<compile_context>
chip_gen: v7x
topology: tpu7x:2x2x1
jax: 0.10.0
libtpu: 0.0.40
codegen_flags: <defaults>
</compile_context>

<pallas_src>
import functools

import jax
import jax.numpy as jnp
from jax.experimental import pallas as pl
from jax.experimental.pallas import tpu as pltpu

BN_EPS = 1e-5
LANES = 128


# ----------------------------- Pallas kernel ------------------------------ #
def _resnet_kernel(x_ref, s_ref, w_ref, b_ref, o_ref, *, num_blocks):
    """Full ChessResNet forward for one batch element, activation in VMEM.

    x_ref : (HW, C_pad)              channel-last, channel-padded input
    s_ref : (9, HW, HW)              per-tap shift/zero-pad operators
    w_ref : (L, 9, C_pad, C_pad)     BN-scale-folded, zero-padded weights
    b_ref : (L, 1, C_pad)            folded BN bias per layer
    o_ref : (HW, C_pad)
    """

    def conv_bn(act, layer, relu, residual=None):
        acc = None
        for k in range(9):                                      # 3x3 taps
            # g[m, ci] = act[neighbour_k(m), ci]  (zero outside the board)
            g = jnp.dot(s_ref[k, :, :], act,
                        preferred_element_type=jnp.float32)
            t = jnp.dot(g, w_ref[layer, k, :, :],
                        preferred_element_type=jnp.float32)
            acc = t if acc is None else acc + t
        out = acc + b_ref[layer, :, :]                          # folded BN bias
        if residual is not None:
            out = out + residual
        if relu:
            out = jnp.maximum(out, 0.0)
        return out

    act = x_ref[...]
    layer = 0
    act = conv_bn(act, layer, relu=True)                        # conv1 + bn1
    layer += 1
    for _ in range(num_blocks):                                 # BasicBlocks
        res = act
        act = conv_bn(act, layer, relu=True)
        layer += 1
        act = conv_bn(act, layer, relu=True, residual=res)
        layer += 1
    act = conv_bn(act, layer, relu=False)                       # conv_last + bn_last
    o_ref[...] = act


# ------------------------------- Host glue --------------------------------- #
def _round_up(v, m):
    return -(-v // m) * m


def _fold_layer(w_hwio, bn, c_pad):
    """Fold BN scale into the conv weight; zero-pad channels to c_pad."""
    gamma, beta, mean, var = bn
    scale = gamma / jnp.sqrt(var + BN_EPS)
    bias = beta - mean * scale
    cin, cout = w_hwio.shape[2], w_hwio.shape[3]
    w = (w_hwio * scale).reshape(9, cin, cout)                  # (tap, cin, cout)
    w = jnp.pad(w, ((0, 0), (0, c_pad - cin), (0, c_pad - cout)))
    b = jnp.pad(bias, (0, c_pad - cout)).reshape(1, c_pad)
    return w.astype(jnp.float32), b.astype(jnp.float32)


def _fuse_params(params, c_pad):
    layers = [(params["conv1_w"], params["bn1"])]
    for blk in params["blocks"]:
        layers.append((blk["conv1_w"], blk["bn1"]))
        layers.append((blk["conv2_w"], blk["bn2"]))
    layers.append((params["conv_last_w"], params["bn_last"]))
    ws, bs = zip(*[_fold_layer(w, bn, c_pad) for w, bn in layers])
    return jnp.stack(ws), jnp.stack(bs)      # (L,9,c_pad,c_pad), (L,1,c_pad)


def _shift_matrices(h, w):
    """S[k, m, j] = 1 iff pixel j is the k-th 3x3 neighbour of pixel m (pad=1).

    Static in h,w -> constant-folded by XLA under jit."""
    hw = h * w
    m = jnp.arange(hw)
    y, x = m // w, m % w
    mats = []
    for dy in range(3):
        for dx in range(3):
            sy, sx = y + dy - 1, x + dx - 1
            valid = (sy >= 0) & (sy < h) & (sx >= 0) & (sx < w)
            src = jnp.clip(sy, 0, h - 1) * w + jnp.clip(sx, 0, w - 1)
            one_hot = (jnp.arange(hw)[None, :] == src[:, None]) & valid[:, None]
            mats.append(one_hot.astype(jnp.float32))
    return jnp.stack(mats)                                       # (9, hw, hw)


def chess_resnet_forward(x_nchw, params):
    n, cin, h, w = x_nchw.shape
    hw = h * w
    num_blocks = len(params["blocks"])
    dim_cnn = params["conv1_w"].shape[-1]
    cout_last = params["conv_last_w"].shape[-1]
    c_pad = _round_up(max(cin, dim_cnn, cout_last, LANES), LANES)

    w_all, b_all = _fuse_params(params, c_pad)                   # tiny, folded BN
    s_mats = _shift_matrices(h, w)                               # compile-time const
    num_layers = w_all.shape[0]

    # NCHW -> (N, H*W, C) channel-last, zero-padded to the lane width.
    x = jnp.transpose(x_nchw, (0, 2, 3, 1)).reshape(n, hw, cin).astype(jnp.float32)
    x = jnp.pad(x, ((0, 0), (0, 0), (0, c_pad - cin)))

    kernel = functools.partial(_resnet_kernel, num_blocks=num_blocks)
    out = pl.pallas_call(
        kernel,
        out_shape=jax.ShapeDtypeStruct((n, hw, c_pad), jnp.float32),
        grid=(n,),
        in_specs=[
            pl.BlockSpec((None, hw, c_pad), lambda b: (b, 0, 0)),               # x
            pl.BlockSpec((9, hw, hw), lambda b: (0, 0, 0)),                     # S
            pl.BlockSpec((num_layers, 9, c_pad, c_pad),
                         lambda b: (0, 0, 0, 0)),                               # W
            pl.BlockSpec((num_layers, 1, c_pad), lambda b: (0, 0, 0)),          # bias
        ],
        out_specs=pl.BlockSpec((None, hw, c_pad), lambda b: (b, 0, 0)),
        compiler_params=pltpu.CompilerParams(
            dimension_semantics=("parallel",),
            vmem_limit_bytes=32 * 1024 * 1024,
        ),
    )(x, s_mats, w_all, b_all)

    out = out[:, :, :cout_last].reshape(n, h, w, cout_last)
    return jnp.transpose(out, (0, 3, 1, 2))                      # NHWC -> NCHW


# ------------------------------ Parameters -------------------------------- #
def _conv_w(key, cin, cout):
    fan_in = 9 * cin
    return jax.random.normal(key, (3, 3, cin, cout), jnp.float32) * (2.0 / fan_in) ** 0.5


def _bn(key, c):
    k1, k2, k3, k4 = jax.random.split(key, 4)
    gamma = 1.0 + 0.1 * jax.random.normal(k1, (c,), jnp.float32)
    beta = 0.1 * jax.random.normal(k2, (c,), jnp.float32)
    mean = 0.1 * jax.random.normal(k3, (c,), jnp.float32)
    var = 1.0 + 0.1 * jax.random.uniform(k4, (c,), jnp.float32)
    return (gamma, beta, mean, var)


def init_params(key, cfg):
    n_keys = 4 + 4 * cfg["num_blocks_cnn"]
    keys = list(jax.random.split(key, n_keys))
    params = {
        "conv1_w": _conv_w(keys.pop(), cfg["input_channels"], cfg["dim_cnn"]),
        "bn1": _bn(keys.pop(), cfg["dim_cnn"]),
        "blocks": [],
        "conv_last_w": _conv_w(keys.pop(), cfg["dim_cnn"], cfg["vit_length"]),
        "bn_last": _bn(keys.pop(), cfg["vit_length"]),
    }
    for _ in range(cfg["num_blocks_cnn"]):
        params["blocks"].append({
            "conv1_w": _conv_w(keys.pop(), cfg["dim_cnn"], cfg["dim_cnn"]),
            "bn1": _bn(keys.pop(), cfg["dim_cnn"]),
            "conv2_w": _conv_w(keys.pop(), cfg["dim_cnn"], cfg["dim_cnn"]),
            "bn2": _bn(keys.pop(), cfg["dim_cnn"]),
        })
    return params


# -------------------------- Pure-JAX reference ------------------------------ #
def _ref_conv_bn(x, w, bn, relu, residual=None):
    y = jax.lax.conv_general_dilated(
        x, w, window_strides=(1, 1), padding="SAME",
        dimension_numbers=("NHWC", "HWIO", "NHWC"),
        precision=jax.lax.Precision.HIGHEST)
    gamma, beta, mean, var = bn
    y = (y - mean) * (gamma / jnp.sqrt(var + BN_EPS)) + beta
    if residual is not None:
        y = y + residual
    if relu:
        y = jnp.maximum(y, 0.0)
    return y


def chess_resnet_reference(x_nchw, params):
    x = jnp.transpose(x_nchw, (0, 2, 3, 1))
    out = _ref_conv_bn(x, params["conv1_w"], params["bn1"], True)
    for blk in params["blocks"]:
        h = _ref_conv_bn(out, blk["conv1_w"], blk["bn1"], True)
        out = _ref_conv_bn(h, blk["conv2_w"], blk["bn2"], True, residual=out)
    out = _ref_conv_bn(out, params["conv_last_w"], params["bn_last"], False)
    return jnp.transpose(out, (0, 3, 1, 2))


# ---------------------------------- Main ----------------------------------- #
if __name__ == "__main__":
    cfg = dict(input_channels=4, dim_cnn=32, vit_length=8, num_blocks_cnn=2)
    batch, H, W = 2, 8, 8                                        # chess board: 8x8

    key = jax.random.PRNGKey(0)
    k_x, k_p = jax.random.split(key)
    x = jax.random.normal(k_x, (batch, cfg["input_channels"], H, W), jnp.float32)
    params = init_params(k_p, cfg)

    fwd = jax.jit(chess_resnet_forward)
    out = jax.block_until_ready(fwd(x, params))
    assert out.shape == (batch, cfg["vit_length"], H, W), out.shape

    ref = jax.block_until_ready(chess_resnet_reference(x, params))
    assert jnp.all(jnp.isfinite(out))
    max_err = float(jnp.max(jnp.abs(out - ref)))
    assert jnp.allclose(out, ref, atol=2e-2, rtol=2e-2), max_err

    print("KERNEL_OK")
</pallas_src>

<mosaic_0001>
module attributes {stable_mosaic.version = 11 : i64} {
  func.func @_resnet_kernel(%arg0: i32, %arg1: memref<1x64x128xf32, #tpu.memory_space<vmem>>, %arg2: memref<9x64x64xf32, #tpu.memory_space<vmem>>, %arg3: memref<6x9x128x128xf32, #tpu.memory_space<vmem>>, %arg4: memref<6x1x128xf32, #tpu.memory_space<vmem>>, %arg5: memref<1x64x128xf32, #tpu.memory_space<vmem>>) attributes {dimension_semantics = [#tpu.dimension_semantics<parallel>], iteration_bounds = array<i64: 2>, scalar_prefetch = 0 : i64, scratch_operands = 0 : i64, tpu.core_type = #tpu.core_type<tc>, window_params = [{transform_indices = @transform_0, window_bounds = array<i64: 1, 64, 128>}, {pipeline_mode = #tpu.pipeline_mode<synchronous>, transform_indices = @transform_1, window_bounds = array<i64: 9, 64, 64>}, {pipeline_mode = #tpu.pipeline_mode<synchronous>, transform_indices = @transform_2, window_bounds = array<i64: 6, 9, 128, 128>}, {pipeline_mode = #tpu.pipeline_mode<synchronous>, transform_indices = @transform_3, window_bounds = array<i64: 6, 1, 128>}, {transform_indices = @transform_4, window_bounds = array<i64: 1, 64, 128>}]} {
    %c0 = arith.constant 0 : index
    %c0_0 = arith.constant 0 : index
    %c0_1 = arith.constant 0 : index
    %0 = vector.load %arg1[%c0, %c0_0, %c0_1] : memref<1x64x128xf32, #tpu.memory_space<vmem>>, vector<1x64x128xf32>
    %1 = vector.shape_cast %0 : vector<1x64x128xf32> to vector<64x128xf32>
    %c0_2 = arith.constant 0 : index
    %c0_3 = arith.constant 0 : index
    %c0_4 = arith.constant 0 : index
    %2 = vector.load %arg2[%c0_2, %c0_3, %c0_4] : memref<9x64x64xf32, #tpu.memory_space<vmem>>, vector<1x64x64xf32>
    %3 = vector.shape_cast %2 : vector<1x64x64xf32> to vector<64x64xf32>
    %cst = arith.constant dense<0.000000e+00> : vector<64x128xf32>
    %4 = tpu.matmul %3, %1, %cst {dimension_numbers = #tpu.dot_dimension_numbers<[1], [0], [0], [1], [0, 0, 1, 1], [], []>} : vector<64x64xf32>, vector<64x128xf32>, vector<64x128xf32> -> vector<64x128xf32>
    %c0_5 = arith.constant 0 : index
    %c0_6 = arith.constant 0 : index
    %c0_7 = arith.constant 0 : index
    %c0_8 = arith.constant 0 : index
    %5 = vector.load %arg3[%c0_5, %c0_6, %c0_7, %c0_8] : memref<6x9x128x128xf32, #tpu.memory_space<vmem>>, vector<1x1x128x128xf32>
    %6 = vector.shape_cast %5 : vector<1x1x128x128xf32> to vector<128x128xf32>
    %cst_9 = arith.constant dense<0.000000e+00> : vector<64x128xf32>
    %7 = tpu.matmul %4, %6, %cst_9 {dimension_numbers = #tpu.dot_dimension_numbers<[1], [0], [0], [1], [0, 0, 1, 1], [], []>} : vector<64x128xf32>, vector<128x128xf32>, vector<64x128xf32> -> vector<64x128xf32>
    %c1 = arith.constant 1 : index
    %c0_10 = arith.constant 0 : index
    %c0_11 = arith.constant 0 : index
    %8 = vector.load %arg2[%c1, %c0_10, %c0_11] : memref<9x64x64xf32, #tpu.memory_space<vmem>>, vector<1x64x64xf32>
    %9 = vector.shape_cast %8 : vector<1x64x64xf32> to vector<64x64xf32>
    %cst_12 = arith.constant dense<0.000000e+00> : vector<64x128xf32>
    %10 = tpu.matmul %9, %1, %cst_12 {dimension_numbers = #tpu.dot_dimension_numbers<[1], [0], [0], [1], [0, 0, 1, 1], [], []>} : vector<64x64xf32>, vector<64x128xf32>, vector<64x128xf32> -> vector<64x128xf32>
    %c0_13 = arith.constant 0 : index
    %c1_14 = arith.constant 1 : index
    %c0_15 = arith.constant 0 : index
    %c0_16 = arith.constant 0 : index
    %11 = vector.load %arg3[%c0_13, %c1_14, %c0_15, %c0_16] : memref<6x9x128x128xf32, #tpu.memory_space<vmem>>, vector<1x1x128x128xf32>
    %12 = vector.shape_cast %11 : vector<1x1x128x128xf32> to vector<128x128xf32>
    %cst_17 = arith.constant dense<0.000000e+00> : vector<64x128xf32>
    %13 = tpu.matmul %10, %12, %cst_17 {dimension_numbers = #tpu.dot_dimension_numbers<[1], [0], [0], [1], [0, 0, 1, 1], [], []>} : vector<64x128xf32>, vector<128x128xf32>, vector<64x128xf32> -> vector<64x128xf32>
    %14 = arith.addf %7, %13 : vector<64x128xf32>
    %c2 = arith.constant 2 : index
    %c0_18 = arith.constant 0 : index
    %c0_19 = arith.constant 0 : index
    %15 = vector.load %arg2[%c2, %c0_18, %c0_19] : memref<9x64x64xf32, #tpu.memory_space<vmem>>, vector<1x64x64xf32>
    %16 = vector.shape_cast %15 : vector<1x64x64xf32> to vector<64x64xf32>
    %cst_20 = arith.constant dense<0.000000e+00> : vector<64x128xf32>
    %17 = tpu.matmul %16, %1, %cst_20 {dimension_numbers = #tpu.dot_dimension_numbers<[1], [0], [0], [1], [0, 0, 1, 1], [], []>} : vector<64x64xf32>, vector<64x128xf32>, vector<64x128xf32> -> vector<64x128xf32>
    %c0_21 = arith.constant 0 : index
    %c2_22 = arith.constant 2 : index
    %c0_23 = arith.constant 0 : index
    %c0_24 = arith.constant 0 : index
    %18 = vector.load %arg3[%c0_21, %c2_22, %c0_23, %c0_24] : memref<6x9x128x128xf32, #tpu.memory_space<vmem>>, vector<1x1x128x128xf32>
    %19 = vector.shape_cast %18 : vector<1x1x128x128xf32> to vector<128x128xf32>
    %cst_25 = arith.constant dense<0.000000e+00> : vector<64x128xf32>
    %20 = tpu.matmul %17, %19, %cst_25 {dimension_numbers = #tpu.dot_dimension_numbers<[1], [0], [0], [1], [0, 0, 1, 1], [], []>} : vector<64x128xf32>, vector<128x128xf32>, vector<64x128xf32> -> vector<64x128xf32>
    %21 = arith.addf %14, %20 : vector<64x128xf32>
    %c3 = arith.constant 3 : index
    %c0_26 = arith.constant 0 : index
    %c0_27 = arith.constant 0 : index
    %22 = vector.load %arg2[%c3, %c0_26, %c0_27] : memref<9x64x64xf32, #tpu.memory_space<vmem>>, vector<1x64x64xf32>
    %23 = vector.shape_cast %22 : vector<1x64x64xf32> to vector<64x64xf32>
    %cst_28 = arith.constant dense<0.000000e+00> : vector<64x128xf32>
    %24 = tpu.matmul %23, %1, %cst_28 {dimension_numbers = #tpu.dot_dimension_numbers<[1], [0], [0], [1], [0, 0, 1, 1], [], []>} : vector<64x64xf32>, vector<64x128xf32>, vector<64x128xf32> -> vector<64x128xf32>
    %c0_29 = arith.constant 0 : index
    %c3_30 = arith.constant 3 : index
    %c0_31 = arith.constant 0 : index
    %c0_32 = arith.constant 0 : index
    %25 = vector.load %arg3[%c0_29, %c3_30, %c0_31, %c0_32] : memref<6x9x128x128xf32, #tpu.memory_space<vmem>>, vector<1x1x128x128xf32>
    %26 = vector.shape_cast %25 : vector<1x1x128x128xf32> to vector<128x128xf32>
    %cst_33 = arith.constant dense<0.000000e+00> : vector<64x128xf32>
    %27 = tpu.matmul %24, %26, %cst_33 {dimension_numbers = #tpu.dot_dimension_numbers<[1], [0], [0], [1], [0, 0, 1, 1], [], []>} : vector<64x128xf32>, vector<128x128xf32>, vector<64x128xf32> -> vector<64x128xf32>
    %28 = arith.addf %21, %27 : vector<64x128xf32>
    %c4 = arith.constant 4 : index
    %c0_34 = arith.constant 0 : index
    %c0_35 = arith.constant 0 : index
    %29 = vector.load %arg2[%c4, %c0_34, %c0_35] : memref<9x64x64xf32, #tpu.memory_space<vmem>>, vector<1x64x64xf32>
    %30 = vector.shape_cast %29 : vector<1x64x64xf32> to vector<64x64xf32>
    %cst_36 = arith.constant dense<0.000000e+00> : vector<64x128xf32>
    %31 = tpu.matmul %30, %1, %cst_36 {dimension_numbers = #tpu.dot_dimension_numbers<[1], [0], [0], [1], [0, 0, 1, 1], [], []>} : vector<64x64xf32>, vector<64x128xf32>, vector<64x128xf32> -> vector<64x128xf32>
    %c0_37 = arith.constant 0 : index
    %c4_38 = arith.constant 4 : index
    %c0_39 = arith.constant 0 : index
    %c0_40 = arith.constant 0 : index
    %32 = vector.load %arg3[%c0_37, %c4_38, %c0_39, %c0_40] : memref<6x9x128x128xf32, #tpu.memory_space<vmem>>, vector<1x1x128x128xf32>
    %33 = vector.shape_cast %32 : vector<1x1x128x128xf32> to vector<128x128xf32>
    %cst_41 = arith.constant dense<0.000000e+00> : vector<64x128xf32>
    %34 = tpu.matmul %31, %33, %cst_41 {dimension_numbers = #tpu.dot_dimension_numbers<[1], [0], [0], [1], [0, 0, 1, 1], [], []>} : vector<64x128xf32>, vector<128x128xf32>, vector<64x128xf32> -> vector<64x128xf32>
    %35 = arith.addf %28, %34 : vector<64x128xf32>
    %c5 = arith.constant 5 : index
    %c0_42 = arith.constant 0 : index
    %c0_43 = arith.constant 0 : index
    %36 = vector.load %arg2[%c5, %c0_42, %c0_43] : memref<9x64x64xf32, #tpu.memory_space<vmem>>, vector<1x64x64xf32>
    %37 = vector.shape_cast %36 : vector<1x64x64xf32> to vector<64x64xf32>
    %cst_44 = arith.constant dense<0.000000e+00> : vector<64x128xf32>
    %38 = tpu.matmul %37, %1, %cst_44 {dimension_numbers = #tpu.dot_dimension_numbers<[1], [0], [0], [1], [0, 0, 1, 1], [], []>} : vector<64x64xf32>, vector<64x128xf32>, vector<64x128xf32> -> vector<64x128xf32>
    %c0_45 = arith.constant 0 : index
    %c5_46 = arith.constant 5 : index
    %c0_47 = arith.constant 0 : index
    %c0_48 = arith.constant 0 : index
    %39 = vector.load %arg3[%c0_45, %c5_46, %c0_47, %c0_48] : memref<6x9x128x128xf32, #tpu.memory_space<vmem>>, vector<1x1x128x128xf32>
    %40 = vector.shape_cast %39 : vector<1x1x128x128xf32> to vector<128x128xf32>
    %cst_49 = arith.constant dense<0.000000e+00> : vector<64x128xf32>
    %41 = tpu.matmul %38, %40, %cst_49 {dimension_numbers = #tpu.dot_dimension_numbers<[1], [0], [0], [1], [0, 0, 1, 1], [], []>} : vector<64x128xf32>, vector<128x128xf32>, vector<64x128xf32> -> vector<64x128xf32>
    %42 = arith.addf %35, %41 : vector<64x128xf32>
    %c6 = arith.constant 6 : index
    %c0_50 = arith.constant 0 : index
    %c0_51 = arith.constant 0 : index
    %43 = vector.load %arg2[%c6, %c0_50, %c0_51] : memref<9x64x64xf32, #tpu.memory_space<vmem>>, vector<1x64x64xf32>
    %44 = vector.shape_cast %43 : vector<1x64x64xf32> to vector<64x64xf32>
    %cst_52 = arith.constant dense<0.000000e+00> : vector<64x128xf32>
    %45 = tpu.matmul %44, %1, %cst_52 {dimension_numbers = #tpu.dot_dimension_numbers<[1], [0], [0], [1], [0, 0, 1, 1], [], []>} : vector<64x64xf32>, vector<64x128xf32>, vector<64x128xf32> -> vector<64x128xf32>
    %c0_53 = arith.constant 0 : index
    %c6_54 = arith.constant 6 : index
    %c0_55 = arith.constant 0 : index
    %c0_56 = arith.constant 0 : index
    %46 = vector.load %arg3[%c0_53, %c6_54, %c0_55, %c0_56] : memref<6x9x128x128xf32, #tpu.memory_space<vmem>>, vector<1x1x128x128xf32>
    %47 = vector.shape_cast %46 : vector<1x1x128x128xf32> to vector<128x128xf32>
    %cst_57 = arith.constant dense<0.000000e+00> : vector<64x128xf32>
    %48 = tpu.matmul %45, %47, %cst_57 {dimension_numbers = #tpu.dot_dimension_numbers<[1], [0], [0], [1], [0, 0, 1, 1], [], []>} : vector<64x128xf32>, vector<128x128xf32>, vector<64x128xf32> -> vector<64x128xf32>
    %49 = arith.addf %42, %48 : vector<64x128xf32>
    %c7 = arith.constant 7 : index
    %c0_58 = arith.constant 0 : index
    %c0_59 = arith.constant 0 : index
    %50 = vector.load %arg2[%c7, %c0_58, %c0_59] : memref<9x64x64xf32, #tpu.memory_space<vmem>>, vector<1x64x64xf32>
    %51 = vector.shape_cast %50 : vector<1x64x64xf32> to vector<64x64xf32>
    %cst_60 = arith.constant dense<0.000000e+00> : vector<64x128xf32>
    %52 = tpu.matmul %51, %1, %cst_60 {dimension_numbers = #tpu.dot_dimension_numbers<[1], [0], [0], [1], [0, 0, 1, 1], [], []>} : vector<64x64xf32>, vector<64x128xf32>, vector<64x128xf32> -> vector<64x128xf32>
    %c0_61 = arith.constant 0 : index
    %c7_62 = arith.constant 7 : index
    %c0_63 = arith.constant 0 : index
    %c0_64 = arith.constant 0 : index
    %53 = vector.load %arg3[%c0_61, %c7_62, %c0_63, %c0_64] : memref<6x9x128x128xf32, #tpu.memory_space<vmem>>, vector<1x1x128x128xf32>
    %54 = vector.shape_cast %53 : vector<1x1x128x128xf32> to vector<128x128xf32>
    %cst_65 = arith.constant dense<0.000000e+00> : vector<64x128xf32>
    %55 = tpu.matmul %52, %54, %cst_65 {dimension_numbers = #tpu.dot_dimension_numbers<[1], [0], [0], [1], [0, 0, 1, 1], [], []>} : vector<64x128xf32>, vector<128x128xf32>, vector<64x128xf32> -> vector<64x128xf32>
    %56 = arith.addf %49, %55 : vector<64x128xf32>
    %c8 = arith.constant 8 : index
    %c0_66 = arith.constant 0 : index
    %c0_67 = arith.constant 0 : index
    %57 = vector.load %arg2[%c8, %c0_66, %c0_67] : memref<9x64x64xf32, #tpu.memory_space<vmem>>, vector<1x64x64xf32>
    %58 = vector.shape_cast %57 : vector<1x64x64xf32> to vector<64x64xf32>
    %cst_68 = arith.constant dense<0.000000e+00> : vector<64x128xf32>
    %59 = tpu.matmul %58, %1, %cst_68 {dimension_numbers = #tpu.dot_dimension_numbers<[1], [0], [0], [1], [0, 0, 1, 1], [], []>} : vector<64x64xf32>, vector<64x128xf32>, vector<64x128xf32> -> vector<64x128xf32>
    %c0_69 = arith.constant 0 : index
    %c8_70 = arith.constant 8 : index
    %c0_71 = arith.constant 0 : index
    %c0_72 = arith.constant 0 : index
    %60 = vector.load %arg3[%c0_69, %c8_70, %c0_71, %c0_72] : memref<6x9x128x128xf32, #tpu.memory_space<vmem>>, vector<1x1x128x128xf32>
    %61 = vector.shape_cast %60 : vector<1x1x128x128xf32> to vector<128x128xf32>
    %cst_73 = arith.constant dense<0.000000e+00> : vector<64x128xf32>
    %62 = tpu.matmul %59, %61, %cst_73 {dimension_numbers = #tpu.dot_dimension_numbers<[1], [0], [0], [1], [0, 0, 1, 1], [], []>} : vector<64x128xf32>, vector<128x128xf32>, vector<64x128xf32> -> vector<64x128xf32>
    %63 = arith.addf %56, %62 : vector<64x128xf32>
    %c0_74 = arith.constant 0 : index
    %c0_75 = arith.constant 0 : index
    %c0_76 = arith.constant 0 : index
    %64 = vector.load %arg4[%c0_74, %c0_75, %c0_76] : memref<6x1x128xf32, #tpu.memory_space<vmem>>, vector<1x1x128xf32>
    %65 = vector.shape_cast %64 : vector<1x1x128xf32> to vector<1x128xf32>
    %66 = vector.broadcast %65 : vector<1x128xf32> to vector<64x128xf32>
    %67 = arith.addf %63, %66 : vector<64x128xf32>
    %cst_77 = arith.constant 0.000000e+00 : f32
    %68 = vector.broadcast %cst_77 : f32 to vector<64x128xf32>
    %69 = arith.maximumf %67, %68 : vector<64x128xf32>
    %c0_78 = arith.constant 0 : index
    %c0_79 = arith.constant 0 : index
    %c0_80 = arith.constant 0 : index
    %70 = vector.load %arg2[%c0_78, %c0_79, %c0_80] : memref<9x64x64xf32, #tpu.memory_space<vmem>>, vector<1x64x64xf32>
    %71 = vector.shape_cast %70 : vector<1x64x64xf32> to vector<64x64xf32>
    %cst_81 = arith.constant dense<0.000000e+00> : vector<64x128xf32>
    %72 = tpu.matmul %71, %69, %cst_81 {dimension_numbers = #tpu.dot_dimension_numbers<[1], [0], [0], [1], [0, 0, 1, 1], [], []>} : vector<64x64xf32>, vector<64x128xf32>, vector<64x128xf32> -> vector<64x128xf32>
    %c1_82 = arith.constant 1 : index
    %c0_83 = arith.constant 0 : index
    %c0_84 = arith.constant 0 : index
    %c0_85 = arith.constant 0 : index
    %73 = vector.load %arg3[%c1_82, %c0_83, %c0_84, %c0_85] : memref<6x9x128x128xf32, #tpu.memory_space<vmem>>, vector<1x1x128x128xf32>
    %74 = vector.shape_cast %73 : vector<1x1x128x128xf32> to vector<128x128xf32>
    %cst_86 = arith.constant dense<0.000000e+00> : vector<64x128xf32>
    %75 = tpu.matmul %72, %74, %cst_86 {dimension_numbers = #tpu.dot_dimension_numbers<[1], [0], [0], [1], [0, 0, 1, 1], [], []>} : vector<64x128xf32>, vector<128x128xf32>, vector<64x128xf32> -> vector<64x128xf32>
    %c1_87 = arith.constant 1 : index
    %c0_88 = arith.constant 0 : index
    %c0_89 = arith.constant 0 : index
    %76 = vector.load %arg2[%c1_87, %c0_88, %c0_89] : memref<9x64x64xf32, #tpu.memory_space<vmem>>, vector<1x64x64xf32>
    %77 = vector.shape_cast %76 : vector<1x64x64xf32> to vector<64x64xf32>
    %cst_90 = arith.constant dense<0.000000e+00> : vector<64x128xf32>
    %78 = tpu.matmul %77, %69, %cst_90 {dimension_numbers = #tpu.dot_dimension_numbers<[1], [0], [0], [1], [0, 0, 1, 1], [], []>} : vector<64x64xf32>, vector<64x128xf32>, vector<64x128xf32> -> vector<64x128xf32>
    %c1_91 = arith.constant 1 : index
    %c1_92 = arith.constant 1 : index
    %c0_93 = arith.constant 0 : index
    %c0_94 = arith.constant 0 : index
    %79 = vector.load %arg3[%c1_91, %c1_92, %c0_93, %c0_94] : memref<6x9x128x128xf32, #tpu.memory_space<vmem>>, vector<1x1x128x128xf32>
    %80 = vector.shape_cast %79 : vector<1x1x128x128xf32> to vector<128x128xf32>
    %cst_95 = arith.constant dense<0.000000e+00> : vector<64x128xf32>
    %81 = tpu.matmul %78, %80, %cst_95 {dimension_numbers = #tpu.dot_dimension_numbers<[1], [0], [0], [1], [0, 0, 1, 1], [], []>} : vector<64x128xf32>, vector<128x128xf32>, vector<64x128xf32> -> vector<64x128xf32>
    %82 = arith.addf %75, %81 : vector<64x128xf32>
    %c2_96 = arith.constant 2 : index
    %c0_97 = arith.constant 0 : index
    %c0_98 = arith.constant 0 : index
    %83 = vector.load %arg2[%c2_96, %c0_97, %c0_98] : memref<9x64x64xf32, #tpu.memory_space<vmem>>, vector<1x64x64xf32>
    %84 = vector.shape_cast %83 : vector<1x64x64xf32> to vector<64x64xf32>
    %cst_99 = arith.constant dense<0.000000e+00> : vector<64x128xf32>
    %85 = tpu.matmul %84, %69, %cst_99 {dimension_numbers = #tpu.dot_dimension_numbers<[1], [0], [0], [1], [0, 0, 1, 1], [], []>} : vector<64x64xf32>, vector<64x128xf32>, vector<64x128xf32> -> vector<64x128xf32>
    %c1_100 = arith.constant 1 : index
    %c2_101 = arith.constant 2 : index
    %c0_102 = arith.constant 0 : index
    %c0_103 = arith.constant 0 : index
    %86 = vector.load %arg3[%c1_100, %c2_101, %c0_102, %c0_103] : memref<6x9x128x128xf32, #tpu.memory_space<vmem>>, vector<1x1x128x128xf32>
    %87 = vector.shape_cast %86 : vector<1x1x128x128xf32> to vector<128x128xf32>
    %cst_104 = arith.constant dense<0.000000e+00> : vector<64x128xf32>
    %88 = tpu.matmul %85, %87, %cst_104 {dimension_numbers = #tpu.dot_dimension_numbers<[1], [0], [0], [1], [0, 0, 1, 1], [], []>} : vector<64x128xf32>, vector<128x128xf32>, vector<64x128xf32> -> vector<64x128xf32>
    %89 = arith.addf %82, %88 : vector<64x128xf32>
    %c3_105 = arith.constant 3 : index
    %c0_106 = arith.constant 0 : index
    %c0_107 = arith.constant 0 : index
    %90 = vector.load %arg2[%c3_105, %c0_106, %c0_107] : memref<9x64x64xf32, #tpu.memory_space<vmem>>, vector<1x64x64xf32>
    %91 = vector.shape_cast %90 : vector<1x64x64xf32> to vector<64x64xf32>
    %cst_108 = arith.constant dense<0.000000e+00> : vector<64x128xf32>
    %92 = tpu.matmul %91, %69, %cst_108 {dimension_numbers = #tpu.dot_dimension_numbers<[1], [0], [0], [1], [0, 0, 1, 1], [], []>} : vector<64x64xf32>, vector<64x128xf32>, vector<64x128xf32> -> vector<64x128xf32>
    %c1_109 = arith.constant 1 : index
    %c3_110 = arith.constant 3 : index
    %c0_111 = arith.constant 0 : index
    %c0_112 = arith.constant 0 : index
    %93 = vector.load %arg3[%c1_109, %c3_110, %c0_111, %c0_112] : memref<6x9x128x128xf32, #tpu.memory_space<vmem>>, vector<1x1x128x128xf32>
    %94 = vector.shape_cast %93 : vector<1x1x128x128xf32> to vector<128x128xf32>
    %cst_113 = arith.constant dense<0.000000e+00> : vector<64x128xf32>
    %95 = tpu.matmul %92, %94, %cst_113 {dimension_numbers = #tpu.dot_dimension_numbers<[1], [0], [0], [1], [0, 0, 1, 1], [], []>} : vector<64x128xf32>, vector<128x128xf32>, vector<64x128xf32> -> vector<64x128xf32>
    %96 = arith.addf %89, %95 : vector<64x128xf32>
    %c4_114 = arith.constant 4 : index
    %c0_115 = arith.constant 0 : index
    %c0_116 = arith.constant 0 : index
    %97 = vector.load %arg2[%c4_114, %c0_115, %c0_116] : memref<9x64x64xf32, #tpu.memory_space<vmem>>, vector<1x64x64xf32>
    %98 = vector.shape_cast %97 : vector<1x64x64xf32> to vector<64x64xf32>
    %cst_117 = arith.constant dense<0.000000e+00> : vector<64x128xf32>
    %99 = tpu.matmul %98, %69, %cst_117 {dimension_numbers = #tpu.dot_dimension_numbers<[1], [0], [0], [1], [0, 0, 1, 1], [], []>} : vector<64x64xf32>, vector<64x128xf32>, vector<64x128xf32> -> vector<64x128xf32>
    %c1_118 = arith.constant 1 : index
    %c4_119 = arith.constant 4 : index
    %c0_120 = arith.constant 0 : index
    %c0_121 = arith.constant 0 : index
    %100 = vector.load %arg3[%c1_118, %c4_119, %c0_120, %c0_121] : memref<6x9x128x128xf32, #tpu.memory_space<vmem>>, vector<1x1x128x128xf32>
    %101 = vector.shape_cast %100 : vector<1x1x128x128xf32> to vector<128x128xf32>
    %cst_122 = arith.constant dense<0.000000e+00> : vector<64x128xf32>
    %102 = tpu.matmul %99, %101, %cst_122 {dimension_numbers = #tpu.dot_dimension_numbers<[1], [0], [0], [1], [0, 0, 1, 1], [], []>} : vector<64x128xf32>, vector<128x128xf32>, vector<64x128xf32> -> vector<64x128xf32>
    %103 = arith.addf %96, %102 : vector<64x128xf32>
    %c5_123 = arith.constant 5 : index
    %c0_124 = arith.constant 0 : index
    %c0_125 = arith.constant 0 : index
    %104 = vector.load %arg2[%c5_123, %c0_124, %c0_125] : memref<9x64x64xf32, #tpu.memory_space<vmem>>, vector<1x64x64xf32>
    %105 = vector.shape_cast %104 : vector<1x64x64xf32> to vector<64x64xf32>
    %cst_126 = arith.constant dense<0.000000e+00> : vector<64x128xf32>
    %106 = tpu.matmul %105, %69, %cst_126 {dimension_numbers = #tpu.dot_dimension_numbers<[1], [0], [0], [1], [0, 0, 1, 1], [], []>} : vector<64x64xf32>, vector<64x128xf32>, vector<64x128xf32> -> vector<64x128xf32>
    %c1_127 = arith.constant 1 : index
    %c5_128 = arith.constant 5 : index
    %c0_129 = arith.constant 0 : index
    %c0_130 = arith.constant 0 : index
    %107 = vector.load %arg3[%c1_127, %c5_128, %c0_129, %c0_130] : memref<6x9x128x128xf32, #tpu.memory_space<vmem>>, vector<1x1x128x128xf32>
    %108 = vector.shape_cast %107 : vector<1x1x128x128xf32> to vector<128x128xf32>
    %cst_131 = arith.constant dense<0.000000e+00> : vector<64x128xf32>
    %109 = tpu.matmul %106, %108, %cst_131 {dimension_numbers = #tpu.dot_dimension_numbers<[1], [0], [0], [1], [0, 0, 1, 1], [], []>} : vector<64x128xf32>, vector<128x128xf32>, vector<64x128xf32> -> vector<64x128xf32>
    %110 = arith.addf %103, %109 : vector<64x128xf32>
    %c6_132 = arith.constant 6 : index
    %c0_133 = arith.constant 0 : index
    %c0_134 = arith.constant 0 : index
    %111 = vector.load %arg2[%c6_132, %c0_133, %c0_134] : memref<9x64x64xf32, #tpu.memory_space<vmem>>, vector<1x64x64xf32>
    %112 = vector.shape_cast %111 : vector<1x64x64xf32> to vector<64x64xf32>
    %cst_135 = arith.constant dense<0.000000e+00> : vector<64x128xf32>
    %113 = tpu.matmul %112, %69, %cst_135 {dimension_numbers = #tpu.dot_dimension_numbers<[1], [0], [0], [1], [0, 0, 1, 1], [], []>} : vector<64x64xf32>, vector<64x128xf32>, vector<64x128xf32> -> vector<64x128xf32>
    %c1_136 = arith.constant 1 : index
    %c6_137 = arith.constant 6 : index
    %c0_138 = arith.constant 0 : index
    %c0_139 = arith.constant 0 : index
    %114 = vector.load %arg3[%c1_136, %c6_137, %c0_138, %c0_139] : memref<6x9x128x128xf32, #tpu.memory_space<vmem>>, vector<1x1x128x128xf32>
    %115 = vector.shape_cast %114 : vector<1x1x128x128xf32> to vector<128x128xf32>
    %cst_140 = arith.constant dense<0.000000e+00> : vector<64x128xf32>
    %116 = tpu.matmul %113, %115, %cst_140 {dimension_numbers = #tpu.dot_dimension_numbers<[1], [0], [0], [1], [0, 0, 1, 1], [], []>} : vector<64x128xf32>, vector<128x128xf32>, vector<64x128xf32> -> vector<64x128xf32>
    %117 = arith.addf %110, %116 : vector<64x128xf32>
    %c7_141 = arith.constant 7 : index
    %c0_142 = arith.constant 0 : index
    %c0_143 = arith.constant 0 : index
    %118 = vector.load %arg2[%c7_141, %c0_142, %c0_143] : memref<9x64x64xf32, #tpu.memory_space<vmem>>, vector<1x64x64xf32>
    %119 = vector.shape_cast %118 : vector<1x64x64xf32> to vector<64x64xf32>
    %cst_144 = arith.constant dense<0.000000e+00> : vector<64x128xf32>
    %120 = tpu.matmul %119, %69, %cst_144 {dimension_numbers = #tpu.dot_dimension_numbers<[1], [0], [0], [1], [0, 0, 1, 1], [], []>} : vector<64x64xf32>, vector<64x128xf32>, vector<64x128xf32> -> vector<64x128xf32>
    %c1_145 = arith.constant 1 : index
    %c7_146 = arith.constant 7 : index
    %c0_147 = arith.constant 0 : index
    %c0_148 = arith.constant 0 : index
    %121 = vector.load %arg3[%c1_145, %c7_146, %c0_147, %c0_148] : memref<6x9x128x128xf32, #tpu.memory_space<vmem>>, vector<1x1x128x128xf32>
    %122 = vector.shape_cast %121 : vector<1x1x128x128xf32> to vector<128x128xf32>
    %cst_149 = arith.constant dense<0.000000e+00> : vector<64x128xf32>
    %123 = tpu.matmul %120, %122, %cst_149 {dimension_numbers = #tpu.dot_dimension_numbers<[1], [0], [0], [1], [0, 0, 1, 1], [], []>} : vector<64x128xf32>, vector<128x128xf32>, vector<64x128xf32> -> vector<64x128xf32>
    %124 = arith.addf %117, %123 : vector<64x128xf32>
    %c8_150 = arith.constant 8 : index
    %c0_151 = arith.constant 0 : index
    %c0_152 = arith.constant 0 : index
    %125 = vector.load %arg2[%c8_150, %c0_151, %c0_152] : memref<9x64x64xf32, #tpu.memory_space<vmem>>, vector<1x64x64xf32>
    %126 = vector.shape_cast %125 : vector<1x64x64xf32> to vector<64x64xf32>
    %cst_153 = arith.constant dense<0.000000e+00> : vector<64x128xf32>
    %127 = tpu.matmul %126, %69, %cst_153 {dimension_numbers = #tpu.dot_dimension_numbers<[1], [0], [0], [1], [0, 0, 1, 1], [], []>} : vector<64x64xf32>, vector<64x128xf32>, vector<64x128xf32> -> vector<64x128xf32>
    %c1_154 = arith.constant 1 : index
    %c8_155 = arith.constant 8 : index
    %c0_156 = arith.constant 0 : index
    %c0_157 = arith.constant 0 : index
    %128 = vector.load %arg3[%c1_154, %c8_155, %c0_156, %c0_157] : memref<6x9x128x128xf32, #tpu.memory_space<vmem>>, vector<1x1x128x128xf32>
    %129 = vector.shape_cast %128 : vector<1x1x128x128xf32> to vector<128x128xf32>
    %cst_158 = arith.constant dense<0.000000e+00> : vector<64x128xf32>
    %130 = tpu.matmul %127, %129, %cst_158 {dimension_numbers = #tpu.dot_dimension_numbers<[1], [0], [0], [1], [0, 0, 1, 1], [], []>} : vector<64x128xf32>, vector<128x128xf32>, vector<64x128xf32> -> vector<64x128xf32>
    %131 = arith.addf %124, %130 : vector<64x128xf32>
    %c1_159 = arith.constant 1 : index
    %c0_160 = arith.constant 0 : index
    %c0_161 = arith.constant 0 : index
    %132 = vector.load %arg4[%c1_159, %c0_160, %c0_161] : memref<6x1x128xf32, #tpu.memory_space<vmem>>, vector<1x1x128xf32>
    %133 = vector.shape_cast %132 : vector<1x1x128xf32> to vector<1x128xf32>
    %134 = vector.broadcast %133 : vector<1x128xf32> to vector<64x128xf32>
    %135 = arith.addf %131, %134 : vector<64x128xf32>
    %cst_162 = arith.constant 0.000000e+00 : f32
    %136 = vector.broadcast %cst_162 : f32 to vector<64x128xf32>
    %137 = arith.maximumf %135, %136 : vector<64x128xf32>
    %c0_163 = arith.constant 0 : index
    %c0_164 = arith.constant 0 : index
    %c0_165 = arith.constant 0 : index
    %138 = vector.load %arg2[%c0_163, %c0_164, %c0_165] : memref<9x64x64xf32, #tpu.memory_space<vmem>>, vector<1x64x64xf32>
    %139 = vector.shape_cast %138 : vector<1x64x64xf32> to vector<64x64xf32>
    %cst_166 = arith.constant dense<0.000000e+00> : vector<64x128xf32>
    %140 = tpu.matmul %139, %137, %cst_166 {dimension_numbers = #tpu.dot_dimension_numbers<[1], [0], [0], [1], [0, 0, 1, 1], [], []>} : vector<64x64xf32>, vector<64x128xf32>, vector<64x128xf32> -> vector<64x128xf32>
    %c2_167 = arith.constant 2 : index
    %c0_168 = arith.constant 0 : index
    %c0_169 = arith.constant 0 : index
    %c0_170 = arith.constant 0 : index
    %141 = vector.load %arg3[%c2_167, %c0_168, %c0_169, %c0_170] : memref<6x9x128x128xf32, #tpu.memory_space<vmem>>, vector<1x1x128x128xf32>
    %142 = vector.shape_cast %141 : vector<1x1x128x128xf32> to vector<128x128xf32>
    %cst_171 = arith.constant dense<0.000000e+00> : vector<64x128xf32>
    %143 = tpu.matmul %140, %142, %cst_171 {dimension_numbers = #tpu.dot_dimension_numbers<[1], [0], [0], [1], [0, 0, 1, 1], [], []>} : vector<64x128xf32>, vector<128x128xf32>, vector<64x128xf32> -> vector<64x128xf32>
    %c1_172 = arith.constant 1 : index
    %c0_173 = arith.constant 0 : index
    %c0_174 = arith.constant 0 : index
    %144 = vector.load %arg2[%c1_172, %c0_173, %c0_174] : memref<9x64x64xf32, #tpu.memory_space<vmem>>, vector<1x64x64xf32>
    %145 = vector.shape_cast %144 : vector<1x64x64xf32> to vector<64x64xf32>
    %cst_175 = arith.constant dense<0.000000e+00> : vector<64x128xf32>
    %146 = tpu.matmul %145, %137, %cst_175 {dimension_numbers = #tpu.dot_dimension_numbers<[1], [0], [0], [1], [0, 0, 1, 1], [], []>} : vector<64x64xf32>, vector<64x128xf32>, vector<64x128xf32> -> vector<64x128xf32>
    %c2_176 = arith.constant 2 : index
    %c1_177 = arith.constant 1 : index
    %c0_178 = arith.constant 0 : index
    %c0_179 = arith.constant 0 : index
    %147 = vector.load %arg3[%c2_176, %c1_177, %c0_178, %c0_179] : memref<6x9x128x128xf32, #tpu.memory_space<vmem>>, vector<1x1x128x128xf32>
    %148 = vector.shape_cast %147 : vector<1x1x128x128xf32> to vector<128x128xf32>
    %cst_180 = arith.constant dense<0.000000e+00> : vector<64x128xf32>
    %149 = tpu.matmul %146, %148, %cst_180 {dimension_numbers = #tpu.dot_dimension_numbers<[1], [0], [0], [1], [0, 0, 1, 1], [], []>} : vector<64x128xf32>, vector<128x128xf32>, vector<64x128xf32> -> vector<64x128xf32>
    %150 = arith.addf %143, %149 : vector<64x128xf32>
    %c2_181 = arith.constant 2 : index
    %c0_182 = arith.constant 0 : index
    %c0_183 = arith.constant 0 : index
    %151 = vector.load %arg2[%c2_181, %c0_182, %c0_183] : memref<9x64x64xf32, #tpu.memory_space<vmem>>, vector<1x64x64xf32>
    %152 = vector.shape_cast %151 : vector<1x64x64xf32> to vector<64x64xf32>
    %cst_184 = arith.constant dense<0.000000e+00> : vector<64x128xf32>
    %153 = tpu.matmul %152, %137, %cst_184 {dimension_numbers = #tpu.dot_dimension_numbers<[1], [0], [0], [1], [0, 0, 1, 1], [], []>} : vector<64x64xf32>, vector<64x128xf32>, vector<64x128xf32> -> vector<64x128xf32>
    %c2_185 = arith.constant 2 : index
    %c2_186 = arith.constant 2 : index
    %c0_187 = arith.constant 0 : index
    %c0_188 = arith.constant 0 : index
    %154 = vector.load %arg3[%c2_185, %c2_186, %c0_187, %c0_188] : memref<6x9x128x128xf32, #tpu.memory_space<vmem>>, vector<1x1x128x128xf32>
    %155 = vector.shape_cast %154 : vector<1x1x128x128xf32> to vector<128x128xf32>
    %cst_189 = arith.constant dense<0.000000e+00> : vector<64x128xf32>
    %156 = tpu.matmul %153, %155, %cst_189 {dimension_numbers = #tpu.dot_dimension_numbers<[1], [0], [0], [1], [0, 0, 1, 1], [], []>} : vector<64x128xf32>, vector<128x128xf32>, vector<64x128xf32> -> vector<64x128xf32>
    %157 = arith.addf %150, %156 : vector<64x128xf32>
    %c3_190 = arith.constant 3 : index
    %c0_191 = arith.constant 0 : index
    %c0_192 = arith.constant 0 : index
    %158 = vector.load %arg2[%c3_190, %c0_191, %c0_192] : memref<9x64x64xf32, #tpu.memory_space<vmem>>, vector<1x64x64xf32>
    %159 = vector.shape_cast %158 : vector<1x64x64xf32> to vector<64x64xf32>
    %cst_193 = arith.constant dense<0.000000e+00> : vector<64x128xf32>
    %160 = tpu.matmul %159, %137, %cst_193 {dimension_numbers = #tpu.dot_dimension_numbers<[1], [0], [0], [1], [0, 0, 1, 1], [], []>} : vector<64x64xf32>, vector<64x128xf32>, vector<64x128xf32> -> vector<64x128xf32>
    %c2_194 = arith.constant 2 : index
    %c3_195 = arith.constant 3 : index
    %c0_196 = arith.constant 0 : index
    %c0_197 = arith.constant 0 : index
    %161 = vector.load %arg3[%c2_194, %c3_195, %c0_196, %c0_197] : memref<6x9x128x128xf32, #tpu.memory_space<vmem>>, vector<1x1x128x128xf32>
    %162 = vector.shape_cast %161 : vector<1x1x128x128xf32> to vector<128x128xf32>
    %cst_198 = arith.constant dense<0.000000e+00> : vector<64x128xf32>
    %163 = tpu.matmul %160, %162, %cst_198 {dimension_numbers = #tpu.dot_dimension_numbers<[1], [0], [0], [1], [0, 0, 1, 1], [], []>} : vector<64x128xf32>, vector<128x128xf32>, vector<64x128xf32> -> vector<64x128xf32>
    %164 = arith.addf %157, %163 : vector<64x128xf32>
    %c4_199 = arith.constant 4 : index
    %c0_200 = arith.constant 0 : index
    %c0_201 = arith.constant 0 : index
    %165 = vector.load %arg2[%c4_199, %c0_200, %c0_201] : memref<9x64x64xf32, #tpu.memory_space<vmem>>, vector<1x64x64xf32>
    %166 = vector.shape_cast %165 : vector<1x64x64xf32> to vector<64x64xf32>
    %cst_202 = arith.constant dense<0.000000e+00> : vector<64x128xf32>
    %167 = tpu.matmul %166, %137, %cst_202 {dimension_numbers = #tpu.dot_dimension_numbers<[1], [0], [0], [1], [0, 0, 1, 1], [], []>} : vector<64x64xf32>, vector<64x128xf32>, vector<64x128xf32> -> vector<64x128xf32>
    %c2_203 = arith.constant 2 : index
    %c4_204 = arith.constant 4 : index
    %c0_205 = arith.constant 0 : index
    %c0_206 = arith.constant 0 : index
    %168 = vector.load %arg3[%c2_203, %c4_204, %c0_205, %c0_206] : memref<6x9x128x128xf32, #tpu.memory_space<vmem>>, vector<1x1x128x128xf32>
    %169 = vector.shape_cast %168 : vector<1x1x128x128xf32> to vector<128x128xf32>
    %cst_207 = arith.constant dense<0.000000e+00> : vector<64x128xf32>
    %170 = tpu.matmul %167, %169, %cst_207 {dimension_numbers = #tpu.dot_dimension_numbers<[1], [0], [0], [1], [0, 0, 1, 1], [], []>} : vector<64x128xf32>, vector<128x128xf32>, vector<64x128xf32> -> vector<64x128xf32>
    %171 = arith.addf %164, %170 : vector<64x128xf32>
    %c5_208 = arith.constant 5 : index
    %c0_209 = arith.constant 0 : index
    %c0_210 = arith.constant 0 : index
    %172 = vector.load %arg2[%c5_208, %c0_209, %c0_210] : memref<9x64x64xf32, #tpu.memory_space<vmem>>, vector<1x64x64xf32>
    %173 = vector.shape_cast %172 : vector<1x64x64xf32> to vector<64x64xf32>
    %cst_211 = arith.constant dense<0.000000e+00> : vector<64x128xf32>
    %174 = tpu.matmul %173, %137, %cst_211 {dimension_numbers = #tpu.dot_dimension_numbers<[1], [0], [0], [1], [0, 0, 1, 1], [], []>} : vector<64x64xf32>, vector<64x128xf32>, vector<64x128xf32> -> vector<64x128xf32>
    %c2_212 = arith.constant 2 : index
    %c5_213 = arith.constant 5 : index
    %c0_214 = arith.constant 0 : index
    %c0_215 = arith.constant 0 : index
    %175 = vector.load %arg3[%c2_212, %c5_213, %c0_214, %c0_215] : memref<6x9x128x128xf32, #tpu.memory_space<vmem>>, vector<1x1x128x128xf32>
    %176 = vector.shape_cast %175 : vector<1x1x128x128xf32> to vector<128x128xf32>
    %cst_216 = arith.constant dense<0.000000e+00> : vector<64x128xf32>
    %177 = tpu.matmul %174, %176, %cst_216 {dimension_numbers = #tpu.dot_dimension_numbers<[1], [0], [0], [1], [0, 0, 1, 1], [], []>} : vector<64x128xf32>, vector<128x128xf32>, vector<64x128xf32> -> vector<64x128xf32>
    %178 = arith.addf %171, %177 : vector<64x128xf32>
    %c6_217 = arith.constant 6 : index
    %c0_218 = arith.constant 0 : index
    %c0_219 = arith.constant 0 : index
    %179 = vector.load %arg2[%c6_217, %c0_218, %c0_219] : memref<9x64x64xf32, #tpu.memory_space<vmem>>, vector<1x64x64xf32>
    %180 = vector.shape_cast %179 : vector<1x64x64xf32> to vector<64x64xf32>
    %cst_220 = arith.constant dense<0.000000e+00> : vector<64x128xf32>
    %181 = tpu.matmul %180, %137, %cst_220 {dimension_numbers = #tpu.dot_dimension_numbers<[1], [0], [0], [1], [0, 0, 1, 1], [], []>} : vector<64x64xf32>, vector<64x128xf32>, vector<64x128xf32> -> vector<64x128xf32>
    %c2_221 = arith.constant 2 : index
    %c6_222 = arith.constant 6 : index
    %c0_223 = arith.constant 0 : index
    %c0_224 = arith.constant 0 : index
    %182 = vector.load %arg3[%c2_221, %c6_222, %c0_223, %c0_224] : memref<6x9x128x128xf32, #tpu.memory_space<vmem>>, vector<1x1x128x128xf32>
    %183 = vector.shape_cast %182 : vector<1x1x128x128xf32> to vector<128x128xf32>
    %cst_225 = arith.constant dense<0.000000e+00> : vector<64x128xf32>
    %184 = tpu.matmul %181, %183, %cst_225 {dimension_numbers = #tpu.dot_dimension_numbers<[1], [0], [0], [1], [0, 0, 1, 1], [], []>} : vector<64x128xf32>, vector<128x128xf32>, vector<64x128xf32> -> vector<64x128xf32>
    %185 = arith.addf %178, %184 : vector<64x128xf32>
    %c7_226 = arith.constant 7 : index
    %c0_227 = arith.constant 0 : index
    %c0_228 = arith.constant 0 : index
    %186 = vector.load %arg2[%c7_226, %c0_227, %c0_228] : memref<9x64x64xf32, #tpu.memory_space<vmem>>, vector<1x64x64xf32>
    %187 = vector.shape_cast %186 : vector<1x64x64xf32> to vector<64x64xf32>
    %cst_229 = arith.constant dense<0.000000e+00> : vector<64x128xf32>
    %188 = tpu.matmul %187, %137, %cst_229 {dimension_numbers = #tpu.dot_dimension_numbers<[1], [0], [0], [1], [0, 0, 1, 1], [], []>} : vector<64x64xf32>, vector<64x128xf32>, vector<64x128xf32> -> vector<64x128xf32>
    %c2_230 = arith.constant 2 : index
    %c7_231 = arith.constant 7 : index
    %c0_232 = arith.constant 0 : index
    %c0_233 = arith.constant 0 : index
    %189 = vector.load %arg3[%c2_230, %c7_231, %c0_232, %c0_233] : memref<6x9x128x128xf32, #tpu.memory_space<vmem>>, vector<1x1x128x128xf32>
    %190 = vector.shape_cast %189 : vector<1x1x128x128xf32> to vector<128x128xf32>
    %cst_234 = arith.constant dense<0.000000e+00> : vector<64x128xf32>
    %191 = tpu.matmul %188, %190, %cst_234 {dimension_numbers = #tpu.dot_dimension_numbers<[1], [0], [0], [1], [0, 0, 1, 1], [], []>} : vector<64x128xf32>, vector<128x128xf32>, vector<64x128xf32> -> vector<64x128xf32>
    %192 = arith.addf %185, %191 : vector<64x128xf32>
    %c8_235 = arith.constant 8 : index
    %c0_236 = arith.constant 0 : index
    %c0_237 = arith.constant 0 : index
    %193 = vector.load %arg2[%c8_235, %c0_236, %c0_237] : memref<9x64x64xf32, #tpu.memory_space<vmem>>, vector<1x64x64xf32>
    %194 = vector.shape_cast %193 : vector<1x64x64xf32> to vector<64x64xf32>
    %cst_238 = arith.constant dense<0.000000e+00> : vector<64x128xf32>
    %195 = tpu.matmul %194, %137, %cst_238 {dimension_numbers = #tpu.dot_dimension_numbers<[1], [0], [0], [1], [0, 0, 1, 1], [], []>} : vector<64x64xf32>, vector<64x128xf32>, vector<64x128xf32> -> vector<64x128xf32>
    %c2_239 = arith.constant 2 : index
    %c8_240 = arith.constant 8 : index
    %c0_241 = arith.constant 0 : index
    %c0_242 = arith.constant 0 : index
    %196 = vector.load %arg3[%c2_239, %c8_240, %c0_241, %c0_242] : memref<6x9x128x128xf32, #tpu.memory_space<vmem>>, vector<1x1x128x128xf32>
    %197 = vector.shape_cast %196 : vector<1x1x128x128xf32> to vector<128x128xf32>
    %cst_243 = arith.constant dense<0.000000e+00> : vector<64x128xf32>
    %198 = tpu.matmul %195, %197, %cst_243 {dimension_numbers = #tpu.dot_dimension_numbers<[1], [0], [0], [1], [0, 0, 1, 1], [], []>} : vector<64x128xf32>, vector<128x128xf32>, vector<64x128xf32> -> vector<64x128xf32>
    %199 = arith.addf %192, %198 : vector<64x128xf32>
    %c2_244 = arith.constant 2 : index
    %c0_245 = arith.constant 0 : index
    %c0_246 = arith.constant 0 : index
    %200 = vector.load %arg4[%c2_244, %c0_245, %c0_246] : memref<6x1x128xf32, #tpu.memory_space<vmem>>, vector<1x1x128xf32>
    %201 = vector.shape_cast %200 : vector<1x1x128xf32> to vector<1x128xf32>
    %202 = vector.broadcast %201 : vector<1x128xf32> to vector<64x128xf32>
    %203 = arith.addf %199, %202 : vector<64x128xf32>
    %204 = arith.addf %203, %69 : vector<64x128xf32>
    %cst_247 = arith.constant 0.000000e+00 : f32
    %205 = vector.broadcast %cst_247 : f32 to vector<64x128xf32>
    %206 = arith.maximumf %204, %205 : vector<64x128xf32>
    %c0_248 = arith.constant 0 : index
    %c0_249 = arith.constant 0 : index
    %c0_250 = arith.constant 0 : index
    %207 = vector.load %arg2[%c0_248, %c0_249, %c0_250] : memref<9x64x64xf32, #tpu.memory_space<vmem>>, vector<1x64x64xf32>
    %208 = vector.shape_cast %207 : vector<1x64x64xf32> to vector<64x64xf32>
    %cst_251 = arith.constant dense<0.000000e+00> : vector<64x128xf32>
    %209 = tpu.matmul %208, %206, %cst_251 {dimension_numbers = #tpu.dot_dimension_numbers<[1], [0], [0], [1], [0, 0, 1, 1], [], []>} : vector<64x64xf32>, vector<64x128xf32>, vector<64x128xf32> -> vector<64x128xf32>
    %c3_252 = arith.constant 3 : index
    %c0_253 = arith.constant 0 : index
    %c0_254 = arith.constant 0 : index
    %c0_255 = arith.constant 0 : index
    %210 = vector.load %arg3[%c3_252, %c0_253, %c0_254, %c0_255] : memref<6x9x128x128xf32, #tpu.memory_space<vmem>>, vector<1x1x128x128xf32>
    %211 = vector.shape_cast %210 : vector<1x1x128x128xf32> to vector<128x128xf32>
    %cst_256 = arith.constant dense<0.000000e+00> : vector<64x128xf32>
    %212 = tpu.matmul %209, %211, %cst_256 {dimension_numbers = #tpu.dot_dimension_numbers<[1], [0], [0], [1], [0, 0, 1, 1], [], []>} : vector<64x128xf32>, vector<128x128xf32>, vector<64x128xf32> -> vector<64x128xf32>
    %c1_257 = arith.constant 1 : index
    %c0_258 = arith.constant 0 : index
    %c0_259 = arith.constant 0 : index
    %213 = vector.load %arg2[%c1_257, %c0_258, %c0_259] : memref<9x64x64xf32, #tpu.memory_space<vmem>>, vector<1x64x64xf32>
    %214 = vector.shape_cast %213 : vector<1x64x64xf32> to vector<64x64xf32>
    %cst_260 = arith.constant dense<0.000000e+00> : vector<64x128xf32>
    %215 = tpu.matmul %214, %206, %cst_260 {dimension_numbers = #tpu.dot_dimension_numbers<[1], [0], [0], [1], [0, 0, 1, 1], [], []>} : vector<64x64xf32>, vector<64x128xf32>, vector<64x128xf32> -> vector<64x128xf32>
    %c3_261 = arith.constant 3 : index
    %c1_262 = arith.constant 1 : index
    %c0_263 = arith.constant 0 : index
    %c0_264 = arith.constant 0 : index
    %216 = vector.load %arg3[%c3_261, %c1_262, %c0_263, %c0_264] : memref<6x9x128x128xf32, #tpu.memory_space<vmem>>, vector<1x1x128x128xf32>
    %217 = vector.shape_cast %216 : vector<1x1x128x128xf32> to vector<128x128xf32>
    %cst_265 = arith.constant dense<0.000000e+00> : vector<64x128xf32>
    %218 = tpu.matmul %215, %217, %cst_265 {dimension_numbers = #tpu.dot_dimension_numbers<[1], [0], [0], [1], [0, 0, 1, 1], [], []>} : vector<64x128xf32>, vector<128x128xf32>, vector<64x128xf32> -> vector<64x128xf32>
    %219 = arith.addf %212, %218 : vector<64x128xf32>
    %c2_266 = arith.constant 2 : index
    %c0_267 = arith.constant 0 : index
    %c0_268 = arith.constant 0 : index
    %220 = vector.load %arg2[%c2_266, %c0_267, %c0_268] : memref<9x64x64xf32, #tpu.memory_space<vmem>>, vector<1x64x64xf32>
    %221 = vector.shape_cast %220 : vector<1x64x64xf32> to vector<64x64xf32>
    %cst_269 = arith.constant dense<0.000000e+00> : vector<64x128xf32>
    %222 = tpu.matmul %221, %206, %cst_269 {dimension_numbers = #tpu.dot_dimension_numbers<[1], [0], [0], [1], [0, 0, 1, 1], [], []>} : vector<64x64xf32>, vector<64x128xf32>, vector<64x128xf32> -> vector<64x128xf32>
    %c3_270 = arith.constant 3 : index
    %c2_271 = arith.constant 2 : index
    %c0_272 = arith.constant 0 : index
    %c0_273 = arith.constant 0 : index
    %223 = vector.load %arg3[%c3_270, %c2_271, %c0_272, %c0_273] : memref<6x9x128x128xf32, #tpu.memory_space<vmem>>, vector<1x1x128x128xf32>
    %224 = vector.shape_cast %223 : vector<1x1x128x128xf32> to vector<128x128xf32>
    %cst_274 = arith.constant dense<0.000000e+00> : vector<64x128xf32>
    %225 = tpu.matmul %222, %224, %cst_274 {dimension_numbers = #tpu.dot_dimension_numbers<[1], [0], [0], [1], [0, 0, 1, 1], [], []>} : vector<64x128xf32>, vector<128x128xf32>, vector<64x128xf32> -> vector<64x128xf32>
    %226 = arith.addf %219, %225 : vector<64x128xf32>
    %c3_275 = arith.constant 3 : index
    %c0_276 = arith.constant 0 : index
    %c0_277 = arith.constant 0 : index
    %227 = vector.load %arg2[%c3_275, %c0_276, %c0_277] : memref<9x64x64xf32, #tpu.memory_space<vmem>>, vector<1x64x64xf32>
    %228 = vector.shape_cast %227 : vector<1x64x64xf32> to vector<64x64xf32>
    %cst_278 = arith.constant dense<0.000000e+00> : vector<64x128xf32>
    %229 = tpu.matmul %228, %206, %cst_278 {dimension_numbers = #tpu.dot_dimension_numbers<[1], [0], [0], [1], [0, 0, 1, 1], [], []>} : vector<64x64xf32>, vector<64x128xf32>, vector<64x128xf32> -> vector<64x128xf32>
    %c3_279 = arith.constant 3 : index
    %c3_280 = arith.constant 3 : index
    %c0_281 = arith.constant 0 : index
    %c0_282 = arith.constant 0 : index
    %230 = vector.load %arg3[%c3_279, %c3_280, %c0_281, %c0_282] : memref<6x9x128x128xf32, #tpu.memory_space<vmem>>, vector<1x1x128x128xf32>
    %231 = vector.shape_cast %230 : vector<1x1x128x128xf32> to vector<128x128xf32>
    %cst_283 = arith.constant dense<0.000000e+00> : vector<64x128xf32>
    %232 = tpu.matmul %229, %231, %cst_283 {dimension_numbers = #tpu.dot_dimension_numbers<[1], [0], [0], [1], [0, 0, 1, 1], [], []>} : vector<64x128xf32>, vector<128x128xf32>, vector<64x128xf32> -> vector<64x128xf32>
    %233 = arith.addf %226, %232 : vector<64x128xf32>
    %c4_284 = arith.constant 4 : index
    %c0_285 = arith.constant 0 : index
    %c0_286 = arith.constant 0 : index
    %234 = vector.load %arg2[%c4_284, %c0_285, %c0_286] : memref<9x64x64xf32, #tpu.memory_space<vmem>>, vector<1x64x64xf32>
    %235 = vector.shape_cast %234 : vector<1x64x64xf32> to vector<64x64xf32>
    %cst_287 = arith.constant dense<0.000000e+00> : vector<64x128xf32>
    %236 = tpu.matmul %235, %206, %cst_287 {dimension_numbers = #tpu.dot_dimension_numbers<[1], [0], [0], [1], [0, 0, 1, 1], [], []>} : vector<64x64xf32>, vector<64x128xf32>, vector<64x128xf32> -> vector<64x128xf32>
    %c3_288 = arith.constant 3 : index
    %c4_289 = arith.constant 4 : index
    %c0_290 = arith.constant 0 : index
    %c0_291 = arith.constant 0 : index
    %237 = vector.load %arg3[%c3_288, %c4_289, %c0_290, %c0_291] : memref<6x9x128x128xf32, #tpu.memory_space<vmem>>, vector<1x1x128x128xf32>
    %238 = vector.shape_cast %237 : vector<1x1x128x128xf32> to vector<128x128xf32>
    %cst_292 = arith.constant dense<0.000000e+00> : vector<64x128xf32>
    %239 = tpu.matmul %236, %238, %cst_292 {dimension_numbers = #tpu.dot_dimension_numbers<[1], [0], [0], [1], [0, 0, 1, 1], [], []>} : vector<64x128xf32>, vector<128x128xf32>, vector<64x128xf32> -> vector<64x128xf32>
    %240 = arith.addf %233, %239 : vector<64x128xf32>
    %c5_293 = arith.constant 5 : index
    %c0_294 = arith.constant 0 : index
    %c0_295 = arith.constant 0 : index
    %241 = vector.load %arg2[%c5_293, %c0_294, %c0_295] : memref<9x64x64xf32, #tpu.memory_space<vmem>>, vector<1x64x64xf32>
    %242 = vector.shape_cast %241 : vector<1x64x64xf32> to vector<64x64xf32>
    %cst_296 = arith.constant dense<0.000000e+00> : vector<64x128xf32>
    %243 = tpu.matmul %242, %206, %cst_296 {dimension_numbers = #tpu.dot_dimension_numbers<[1], [0], [0], [1], [0, 0, 1, 1], [], []>} : vector<64x64xf32>, vector<64x128xf32>, vector<64x128xf32> -> vector<64x128xf32>
    %c3_297 = arith.constant 3 : index
    %c5_298 = arith.constant 5 : index
    %c0_299 = arith.constant 0 : index
    %c0_300 = arith.constant 0 : index
    %244 = vector.load %arg3[%c3_297, %c5_298, %c0_299, %c0_300] : memref<6x9x128x128xf32, #tpu.memory_space<vmem>>, vector<1x1x128x128xf32>
    %245 = vector.shape_cast %244 : vector<1x1x128x128xf32> to vector<128x128xf32>
    %cst_301 = arith.constant dense<0.000000e+00> : vector<64x128xf32>
    %246 = tpu.matmul %243, %245, %cst_301 {dimension_numbers = #tpu.dot_dimension_numbers<[1], [0], [0], [1], [0, 0, 1, 1], [], []>} : vector<64x128xf32>, vector<128x128xf32>, vector<64x128xf32> -> vector<64x128xf32>
    %247 = arith.addf %240, %246 : vector<64x128xf32>
    %c6_302 = arith.constant 6 : index
    %c0_303 = arith.constant 0 : index
    %c0_304 = arith.constant 0 : index
    %248 = vector.load %arg2[%c6_302, %c0_303, %c0_304] : memref<9x64x64xf32, #tpu.memory_space<vmem>>, vector<1x64x64xf32>
    %249 = vector.shape_cast %248 : vector<1x64x64xf32> to vector<64x64xf32>
    %cst_305 = arith.constant dense<0.000000e+00> : vector<64x128xf32>
    %250 = tpu.matmul %249, %206, %cst_305 {dimension_numbers = #tpu.dot_dimension_numbers<[1], [0], [0], [1], [0, 0, 1, 1], [], []>} : vector<64x64xf32>, vector<64x128xf32>, vector<64x128xf32> -> vector<64x128xf32>
    %c3_306 = arith.constant 3 : index
    %c6_307 = arith.constant 6 : index
    %c0_308 = arith.constant 0 : index
    %c0_309 = arith.constant 0 : index
    %251 = vector.load %arg3[%c3_306, %c6_307, %c0_308, %c0_309] : memref<6x9x128x128xf32, #tpu.memory_space<vmem>>, vector<1x1x128x128xf32>
    %252 = vector.shape_cast %251 : vector<1x1x128x128xf32> to vector<128x128xf32>
    %cst_310 = arith.constant dense<0.000000e+00> : vector<64x128xf32>
    %253 = tpu.matmul %250, %252, %cst_310 {dimension_numbers = #tpu.dot_dimension_numbers<[1], [0], [0], [1], [0, 0, 1, 1], [], []>} : vector<64x128xf32>, vector<128x128xf32>, vector<64x128xf32> -> vector<64x128xf32>
    %254 = arith.addf %247, %253 : vector<64x128xf32>
    %c7_311 = arith.constant 7 : index
    %c0_312 = arith.constant 0 : index
    %c0_313 = arith.constant 0 : index
    %255 = vector.load %arg2[%c7_311, %c0_312, %c0_313] : memref<9x64x64xf32, #tpu.memory_space<vmem>>, vector<1x64x64xf32>
    %256 = vector.shape_cast %255 : vector<1x64x64xf32> to vector<64x64xf32>
    %cst_314 = arith.constant dense<0.000000e+00> : vector<64x128xf32>
    %257 = tpu.matmul %256, %206, %cst_314 {dimension_numbers = #tpu.dot_dimension_numbers<[1], [0], [0], [1], [0, 0, 1, 1], [], []>} : vector<64x64xf32>, vector<64x128xf32>, vector<64x128xf32> -> vector<64x128xf32>
    %c3_315 = arith.constant 3 : index
    %c7_316 = arith.constant 7 : index
    %c0_317 = arith.constant 0 : index
    %c0_318 = arith.constant 0 : index
    %258 = vector.load %arg3[%c3_315, %c7_316, %c0_317, %c0_318] : memref<6x9x128x128xf32, #tpu.memory_space<vmem>>, vector<1x1x128x128xf32>
    %259 = vector.shape_cast %258 : vector<1x1x128x128xf32> to vector<128x128xf32>
    %cst_319 = arith.constant dense<0.000000e+00> : vector<64x128xf32>
    %260 = tpu.matmul %257, %259, %cst_319 {dimension_numbers = #tpu.dot_dimension_numbers<[1], [0], [0], [1], [0, 0, 1, 1], [], []>} : vector<64x128xf32>, vector<128x128xf32>, vector<64x128xf32> -> vector<64x128xf32>
    %261 = arith.addf %254, %260 : vector<64x128xf32>
    %c8_320 = arith.constant 8 : index
    %c0_321 = arith.constant 0 : index
    %c0_322 = arith.constant 0 : index
    %262 = vector.load %arg2[%c8_320, %c0_321, %c0_322] : memref<9x64x64xf32, #tpu.memory_space<vmem>>, vector<1x64x64xf32>
    %263 = vector.shape_cast %262 : vector<1x64x64xf32> to vector<64x64xf32>
    %cst_323 = arith.constant dense<0.000000e+00> : vector<64x128xf32>
    %264 = tpu.matmul %263, %206, %cst_323 {dimension_numbers = #tpu.dot_dimension_numbers<[1], [0], [0], [1], [0, 0, 1, 1], [], []>} : vector<64x64xf32>, vector<64x128xf32>, vector<64x128xf32> -> vector<64x128xf32>
    %c3_324 = arith.constant 3 : index
    %c8_325 = arith.constant 8 : index
    %c0_326 = arith.constant 0 : index
    %c0_327 = arith.constant 0 : index
    %265 = vector.load %arg3[%c3_324, %c8_325, %c0_326, %c0_327] : memref<6x9x128x128xf32, #tpu.memory_space<vmem>>, vector<1x1x128x128xf32>
    %266 = vector.shape_cast %265 : vector<1x1x128x128xf32> to vector<128x128xf32>
    %cst_328 = arith.constant dense<0.000000e+00> : vector<64x128xf32>
    %267 = tpu.matmul %264, %266, %cst_328 {dimension_numbers = #tpu.dot_dimension_numbers<[1], [0], [0], [1], [0, 0, 1, 1], [], []>} : vector<64x128xf32>, vector<128x128xf32>, vector<64x128xf32> -> vector<64x128xf32>
    %268 = arith.addf %261, %267 : vector<64x128xf32>
    %c3_329 = arith.constant 3 : index
    %c0_330 = arith.constant 0 : index
    %c0_331 = arith.constant 0 : index
    %269 = vector.load %arg4[%c3_329, %c0_330, %c0_331] : memref<6x1x128xf32, #tpu.memory_space<vmem>>, vector<1x1x128xf32>
    %270 = vector.shape_cast %269 : vector<1x1x128xf32> to vector<1x128xf32>
    %271 = vector.broadcast %270 : vector<1x128xf32> to vector<64x128xf32>
    %272 = arith.addf %268, %271 : vector<64x128xf32>
    %cst_332 = arith.constant 0.000000e+00 : f32
    %273 = vector.broadcast %cst_332 : f32 to vector<64x128xf32>
    %274 = arith.maximumf %272, %273 : vector<64x128xf32>
    %c0_333 = arith.constant 0 : index
    %c0_334 = arith.constant 0 : index
    %c0_335 = arith.constant 0 : index
    %275 = vector.load %arg2[%c0_333, %c0_334, %c0_335] : memref<9x64x64xf32, #tpu.memory_space<vmem>>, vector<1x64x64xf32>
    %276 = vector.shape_cast %275 : vector<1x64x64xf32> to vector<64x64xf32>
    %cst_336 = arith.constant dense<0.000000e+00> : vector<64x128xf32>
    %277 = tpu.matmul %276, %274, %cst_336 {dimension_numbers = #tpu.dot_dimension_numbers<[1], [0], [0], [1], [0, 0, 1, 1], [], []>} : vector<64x64xf32>, vector<64x128xf32>, vector<64x128xf32> -> vector<64x128xf32>
    %c4_337 = arith.constant 4 : index
    %c0_338 = arith.constant 0 : index
    %c0_339 = arith.constant 0 : index
    %c0_340 = arith.constant 0 : index
    %278 = vector.load %arg3[%c4_337, %c0_338, %c0_339, %c0_340] : memref<6x9x128x128xf32, #tpu.memory_space<vmem>>, vector<1x1x128x128xf32>
    %279 = vector.shape_cast %278 : vector<1x1x128x128xf32> to vector<128x128xf32>
    %cst_341 = arith.constant dense<0.000000e+00> : vector<64x128xf32>
    %280 = tpu.matmul %277, %279, %cst_341 {dimension_numbers = #tpu.dot_dimension_numbers<[1], [0], [0], [1], [0, 0, 1, 1], [], []>} : vector<64x128xf32>, vector<128x128xf32>, vector<64x128xf32> -> vector<64x128xf32>
    %c1_342 = arith.constant 1 : index
    %c0_343 = arith.constant 0 : index
    %c0_344 = arith.constant 0 : index
    %281 = vector.load %arg2[%c1_342, %c0_343, %c0_344] : memref<9x64x64xf32, #tpu.memory_space<vmem>>, vector<1x64x64xf32>
    %282 = vector.shape_cast %281 : vector<1x64x64xf32> to vector<64x64xf32>
    %cst_345 = arith.constant dense<0.000000e+00> : vector<64x128xf32>
    %283 = tpu.matmul %282, %274, %cst_345 {dimension_numbers = #tpu.dot_dimension_numbers<[1], [0], [0], [1], [0, 0, 1, 1], [], []>} : vector<64x64xf32>, vector<64x128xf32>, vector<64x128xf32> -> vector<64x128xf32>
    %c4_346 = arith.constant 4 : index
    %c1_347 = arith.constant 1 : index
    %c0_348 = arith.constant 0 : index
    %c0_349 = arith.constant 0 : index
    %284 = vector.load %arg3[%c4_346, %c1_347, %c0_348, %c0_349] : memref<6x9x128x128xf32, #tpu.memory_space<vmem>>, vector<1x1x128x128xf32>
    %285 = vector.shape_cast %284 : vector<1x1x128x128xf32> to vector<128x128xf32>
    %cst_350 = arith.constant dense<0.000000e+00> : vector<64x128xf32>
    %286 = tpu.matmul %283, %285, %cst_350 {dimension_numbers = #tpu.dot_dimension_numbers<[1], [0], [0], [1], [0, 0, 1, 1], [], []>} : vector<64x128xf32>, vector<128x128xf32>, vector<64x128xf32> -> vector<64x128xf32>
    %287 = arith.addf %280, %286 : vector<64x128xf32>
    %c2_351 = arith.constant 2 : index
    %c0_352 = arith.constant 0 : index
    %c0_353 = arith.constant 0 : index
    %288 = vector.load %arg2[%c2_351, %c0_352, %c0_353] : memref<9x64x64xf32, #tpu.memory_space<vmem>>, vector<1x64x64xf32>
    %289 = vector.shape_cast %288 : vector<1x64x64xf32> to vector<64x64xf32>
    %cst_354 = arith.constant dense<0.000000e+00> : vector<64x128xf32>
    %290 = tpu.matmul %289, %274, %cst_354 {dimension_numbers = #tpu.dot_dimension_numbers<[1], [0], [0], [1], [0, 0, 1, 1], [], []>} : vector<64x64xf32>, vector<64x128xf32>, vector<64x128xf32> -> vector<64x128xf32>
    %c4_355 = arith.constant 4 : index
    %c2_356 = arith.constant 2 : index
    %c0_357 = arith.constant 0 : index
    %c0_358 = arith.constant 0 : index
    %291 = vector.load %arg3[%c4_355, %c2_356, %c0_357, %c0_358] : memref<6x9x128x128xf32, #tpu.memory_space<vmem>>, vector<1x1x128x128xf32>
    %292 = vector.shape_cast %291 : vector<1x1x128x128xf32> to vector<128x128xf32>
    %cst_359 = arith.constant dense<0.000000e+00> : vector<64x128xf32>
    %293 = tpu.matmul %290, %292, %cst_359 {dimension_numbers = #tpu.dot_dimension_numbers<[1], [0], [0], [1], [0, 0, 1, 1], [], []>} : vector<64x128xf32>, vector<128x128xf32>, vector<64x128xf32> -> vector<64x128xf32>
    %294 = arith.addf %287, %293 : vector<64x128xf32>
    %c3_360 = arith.constant 3 : index
    %c0_361 = arith.constant 0 : index
    %c0_362 = arith.constant 0 : index
    %295 = vector.load %arg2[%c3_360, %c0_361, %c0_362] : memref<9x64x64xf32, #tpu.memory_space<vmem>>, vector<1x64x64xf32>
    %296 = vector.shape_cast %295 : vector<1x64x64xf32> to vector<64x64xf32>
    %cst_363 = arith.constant dense<0.000000e+00> : vector<64x128xf32>
    %297 = tpu.matmul %296, %274, %cst_363 {dimension_numbers = #tpu.dot_dimension_numbers<[1], [0], [0], [1], [0, 0, 1, 1], [], []>} : vector<64x64xf32>, vector<64x128xf32>, vector<64x128xf32> -> vector<64x128xf32>
    %c4_364 = arith.constant 4 : index
    %c3_365 = arith.constant 3 : index
    %c0_366 = arith.constant 0 : index
    %c0_367 = arith.constant 0 : index
    %298 = vector.load %arg3[%c4_364, %c3_365, %c0_366, %c0_367] : memref<6x9x128x128xf32, #tpu.memory_space<vmem>>, vector<1x1x128x128xf32>
    %299 = vector.shape_cast %298 : vector<1x1x128x128xf32> to vector<128x128xf32>
    %cst_368 = arith.constant dense<0.000000e+00> : vector<64x128xf32>
    %300 = tpu.matmul %297, %299, %cst_368 {dimension_numbers = #tpu.dot_dimension_numbers<[1], [0], [0], [1], [0, 0, 1, 1], [], []>} : vector<64x128xf32>, vector<128x128xf32>, vector<64x128xf32> -> vector<64x128xf32>
    %301 = arith.addf %294, %300 : vector<64x128xf32>
    %c4_369 = arith.constant 4 : index
    %c0_370 = arith.constant 0 : index
    %c0_371 = arith.constant 0 : index
    %302 = vector.load %arg2[%c4_369, %c0_370, %c0_371] : memref<9x64x64xf32, #tpu.memory_space<vmem>>, vector<1x64x64xf32>
    %303 = vector.shape_cast %302 : vector<1x64x64xf32> to vector<64x64xf32>
    %cst_372 = arith.constant dense<0.000000e+00> : vector<64x128xf32>
    %304 = tpu.matmul %303, %274, %cst_372 {dimension_numbers = #tpu.dot_dimension_numbers<[1], [0], [0], [1], [0, 0, 1, 1], [], []>} : vector<64x64xf32>, vector<64x128xf32>, vector<64x128xf32> -> vector<64x128xf32>
    %c4_373 = arith.constant 4 : index
    %c4_374 = arith.constant 4 : index
    %c0_375 = arith.constant 0 : index
    %c0_376 = arith.constant 0 : index
    %305 = vector.load %arg3[%c4_373, %c4_374, %c0_375, %c0_376] : memref<6x9x128x128xf32, #tpu.memory_space<vmem>>, vector<1x1x128x128xf32>
    %306 = vector.shape_cast %305 : vector<1x1x128x128xf32> to vector<128x128xf32>
    %cst_377 = arith.constant dense<0.000000e+00> : vector<64x128xf32>
    %307 = tpu.matmul %304, %306, %cst_377 {dimension_numbers = #tpu.dot_dimension_numbers<[1], [0], [0], [1], [0, 0, 1, 1], [], []>} : vector<64x128xf32>, vector<128x128xf32>, vector<64x128xf32> -> vector<64x128xf32>
    %308 = arith.addf %301, %307 : vector<64x128xf32>
    %c5_378 = arith.constant 5 : index
    %c0_379 = arith.constant 0 : index
    %c0_380 = arith.constant 0 : index
    %309 = vector.load %arg2[%c5_378, %c0_379, %c0_380] : memref<9x64x64xf32, #tpu.memory_space<vmem>>, vector<1x64x64xf32>
    %310 = vector.shape_cast %309 : vector<1x64x64xf32> to vector<64x64xf32>
    %cst_381 = arith.constant dense<0.000000e+00> : vector<64x128xf32>
    %311 = tpu.matmul %310, %274, %cst_381 {dimension_numbers = #tpu.dot_dimension_numbers<[1], [0], [0], [1], [0, 0, 1, 1], [], []>} : vector<64x64xf32>, vector<64x128xf32>, vector<64x128xf32> -> vector<64x128xf32>
    %c4_382 = arith.constant 4 : index
    %c5_383 = arith.constant 5 : index
    %c0_384 = arith.constant 0 : index
    %c0_385 = arith.constant 0 : index
    %312 = vector.load %arg3[%c4_382, %c5_383, %c0_384, %c0_385] : memref<6x9x128x128xf32, #tpu.memory_space<vmem>>, vector<1x1x128x128xf32>
    %313 = vector.shape_cast %312 : vector<1x1x128x128xf32> to vector<128x128xf32>
    %cst_386 = arith.constant dense<0.000000e+00> : vector<64x128xf32>
    %314 = tpu.matmul %311, %313, %cst_386 {dimension_numbers = #tpu.dot_dimension_numbers<[1], [0], [0], [1], [0, 0, 1, 1], [], []>} : vector<64x128xf32>, vector<128x128xf32>, vector<64x128xf32> -> vector<64x128xf32>
    %315 = arith.addf %308, %314 : vector<64x128xf32>
    %c6_387 = arith.constant 6 : index
    %c0_388 = arith.constant 0 : index
    %c0_389 = arith.constant 0 : index
    %316 = vector.load %arg2[%c6_387, %c0_388, %c0_389] : memref<9x64x64xf32, #tpu.memory_space<vmem>>, vector<1x64x64xf32>
    %317 = vector.shape_cast %316 : vector<1x64x64xf32> to vector<64x64xf32>
    %cst_390 = arith.constant dense<0.000000e+00> : vector<64x128xf32>
    %318 = tpu.matmul %317, %274, %cst_390 {dimension_numbers = #tpu.dot_dimension_numbers<[1], [0], [0], [1], [0, 0, 1, 1], [], []>} : vector<64x64xf32>, vector<64x128xf32>, vector<64x128xf32> -> vector<64x128xf32>
    %c4_391 = arith.constant 4 : index
    %c6_392 = arith.constant 6 : index
    %c0_393 = arith.constant 0 : index
    %c0_394 = arith.constant 0 : index
    %319 = vector.load %arg3[%c4_391, %c6_392, %c0_393, %c0_394] : memref<6x9x128x128xf32, #tpu.memory_space<vmem>>, vector<1x1x128x128xf32>
    %320 = vector.shape_cast %319 : vector<1x1x128x128xf32> to vector<128x128xf32>
    %cst_395 = arith.constant dense<0.000000e+00> : vector<64x128xf32>
    %321 = tpu.matmul %318, %320, %cst_395 {dimension_numbers = #tpu.dot_dimension_numbers<[1], [0], [0], [1], [0, 0, 1, 1], [], []>} : vector<64x128xf32>, vector<128x128xf32>, vector<64x128xf32> -> vector<64x128xf32>
    %322 = arith.addf %315, %321 : vector<64x128xf32>
    %c7_396 = arith.constant 7 : index
    %c0_397 = arith.constant 0 : index
    %c0_398 = arith.constant 0 : index
    %323 = vector.load %arg2[%c7_396, %c0_397, %c0_398] : memref<9x64x64xf32, #tpu.memory_space<vmem>>, vector<1x64x64xf32>
    %324 = vector.shape_cast %323 : vector<1x64x64xf32> to vector<64x64xf32>
    %cst_399 = arith.constant dense<0.000000e+00> : vector<64x128xf32>
    %325 = tpu.matmul %324, %274, %cst_399 {dimension_numbers = #tpu.dot_dimension_numbers<[1], [0], [0], [1], [0, 0, 1, 1], [], []>} : vector<64x64xf32>, vector<64x128xf32>, vector<64x128xf32> -> vector<64x128xf32>
    %c4_400 = arith.constant 4 : index
    %c7_401 = arith.constant 7 : index
    %c0_402 = arith.constant 0 : index
    %c0_403 = arith.constant 0 : index
    %326 = vector.load %arg3[%c4_400, %c7_401, %c0_402, %c0_403] : memref<6x9x128x128xf32, #tpu.memory_space<vmem>>, vector<1x1x128x128xf32>
    %327 = vector.shape_cast %326 : vector<1x1x128x128xf32> to vector<128x128xf32>
    %cst_404 = arith.constant dense<0.000000e+00> : vector<64x128xf32>
    %328 = tpu.matmul %325, %327, %cst_404 {dimension_numbers = #tpu.dot_dimension_numbers<[1], [0], [0], [1], [0, 0, 1, 1], [], []>} : vector<64x128xf32>, vector<128x128xf32>, vector<64x128xf32> -> vector<64x128xf32>
    %329 = arith.addf %322, %328 : vector<64x128xf32>
    %c8_405 = arith.constant 8 : index
    %c0_406 = arith.constant 0 : index
    %c0_407 = arith.constant 0 : index
    %330 = vector.load %arg2[%c8_405, %c0_406, %c0_407] : memref<9x64x64xf32, #tpu.memory_space<vmem>>, vector<1x64x64xf32>
    %331 = vector.shape_cast %330 : vector<1x64x64xf32> to vector<64x64xf32>
    %cst_408 = arith.constant dense<0.000000e+00> : vector<64x128xf32>
    %332 = tpu.matmul %331, %274, %cst_408 {dimension_numbers = #tpu.dot_dimension_numbers<[1], [0], [0], [1], [0, 0, 1, 1], [], []>} : vector<64x64xf32>, vector<64x128xf32>, vector<64x128xf32> -> vector<64x128xf32>
    %c4_409 = arith.constant 4 : index
    %c8_410 = arith.constant 8 : index
    %c0_411 = arith.constant 0 : index
    %c0_412 = arith.constant 0 : index
    %333 = vector.load %arg3[%c4_409, %c8_410, %c0_411, %c0_412] : memref<6x9x128x128xf32, #tpu.memory_space<vmem>>, vector<1x1x128x128xf32>
    %334 = vector.shape_cast %333 : vector<1x1x128x128xf32> to vector<128x128xf32>
    %cst_413 = arith.constant dense<0.000000e+00> : vector<64x128xf32>
    %335 = tpu.matmul %332, %334, %cst_413 {dimension_numbers = #tpu.dot_dimension_numbers<[1], [0], [0], [1], [0, 0, 1, 1], [], []>} : vector<64x128xf32>, vector<128x128xf32>, vector<64x128xf32> -> vector<64x128xf32>
    %336 = arith.addf %329, %335 : vector<64x128xf32>
    %c4_414 = arith.constant 4 : index
    %c0_415 = arith.constant 0 : index
    %c0_416 = arith.constant 0 : index
    %337 = vector.load %arg4[%c4_414, %c0_415, %c0_416] : memref<6x1x128xf32, #tpu.memory_space<vmem>>, vector<1x1x128xf32>
    %338 = vector.shape_cast %337 : vector<1x1x128xf32> to vector<1x128xf32>
    %339 = vector.broadcast %338 : vector<1x128xf32> to vector<64x128xf32>
    %340 = arith.addf %336, %339 : vector<64x128xf32>
    %341 = arith.addf %340, %206 : vector<64x128xf32>
    %cst_417 = arith.constant 0.000000e+00 : f32
    %342 = vector.broadcast %cst_417 : f32 to vector<64x128xf32>
    %343 = arith.maximumf %341, %342 : vector<64x128xf32>
    %c0_418 = arith.constant 0 : index
    %c0_419 = arith.constant 0 : index
    %c0_420 = arith.constant 0 : index
    %344 = vector.load %arg2[%c0_418, %c0_419, %c0_420] : memref<9x64x64xf32, #tpu.memory_space<vmem>>, vector<1x64x64xf32>
    %345 = vector.shape_cast %344 : vector<1x64x64xf32> to vector<64x64xf32>
    %cst_421 = arith.constant dense<0.000000e+00> : vector<64x128xf32>
    %346 = tpu.matmul %345, %343, %cst_421 {dimension_numbers = #tpu.dot_dimension_numbers<[1], [0], [0], [1], [0, 0, 1, 1], [], []>} : vector<64x64xf32>, vector<64x128xf32>, vector<64x128xf32> -> vector<64x128xf32>
    %c5_422 = arith.constant 5 : index
    %c0_423 = arith.constant 0 : index
    %c0_424 = arith.constant 0 : index
    %c0_425 = arith.constant 0 : index
    %347 = vector.load %arg3[%c5_422, %c0_423, %c0_424, %c0_425] : memref<6x9x128x128xf32, #tpu.memory_space<vmem>>, vector<1x1x128x128xf32>
    %348 = vector.shape_cast %347 : vector<1x1x128x128xf32> to vector<128x128xf32>
    %cst_426 = arith.constant dense<0.000000e+00> : vector<64x128xf32>
    %349 = tpu.matmul %346, %348, %cst_426 {dimension_numbers = #tpu.dot_dimension_numbers<[1], [0], [0], [1], [0, 0, 1, 1], [], []>} : vector<64x128xf32>, vector<128x128xf32>, vector<64x128xf32> -> vector<64x128xf32>
    %c1_427 = arith.constant 1 : index
    %c0_428 = arith.constant 0 : index
    %c0_429 = arith.constant 0 : index
    %350 = vector.load %arg2[%c1_427, %c0_428, %c0_429] : memref<9x64x64xf32, #tpu.memory_space<vmem>>, vector<1x64x64xf32>
    %351 = vector.shape_cast %350 : vector<1x64x64xf32> to vector<64x64xf32>
    %cst_430 = arith.constant dense<0.000000e+00> : vector<64x128xf32>
    %352 = tpu.matmul %351, %343, %cst_430 {dimension_numbers = #tpu.dot_dimension_numbers<[1], [0], [0], [1], [0, 0, 1, 1], [], []>} : vector<64x64xf32>, vector<64x128xf32>, vector<64x128xf32> -> vector<64x128xf32>
    %c5_431 = arith.constant 5 : index
    %c1_432 = arith.constant 1 : index
    %c0_433 = arith.constant 0 : index
    %c0_434 = arith.constant 0 : index
    %353 = vector.load %arg3[%c5_431, %c1_432, %c0_433, %c0_434] : memref<6x9x128x128xf32, #tpu.memory_space<vmem>>, vector<1x1x128x128xf32>
    %354 = vector.shape_cast %353 : vector<1x1x128x128xf32> to vector<128x128xf32>
    %cst_435 = arith.constant dense<0.000000e+00> : vector<64x128xf32>
    %355 = tpu.matmul %352, %354, %cst_435 {dimension_numbers = #tpu.dot_dimension_numbers<[1], [0], [0], [1], [0, 0, 1, 1], [], []>} : vector<64x128xf32>, vector<128x128xf32>, vector<64x128xf32> -> vector<64x128xf32>
    %356 = arith.addf %349, %355 : vector<64x128xf32>
    %c2_436 = arith.constant 2 : index
    %c0_437 = arith.constant 0 : index
    %c0_438 = arith.constant 0 : index
    %357 = vector.load %arg2[%c2_436, %c0_437, %c0_438] : memref<9x64x64xf32, #tpu.memory_space<vmem>>, vector<1x64x64xf32>
    %358 = vector.shape_cast %357 : vector<1x64x64xf32> to vector<64x64xf32>
    %cst_439 = arith.constant dense<0.000000e+00> : vector<64x128xf32>
    %359 = tpu.matmul %358, %343, %cst_439 {dimension_numbers = #tpu.dot_dimension_numbers<[1], [0], [0], [1], [0, 0, 1, 1], [], []>} : vector<64x64xf32>, vector<64x128xf32>, vector<64x128xf32> -> vector<64x128xf32>
    %c5_440 = arith.constant 5 : index
    %c2_441 = arith.constant 2 : index
    %c0_442 = arith.constant 0 : index
    %c0_443 = arith.constant 0 : index
    %360 = vector.load %arg3[%c5_440, %c2_441, %c0_442, %c0_443] : memref<6x9x128x128xf32, #tpu.memory_space<vmem>>, vector<1x1x128x128xf32>
    %361 = vector.shape_cast %360 : vector<1x1x128x128xf32> to vector<128x128xf32>
    %cst_444 = arith.constant dense<0.000000e+00> : vector<64x128xf32>
    %362 = tpu.matmul %359, %361, %cst_444 {dimension_numbers = #tpu.dot_dimension_numbers<[1], [0], [0], [1], [0, 0, 1, 1], [], []>} : vector<64x128xf32>, vector<128x128xf32>, vector<64x128xf32> -> vector<64x128xf32>
    %363 = arith.addf %356, %362 : vector<64x128xf32>
    %c3_445 = arith.constant 3 : index
    %c0_446 = arith.constant 0 : index
    %c0_447 = arith.constant 0 : index
    %364 = vector.load %arg2[%c3_445, %c0_446, %c0_447] : memref<9x64x64xf32, #tpu.memory_space<vmem>>, vector<1x64x64xf32>
    %365 = vector.shape_cast %364 : vector<1x64x64xf32> to vector<64x64xf32>
    %cst_448 = arith.constant dense<0.000000e+00> : vector<64x128xf32>
    %366 = tpu.matmul %365, %343, %cst_448 {dimension_numbers = #tpu.dot_dimension_numbers<[1], [0], [0], [1], [0, 0, 1, 1], [], []>} : vector<64x64xf32>, vector<64x128xf32>, vector<64x128xf32> -> vector<64x128xf32>
    %c5_449 = arith.constant 5 : index
    %c3_450 = arith.constant 3 : index
    %c0_451 = arith.constant 0 : index
    %c0_452 = arith.constant 0 : index
    %367 = vector.load %arg3[%c5_449, %c3_450, %c0_451, %c0_452] : memref<6x9x128x128xf32, #tpu.memory_space<vmem>>, vector<1x1x128x128xf32>
    %368 = vector.shape_cast %367 : vector<1x1x128x128xf32> to vector<128x128xf32>
    %cst_453 = arith.constant dense<0.000000e+00> : vector<64x128xf32>
    %369 = tpu.matmul %366, %368, %cst_453 {dimension_numbers = #tpu.dot_dimension_numbers<[1], [0], [0], [1], [0, 0, 1, 1], [], []>} : vector<64x128xf32>, vector<128x128xf32>, vector<64x128xf32> -> vector<64x128xf32>
    %370 = arith.addf %363, %369 : vector<64x128xf32>
    %c4_454 = arith.constant 4 : index
    %c0_455 = arith.constant 0 : index
    %c0_456 = arith.constant 0 : index
    %371 = vector.load %arg2[%c4_454, %c0_455, %c0_456] : memref<9x64x64xf32, #tpu.memory_space<vmem>>, vector<1x64x64xf32>
    %372 = vector.shape_cast %371 : vector<1x64x64xf32> to vector<64x64xf32>
    %cst_457 = arith.constant dense<0.000000e+00> : vector<64x128xf32>
    %373 = tpu.matmul %372, %343, %cst_457 {dimension_numbers = #tpu.dot_dimension_numbers<[1], [0], [0], [1], [0, 0, 1, 1], [], []>} : vector<64x64xf32>, vector<64x128xf32>, vector<64x128xf32> -> vector<64x128xf32>
    %c5_458 = arith.constant 5 : index
    %c4_459 = arith.constant 4 : index
    %c0_460 = arith.constant 0 : index
    %c0_461 = arith.constant 0 : index
    %374 = vector.load %arg3[%c5_458, %c4_459, %c0_460, %c0_461] : memref<6x9x128x128xf32, #tpu.memory_space<vmem>>, vector<1x1x128x128xf32>
    %375 = vector.shape_cast %374 : vector<1x1x128x128xf32> to vector<128x128xf32>
    %cst_462 = arith.constant dense<0.000000e+00> : vector<64x128xf32>
    %376 = tpu.matmul %373, %375, %cst_462 {dimension_numbers = #tpu.dot_dimension_numbers<[1], [0], [0], [1], [0, 0, 1, 1], [], []>} : vector<64x128xf32>, vector<128x128xf32>, vector<64x128xf32> -> vector<64x128xf32>
    %377 = arith.addf %370, %376 : vector<64x128xf32>
    %c5_463 = arith.constant 5 : index
    %c0_464 = arith.constant 0 : index
    %c0_465 = arith.constant 0 : index
    %378 = vector.load %arg2[%c5_463, %c0_464, %c0_465] : memref<9x64x64xf32, #tpu.memory_space<vmem>>, vector<1x64x64xf32>
    %379 = vector.shape_cast %378 : vector<1x64x64xf32> to vector<64x64xf32>
    %cst_466 = arith.constant dense<0.000000e+00> : vector<64x128xf32>
    %380 = tpu.matmul %379, %343, %cst_466 {dimension_numbers = #tpu.dot_dimension_numbers<[1], [0], [0], [1], [0, 0, 1, 1], [], []>} : vector<64x64xf32>, vector<64x128xf32>, vector<64x128xf32> -> vector<64x128xf32>
    %c5_467 = arith.constant 5 : index
    %c5_468 = arith.constant 5 : index
    %c0_469 = arith.constant 0 : index
    %c0_470 = arith.constant 0 : index
    %381 = vector.load %arg3[%c5_467, %c5_468, %c0_469, %c0_470] : memref<6x9x128x128xf32, #tpu.memory_space<vmem>>, vector<1x1x128x128xf32>
    %382 = vector.shape_cast %381 : vector<1x1x128x128xf32> to vector<128x128xf32>
    %cst_471 = arith.constant dense<0.000000e+00> : vector<64x128xf32>
    %383 = tpu.matmul %380, %382, %cst_471 {dimension_numbers = #tpu.dot_dimension_numbers<[1], [0], [0], [1], [0, 0, 1, 1], [], []>} : vector<64x128xf32>, vector<128x128xf32>, vector<64x128xf32> -> vector<64x128xf32>
    %384 = arith.addf %377, %383 : vector<64x128xf32>
    %c6_472 = arith.constant 6 : index
    %c0_473 = arith.constant 0 : index
    %c0_474 = arith.constant 0 : index
    %385 = vector.load %arg2[%c6_472, %c0_473, %c0_474] : memref<9x64x64xf32, #tpu.memory_space<vmem>>, vector<1x64x64xf32>
    %386 = vector.shape_cast %385 : vector<1x64x64xf32> to vector<64x64xf32>
    %cst_475 = arith.constant dense<0.000000e+00> : vector<64x128xf32>
    %387 = tpu.matmul %386, %343, %cst_475 {dimension_numbers = #tpu.dot_dimension_numbers<[1], [0], [0], [1], [0, 0, 1, 1], [], []>} : vector<64x64xf32>, vector<64x128xf32>, vector<64x128xf32> -> vector<64x128xf32>
    %c5_476 = arith.constant 5 : index
    %c6_477 = arith.constant 6 : index
    %c0_478 = arith.constant 0 : index
    %c0_479 = arith.constant 0 : index
    %388 = vector.load %arg3[%c5_476, %c6_477, %c0_478, %c0_479] : memref<6x9x128x128xf32, #tpu.memory_space<vmem>>, vector<1x1x128x128xf32>
    %389 = vector.shape_cast %388 : vector<1x1x128x128xf32> to vector<128x128xf32>
    %cst_480 = arith.constant dense<0.000000e+00> : vector<64x128xf32>
    %390 = tpu.matmul %387, %389, %cst_480 {dimension_numbers = #tpu.dot_dimension_numbers<[1], [0], [0], [1], [0, 0, 1, 1], [], []>} : vector<64x128xf32>, vector<128x128xf32>, vector<64x128xf32> -> vector<64x128xf32>
    %391 = arith.addf %384, %390 : vector<64x128xf32>
    %c7_481 = arith.constant 7 : index
    %c0_482 = arith.constant 0 : index
    %c0_483 = arith.constant 0 : index
    %392 = vector.load %arg2[%c7_481, %c0_482, %c0_483] : memref<9x64x64xf32, #tpu.memory_space<vmem>>, vector<1x64x64xf32>
    %393 = vector.shape_cast %392 : vector<1x64x64xf32> to vector<64x64xf32>
    %cst_484 = arith.constant dense<0.000000e+00> : vector<64x128xf32>
    %394 = tpu.matmul %393, %343, %cst_484 {dimension_numbers = #tpu.dot_dimension_numbers<[1], [0], [0], [1], [0, 0, 1, 1], [], []>} : vector<64x64xf32>, vector<64x128xf32>, vector<64x128xf32> -> vector<64x128xf32>
    %c5_485 = arith.constant 5 : index
    %c7_486 = arith.constant 7 : index
    %c0_487 = arith.constant 0 : index
    %c0_488 = arith.constant 0 : index
    %395 = vector.load %arg3[%c5_485, %c7_486, %c0_487, %c0_488] : memref<6x9x128x128xf32, #tpu.memory_space<vmem>>, vector<1x1x128x128xf32>
    %396 = vector.shape_cast %395 : vector<1x1x128x128xf32> to vector<128x128xf32>
    %cst_489 = arith.constant dense<0.000000e+00> : vector<64x128xf32>
    %397 = tpu.matmul %394, %396, %cst_489 {dimension_numbers = #tpu.dot_dimension_numbers<[1], [0], [0], [1], [0, 0, 1, 1], [], []>} : vector<64x128xf32>, vector<128x128xf32>, vector<64x128xf32> -> vector<64x128xf32>
    %398 = arith.addf %391, %397 : vector<64x128xf32>
    %c8_490 = arith.constant 8 : index
    %c0_491 = arith.constant 0 : index
    %c0_492 = arith.constant 0 : index
    %399 = vector.load %arg2[%c8_490, %c0_491, %c0_492] : memref<9x64x64xf32, #tpu.memory_space<vmem>>, vector<1x64x64xf32>
    %400 = vector.shape_cast %399 : vector<1x64x64xf32> to vector<64x64xf32>
    %cst_493 = arith.constant dense<0.000000e+00> : vector<64x128xf32>
    %401 = tpu.matmul %400, %343, %cst_493 {dimension_numbers = #tpu.dot_dimension_numbers<[1], [0], [0], [1], [0, 0, 1, 1], [], []>} : vector<64x64xf32>, vector<64x128xf32>, vector<64x128xf32> -> vector<64x128xf32>
    %c5_494 = arith.constant 5 : index
    %c8_495 = arith.constant 8 : index
    %c0_496 = arith.constant 0 : index
    %c0_497 = arith.constant 0 : index
    %402 = vector.load %arg3[%c5_494, %c8_495, %c0_496, %c0_497] : memref<6x9x128x128xf32, #tpu.memory_space<vmem>>, vector<1x1x128x128xf32>
    %403 = vector.shape_cast %402 : vector<1x1x128x128xf32> to vector<128x128xf32>
    %cst_498 = arith.constant dense<0.000000e+00> : vector<64x128xf32>
    %404 = tpu.matmul %401, %403, %cst_498 {dimension_numbers = #tpu.dot_dimension_numbers<[1], [0], [0], [1], [0, 0, 1, 1], [], []>} : vector<64x128xf32>, vector<128x128xf32>, vector<64x128xf32> -> vector<64x128xf32>
    %405 = arith.addf %398, %404 : vector<64x128xf32>
    %c5_499 = arith.constant 5 : index
    %c0_500 = arith.constant 0 : index
    %c0_501 = arith.constant 0 : index
    %406 = vector.load %arg4[%c5_499, %c0_500, %c0_501] : memref<6x1x128xf32, #tpu.memory_space<vmem>>, vector<1x1x128xf32>
    %407 = vector.shape_cast %406 : vector<1x1x128xf32> to vector<1x128xf32>
    %408 = vector.broadcast %407 : vector<1x128xf32> to vector<64x128xf32>
    %409 = arith.addf %405, %408 : vector<64x128xf32>
    %c0_502 = arith.constant 0 : index
    %c0_503 = arith.constant 0 : index
    %c0_504 = arith.constant 0 : index
    %410 = vector.load %arg5[%c0_502, %c0_503, %c0_504] : memref<1x64x128xf32, #tpu.memory_space<vmem>>, vector<1x64x128xf32>
    %411 = vector.shape_cast %410 : vector<1x64x128xf32> to vector<64x128xf32>
    %412 = vector.shape_cast %409 : vector<64x128xf32> to vector<1x64x128xf32>
    tpu.vector_store %arg5[%c0_502, %c0_503, %c0_504], %412 {strides = array<i32>} : memref<1x64x128xf32, #tpu.memory_space<vmem>>, vector<1x64x128xf32>,
    return
  }
  func.func @transform_0(%arg0: i32) -> (i32, i32, i32) {
    %c0_i32 = arith.constant 0 : i32
    %c0_i32_0 = arith.constant 0 : i32
    %c0_i32_1 = arith.constant 0 : i32
    return %arg0, %c0_i32, %c0_i32_0 : i32, i32, i32
  }
  func.func @transform_1(%arg0: i32) -> (i32, i32, i32) {
    %c0_i32 = arith.constant 0 : i32
    %c0_i32_0 = arith.constant 0 : i32
    %c0_i32_1 = arith.constant 0 : i32
    %c0_i32_2 = arith.constant 0 : i32
    return %c0_i32, %c0_i32_0, %c0_i32_1 : i32, i32, i32
  }
  func.func @transform_2(%arg0: i32) -> (i32, i32, i32, i32) {
    %c0_i32 = arith.constant 0 : i32
    %c0_i32_0 = arith.constant 0 : i32
    %c0_i32_1 = arith.constant 0 : i32
    %c0_i32_2 = arith.constant 0 : i32
    %c0_i32_3 = arith.constant 0 : i32
    return %c0_i32, %c0_i32_0, %c0_i32_1, %c0_i32_2 : i32, i32, i32, i32
  }
  func.func @transform_3(%arg0: i32) -> (i32, i32, i32) {
    %c0_i32 = arith.constant 0 : i32
    %c0_i32_0 = arith.constant 0 : i32
    %c0_i32_1 = arith.constant 0 : i32
    %c0_i32_2 = arith.constant 0 : i32
    return %c0_i32, %c0_i32_0, %c0_i32_1 : i32, i32, i32
  }
  func.func @transform_4(%arg0: i32) -> (i32, i32, i32) {
    %c0_i32 = arith.constant 0 : i32
    %c0_i32_0 = arith.constant 0 : i32
    %c0_i32_1 = arith.constant 0 : i32
    return %arg0, %c0_i32, %c0_i32_0 : i32, i32, i32
  }
}

</mosaic_0001>

<bundles_post_ra>
// kernel: chess_resnet_forward.1
= control target key start
LH: loop header
LB: loop body
LE: loop exit
PB: predicated region body
PF: predicated region fallthrough
CT: control target
= control target key end

     0   :  { %s24094_s15 = smov 0   ;;  %s30003_s0 = inlined_call_operand.vmem [shape: f32[2,64,128], index: 0, kind: input, shape index: {}]   ;;  %s30004_s1 = inlined_call_operand.vmem [shape: f32[9,64,64], index: 1, kind: input, shape index: {}]   ;;  %s30005_s2 = inlined_call_operand.vmem [shape: f32[6,9,128,128], index: 2, kind: input, shape index: {}]   ;;  %s30006_s3 = inlined_call_operand.vmem [shape: f32[6,1,128], index: 3, kind: input, shape index: {}]   ;;  %s30007_s4 = inlined_call_operand.vmem [shape: f32[2,64,128], index: 4, kind: output, shape index: {}]  }
   0x1 LB: > { %s13310_s16 = sadd.s32 4294967295, %s24067_s15   ;;  %p13314_p0 = scmp.ge.s32.totalorder %s24067_s15, 1  ;;  %s24067_s15 = sphi %s24094_s15, %s14_s15  }
   0x2   : > { %p162_p1 = scmp.lt.s32.totalorder %s24067_s15, 3 }
   0x4   : > { %p163_p2 = pnand %p13314_p0, %p162_p1 }
   0x6   : > { %166 = sbr.rel (%p163_p2) target bundleno = 5502 (0x157e), region = 36 }
   0xd   : > { %p188_p3 = scmp.lt.s32.totalorder %s13310_s16, 1  ;;  %v24105_v0 = vld [vmem:[%s30004_s1] sm:$0xff]  ;;  %vm214_vm0 = vcmask 523264   ;;  %v207_v14 = vld [vmem:[%s30004_s1 + $0x8] sm:$0xff]  ;;  %v208_v16 = vld [vmem:[%s30004_s1 + $0x10] sm:$0xff] }
   0xe   : > { %16854 = vmatprep.mubr.msk.f32.mxu0 %vm214_vm0, %v24105_v0  ;;  %v13359_v1 = vld [vmem:[%s30004_s1 + $0x80] sm:$0xff]  ;;  %v13360_v15 = vld [vmem:[%s30004_s1 + $0x88] sm:$0xff]  ;;  %v13361_v17 = vld [vmem:[%s30004_s1 + $0x90] sm:$0xff] }
   0xf   : > { %s30034_s16 = smov (!%p188_p3, %s13310_s16), 1  ;;  %16998 = vmatprep.mubr.msk.f32.mxu1 %vm214_vm0, %v13359_v1  ;;  %v209_v18 = vld [vmem:[%s30004_s1 + $0x18] sm:$0xff]  ;;  %v210_v20 = vld [vmem:[%s30004_s1 + $0x20] sm:$0xff]  ;;  %v211_v22 = vld [vmem:[%s30004_s1 + $0x28] sm:$0xff] }
  0x10   : > { %s14676_s19 = sshll.u32 %s30034_s16, 6  ;;  %v13362_v19 = vld [vmem:[%s30004_s1 + $0x98] sm:$0xff]  ;;  %v13363_v21 = vld [vmem:[%s30004_s1 + $0xa0] sm:$0xff]  ;;  %v13364_v23 = vld [vmem:[%s30004_s1 + $0xa8] sm:$0xff] }
  0x11   : > { %s192_s22 = scalar_lea.vmem %s30003_s0, %s14676_s19  ;;  %v212_v24 = vld [vmem:[%s30004_s1 + $0x30] sm:$0xff]  ;;  %v13343_v26 = vld [vmem:[%s30005_s2 + $0x80] sm:$0xff]  ;;  %v13344_v27 = vld [vmem:[%s30005_s2 + $0x88] sm:$0xff]  ;;  %s197_s7 = scalar_lea.vmem %s30007_s4, %s14676_s19 }
  0x12   : > { %v198_v2 = vld [vmem:[%s192_s22] sm:$0xff]  ;;  %v199_v3 = vld [vmem:[%s192_s22 + $0x8] sm:$0xff]  ;;  %v200_v4 = vld [vmem:[%s192_s22 + $0x10] sm:$0xff]  ;;  %v20758_v32 = vpack.c.bf16 %v13344_v27, %v13343_v26 }
  0x13   : > { %v24121_v5 = vpack.c.bf16 %v199_v3, %v198_v2  ;;  %v201_v6 = vld [vmem:[%s192_s22 + $0x18] sm:$0xff]  ;;  %v202_v8 = vld [vmem:[%s192_s22 + $0x20] sm:$0xff]  ;;  %v203_v9 = vld [vmem:[%s192_s22 + $0x28] sm:$0xff] }
  0x14   : > { %v24123_v7 = vpack.c.bf16 %v201_v6, %v200_v4  ;;  %v24130_v10 = vpack.c.bf16 %v203_v9, %v202_v8  ;;  %v204_v11 = vld [vmem:[%s192_s22 + $0x30] sm:$0xff]  ;;  %v205_v12 = vld [vmem:[%s192_s22 + $0x38] sm:$0xff]  ;;  %v13327_v30 = vld [vmem:[%s30004_s1 + $0x40] sm:$0xff] }
  0x15   : > { %20727 = vmatprep.subr.bf16.mxu0 %v24121_v5  ;;  %20823 = vmatprep.subr.bf16.mxu1 %v24121_v5  ;;  %v24136_v13 = vpack.c.bf16 %v205_v12, %v204_v11  ;;  %v13365_v25 = vld [vmem:[%s30004_s1 + $0xb0] sm:$0xff]  ;;  %v213_v28 = vld [vmem:[%s30004_s1 + $0x38] sm:$0xff]  ;;  %v13391_v31 = vld [vmem:[%s30004_s1 + $0xc0] sm:$0xff] }
  0x16   : > { %20729 = vmatpush3.bf16.msra.mxu0 %v24121_v5  ;;  %20825 = vmatpush3.bf16.msra.mxu1 %v24121_v5  ;;  %v13366_v29 = vld [vmem:[%s30004_s1 + $0xb8] sm:$0xff]  ;;  %v13328_v33 = vld [vmem:[%s30004_s1 + $0x48] sm:$0xff]  ;;  %v13345_v34 = vld [vmem:[%s30005_s2 + $0x90] sm:$0xff] }
  0x17   : > { %20731 = vmatprep.subr.bf16.mxu0 %v24123_v7  ;;  %20827 = vmatprep.subr.bf16.mxu1 %v24123_v7  ;;  %v13346_v35 = vld [vmem:[%s30005_s2 + $0x98] sm:$0xff]  ;;  %v13329_v36 = vld [vmem:[%s30004_s1 + $0x50] sm:$0xff]  ;;  %v13392_v37 = vld [vmem:[%s30004_s1 + $0xc8] sm:$0xff] }
  0x18   : > { %v13393_v38 = vld [vmem:[%s30004_s1 + $0xd0] sm:$0xff]  ;;  %v20762_v39 = vpack.c.bf16 %v13346_v35, %v13345_v34  ;;  %v13330_v40 = vld [vmem:[%s30004_s1 + $0x58] sm:$0xff]  ;;  %v13347_v41 = vld [vmem:[%s30005_s2 + $0xa0] sm:$0xff] }
  0x19   : > { %v13348_v42 = vld [vmem:[%s30005_s2 + $0xa8] sm:$0xff]  ;;  %v13331_v43 = vld [vmem:[%s30004_s1 + $0x60] sm:$0xff]  ;;  %v13394_v44 = vld [vmem:[%s30004_s1 + $0xd8] sm:$0xff] }
  0x1a   : > { %20733 = vmatpush3.bf16.msra.mxu0 %v24123_v7  ;;  %20829 = vmatpush3.bf16.msra.mxu1 %v24123_v7  ;;  %v13395_v45 = vld [vmem:[%s30004_s1 + $0xe0] sm:$0xff]  ;;  %v20766_v46 = vpack.c.bf16 %v13348_v42, %v13347_v41  ;;  %v13332_v47 = vld [vmem:[%s30004_s1 + $0x68] sm:$0xff]  ;;  %v13349_v48 = vld [vmem:[%s30005_s2 + $0xb0] sm:$0xff] }
  0x1b   : > { %20735 = vmatprep.subr.bf16.mxu0 %v24130_v10  ;;  %20831 = vmatprep.subr.bf16.mxu1 %v24130_v10  ;;  %v13350_v49 = vld [vmem:[%s30005_s2 + $0xb8] sm:$0xff]  ;;  %v13333_v50 = vld [vmem:[%s30004_s1 + $0x70] sm:$0xff]  ;;  %v13396_v51 = vld [vmem:[%s30004_s1 + $0xe8] sm:$0xff] }
  0x1c   : > { %v13397_v52 = vld [vmem:[%s30004_s1 + $0xf0] sm:$0xff]  ;;  %v20770_v53 = vpack.c.bf16 %v13350_v49, %v13349_v48  ;;  %v13334_v54 = vld [vmem:[%s30004_s1 + $0x78] sm:$0xff]  ;;  %v13423_v56 = vld [vmem:[%s30004_s1 + $0x100] sm:$0xff] }
  0x1d   : > { %v13398_v55 = vld [vmem:[%s30004_s1 + $0xf8] sm:$0xff]  ;;  %v13424_v57 = vld [vmem:[%s30004_s1 + $0x108] sm:$0xff]  ;;  %v13425_v58 = vld [vmem:[%s30004_s1 + $0x110] sm:$0xff] }
  0x1e   : > { %20737 = vmatpush3.bf16.msra.mxu0 %v24130_v10  ;;  %20833 = vmatpush3.bf16.msra.mxu1 %v24130_v10  ;;  %v13426_v59 = vld [vmem:[%s30004_s1 + $0x118] sm:$0xff]  ;;  %v13427_v60 = vld [vmem:[%s30004_s1 + $0x120] sm:$0xff]  ;;  %v13428_v61 = vld [vmem:[%s30004_s1 + $0x128] sm:$0xff] }
  0x1f   : > { %20739 = vmatprep.subr.bf16.mxu0 %v24136_v13  ;;  %20835 = vmatprep.subr.bf16.mxu1 %v24136_v13  ;;  %v13429_v62 = vld [vmem:[%s30004_s1 + $0x130] sm:$0xff]  ;;  %v13430_v63 = vld [vmem:[%s30004_s1 + $0x138] sm:$0xff]  ;;  %v13455_v1 = vld [vmem:[%s30004_s1 + $0x140] sm:$0xff] }
  0x20   : > { %v13456_v2 = vld [vmem:[%s30004_s1 + $0x148] sm:$0xff]  ;;  %v13457_v3 = vld [vmem:[%s30004_s1 + $0x150] sm:$0xff]  ;;  %v13458_v4 = vld [vmem:[%s30004_s1 + $0x158] sm:$0xff] }
  0x21   : > { %v13459_v6 = vld [vmem:[%s30004_s1 + $0x160] sm:$0xff]  ;;  %v13460_v8 = vld [vmem:[%s30004_s1 + $0x168] sm:$0xff]  ;;  %v13461_v9 = vld [vmem:[%s30004_s1 + $0x170] sm:$0xff] }
  0x22   : > { %20741 = vmatpush3.bf16.msra.mxu0 %v24136_v13  ;;  %20837 = vmatpush3.bf16.msra.mxu1 %v24136_v13  ;;  %v13462_v11 = vld [vmem:[%s30004_s1 + $0x178] sm:$0xff]  ;;  %v13487_v12 = vld [vmem:[%s30004_s1 + $0x180] sm:$0xff]  ;;  %v13489_v27 = vld [vmem:[%s30004_s1 + $0x190] sm:$0xff] }
  0x23   : > { %20743 = vmatprep.subr.bf16.mxu0 %v24121_v5  ;;  %20871 = vmatprep.subr.bf16.mxu1 %v24121_v5  ;;  %v13493_v34 = vld [vmem:[%s30004_s1 + $0x1b0] sm:$0xff]  ;;  %v13494_v35 = vld [vmem:[%s30004_s1 + $0x1b8] sm:$0xff]  ;;  %v13552_v41 = vld [vmem:[%s30004_s1 + $0x208] sm:$0xff] }
  0x24   : > { %v13553_v42 = vld [vmem:[%s30004_s1 + $0x210] sm:$0xff] }
  0x25   : > { %16855 = vmatmul.mubr.msk.f32.vlgmr.msra.gmra.mrb[0].mxu0 %vm214_vm0, %v207_v14  ;;  %16999 = vmatmul.mubr.msk.f32.vlgmr.msra.gmra.mrb[0].mxu1 %vm214_vm0, %v13360_v15  ;;  %v13488_v14 = vld [vmem:[%s30004_s1 + $0x188] sm:$0xff]  ;;  %v13351_v15 = vld [vmem:[%s30005_s2 + $0xc0] sm:$0xff] }
  0x26   : > { %20745 = vmatpush3.bf16.msra.mxu0 %v24121_v5  ;;  %16857 = vmatprep.mubr.msk.f32.mxu0 %vm214_vm0, %v208_v16  ;;  %v13352_v16 = vld [vmem:[%s30005_s2 + $0xc8] sm:$0xff] }
  0x27   : > { %20747 = vmatprep.subr.bf16.mxu0 %v24123_v7  ;;  %20873 = vmatpush3.bf16.msra.mxu1 %v24121_v5 }
  0x28   : > { %17001 = vmatprep.mubr.msk.f32.mxu1 %vm214_vm0, %v13361_v17  ;;  %20875 = vmatprep.subr.bf16.mxu1 %v24123_v7  ;;  %v20774_v17 = vpack.c.bf16 %v13352_v16, %v13351_v15 }
  0x29   : > { %16858 = vmatmul.mubr.msk.f32.gmra.mrb[2].mxu0 %vm214_vm0, %v209_v18  ;;  %17002 = vmatmul.mubr.msk.f32.gmra.mrb[2].mxu1 %vm214_vm0, %v13362_v19  ;;  %v13353_v18 = vld [vmem:[%s30005_s2 + $0xd0] sm:$0xff]  ;;  %v13354_v19 = vld [vmem:[%s30005_s2 + $0xd8] sm:$0xff] }
  0x2a   : > { %20749 = vmatpush3.bf16.msra.mxu0 %v24123_v7  ;;  %16860 = vmatprep.mubr.msk.f32.mxu0 %vm214_vm0, %v210_v20  ;;  %v20778_v20 = vpack.c.bf16 %v13354_v19, %v13353_v18  ;;  %v351_v18 = vld [vmem:[%s30005_s2 + $0x38] sm:$0xff] }
  0x2b   : > { %20751 = vmatprep.subr.bf16.mxu0 %v24130_v10  ;;  %20877 = vmatpush3.bf16.msra.mxu1 %v24123_v7 }
  0x2c   : > { %17004 = vmatprep.mubr.msk.f32.mxu1 %vm214_vm0, %v13363_v21  ;;  %20879 = vmatprep.subr.bf16.mxu1 %v24130_v10  ;;  %v13355_v21 = vld [vmem:[%s30005_s2 + $0xe0] sm:$0xff] }
  0x2d   : > { %16861 = vmatmul.mubr.msk.f32.gmra.mrb[4].mxu0 %vm214_vm0, %v211_v22  ;;  %17005 = vmatmul.mubr.msk.f32.gmra.mrb[4].mxu1 %vm214_vm0, %v13364_v23  ;;  %v13356_v22 = vld [vmem:[%s30005_s2 + $0xe8] sm:$0xff] }
  0x2e   : > { %20753 = vmatpush3.bf16.msra.mxu0 %v24130_v10  ;;  %16863 = vmatprep.mubr.msk.f32.mxu0 %vm214_vm0, %v212_v24  ;;  %v20782_v23 = vpack.c.bf16 %v13356_v22, %v13355_v21  ;;  %v13357_v24 = vld [vmem:[%s30005_s2 + $0xf0] sm:$0xff] }
  0x2f   : > { %20755 = vmatprep.subr.bf16.mxu0 %v24136_v13  ;;  %20881 = vmatpush3.bf16.msra.mxu1 %v24130_v10 }
  0x30   : > { %17007 = vmatprep.mubr.msk.f32.mxu1 %vm214_vm0, %v13365_v25  ;;  %20883 = vmatprep.subr.bf16.mxu1 %v24136_v13  ;;  %v13358_v25 = vld [vmem:[%s30005_s2 + $0xf8] sm:$0xff] }
  0x31   : > { %16864 = vmatmul.mubr.msk.f32.gmra.mrb[6].mxu0 %vm214_vm0, %v213_v28  ;;  %17008 = vmatmul.mubr.msk.f32.gmra.mrb[6].mxu1 %vm214_vm0, %v13366_v29  ;;  %v20786_v26 = vpack.c.bf16 %v13358_v25, %v13357_v24  ;;  %v13490_v28 = vld [vmem:[%s30004_s1 + $0x198] sm:$0xff]  ;;  %v344_v29 = vld [vmem:[%s30005_s2] sm:$0xff]  ;;  %v353_v25 = vld [vmem:[%s30005_s2 + $0x48] sm:$0xff] }
  0x32   : > { %20757 = vmatpush3.bf16.msra.mxu0 %v24136_v13  ;;  %16882 = vmatprep.mubr.msk.f32.mxu0 %vm214_vm0, %v13327_v30  ;;  %v345_v30 = vld [vmem:[%s30005_s2 + $0x8] sm:$0xff]  ;;  %v352_v24 = vld [vmem:[%s30005_s2 + $0x40] sm:$0xff] }
  0x33   : > { %20885 = vmatpush3.bf16.msra.mxu1 %v24136_v13  ;;  %17070 = vmatprep.mubr.msk.f32.mxu1 %vm214_vm0, %v13391_v31  ;;  %v24448_v31 = vpack.c.bf16 %v345_v30, %v344_v29  ;;  %v20806_v29 = vpack.c.bf16 %v353_v25, %v352_v24  ;;  %v13389_v24 = vld [vmem:[%s30005_s2 + $0x170] sm:$0xff]  ;;  %v13390_v25 = vld [vmem:[%s30005_s2 + $0x178] sm:$0xff] }
  0x34   : > { %20919 = vmatprep.subr.bf16.mxu1 %v24121_v5  ;;  %20759 = vmatprep.subr.bf16.mxu0 %v20758_v32 }
  0x35   : > { %16883 = vmatmul.mubr.msk.f32.vlgmr.msra.gmra.mrb[8].mxu0 %vm214_vm0, %v13328_v33  ;;  %v13492_v33 = vld [vmem:[%s30004_s1 + $0x1a8] sm:$0xff] }
  0x36   : > { %16885 = vmatprep.mubr.msk.f32.mxu0 %vm214_vm0, %v13329_v36  ;;  %17071 = vmatmul.mubr.msk.f32.vlgmr.msra.gmra.mrb[8].mxu1 %vm214_vm0, %v13392_v37  ;;  %v13519_v36 = vld [vmem:[%s30004_s1 + $0x1c0] sm:$0xff]  ;;  %v13520_v37 = vld [vmem:[%s30004_s1 + $0x1c8] sm:$0xff] }
  0x37   : > { %20921 = vmatpush3.bf16.msra.mxu1 %v24121_v5  ;;  %17073 = vmatprep.mubr.msk.f32.mxu1 %vm214_vm0, %v13393_v38  ;;  %v13521_v38 = vld [vmem:[%s30004_s1 + $0x1d0] sm:$0xff] }
  0x38   : > { %20923 = vmatprep.subr.bf16.mxu1 %v24123_v7  ;;  %20761 = vmatpush3.bf16.msra.mxu0 %v20758_v32  ;;  %v13491_v32 = vld [vmem:[%s30004_s1 + $0x1a0] sm:$0xff] }
  0x39   : > { %16886 = vmatmul.mubr.msk.f32.gmra.mrb[10].mxu0 %vm214_vm0, %v13330_v40  ;;  %20763 = vmatprep.subr.bf16.mxu0 %v20762_v39  ;;  %v13551_v40 = vld [vmem:[%s30004_s1 + $0x200] sm:$0xff] }
  0x3a   : > { %16888 = vmatprep.mubr.msk.f32.mxu0 %vm214_vm0, %v13331_v43  ;;  %17074 = vmatmul.mubr.msk.f32.gmra.mrb[10].mxu1 %vm214_vm0, %v13394_v44  ;;  %v13554_v43 = vld [vmem:[%s30004_s1 + $0x218] sm:$0xff]  ;;  %v13555_v44 = vld [vmem:[%s30004_s1 + $0x220] sm:$0xff] }
  0x3b   : > { %20925 = vmatpush3.bf16.msra.mxu1 %v24123_v7  ;;  %17076 = vmatprep.mubr.msk.f32.mxu1 %vm214_vm0, %v13395_v45  ;;  %v13556_v45 = vld [vmem:[%s30004_s1 + $0x228] sm:$0xff] }
  0x3c   : > { %20927 = vmatprep.subr.bf16.mxu1 %v24130_v10  ;;  %20765 = vmatpush3.bf16.msra.mxu0 %v20762_v39  ;;  %v13526_v39 = vld [vmem:[%s30004_s1 + $0x1f8] sm:$0xff] }
  0x3d   : > { %16889 = vmatmul.mubr.msk.f32.gmra.mrb[12].mxu0 %vm214_vm0, %v13332_v47  ;;  %20767 = vmatprep.subr.bf16.mxu0 %v20766_v46  ;;  %v13558_v47 = vld [vmem:[%s30004_s1 + $0x238] sm:$0xff] }
  0x3e   : > { %16891 = vmatprep.mubr.msk.f32.mxu0 %vm214_vm0, %v13333_v50  ;;  %17077 = vmatmul.mubr.msk.f32.gmra.mrb[12].mxu1 %vm214_vm0, %v13396_v51 }
  0x3f   : > { %20929 = vmatpush3.bf16.msra.mxu1 %v24130_v10  ;;  %17079 = vmatprep.mubr.msk.f32.mxu1 %vm214_vm0, %v13397_v52 }
  0x40   : > { %20931 = vmatprep.subr.bf16.mxu1 %v24136_v13  ;;  %20769 = vmatpush3.bf16.msra.mxu0 %v20766_v46  ;;  %v13557_v46 = vld [vmem:[%s30004_s1 + $0x230] sm:$0xff] }
  0x41   : > { %16892 = vmatmul.mubr.msk.f32.gmra.mrb[14].mxu0 %vm214_vm0, %v13334_v54  ;;  %20771 = vmatprep.subr.bf16.mxu0 %v20770_v53 }
  0x42   : > { %17080 = vmatmul.mubr.msk.f32.gmra.mrb[14].mxu1 %vm214_vm0, %v13398_v55 }
  0x43   : > { %20933 = vmatpush3.bf16.msra.mxu1 %v24136_v13  ;;  %17142 = vmatprep.mubr.msk.f32.mxu1 %vm214_vm0, %v13423_v56 }
  0x44   : > { %20967 = vmatprep.subr.bf16.mxu1 %v24121_v5  ;;  %20773 = vmatpush3.bf16.msra.mxu0 %v20770_v53 }
  0x45   : > { %20775 = vmatprep.subr.bf16.mxu0 %v20774_v17 }
  0x46   : > { %17143 = vmatmul.mubr.msk.f32.vlgmr.msra.gmra.mrb[16].mxu1 %vm214_vm0, %v13424_v57 }
  0x47   : > { %20969 = vmatpush3.bf16.msra.mxu1 %v24121_v5  ;;  %17145 = vmatprep.mubr.msk.f32.mxu1 %vm214_vm0, %v13425_v58 }
  0x48   : > { %20971 = vmatprep.subr.bf16.mxu1 %v24123_v7  ;;  %20777 = vmatpush3.bf16.msra.mxu0 %v20774_v17  ;;  %v350_v17 = vld [vmem:[%s30005_s2 + $0x30] sm:$0xff] }
  0x49   : > { %20779 = vmatprep.subr.bf16.mxu0 %v20778_v20  ;;  %v20802_v22 = vpack.c.bf16 %v351_v18, %v350_v17  ;;  %v13386_v17 = vld [vmem:[%s30005_s2 + $0x158] sm:$0xff] }
  0x4a   : > { %17146 = vmatmul.mubr.msk.f32.gmra.mrb[18].mxu1 %vm214_vm0, %v13426_v59 }
  0x4b   : > { %20973 = vmatpush3.bf16.msra.mxu1 %v24123_v7  ;;  %17148 = vmatprep.mubr.msk.f32.mxu1 %vm214_vm0, %v13427_v60 }
  0x4c   : > { %20975 = vmatprep.subr.bf16.mxu1 %v24130_v10  ;;  %20781 = vmatpush3.bf16.msra.mxu0 %v20778_v20 }
  0x4d   : > { %20783 = vmatprep.subr.bf16.mxu0 %v20782_v23 }
  0x4e   : > { %17149 = vmatmul.mubr.msk.f32.gmra.mrb[20].mxu1 %vm214_vm0, %v13428_v61 }
  0x4f   : > { %20977 = vmatpush3.bf16.msra.mxu1 %v24130_v10  ;;  %17151 = vmatprep.mubr.msk.f32.mxu1 %vm214_vm0, %v13429_v62 }
  0x50   : > { %20979 = vmatprep.subr.bf16.mxu1 %v24136_v13  ;;  %20785 = vmatpush3.bf16.msra.mxu0 %v20782_v23 }
  0x51   : > { %20787 = vmatprep.subr.bf16.mxu0 %v20786_v26 }
  0x52   : > { %17152 = vmatmul.mubr.msk.f32.gmra.mrb[22].mxu1 %vm214_vm0, %v13430_v63  ;;  %v346_v63 = vld [vmem:[%s30005_s2 + $0x10] sm:$0xff] }
  0x53   : > { %20981 = vmatpush3.bf16.msra.mxu1 %v24136_v13  ;;  %17214 = vmatprep.mubr.msk.f32.mxu1 %vm214_vm0, %v13455_v1  ;;  %v347_v1 = vld [vmem:[%s30005_s2 + $0x18] sm:$0xff] }
  0x54   : > { %21015 = vmatprep.subr.bf16.mxu1 %v24121_v5  ;;  %20789 = vmatpush3.bf16.msra.mxu0 %v20786_v26 }
  0x55   : > { %20791 = vmatprep.subr.bf16.mxu0 %v24448_v31 }
  0x56   : > { %17215 = vmatmul.mubr.msk.f32.vlgmr.msra.gmra.mrb[24].mxu1 %vm214_vm0, %v13456_v2 }
  0x57   : > { %21017 = vmatpush3.bf16.msra.mxu1 %v24121_v5  ;;  %17217 = vmatprep.mubr.msk.f32.mxu1 %vm214_vm0, %v13457_v3 }
  0x58   : > { %21019 = vmatprep.subr.bf16.mxu1 %v24123_v7 }
  0x5a   : > { %17218 = vmatmul.mubr.msk.f32.gmra.mrb[26].mxu1 %vm214_vm0, %v13458_v4  ;;  %v20794_v4 = vpack.c.bf16 %v347_v1, %v346_v63 }
  0x5b   : > { %21021 = vmatpush3.bf16.msra.mxu1 %v24123_v7  ;;  %17220 = vmatprep.mubr.msk.f32.mxu1 %vm214_vm0, %v13459_v6 }
  0x5c   : > { %21023 = vmatprep.subr.bf16.mxu1 %v24130_v10 }
  0x5e   : > { %17221 = vmatmul.mubr.msk.f32.gmra.mrb[28].mxu1 %vm214_vm0, %v13460_v8  ;;  %v348_v8 = vld [vmem:[%s30005_s2 + $0x20] sm:$0xff] }
  0x5f   : > { %21025 = vmatpush3.bf16.msra.mxu1 %v24130_v10  ;;  %17223 = vmatprep.mubr.msk.f32.mxu1 %vm214_vm0, %v13461_v9  ;;  %v349_v9 = vld [vmem:[%s30005_s2 + $0x28] sm:$0xff] }
  0x60   : > { %21027 = vmatprep.subr.bf16.mxu1 %v24136_v13  ;;  %v20798_v15 = vpack.c.bf16 %v349_v9, %v348_v8 }
  0x62   : > { %17224 = vmatmul.mubr.msk.f32.gmra.mrb[30].mxu1 %vm214_vm0, %v13462_v11 }
  0x63   : > { %21029 = vmatpush3.bf16.msra.mxu1 %v24136_v13  ;;  %17286 = vmatprep.mubr.msk.f32.mxu1 %vm214_vm0, %v13487_v12 }
  0x64   : > { %21063 = vmatprep.subr.bf16.mxu1 %v24121_v5 }
  0x66   : > { %17287 = vmatmul.mubr.msk.f32.vlgmr.msra.gmra.mrb[32].mxu1 %vm214_vm0, %v13488_v14 }
  0x67   : > { %21065 = vmatpush3.bf16.msra.mxu1 %v24121_v5  ;;  %17289 = vmatprep.mubr.msk.f32.mxu1 %vm214_vm0, %v13489_v27 }
  0x68   : > { %21067 = vmatprep.subr.bf16.mxu1 %v24123_v7 }
  0x6a   : > { %17290 = vmatmul.mubr.msk.f32.gmra.mrb[34].mxu1 %vm214_vm0, %v13490_v28 }
  0x6b   : > { %21069 = vmatpush3.bf16.msra.mxu1 %v24123_v7  ;;  %17292 = vmatprep.mubr.msk.f32.mxu1 %vm214_vm0, %v13491_v32  ;;  %v355_v32 = vld [vmem:[%s30005_s2 + $0x58] sm:$0xff] }
  0x6c   : > { %21071 = vmatprep.subr.bf16.mxu1 %v24130_v10 }
  0x6e   : > { %17293 = vmatmul.mubr.msk.f32.gmra.mrb[36].mxu1 %vm214_vm0, %v13492_v33 }
  0x6f   : > { %21073 = vmatpush3.bf16.msra.mxu1 %v24130_v10  ;;  %17295 = vmatprep.mubr.msk.f32.mxu1 %vm214_vm0, %v13493_v34 }
  0x70   : > { %21075 = vmatprep.subr.bf16.mxu1 %v24136_v13 }
  0x72   : > { %17296 = vmatmul.mubr.msk.f32.gmra.mrb[38].mxu1 %vm214_vm0, %v13494_v35 }
  0x73   : > { %21077 = vmatpush3.bf16.msra.mxu1 %v24136_v13  ;;  %17358 = vmatprep.mubr.msk.f32.mxu1 %vm214_vm0, %v13519_v36  ;;  %v356_v36 = vld [vmem:[%s30005_s2 + $0x60] sm:$0xff] }
  0x74   : > { %21111 = vmatprep.subr.bf16.mxu1 %v24121_v5 }
  0x76   : > { %17359 = vmatmul.mubr.msk.f32.vlgmr.msra.gmra.mrb[40].mxu1 %vm214_vm0, %v13520_v37  ;;  %v357_v37 = vld [vmem:[%s30005_s2 + $0x68] sm:$0xff] }
  0x77   : > { %21113 = vmatpush3.bf16.msra.mxu1 %v24121_v5  ;;  %17361 = vmatprep.mubr.msk.f32.mxu1 %vm214_vm0, %v13521_v38  ;;  %v13522_v5 = vld [vmem:[%s30004_s1 + $0x1d8] sm:$0xff] }
  0x78   : > { %21115 = vmatprep.subr.bf16.mxu1 %v24123_v7 }
  0x7a   : > { %17362 = vmatmul.mubr.msk.f32.gmra.mrb[42].mxu1 %vm214_vm0, %v13522_v5  ;;  %v20814_v5 = vpack.c.bf16 %v357_v37, %v356_v36  ;;  %v13409_v37 = vld [vmem:[%s30005_s2 + $0x190] sm:$0xff] }
  0x7b   : > { %21117 = vmatpush3.bf16.msra.mxu1 %v24123_v7  ;;  %v13523_v7 = vld [vmem:[%s30004_s1 + $0x1e0] sm:$0xff] }
  0x7c   : > { %21119 = vmatprep.subr.bf16.mxu1 %v24130_v10  ;;  %17364 = vmatprep.mubr.msk.f32.mxu1 %vm214_vm0, %v13523_v7 }
  0x7f   : > { %21121 = vmatpush3.bf16.msra.mxu1 %v24130_v10  ;;  %v13524_v10 = vld [vmem:[%s30004_s1 + $0x1e8] sm:$0xff] }
  0x80   : > { %21123 = vmatprep.subr.bf16.mxu1 %v24136_v13  ;;  %17365 = vmatmul.mubr.msk.f32.gmra.mrb[44].mxu1 %vm214_vm0, %v13524_v10  ;;  %v358_v10 = vld [vmem:[%s30005_s2 + $0x70] sm:$0xff] }
  0x83   : > { %21125 = vmatpush3.bf16.msra.mxu1 %v24136_v13  ;;  %v13525_v13 = vld [vmem:[%s30004_s1 + $0x1f0] sm:$0xff] }
  0x84   : > { %17367 = vmatprep.mubr.msk.f32.mxu1 %vm214_vm0, %v13525_v13  ;;  %v359_v13 = vld [vmem:[%s30005_s2 + $0x78] sm:$0xff] }
  0x85   : > { %17368 = vmatmul.mubr.msk.f32.gmra.mrb[46].mxu1 %vm214_vm0, %v13526_v39 }
  0x86   : > { %17430 = vmatprep.mubr.msk.f32.mxu1 %vm214_vm0, %v13551_v40  ;;  %v20818_v40 = vpack.c.bf16 %v359_v13, %v358_v10 }
  0x89   : > { %17431 = vmatmul.mubr.msk.f32.vlgmr.msra.gmra.mrb[48].mxu1 %vm214_vm0, %v13552_v41 }
  0x8a   : > { %17433 = vmatprep.mubr.msk.f32.mxu1 %vm214_vm0, %v13553_v42  ;;  %v13375_v42 = vld [vmem:[%s30005_s2 + $0x100] sm:$0xff] }
  0x8d   : > { %17434 = vmatmul.mubr.msk.f32.gmra.mrb[50].mxu1 %vm214_vm0, %v13554_v43  ;;  %v13376_v43 = vld [vmem:[%s30005_s2 + $0x108] sm:$0xff] }
  0x8e   : > { %17436 = vmatprep.mubr.msk.f32.mxu1 %vm214_vm0, %v13555_v44 }
  0x91   : > { %17437 = vmatmul.mubr.msk.f32.gmra.mrb[52].mxu1 %vm214_vm0, %v13556_v45  ;;  %v20838_v45 = vpack.c.bf16 %v13376_v43, %v13375_v42  ;;  %v13412_v42 = vld [vmem:[%s30005_s2 + $0x1a8] sm:$0xff] }
  0x92   : > { %17439 = vmatprep.mubr.msk.f32.mxu1 %vm214_vm0, %v13557_v46 }
  0x95   : > { %17440 = vmatmul.mubr.msk.f32.gmra.mrb[54].mxu1 %vm214_vm0, %v13558_v47  ;;  %v13377_v47 = vld [vmem:[%s30005_s2 + $0x110] sm:$0xff] }
  0x96   : > { %17502 = vmatprep.mubr.msk.f32.mxu1 %vm214_vm0, %v24105_v0 }
  0xf8   : > { %v24540_v48 = vpop.f32.mrb[0].mxu0  ;;  %v24542_v49 = vpop.f32.mrb[0].mxu1 }
  0xf9   : > { %v305_v50 = vpop.f32.mrb[1].mxu0  ;;  %v24544_v51 = vpop.f32.mrb[1].mxu1 }
  0xfc   : > { %v24546_v52 = vpop.f32.mrb[2].mxu0  ;;  %v24548_v53 = vpop.f32.mrb[2].mxu1 }
  0xfd   : > { %v24550_v54 = vpop.f32.mrb[3].mxu0  ;;  %v24552_v55 = vpop.f32.mrb[3].mxu1 }
 0x100   : > { %v24554_v56 = vpop.f32.mrb[4].mxu0  ;;  %v24556_v57 = vpop.f32.mrb[4].mxu1 }
 0x101   : > { %v24558_v0 = vpop.f32.mrb[5].mxu0  ;;  %v24560_v58 = vpop.f32.mrb[5].mxu1 }
 0x104   : > { %v24562_v59 = vpop.f32.mrb[6].mxu0  ;;  %v24564_v60 = vpop.f32.mrb[6].mxu1 }
 0x105   : > { %v24566_v61 = vpop.f32.mrb[7].mxu0  ;;  %v24568_v62 = vpop.f32.mrb[7].mxu1 }
 0x108   : > { %v16884_v2 = vpop.f32.mrb[8].mxu0 }
 0x109   : > { %v459_v3 = vpop.f32.mrb[9].mxu0  ;;  %v24576_v6 = vpop.f32.mrb[8].mxu1 }
 0x10a   : > { %16926 = vmatprep.mubr.f32.mxu0 %v459_v3  ;;  %v24584_v11 = vpop.f32.mrb[9].mxu1  ;;  %v13379_v3 = vld [vmem:[%s30005_s2 + $0x120] sm:$0xff] }
 0x10b   : > { %16927 = vmatmul.mubr.f32.vlgmr.msra.gmra.mrb[16].mxu0 %v16884_v2 }
 0x10c   : > { %20793 = vmatpush3.bf16.msra.mxu0 %v24448_v31  ;;  %v16887_v12 = vpop.f32.mrb[10].mxu0  ;;  %v354_v31 = vld [vmem:[%s30005_s2 + $0x50] sm:$0xff] }
 0x10d   : > { %v469_v14 = vpop.f32.mrb[11].mxu0  ;;  %20795 = vmatprep.subr.bf16.mxu0 %v20794_v4  ;;  %v24587_v16 = vpop.f32.mrb[10].mxu1  ;;  %v20810_v34 = vpack.c.bf16 %v355_v32, %v354_v31  ;;  %v13407_v31 = vld [vmem:[%s30005_s2 + $0x180] sm:$0xff]  ;;  %v13408_v32 = vld [vmem:[%s30005_s2 + $0x188] sm:$0xff] }
 0x10e   : > { %16929 = vmatprep.mubr.f32.mxu0 %v469_v14  ;;  %v24595_v19 = vpop.f32.mrb[11].mxu1  ;;  %v13382_v14 = vld [vmem:[%s30005_s2 + $0x138] sm:$0xff] }
 0x10f   : > { %16930 = vmatmul.mubr.f32.gmra.mrb[18].mxu0 %v16887_v12  ;;  %v13381_v12 = vld [vmem:[%s30005_s2 + $0x130] sm:$0xff] }
 0x110   : > { %20797 = vmatpush3.bf16.msra.mxu0 %v20794_v4  ;;  %v16890_v20 = vpop.f32.mrb[12].mxu0  ;;  %v13380_v4 = vld [vmem:[%s30005_s2 + $0x128] sm:$0xff] }
 0x111   : > { %v479_v21 = vpop.f32.mrb[13].mxu0  ;;  %20799 = vmatprep.subr.bf16.mxu0 %v20798_v15  ;;  %v24597_v23 = vpop.f32.mrb[12].mxu1  ;;  %v20846_v9 = vpack.c.bf16 %v13380_v4, %v13379_v3  ;;  %v13420_v3 = vld [vmem:[%s30005_s2 + $0x1e8] sm:$0xff] }
 0x112   : > { %16932 = vmatprep.mubr.f32.mxu0 %v479_v21  ;;  %v24605_v26 = vpop.f32.mrb[13].mxu1  ;;  %v13388_v21 = vld [vmem:[%s30005_s2 + $0x168] sm:$0xff] }
 0x113   : > { %16933 = vmatmul.mubr.f32.gmra.mrb[20].mxu0 %v16890_v20  ;;  %v13387_v20 = vld [vmem:[%s30005_s2 + $0x160] sm:$0xff] }
 0x114   : > { %20801 = vmatpush3.bf16.msra.mxu0 %v20798_v15  ;;  %v16893_v27 = vpop.f32.mrb[14].mxu0  ;;  %v13384_v15 = vld [vmem:[%s30005_s2 + $0x148] sm:$0xff] }
 0x115   : > { %v489_v28 = vpop.f32.mrb[15].mxu0  ;;  %20803 = vmatprep.subr.bf16.mxu0 %v20802_v22  ;;  %v24607_v30 = vpop.f32.mrb[14].mxu1 }
 0x116   : > { %16935 = vmatprep.mubr.f32.mxu0 %v489_v28  ;;  %v24615_v33 = vpop.f32.mrb[15].mxu1  ;;  %v20866_v28 = vpack.c.bf16 %v13390_v25, %v13389_v24 }
 0x117   : > { %16936 = vmatmul.mubr.f32.gmra.mrb[22].mxu0 %v16893_v27 }
 0x118   : > { %20805 = vmatpush3.bf16.msra.mxu0 %v20802_v22  ;;  %16970 = vmatprep.mubr.f32.mxu0 %v305_v50  ;;  %v13378_v50 = vld [vmem:[%s30005_s2 + $0x118] sm:$0xff] }
 0x119   : > { %20807 = vmatprep.subr.bf16.mxu0 %v20806_v29  ;;  %v24617_v35 = vpop.f32.mrb[16].mxu1  ;;  %v20842_v1 = vpack.c.bf16 %v13378_v50, %v13377_v47  ;;  %v13414_v47 = vld [vmem:[%s30005_s2 + $0x1b8] sm:$0xff]  ;;  %v13416_v50 = vld [vmem:[%s30005_s2 + $0x1c8] sm:$0xff] }
 0x11a   : > { %v24625_v38 = vpop.f32.mrb[17].mxu1 }
 0x11c   : > { %20809 = vmatpush3.bf16.msra.mxu0 %v20806_v29 }
 0x11d   : > { %20811 = vmatprep.subr.bf16.mxu0 %v20810_v34  ;;  %v24627_v7 = vpop.f32.mrb[18].mxu1 }
 0x11e   : > { %v24635_v39 = vpop.f32.mrb[19].mxu1 }
 0x120   : > { %20813 = vmatpush3.bf16.msra.mxu0 %v20810_v34  ;;  %v20886_v34 = vpack.c.bf16 %v13408_v32, %v13407_v31  ;;  %v13444_v31 = vld [vmem:[%s30005_s2 + $0x228] sm:$0xff] }
 0x121   : > { %20815 = vmatprep.subr.bf16.mxu0 %v20814_v5  ;;  %v24637_v41 = vpop.f32.mrb[20].mxu1 }
 0x122   : > { %v24645_v44 = vpop.f32.mrb[21].mxu1 }
 0x124   : > { %20817 = vmatpush3.bf16.msra.mxu0 %v20814_v5  ;;  %v13410_v5 = vld [vmem:[%s30005_s2 + $0x198] sm:$0xff] }
 0x125   : > { %20819 = vmatprep.subr.bf16.mxu0 %v20818_v40  ;;  %v24647_v46 = vpop.f32.mrb[22].mxu1  ;;  %v20890_v13 = vpack.c.bf16 %v13410_v5, %v13409_v37  ;;  %v13446_v37 = vld [vmem:[%s30005_s2 + $0x238] sm:$0xff]  ;;  %v13448_v5 = vld [vmem:[%s30005_s2 + $0x248] sm:$0xff] }
 0x126   : > { %v24655_v63 = vpop.f32.mrb[23].mxu1 }
 0x128   : > { %20821 = vmatpush3.bf16.msra.mxu0 %v20818_v40  ;;  %v13411_v40 = vld [vmem:[%s30005_s2 + $0x1a0] sm:$0xff] }
 0x129   : > { %20839 = vmatprep.subr.bf16.mxu0 %v20838_v45  ;;  %v24657_v2 = vpop.f32.mrb[24].mxu1  ;;  %v20894_v43 = vpack.c.bf16 %v13412_v42, %v13411_v40  ;;  %v13452_v42 = vld [vmem:[%s30005_s2 + $0x268] sm:$0xff] }
 0x12a   : > { %v24665_v8 = vpop.f32.mrb[25].mxu1 }
 0x12b   : > { %16971 = vmatmul.mubr.f32.vlgmr.msra.gmra.mrb[16].mxu0 %v24540_v48  ;;  %v20850_v48 = vpack.c.bf16 %v13382_v14, %v13381_v12  ;;  %v13422_v12 = vld [vmem:[%s30005_s2 + $0x1f8] sm:$0xff] }
 0x12c   : > { %16973 = vmatprep.mubr.f32.mxu0 %v24550_v54  ;;  %20841 = vmatpush3.bf16.msra.mxu0 %v20838_v45  ;;  %v13383_v54 = vld [vmem:[%s30005_s2 + $0x140] sm:$0xff]  ;;  %v13413_v45 = vld [vmem:[%s30005_s2 + $0x1b0] sm:$0xff] }
 0x12d   : > { %20843 = vmatprep.subr.bf16.mxu0 %v20842_v1  ;;  %v24693_v18 = vpop.f32.mrb[26].mxu1 }
 0x12f   : > { %16974 = vmatmul.mubr.f32.gmra.mrb[18].mxu0 %v24546_v52  ;;  %v20854_v52 = vpack.c.bf16 %v13384_v15, %v13383_v54  ;;  %v13439_v15 = vld [vmem:[%s30005_s2 + $0x200] sm:$0xff] }
 0x130   : > { %16976 = vmatprep.mubr.f32.mxu0 %v24558_v0  ;;  %20845 = vmatpush3.bf16.msra.mxu0 %v20842_v1  ;;  %v13385_v0 = vld [vmem:[%s30005_s2 + $0x150] sm:$0xff]  ;;  %v13418_v1 = vld [vmem:[%s30005_s2 + $0x1d8] sm:$0xff] }
 0x131   : > { %20847 = vmatprep.subr.bf16.mxu0 %v20846_v9 }
 0x133   : > { %16977 = vmatmul.mubr.f32.gmra.mrb[20].mxu0 %v24554_v56  ;;  %v20858_v56 = vpack.c.bf16 %v13386_v17, %v13385_v0 }
 0x134   : > { %16979 = vmatprep.mubr.f32.mxu0 %v24566_v61  ;;  %20849 = vmatpush3.bf16.msra.mxu0 %v20846_v9  ;;  %v24695_v61 = vpop.f32.mrb[27].mxu1 }
 0x135   : > { %20851 = vmatprep.subr.bf16.mxu0 %v20850_v48  ;;  %v24703_v22 = vpop.f32.mrb[28].mxu1 }
 0x137   : > { %16980 = vmatmul.mubr.f32.gmra.mrb[22].mxu0 %v24562_v59  ;;  %v20862_v59 = vpack.c.bf16 %v13388_v21, %v13387_v20  ;;  %v13441_v20 = vld [vmem:[%s30005_s2 + $0x210] sm:$0xff]  ;;  %v13442_v21 = vld [vmem:[%s30005_s2 + $0x218] sm:$0xff] }
 0x138   : > { %20853 = vmatpush3.bf16.msra.mxu0 %v20850_v48  ;;  %17042 = vmatprep.mubr.f32.mxu0 %v24544_v51  ;;  %v24705_v51 = vpop.f32.mrb[29].mxu1  ;;  %v20938_v24 = vpack.c.bf16 %v13442_v21, %v13441_v20  ;;  %v13477_v21 = vld [vmem:[%s30005_s2 + $0x2b0] sm:$0xff] }
 0x139   : > { %20855 = vmatprep.subr.bf16.mxu0 %v20854_v52  ;;  %v24713_v27 = vpop.f32.mrb[30].mxu1 }
 0x13a   : > { %v24715_v29 = vpop.f32.mrb[31].mxu1 }
 0x13b   : > { %v24723_v36 = vpop.f32.mrb[32].mxu1 }
 0x13c   : > { %20857 = vmatpush3.bf16.msra.mxu0 %v20854_v52  ;;  %v24731_v10 = vpop.f32.mrb[33].mxu1  ;;  %v13440_v52 = vld [vmem:[%s30005_s2 + $0x208] sm:$0xff] }
 0x13d   : > { %20859 = vmatprep.subr.bf16.mxu0 %v20858_v56  ;;  %v24771_v4 = vpop.f32.mrb[34].mxu1 }
 0x13e   : > { %v24773_v9 = vpop.f32.mrb[35].mxu1 }
 0x140   : > { %20861 = vmatpush3.bf16.msra.mxu0 %v20858_v56  ;;  %v20934_v56 = vpack.c.bf16 %v13440_v52, %v13439_v15  ;;  %v13476_v15 = vld [vmem:[%s30005_s2 + $0x2a8] sm:$0xff] }
 0x141   : > { %20863 = vmatprep.subr.bf16.mxu0 %v20862_v59  ;;  %v24781_v14 = vpop.f32.mrb[36].mxu1 }
 0x142   : > { %v24783_v48 = vpop.f32.mrb[37].mxu1 }
 0x144   : > { %20865 = vmatpush3.bf16.msra.mxu0 %v20862_v59 }
 0x145   : > { %20867 = vmatprep.subr.bf16.mxu0 %v20866_v28  ;;  %v24791_v0 = vpop.f32.mrb[38].mxu1 }
 0x146   : > { %v24793_v17 = vpop.f32.mrb[39].mxu1 }
 0x148   : > { %20869 = vmatpush3.bf16.msra.mxu0 %v20866_v28  ;;  %v13443_v28 = vld [vmem:[%s30005_s2 + $0x220] sm:$0xff] }
 0x149   : > { %20887 = vmatprep.subr.bf16.mxu0 %v20886_v34  ;;  %v24801_v59 = vpop.f32.mrb[40].mxu1  ;;  %v20942_v32 = vpack.c.bf16 %v13444_v31, %v13443_v28  ;;  %v13479_v31 = vld [vmem:[%s30005_s2 + $0x2c0] sm:$0xff] }
 0x14a   : > { %v24803_v25 = vpop.f32.mrb[41].mxu1 }
 0x14b   : > { %17043 = vmatmul.mubr.f32.vlgmr.msra.gmra.mrb[16].mxu0 %v24542_v49  ;;  %v20898_v49 = vpack.c.bf16 %v13414_v47, %v13413_v45  ;;  %v13454_v45 = vld [vmem:[%s30005_s2 + $0x278] sm:$0xff] }
 0x14c   : > { %20889 = vmatpush3.bf16.msra.mxu0 %v20886_v34  ;;  %17045 = vmatprep.mubr.f32.mxu0 %v24552_v55  ;;  %v13415_v55 = vld [vmem:[%s30005_s2 + $0x1c0] sm:$0xff]  ;;  %v13445_v34 = vld [vmem:[%s30005_s2 + $0x230] sm:$0xff] }
 0x14d   : > { %20891 = vmatprep.subr.bf16.mxu0 %v20890_v13  ;;  %v24837_v40 = vpop.f32.mrb[42].mxu1 }
 0x14f   : > { %17046 = vmatmul.mubr.f32.gmra.mrb[18].mxu0 %v24548_v53  ;;  %v20902_v53 = vpack.c.bf16 %v13416_v50, %v13415_v55  ;;  %v13471_v50 = vld [vmem:[%s30005_s2 + $0x280] sm:$0xff] }
 0x150   : > { %20893 = vmatpush3.bf16.msra.mxu0 %v20890_v13  ;;  %17048 = vmatprep.mubr.f32.mxu0 %v24560_v58  ;;  %v13417_v58 = vld [vmem:[%s30005_s2 + $0x1d0] sm:$0xff]  ;;  %v13450_v13 = vld [vmem:[%s30005_s2 + $0x258] sm:$0xff] }
 0x151   : > { %20895 = vmatprep.subr.bf16.mxu0 %v20894_v43 }
 0x153   : > { %17049 = vmatmul.mubr.f32.gmra.mrb[20].mxu0 %v24556_v57  ;;  %v20906_v57 = vpack.c.bf16 %v13418_v1, %v13417_v58 }
 0x154   : > { %20897 = vmatpush3.bf16.msra.mxu0 %v20894_v43  ;;  %17051 = vmatprep.mubr.f32.mxu0 %v24568_v62  ;;  %v13419_v62 = vld [vmem:[%s30005_s2 + $0x1e0] sm:$0xff]  ;;  %v24845_v43 = vpop.f32.mrb[43].mxu1 }
 0x155   : > { %20899 = vmatprep.subr.bf16.mxu0 %v20898_v49  ;;  %v24853_v47 = vpop.f32.mrb[44].mxu1 }
 0x157   : > { %17052 = vmatmul.mubr.f32.gmra.mrb[22].mxu0 %v24564_v60  ;;  %v20910_v60 = vpack.c.bf16 %v13420_v3, %v13419_v62  ;;  %v13473_v62 = vld [vmem:[%s30005_s2 + $0x290] sm:$0xff]  ;;  %v13474_v3 = vld [vmem:[%s30005_s2 + $0x298] sm:$0xff] }
 0x158   : > { %20901 = vmatpush3.bf16.msra.mxu0 %v20898_v49  ;;  %17114 = vmatprep.mubr.f32.mxu0 %v24584_v11  ;;  %v13421_v11 = vld [vmem:[%s30005_s2 + $0x1f0] sm:$0xff]  ;;  %v24855_v49 = vpop.f32.mrb[45].mxu1 }
 0x159   : > { %20903 = vmatprep.subr.bf16.mxu0 %v20902_v53  ;;  %v20914_v54 = vpack.c.bf16 %v13422_v12, %v13421_v11  ;;  %v24863_v58 = vpop.f32.mrb[46].mxu1  ;;  %v20986_v12 = vpack.c.bf16 %v13474_v3, %v13473_v62  ;;  %v13514_v62 = vld [vmem:[%s30005_s2 + $0x358] sm:$0xff]  ;;  %v13516_v3 = vld [vmem:[%s30005_s2 + $0x368] sm:$0xff] }
 0x15a   : > { %v24865_v1 = vpop.f32.mrb[47].mxu1 }
 0x15c   : > { %20905 = vmatpush3.bf16.msra.mxu0 %v20902_v53  ;;  %v13472_v53 = vld [vmem:[%s30005_s2 + $0x288] sm:$0xff] }
 0x15d   : > { %20907 = vmatprep.subr.bf16.mxu0 %v20906_v57 }
 0x160   : > { %20909 = vmatpush3.bf16.msra.mxu0 %v20906_v57  ;;  %v20982_v57 = vpack.c.bf16 %v13472_v53, %v13471_v50  ;;  %v13509_v50 = vld [vmem:[%s30005_s2 + $0x330] sm:$0xff]  ;;  %v13510_v53 = vld [vmem:[%s30005_s2 + $0x338] sm:$0xff] }
 0x161   : > { %20911 = vmatprep.subr.bf16.mxu0 %v20910_v60 }
 0x164   : > { %20913 = vmatpush3.bf16.msra.mxu0 %v20910_v60  ;;  %v24873_v60 = vpop.f32.mrb[48].mxu1 }
 0x165   : > { %20915 = vmatprep.subr.bf16.mxu0 %v20914_v54  ;;  %v24875_v11 = vpop.f32.mrb[49].mxu1 }
 0x166   : > { %v24884_v52 = vpop.f32.mrb[50].mxu1 }
 0x168   : > { %20917 = vmatpush3.bf16.msra.mxu0 %v20914_v54  ;;  %v13475_v54 = vld [vmem:[%s30005_s2 + $0x2a0] sm:$0xff] }
 0x169   : > { %20935 = vmatprep.subr.bf16.mxu0 %v20934_v56  ;;  %v20990_v20 = vpack.c.bf16 %v13476_v15, %v13475_v54  ;;  %v13535_v15 = vld [vmem:[%s30005_s2 + $0x380] sm:$0xff] }
 0x16b   : > { %17115 = vmatmul.mubr.f32.vlgmr.msra.gmra.mrb[16].mxu0 %v24576_v6  ;;  %v20946_v6 = vpack.c.bf16 %v13446_v37, %v13445_v34  ;;  %v13481_v37 = vld [vmem:[%s30005_s2 + $0x2d0] sm:$0xff] }
 0x16c   : > { %20937 = vmatpush3.bf16.msra.mxu0 %v20934_v56  ;;  %17117 = vmatprep.mubr.f32.mxu0 %v24595_v19  ;;  %v13447_v19 = vld [vmem:[%s30005_s2 + $0x240] sm:$0xff]  ;;  %v24887_v56 = vpop.f32.mrb[51].mxu1 }
 0x16d   : > { %20939 = vmatprep.subr.bf16.mxu0 %v20938_v24 }
 0x16f   : > { %17118 = vmatmul.mubr.f32.gmra.mrb[18].mxu0 %v24587_v16  ;;  %v20950_v16 = vpack.c.bf16 %v13448_v5, %v13447_v19  ;;  %v13484_v19 = vld [vmem:[%s30005_s2 + $0x2e8] sm:$0xff] }
 0x170   : > { %20941 = vmatpush3.bf16.msra.mxu0 %v20938_v24  ;;  %17120 = vmatprep.mubr.f32.mxu0 %v24605_v26  ;;  %v13449_v26 = vld [vmem:[%s30005_s2 + $0x250] sm:$0xff]  ;;  %v13478_v24 = vld [vmem:[%s30005_s2 + $0x2b8] sm:$0xff] }
 0x171   : > { %20943 = vmatprep.subr.bf16.mxu0 %v20942_v32  ;;  %v20994_v28 = vpack.c.bf16 %v13478_v24, %v13477_v21  ;;  %v13537_v24 = vld [vmem:[%s30005_s2 + $0x390] sm:$0xff] }
 0x173   : > { %17121 = vmatmul.mubr.f32.gmra.mrb[20].mxu0 %v24597_v23  ;;  %v20954_v23 = vpack.c.bf16 %v13450_v13, %v13449_v26  ;;  %v13503_v26 = vld [vmem:[%s30005_s2 + $0x300] sm:$0xff]  ;;  %v13504_v13 = vld [vmem:[%s30005_s2 + $0x308] sm:$0xff] }
 0x174   : > { %20945 = vmatpush3.bf16.msra.mxu0 %v20942_v32  ;;  %17123 = vmatprep.mubr.f32.mxu0 %v24615_v33  ;;  %v13451_v33 = vld [vmem:[%s30005_s2 + $0x260] sm:$0xff]  ;;  %v13480_v32 = vld [vmem:[%s30005_s2 + $0x2c8] sm:$0xff] }
 0x175   : > { %20947 = vmatprep.subr.bf16.mxu0 %v20946_v6  ;;  %v20998_v34 = vpack.c.bf16 %v13480_v32, %v13479_v31  ;;  %v13539_v32 = vld [vmem:[%s30005_s2 + $0x3a0] sm:$0xff] }
 0x177   : > { %17124 = vmatmul.mubr.f32.gmra.mrb[22].mxu0 %v24607_v30  ;;  %v20958_v30 = vpack.c.bf16 %v13452_v42, %v13451_v33  ;;  %v13505_v33 = vld [vmem:[%s30005_s2 + $0x310] sm:$0xff]  ;;  %v13506_v42 = vld [vmem:[%s30005_s2 + $0x318] sm:$0xff] }
 0x178   : > { %20949 = vmatpush3.bf16.msra.mxu0 %v20946_v6  ;;  %17186 = vmatprep.mubr.f32.mxu0 %v24625_v38  ;;  %v13453_v38 = vld [vmem:[%s30005_s2 + $0x270] sm:$0xff]  ;;  %v13482_v6 = vld [vmem:[%s30005_s2 + $0x2d8] sm:$0xff] }
 0x179   : > { %20951 = vmatprep.subr.bf16.mxu0 %v20950_v16  ;;  %v20962_v55 = vpack.c.bf16 %v13454_v45, %v13453_v38  ;;  %v13507_v38 = vld [vmem:[%s30005_s2 + $0x320] sm:$0xff]  ;;  %v13508_v45 = vld [vmem:[%s30005_s2 + $0x328] sm:$0xff] }
 0x17c   : > { %20953 = vmatpush3.bf16.msra.mxu0 %v20950_v16 }
 0x17d   : > { %20955 = vmatprep.subr.bf16.mxu0 %v20954_v23 }
 0x180   : > { %20957 = vmatpush3.bf16.msra.mxu0 %v20954_v23  ;;  %v21030_v23 = vpack.c.bf16 %v13504_v13, %v13503_v26  ;;  %v13568_v26 = vld [vmem:[%s30005_s2 + $0x408] sm:$0xff] }
 0x181   : > { %20959 = vmatprep.subr.bf16.mxu0 %v20958_v30 }
 0x184   : > { %20961 = vmatpush3.bf16.msra.mxu0 %v20958_v30  ;;  %v21034_v30 = vpack.c.bf16 %v13506_v42, %v13505_v33  ;;  %v13570_v33 = vld [vmem:[%s30005_s2 + $0x418] sm:$0xff] }
 0x185   : > { %20963 = vmatprep.subr.bf16.mxu0 %v20962_v55 }
 0x188   : > { %20965 = vmatpush3.bf16.msra.mxu0 %v20962_v55  ;;  %v21038_v55 = vpack.c.bf16 %v13508_v45, %v13507_v38  ;;  %v13572_v38 = vld [vmem:[%s30005_s2 + $0x428] sm:$0xff] }
 0x189   : > { %20983 = vmatprep.subr.bf16.mxu0 %v20982_v57 }
 0x18b   : > { %17187 = vmatmul.mubr.f32.vlgmr.msra.gmra.mrb[16].mxu0 %v24617_v35  ;;  %v24896_v35 = vpop.f32.mrb[52].mxu1 }
 0x18c   : > { %20985 = vmatpush3.bf16.msra.mxu0 %v20982_v57  ;;  %17189 = vmatprep.mubr.f32.mxu0 %v24635_v39  ;;  %v24899_v39 = vpop.f32.mrb[53].mxu1  ;;  %v13512_v57 = vld [vmem:[%s30005_s2 + $0x348] sm:$0xff] }
 0x18d   : > { %20987 = vmatprep.subr.bf16.mxu0 %v20986_v12 }
 0x18f   : > { %17190 = vmatmul.mubr.f32.gmra.mrb[18].mxu0 %v24627_v7  ;;  %v24908_v7 = vpop.f32.mrb[54].mxu1 }
 0x190   : > { %20989 = vmatpush3.bf16.msra.mxu0 %v20986_v12  ;;  %17192 = vmatprep.mubr.f32.mxu0 %v24645_v44  ;;  %v24911_v44 = vpop.f32.mrb[55].mxu1 }
 0x191   : > { %20991 = vmatprep.subr.bf16.mxu0 %v20990_v20 }
 0x193   : > { %17193 = vmatmul.mubr.f32.gmra.mrb[20].mxu0 %v24637_v41  ;;  %v21002_v41 = vpack.c.bf16 %v13482_v6, %v13481_v37  ;;  %v13541_v6 = vld [vmem:[%s30005_s2 + $0x3b0] sm:$0xff] }
 0x194   : > { %20993 = vmatpush3.bf16.msra.mxu0 %v20990_v20  ;;  %17195 = vmatprep.mubr.f32.mxu0 %v24655_v63  ;;  %v13483_v63 = vld [vmem:[%s30005_s2 + $0x2e0] sm:$0xff]  ;;  %v13536_v20 = vld [vmem:[%s30005_s2 + $0x388] sm:$0xff] }
 0x195   : > { %20995 = vmatprep.subr.bf16.mxu0 %v20994_v28  ;;  %v21006_v5 = vpack.c.bf16 %v13484_v19, %v13483_v63  ;;  %v21078_v21 = vpack.c.bf16 %v13536_v20, %v13535_v15  ;;  %v13544_v63 = vld [vmem:[%s30005_s2 + $0x3c8] sm:$0xff]  ;;  %v13546_v19 = vld [vmem:[%s30005_s2 + $0x3d8] sm:$0xff]  ;;  %v13622_v15 = vld [vmem:[%s30005_s2 + $0x530] sm:$0xff] }
 0x196   : > { %v13623_v20 = vld [vmem:[%s30005_s2 + $0x538] sm:$0xff] }
 0x197   : > { %17196 = vmatmul.mubr.f32.gmra.mrb[22].mxu0 %v24647_v46  ;;  %v13485_v46 = vld [vmem:[%s30005_s2 + $0x2f0] sm:$0xff] }
 0x198   : > { %20997 = vmatpush3.bf16.msra.mxu0 %v20994_v28  ;;  %17258 = vmatprep.mubr.f32.mxu0 %v24665_v8  ;;  %v13486_v8 = vld [vmem:[%s30005_s2 + $0x2f8] sm:$0xff] }
 0x199   : > { %20999 = vmatprep.subr.bf16.mxu0 %v20998_v34  ;;  %v21010_v16 = vpack.c.bf16 %v13486_v8, %v13485_v46  ;;  %v13538_v28 = vld [vmem:[%s30005_s2 + $0x398] sm:$0xff] }
 0x19a   : > { %v21082_v31 = vpack.c.bf16 %v13538_v28, %v13537_v24  ;;  %v13627_v24 = vld [vmem:[%s30005_s2 + $0x558] sm:$0xff] }
 0x19c   : > { %21001 = vmatpush3.bf16.msra.mxu0 %v20998_v34  ;;  %v13540_v34 = vld [vmem:[%s30005_s2 + $0x3a8] sm:$0xff] }
 0x19d   : > { %21003 = vmatprep.subr.bf16.mxu0 %v21002_v41  ;;  %v21086_v37 = vpack.c.bf16 %v13540_v34, %v13539_v32  ;;  %v13631_v32 = vld [vmem:[%s30005_s2 + $0x578] sm:$0xff] }
 0x1a0   : > { %21005 = vmatpush3.bf16.msra.mxu0 %v21002_v41  ;;  %v13542_v41 = vld [vmem:[%s30005_s2 + $0x3b8] sm:$0xff] }
 0x1a1   : > { %21007 = vmatprep.subr.bf16.mxu0 %v21006_v5 }
 0x1a4   : > { %21009 = vmatpush3.bf16.msra.mxu0 %v21006_v5  ;;  %v13548_v5 = vld [vmem:[%s30005_s2 + $0x3e8] sm:$0xff] }
 0x1a5   : > { %21011 = vmatprep.subr.bf16.mxu0 %v21010_v16 }
 0x1a8   : > { %21013 = vmatpush3.bf16.msra.mxu0 %v21010_v16  ;;  %v13567_v16 = vld [vmem:[%s30005_s2 + $0x400] sm:$0xff] }
 0x1a9   : > { %21031 = vmatprep.subr.bf16.mxu0 %v21030_v23  ;;  %v21126_v13 = vpack.c.bf16 %v13568_v26, %v13567_v16 }
 0x1ab   : > { %17259 = vmatmul.mubr.f32.vlgmr.msra.gmra.mrb[16].mxu0 %v24657_v2  ;;  %v21042_v2 = vpack.c.bf16 %v13510_v53, %v13509_v50  ;;  %v13574_v50 = vld [vmem:[%s30005_s2 + $0x438] sm:$0xff]  ;;  %v13576_v53 = vld [vmem:[%s30005_s2 + $0x448] sm:$0xff] }
 0x1ac   : > { %21033 = vmatpush3.bf16.msra.mxu0 %v21030_v23  ;;  %17261 = vmatprep.mubr.f32.mxu0 %v24695_v61  ;;  %v13511_v61 = vld [vmem:[%s30005_s2 + $0x340] sm:$0xff]  ;;  %v13569_v23 = vld [vmem:[%s30005_s2 + $0x410] sm:$0xff] }
 0x1ad   : > { %21035 = vmatprep.subr.bf16.mxu0 %v21034_v30  ;;  %v21130_v42 = vpack.c.bf16 %v13570_v33, %v13569_v23 }
 0x1af   : > { %17262 = vmatmul.mubr.f32.gmra.mrb[18].mxu0 %v24693_v18  ;;  %v21046_v18 = vpack.c.bf16 %v13512_v57, %v13511_v61  ;;  %v13580_v61 = vld [vmem:[%s30005_s2 + $0x468] sm:$0xff] }
 0x1b0   : > { %21037 = vmatpush3.bf16.msra.mxu0 %v21034_v30  ;;  %17264 = vmatprep.mubr.f32.mxu0 %v24705_v51  ;;  %v13513_v51 = vld [vmem:[%s30005_s2 + $0x350] sm:$0xff]  ;;  %v13571_v30 = vld [vmem:[%s30005_s2 + $0x420] sm:$0xff] }
 0x1b1   : > { %21039 = vmatprep.subr.bf16.mxu0 %v21038_v55  ;;  %v21134_v45 = vpack.c.bf16 %v13572_v38, %v13571_v30 }
 0x1b3   : > { %17265 = vmatmul.mubr.f32.gmra.mrb[20].mxu0 %v24703_v22  ;;  %v21050_v22 = vpack.c.bf16 %v13514_v62, %v13513_v51  ;;  %v13616_v51 = vld [vmem:[%s30005_s2 + $0x500] sm:$0xff]  ;;  %v13617_v62 = vld [vmem:[%s30005_s2 + $0x508] sm:$0xff] }
 0x1b4   : > { %21041 = vmatpush3.bf16.msra.mxu0 %v21038_v55  ;;  %17267 = vmatprep.mubr.f32.mxu0 %v24715_v29  ;;  %v13515_v29 = vld [vmem:[%s30005_s2 + $0x360] sm:$0xff]  ;;  %v13573_v55 = vld [vmem:[%s30005_s2 + $0x430] sm:$0xff] }
 0x1b5   : > { %21043 = vmatprep.subr.bf16.mxu0 %v21042_v2  ;;  %v21054_v12 = vpack.c.bf16 %v13516_v3, %v13515_v29  ;;  %v13618_v29 = vld [vmem:[%s30005_s2 + $0x510] sm:$0xff]  ;;  %v13619_v3 = vld [vmem:[%s30005_s2 + $0x518] sm:$0xff] }
 0x1b7   : > { %17268 = vmatmul.mubr.f32.gmra.mrb[22].mxu0 %v24713_v27  ;;  %v13517_v27 = vld [vmem:[%s30005_s2 + $0x370] sm:$0xff] }
 0x1b8   : > { %21045 = vmatpush3.bf16.msra.mxu0 %v21042_v2  ;;  %17330 = vmatprep.mubr.f32.mxu0 %v24731_v10  ;;  %v13518_v10 = vld [vmem:[%s30005_s2 + $0x378] sm:$0xff] }
 0x1b9   : > { %21047 = vmatprep.subr.bf16.mxu0 %v21046_v18  ;;  %v21058_v54 = vpack.c.bf16 %v13518_v10, %v13517_v27  ;;  %v13578_v2 = vld [vmem:[%s30005_s2 + $0x458] sm:$0xff]  ;;  %v13620_v27 = vld [vmem:[%s30005_s2 + $0x520] sm:$0xff]  ;;  %v13621_v10 = vld [vmem:[%s30005_s2 + $0x528] sm:$0xff] }
 0x1bc   : > { %21049 = vmatpush3.bf16.msra.mxu0 %v21046_v18 }
 0x1bd   : > { %21051 = vmatprep.subr.bf16.mxu0 %v21050_v22 }
 0x1c0   : > { %21053 = vmatpush3.bf16.msra.mxu0 %v21050_v22  ;;  %v21190_v22 = vpack.c.bf16 %v13617_v62, %v13616_v51  ;;  %v23716_v51 = vld [vmem:[%s30004_s1 + $0x38] sm:$0xff]  ;;  %v23717_v62 = vld [vmem:[%s30004_s1 + $0x40] sm:$0xff] }
 0x1c1   : > { %21055 = vmatprep.subr.bf16.mxu0 %v21054_v12 }
 0x1c4   : > { %21057 = vmatpush3.bf16.msra.mxu0 %v21054_v12  ;;  %v21194_v12 = vpack.c.bf16 %v13619_v3, %v13618_v29  ;;  %v13596_v29 = vld [vmem:[%s30005_s2 + $0x4a0] sm:$0xff]  ;;  %v13597_v3 = vld [vmem:[%s30005_s2 + $0x4a8] sm:$0xff] }
 0x1c5   : > { %21059 = vmatprep.subr.bf16.mxu0 %v21058_v54 }
 0x1c8   : > { %21061 = vmatpush3.bf16.msra.mxu0 %v21058_v54  ;;  %v21198_v54 = vpack.c.bf16 %v13621_v10, %v13620_v27  ;;  %v23719_v27 = vld [vmem:[%s30004_s1 + $0x50] sm:$0xff]  ;;  %v21230_v10 = vpack.c.bf16 %v13597_v3, %v13596_v29  ;;  %v13645_v29 = vld [vmem:[%s30005_s2 + $0x5a8] sm:$0xff] }
 0x1c9   : > { %21079 = vmatprep.subr.bf16.mxu0 %v21078_v21 }
 0x1cb   : > { %17331 = vmatmul.mubr.f32.vlgmr.msra.gmra.mrb[16].mxu0 %v24723_v36  ;;  %v21090_v36 = vpack.c.bf16 %v13542_v41, %v13541_v6 }
 0x1cc   : > { %21081 = vmatpush3.bf16.msra.mxu0 %v21078_v21  ;;  %17333 = vmatprep.mubr.f32.mxu0 %v24773_v9  ;;  %v13543_v9 = vld [vmem:[%s30005_s2 + $0x3c0] sm:$0xff]  ;;  %v13625_v21 = vld [vmem:[%s30005_s2 + $0x548] sm:$0xff] }
 0x1cd   : > { %21083 = vmatprep.subr.bf16.mxu0 %v21082_v31 }
 0x1cf   : > { %17334 = vmatmul.mubr.f32.gmra.mrb[18].mxu0 %v24771_v4  ;;  %v21094_v4 = vpack.c.bf16 %v13544_v63, %v13543_v9 }
 0x1d0   : > { %21085 = vmatpush3.bf16.msra.mxu0 %v21082_v31  ;;  %17336 = vmatprep.mubr.f32.mxu0 %v24783_v48  ;;  %v13545_v48 = vld [vmem:[%s30005_s2 + $0x3d0] sm:$0xff] }
 0x1d1   : > { %21087 = vmatprep.subr.bf16.mxu0 %v21086_v37 }
 0x1d3   : > { %17337 = vmatmul.mubr.f32.gmra.mrb[20].mxu0 %v24781_v14  ;;  %v21098_v14 = vpack.c.bf16 %v13546_v19, %v13545_v48 }
 0x1d4   : > { %21089 = vmatpush3.bf16.msra.mxu0 %v21086_v37  ;;  %17339 = vmatprep.mubr.f32.mxu0 %v24793_v17  ;;  %v13547_v17 = vld [vmem:[%s30005_s2 + $0x3e0] sm:$0xff] }
 0x1d5   : > { %21091 = vmatprep.subr.bf16.mxu0 %v21090_v36  ;;  %v21102_v46 = vpack.c.bf16 %v13548_v5, %v13547_v17  ;;  %v13583_v37 = vld [vmem:[%s30006_s3] ss:$0 sm:$0xff] }
 0x1d7   : > { %17340 = vmatmul.mubr.f32.gmra.mrb[22].mxu0 %v24791_v0  ;;  %v13549_v0 = vld [vmem:[%s30005_s2 + $0x3f0] sm:$0xff] }
 0x1d8   : > { %21093 = vmatpush3.bf16.msra.mxu0 %v21090_v36  ;;  %17402 = vmatprep.mubr.f32.mxu0 %v24803_v25  ;;  %v13550_v25 = vld [vmem:[%s30005_s2 + $0x3f8] sm:$0xff] }
 0x1d9   : > { %21095 = vmatprep.subr.bf16.mxu0 %v21094_v4  ;;  %v21106_v8 = vpack.c.bf16 %v13550_v25, %v13549_v0 }
 0x1dc   : > { %21097 = vmatpush3.bf16.msra.mxu0 %v21094_v4 }
 0x1dd   : > { %21099 = vmatprep.subr.bf16.mxu0 %v21098_v14 }
 0x1e0   : > { %21101 = vmatpush3.bf16.msra.mxu0 %v21098_v14 }
 0x1e1   : > { %21103 = vmatprep.subr.bf16.mxu0 %v21102_v46 }
 0x1e4   : > { %21105 = vmatpush3.bf16.msra.mxu0 %v21102_v46 }
 0x1e5   : > { %21107 = vmatprep.subr.bf16.mxu0 %v21106_v8 }
 0x1e8   : > { %21109 = vmatpush3.bf16.msra.mxu0 %v21106_v8 }
 0x1e9   : > { %21127 = vmatprep.subr.bf16.mxu0 %v21126_v13 }
 0x1eb   : > { %17403 = vmatmul.mubr.f32.vlgmr.msra.gmra.mrb[16].mxu0 %v24801_v59  ;;  %v21138_v59 = vpack.c.bf16 %v13574_v50, %v13573_v55 }
 0x1ec   : > { %21129 = vmatpush3.bf16.msra.mxu0 %v21126_v13  ;;  %17405 = vmatprep.mubr.f32.mxu0 %v24845_v43  ;;  %v13575_v43 = vld [vmem:[%s30005_s2 + $0x440] sm:$0xff] }
 0x1ed   : > { %21131 = vmatprep.subr.bf16.mxu0 %v21130_v42 }
 0x1ef   : > { %17406 = vmatmul.mubr.f32.gmra.mrb[18].mxu0 %v24837_v40  ;;  %v21142_v40 = vpack.c.bf16 %v13576_v53, %v13575_v43  ;;  %v23710_v53 = vld [vmem:[%s30004_s1 + $0x8] sm:$0xff] }
 0x1f0   : > { %21133 = vmatpush3.bf16.msra.mxu0 %v21130_v42  ;;  %17408 = vmatprep.mubr.f32.mxu0 %v24855_v49  ;;  %v13577_v49 = vld [vmem:[%s30005_s2 + $0x450] sm:$0xff] }
 0x1f1   : > { %21135 = vmatprep.subr.bf16.mxu0 %v21134_v45 }
 0x1f3   : > { %17409 = vmatmul.mubr.f32.gmra.mrb[20].mxu0 %v24853_v47  ;;  %v21146_v47 = vpack.c.bf16 %v13578_v2, %v13577_v49  ;;  %v23712_v49 = vld [vmem:[%s30004_s1 + $0x18] sm:$0xff]  ;;  %v23713_v2 = vld [vmem:[%s30004_s1 + $0x20] sm:$0xff] }
 0x1f4   : > { %21137 = vmatpush3.bf16.msra.mxu0 %v21134_v45  ;;  %17411 = vmatprep.mubr.f32.mxu0 %v24865_v1  ;;  %v13579_v1 = vld [vmem:[%s30005_s2 + $0x460] sm:$0xff] }
 0x1f5   : > { %21139 = vmatprep.subr.bf16.mxu0 %v21138_v59  ;;  %v21150_v57 = vpack.c.bf16 %v13580_v61, %v13579_v1  ;;  %v13593_v1 = vld [vmem:[%s30005_s2 + $0x488] sm:$0xff] }
 0x1f6   : > { %v23714_v61 = vld [vmem:[%s30004_s1 + $0x28] sm:$0xff] }
 0x1f7   : > { %17412 = vmatmul.mubr.f32.gmra.mrb[22].mxu0 %v24863_v58  ;;  %v13581_v58 = vld [vmem:[%s30005_s2 + $0x470] sm:$0xff] }
 0x1f8   : > { %21141 = vmatpush3.bf16.msra.mxu0 %v21138_v59  ;;  %17474 = vmatprep.mubr.f32.mxu0 %v24875_v11  ;;  %v13582_v11 = vld [vmem:[%s30005_s2 + $0x478] sm:$0xff] }
 0x1f9   : > { %21143 = vmatprep.subr.bf16.mxu0 %v21142_v40  ;;  %v21154_v18 = vpack.c.bf16 %v13582_v11, %v13581_v58  ;;  %v13594_v11 = vld [vmem:[%s30005_s2 + $0x490] sm:$0xff] }
 0x1fc   : > { %21145 = vmatpush3.bf16.msra.mxu0 %v21142_v40  ;;  %v23711_v40 = vld [vmem:[%s30004_s1 + $0x10] sm:$0xff] }
 0x1fd   : > { %21147 = vmatprep.subr.bf16.mxu0 %v21146_v47 }
 0x200   : > { %21149 = vmatpush3.bf16.msra.mxu0 %v21146_v47  ;;  %v13592_v47 = vld [vmem:[%s30005_s2 + $0x480] sm:$0xff] }
 0x201   : > { %21151 = vmatprep.subr.bf16.mxu0 %v21150_v57  ;;  %v21222_v58 = vpack.c.bf16 %v13593_v1, %v13592_v47 }
 0x204   : > { %21153 = vmatpush3.bf16.msra.mxu0 %v21150_v57  ;;  %v23715_v57 = vld [vmem:[%s30004_s1 + $0x30] sm:$0xff] }
 0x205   : > { %21155 = vmatprep.subr.bf16.mxu0 %v21154_v18 }
 0x208   : > { %21157 = vmatpush3.bf16.msra.mxu0 %v21154_v18  ;;  %v13595_v18 = vld [vmem:[%s30005_s2 + $0x498] sm:$0xff] }
 0x209   : > { %21191 = vmatprep.subr.bf16.mxu0 %v21190_v22 }
 0x20b   : > { %17475 = vmatmul.mubr.f32.vlgmr.msra.gmra.mrb[16].mxu0 %v24873_v60  ;;  %v21202_v60 = vpack.c.bf16 %v13623_v20, %v13622_v15  ;;  %v13599_v15 = vld [vmem:[%s30005_s2 + $0x4b8] sm:$0xff] }
 0x20c   : > { %17477 = vmatprep.mubr.f32.mxu0 %v24887_v56  ;;  %21193 = vmatpush3.bf16.msra.mxu0 %v21190_v22  ;;  %v13624_v56 = vld [vmem:[%s30005_s2 + $0x540] sm:$0xff]  ;;  %v21226_v22 = vpack.c.bf16 %v13595_v18, %v13594_v11  ;;  %v23720_v20 = vld [vmem:[%s30004_s1 + $0x58] sm:$0xff] }
 0x20d   : > { %21195 = vmatprep.subr.bf16.mxu0 %v21194_v12  ;;  %v23725_v11 = vld [vmem:[%s30004_s1 + $0x80] sm:$0xff] }
 0x20f   : > { %17478 = vmatmul.mubr.f32.gmra.mrb[18].mxu0 %v24884_v52  ;;  %v21206_v52 = vpack.c.bf16 %v13625_v21, %v13624_v56  ;;  %v13600_v21 = vld [vmem:[%s30005_s2 + $0x4c0] sm:$0xff] }
 0x210   : > { %17480 = vmatprep.mubr.f32.mxu0 %v24899_v39  ;;  %21197 = vmatpush3.bf16.msra.mxu0 %v21194_v12  ;;  %v13626_v39 = vld [vmem:[%s30005_s2 + $0x550] sm:$0xff]  ;;  %v23718_v12 = vld [vmem:[%s30004_s1 + $0x48] sm:$0xff] }
 0x211   : > { %21199 = vmatprep.subr.bf16.mxu0 %v21198_v54  ;;  %v21210_v28 = vpack.c.bf16 %v13627_v24, %v13626_v39  ;;  %v23722_v39 = vld [vmem:[%s30004_s1 + $0x68] sm:$0xff]  ;;  %v23723_v24 = vld [vmem:[%s30004_s1 + $0x70] sm:$0xff] }
 0x213   : > { %17481 = vmatmul.mubr.f32.gmra.mrb[20].mxu0 %v24896_v35  ;;  %v13628_v35 = vld [vmem:[%s30005_s2 + $0x560] sm:$0xff] }
 0x214   : > { %17483 = vmatprep.mubr.f32.mxu0 %v24911_v44  ;;  %21201 = vmatpush3.bf16.msra.mxu0 %v21198_v54  ;;  %v13629_v44 = vld [vmem:[%s30005_s2 + $0x568] sm:$0xff]  ;;  %v13598_v54 = vld [vmem:[%s30005_s2 + $0x4b0] sm:$0xff] }
 0x215   : > { %21203 = vmatprep.subr.bf16.mxu0 %v21202_v60  ;;  %v21214_v31 = vpack.c.bf16 %v13629_v44, %v13628_v35  ;;  %v21234_v56 = vpack.c.bf16 %v13599_v15, %v13598_v54  ;;  %v13602_v35 = vld [vmem:[%s30005_s2 + $0x4d0] sm:$0xff]  ;;  %v13603_v44 = vld [vmem:[%s30005_s2 + $0x4d8] sm:$0xff] }
 0x216   : > { %v23728_v54 = vld [vmem:[%s30004_s1 + $0x98] sm:$0xff]  ;;  %v13646_v15 = vld [vmem:[%s30005_s2 + $0x5b0] sm:$0xff] }
 0x217   : > { %17484 = vmatmul.mubr.f32.gmra.mrb[22].mxu0 %v24908_v7  ;;  %v13630_v7 = vld [vmem:[%s30005_s2 + $0x570] sm:$0xff] }
 0x218   : > { %21205 = vmatpush3.bf16.msra.mxu0 %v21202_v60  ;;  %v21218_v34 = vpack.c.bf16 %v13631_v32, %v13630_v7  ;;  %v23721_v60 = vld [vmem:[%s30004_s1 + $0x60] sm:$0xff]  ;;  %v21242_v7 = vpack.c.bf16 %v13603_v44, %v13602_v35 }
 0x219   : > { %21207 = vmatprep.subr.bf16.mxu0 %v21206_v52  ;;  %v13604_v32 = vld [vmem:[%s30005_s2 + $0x4e0] sm:$0xff] }
 0x21c   : > { %21209 = vmatpush3.bf16.msra.mxu0 %v21206_v52  ;;  %v13601_v52 = vld [vmem:[%s30005_s2 + $0x4c8] sm:$0xff] }
 0x21d   : > { %21211 = vmatprep.subr.bf16.mxu0 %v21210_v28 }
 0x220   : > { %21213 = vmatpush3.bf16.msra.mxu0 %v21210_v28  ;;  %v21238_v28 = vpack.c.bf16 %v13601_v52, %v13600_v21  ;;  %v23729_v21 = vld [vmem:[%s30004_s1 + $0xa0] sm:$0xff] }
 0x221   : > { %21215 = vmatprep.subr.bf16.mxu0 %v21214_v31 }
 0x224   : > { %21217 = vmatpush3.bf16.msra.mxu0 %v21214_v31  ;;  %v23724_v31 = vld [vmem:[%s30004_s1 + $0x78] sm:$0xff] }
 0x225   : > { %21219 = vmatprep.subr.bf16.mxu0 %v21218_v34 }
 0x228   : > { %21221 = vmatpush3.bf16.msra.mxu0 %v21218_v34  ;;  %v13605_v34 = vld [vmem:[%s30005_s2 + $0x4e8] sm:$0xff] }
 0x2de   : > { %v17476_v6 = vpop.f32.mrb[16].mxu0 }
 0x2df   : > { %v25159_v41 = vadd.f32 %v17476_v6, %v13583_v37  ;;  %v2554_v36 = vpop.f32.mrb[17].mxu0  ;;  %v13606_v6 = vld [vmem:[%s30005_s2 + $0x4f0] sm:$0xff] }
 0x2e0   : > { %v25161_v9 = vadd.f32 %v13583_v37, %v2554_v36  ;;  %v13607_v36 = vld [vmem:[%s30005_s2 + $0x4f8] sm:$0xff] }
 0x2e1   : > { %v30015_v63 = vmax.f32 %v25159_v41, 0.0 }
 0x2e2   : > { %v30014_v4 = vmax.f32 %v25161_v9, 0.0  ;;  %v17479_v48 = vpop.f32.mrb[18].mxu0 }
 0x2e3   : > { %v25165_v19 = vadd.f32 %v17479_v48, %v13583_v37  ;;  %v2564_v14 = vpop.f32.mrb[19].mxu0  ;;  %v21250_v48 = vpack.c.bf16 %v13607_v36, %v13606_v6  ;;  %v23733_v36 = vld [vmem:[%s30004_s1 + $0x100] sm:$0xff] }
 0x2e4   : > { %v25171_v17 = vpack.c.bf16 %v30015_v63, %v30014_v4  ;;  %v25173_v5 = vadd.f32 %v13583_v37, %v2564_v14 }
 0x2e5   : > { %v30013_v46 = vmax.f32 %v25165_v19, 0.0 }
 0x2e6   : > { %v30012_v0 = vmax.f32 %v25173_v5, 0.0  ;;  %v17482_v25 = vpop.f32.mrb[20].mxu0  ;;  %21159 = vmatprep.subr.bf16.mxu1 %v25171_v17  ;;  %21351 = vmatprep.subr.bf16.mxu0 %v25171_v17 }
 0x2e7   : > { %v25179_v8 = vadd.f32 %v17482_v25, %v13583_v37  ;;  %v2574_v16 = vpop.f32.mrb[21].mxu0  ;;  %21161 = vmatpush3.bf16.msra.mxu1 %v25171_v17 }
 0x2e8   : > { %v25186_v26 = vpack.c.bf16 %v30013_v46, %v30012_v0  ;;  %v25188_v13 = vadd.f32 %v13583_v37, %v2574_v16  ;;  %v13694_v46 = vld [vmem:[%s30005_s2 + $0x6b0] sm:$0xff] }
 0x2e9   : > { %v30011_v23 = vmax.f32 %v25179_v8, 0.0 }
 0x2ea   : > { %30019 = vst [vmem:[#allocation2_spill] sm:$0xff] %v25188_v13  ;;  %v30010_v33 = vmax.f32 %v25188_v13, 0.0  ;;  %v17485_v42 = vpop.f32.mrb[22].mxu0  ;;  %21163 = vmatprep.subr.bf16.mxu1 %v25186_v26 }
 0x2eb   : > { %v25193_v30 = vadd.f32 %v17485_v42, %v13583_v37  ;;  %v2584_v38 = vpop.f32.mrb[23].mxu0  ;;  %21165 = vmatpush3.bf16.msra.mxu1 %v25186_v26 }
 0x2ec   : > { %v25200_v45 = vpack.c.bf16 %v30011_v23, %v30010_v33  ;;  %v25202_v55 = vadd.f32 %v13583_v37, %v2584_v38  ;;  %v21246_v37 = vpack.c.bf16 %v13605_v34, %v13604_v32  ;;  %v13650_v32 = vld [vmem:[%s30005_s2 + $0x5d0] sm:$0xff]  ;;  %v13651_v34 = vld [vmem:[%s30005_s2 + $0x5d8] sm:$0xff] }
 0x2ed   : > { %30020 = vst [vmem:[#allocation3_spill] sm:$0xff] %v25193_v30  ;;  %v30009_v50 = vmax.f32 %v25193_v30, 0.0  ;;  %v21290_v6 = vpack.c.bf16 %v13651_v34, %v13650_v32  ;;  %v23767_v32 = vld [vmem:[%s30004_s1 + $0x210] sm:$0xff]  ;;  %v23768_v34 = vld [vmem:[%s30004_s1 + $0x218] sm:$0xff] }
 0x2ee   : > { %30021 = vst [vmem:[#allocation4_spill] sm:$0xff] %v25202_v55  ;;  %v30008_v59 = vmax.f32 %v25202_v55, 0.0  ;;  %21167 = vmatprep.subr.bf16.mxu1 %v25200_v45 }
 0x2ef   : > { %21169 = vmatpush3.bf16.msra.mxu1 %v25200_v45 }
 0x2f0   : > { %v25212_v43 = vpack.c.bf16 %v30009_v50, %v30008_v59  ;;  %v13692_v59 = vld [vmem:[%s30005_s2 + $0x6a0] sm:$0xff]  ;;  %v13693_v50 = vld [vmem:[%s30005_s2 + $0x6a8] sm:$0xff] }
 0x2f1   : > { %v21374_v23 = vpack.c.bf16 %v13693_v50, %v13692_v59  ;;  %v13696_v50 = vld [vmem:[%s30005_s2 + $0x6c0] sm:$0xff]  ;;  %v13697_v59 = vld [vmem:[%s30005_s2 + $0x6c8] sm:$0xff] }
 0x2f2   : > { %21171 = vmatprep.subr.bf16.mxu1 %v25212_v43 }
 0x2f3   : > { %21173 = vmatpush3.bf16.msra.mxu1 %v25212_v43 }
 0x2f4   : > { %21175 = vmatprep.subr.bf16.mxu1 %v25171_v17 }
 0x2f6   : > { %17503 = vmatmul.mubr.msk.f32.vlgmr.msra.gmra.mrb[56].mxu1 %vm214_vm0, %v23710_v53 }
 0x2f7   : > { %21177 = vmatpush3.bf16.msra.mxu1 %v25171_v17  ;;  %17505 = vmatprep.mubr.msk.f32.mxu1 %vm214_vm0, %v23711_v40  ;;  %v13640_v40 = vld [vmem:[%s30005_s2 + $0x580] sm:$0xff] }
 0x2f8   : > { %21179 = vmatprep.subr.bf16.mxu1 %v25186_v26 }
 0x2fa   : > { %17506 = vmatmul.mubr.msk.f32.gmra.mrb[58].mxu1 %vm214_vm0, %v23712_v49  ;;  %v13641_v49 = vld [vmem:[%s30005_s2 + $0x588] sm:$0xff] }
 0x2fb   : > { %21181 = vmatpush3.bf16.msra.mxu1 %v25186_v26  ;;  %17508 = vmatprep.mubr.msk.f32.mxu1 %vm214_vm0, %v23713_v2  ;;  %v21270_v1 = vpack.c.bf16 %v13641_v49, %v13640_v40  ;;  %v23736_v40 = vld [vmem:[%s30004_s1 + $0x118] sm:$0xff] }
 0x2fc   : > { %21183 = vmatprep.subr.bf16.mxu1 %v25200_v45 }
 0x2fe   : > { %17509 = vmatmul.mubr.msk.f32.gmra.mrb[60].mxu1 %vm214_vm0, %v23714_v61  ;;  %v13642_v61 = vld [vmem:[%s30005_s2 + $0x590] sm:$0xff] }
 0x2ff   : > { %21185 = vmatpush3.bf16.msra.mxu1 %v25200_v45  ;;  %17511 = vmatprep.mubr.msk.f32.mxu1 %vm214_vm0, %v23715_v57  ;;  %v13643_v57 = vld [vmem:[%s30005_s2 + $0x598] sm:$0xff] }
 0x300   : > { %21187 = vmatprep.subr.bf16.mxu1 %v25212_v43 }
 0x302   : > { %17512 = vmatmul.mubr.msk.f32.gmra.mrb[62].mxu1 %vm214_vm0, %v23716_v51  ;;  %v21274_v51 = vpack.c.bf16 %v13643_v57, %v13642_v61  ;;  %v23740_v61 = vld [vmem:[%s30004_s1 + $0x138] sm:$0xff]  ;;  %v23741_v57 = vld [vmem:[%s30004_s1 + $0x140] sm:$0xff] }
 0x303   : > { %21189 = vmatpush3.bf16.msra.mxu1 %v25212_v43  ;;  %17530 = vmatprep.mubr.msk.f32.mxu1 %vm214_vm0, %v23717_v62  ;;  %v23726_v62 = vld [vmem:[%s30004_s1 + $0x88] sm:$0xff] }
 0x304   : > { %21223 = vmatprep.subr.bf16.mxu1 %v21222_v58 }
 0x306   : > { %17531 = vmatmul.mubr.msk.f32.vlgmr.msra.gmra.mrb[64].mxu1 %vm214_vm0, %v23718_v12 }
 0x307   : > { %21225 = vmatpush3.bf16.msra.mxu1 %v21222_v58  ;;  %17533 = vmatprep.mubr.msk.f32.mxu1 %vm214_vm0, %v23719_v27  ;;  %v23727_v27 = vld [vmem:[%s30004_s1 + $0x90] sm:$0xff] }
 0x308   : > { %21227 = vmatprep.subr.bf16.mxu1 %v21226_v22 }
 0x30a   : > { %17534 = vmatmul.mubr.msk.f32.gmra.mrb[66].mxu1 %vm214_vm0, %v23720_v20  ;;  %v13647_v20 = vld [vmem:[%s30005_s2 + $0x5b8] sm:$0xff] }
 0x30b   : > { %21229 = vmatpush3.bf16.msra.mxu1 %v21226_v22  ;;  %17536 = vmatprep.mubr.msk.f32.mxu1 %vm214_vm0, %v23721_v60  ;;  %v13644_v22 = vld [vmem:[%s30005_s2 + $0x5a0] sm:$0xff]  ;;  %v21282_v52 = vpack.c.bf16 %v13647_v20, %v13646_v15  ;;  %v23754_v15 = vld [vmem:[%s30004_s1 + $0x1a8] sm:$0xff]  ;;  %v23755_v20 = vld [vmem:[%s30004_s1 + $0x1b0] sm:$0xff] }
 0x30c   : > { %21231 = vmatprep.subr.bf16.mxu1 %v21230_v10 }
 0x30e   : > { %17537 = vmatmul.mubr.msk.f32.gmra.mrb[68].mxu1 %vm214_vm0, %v23722_v39  ;;  %v13648_v39 = vld [vmem:[%s30005_s2 + $0x5c0] sm:$0xff] }
 0x30f   : > { %21233 = vmatpush3.bf16.msra.mxu1 %v21230_v10  ;;  %17539 = vmatprep.mubr.msk.f32.mxu1 %vm214_vm0, %v23723_v24  ;;  %v21278_v10 = vpack.c.bf16 %v13645_v29, %v13644_v22  ;;  %v13649_v24 = vld [vmem:[%s30005_s2 + $0x5c8] sm:$0xff]  ;;  %v23747_v22 = vld [vmem:[%s30004_s1 + $0x170] sm:$0xff]  ;;  %v23748_v29 = vld [vmem:[%s30004_s1 + $0x178] sm:$0xff] }
 0x310   : > { %21235 = vmatprep.subr.bf16.mxu1 %v21234_v56 }
 0x312   : > { %17540 = vmatmul.mubr.msk.f32.gmra.mrb[70].mxu1 %vm214_vm0, %v23724_v31  ;;  %v23731_v31 = vld [vmem:[%s30004_s1 + $0xb0] sm:$0xff] }
 0x313   : > { %21237 = vmatpush3.bf16.msra.mxu1 %v21234_v56 }
 0x314   : > { %21239 = vmatprep.subr.bf16.mxu1 %v21238_v28 }
 0x317   : > { %21241 = vmatpush3.bf16.msra.mxu1 %v21238_v28  ;;  %v23730_v28 = vld [vmem:[%s30004_s1 + $0xa8] sm:$0xff] }
 0x318   : > { %21243 = vmatprep.subr.bf16.mxu1 %v21242_v7 }
 0x31b   : > { %21245 = vmatpush3.bf16.msra.mxu1 %v21242_v7  ;;  %v21286_v7 = vpack.c.bf16 %v13649_v24, %v13648_v39  ;;  %v23760_v39 = vld [vmem:[%s30004_s1 + $0x1d8] sm:$0xff]  ;;  %v23761_v24 = vld [vmem:[%s30004_s1 + $0x1e0] sm:$0xff] }
 0x31c   : > { %21247 = vmatprep.subr.bf16.mxu1 %v21246_v37 }
 0x31f   : > { %21249 = vmatpush3.bf16.msra.mxu1 %v21246_v37  ;;  %v23732_v37 = vld [vmem:[%s30004_s1 + $0xb8] sm:$0xff] }
 0x320   : > { %21251 = vmatprep.subr.bf16.mxu1 %v21250_v48 }
 0x323   : > { %21253 = vmatpush3.bf16.msra.mxu1 %v21250_v48  ;;  %v13652_v48 = vld [vmem:[%s30005_s2 + $0x5e0] sm:$0xff] }
 0x324   : > { %21255 = vmatprep.subr.bf16.mxu1 %v25171_v17 }
 0x3c9   : > { %v17504_v14 = vpop.f32.mrb[56].mxu1 }
 0x3ca   : > { %v2690_v25 = vpop.f32.mrb[57].mxu1 }
 0x3cb   : > { %17618 = vmatprep.mubr.f32.mxu1 %v2690_v25  ;;  %v23734_v25 = vld [vmem:[%s30004_s1 + $0x108] sm:$0xff] }
 0x3cc   : > { %17619 = vmatmul.mubr.f32.vlgmr.msra.gmra.mrb[72].mxu1 %v17504_v14  ;;  %v13653_v14 = vld [vmem:[%s30005_s2 + $0x5e8] sm:$0xff] }
 0x3cd   : > { %21257 = vmatpush3.bf16.msra.mxu1 %v25171_v17  ;;  %v17507_v16 = vpop.f32.mrb[58].mxu1 }
 0x3ce   : > { %21259 = vmatprep.subr.bf16.mxu1 %v25186_v26  ;;  %v2700_v42 = vpop.f32.mrb[59].mxu1 }
 0x3cf   : > { %17621 = vmatprep.mubr.f32.mxu1 %v2700_v42  ;;  %v23735_v42 = vld [vmem:[%s30004_s1 + $0x110] sm:$0xff] }
 0x3d0   : > { %17622 = vmatmul.mubr.f32.gmra.mrb[74].mxu1 %v17507_v16  ;;  %v21294_v16 = vpack.c.bf16 %v13653_v14, %v13652_v48  ;;  %v23772_v48 = vld [vmem:[%s30004_s1 + $0x238] sm:$0xff]  ;;  %v23773_v14 = vld [vmem:[%s30004_s1] sm:$0xff] }
 0x3d1   : > { %21261 = vmatpush3.bf16.msra.mxu1 %v25186_v26  ;;  %v17510_v38 = vpop.f32.mrb[60].mxu1 }
 0x3d2   : > { %21263 = vmatprep.subr.bf16.mxu1 %v25200_v45  ;;  %v2710_v53 = vpop.f32.mrb[61].mxu1 }
 0x3d3   : > { %17624 = vmatprep.mubr.f32.mxu1 %v2710_v53  ;;  %v13655_v53 = vld [vmem:[%s30005_s2 + $0x5f8] sm:$0xff] }
 0x3d4   : > { %17625 = vmatmul.mubr.f32.gmra.mrb[76].mxu1 %v17510_v38  ;;  %v13654_v38 = vld [vmem:[%s30005_s2 + $0x5f0] sm:$0xff] }
 0x3d5   : > { %21265 = vmatpush3.bf16.msra.mxu1 %v25200_v45  ;;  %v17513_v2 = vpop.f32.mrb[62].mxu1  ;;  %v21298_v49 = vpack.c.bf16 %v13655_v53, %v13654_v38 }
 0x3d6   : > { %21267 = vmatprep.subr.bf16.mxu1 %v25212_v43  ;;  %v2720_v47 = vpop.f32.mrb[63].mxu1 }
 0x3d7   : > { %17627 = vmatprep.mubr.f32.mxu1 %v2720_v47  ;;  %v23738_v47 = vld [vmem:[%s30004_s1 + $0x128] sm:$0xff] }
 0x3d8   : > { %17628 = vmatmul.mubr.f32.gmra.mrb[78].mxu1 %v17513_v2  ;;  %v23737_v2 = vld [vmem:[%s30004_s1 + $0x120] sm:$0xff] }
 0x3d9   : > { %21269 = vmatpush3.bf16.msra.mxu1 %v25212_v43  ;;  %v17532_v58 = vpop.f32.mrb[64].mxu1  ;;  %17646 = vmatprep.mubr.msk.f32.mxu1 %vm214_vm0, %v23725_v11  ;;  %v23743_v11 = vld [vmem:[%s30004_s1 + $0x150] sm:$0xff] }
 0x3da   : > { %v2812_v18 = vpop.f32.mrb[65].mxu1  ;;  %21271 = vmatprep.subr.bf16.mxu1 %v21270_v1 }
 0x3db   : > { %17574 = vmatprep.mubr.f32.mxu0 %v2812_v18  ;;  %v23744_v18 = vld [vmem:[%s30004_s1 + $0x158] sm:$0xff] }
 0x3dc   : > { %17575 = vmatmul.mubr.f32.vlgmr.msra.gmra.mrb[24].mxu0 %v17532_v58  ;;  %17647 = vmatmul.mubr.msk.f32.vlgmr.msra.gmra.mrb[80].mxu1 %vm214_vm0, %v23726_v62  ;;  %v23742_v58 = vld [vmem:[%s30004_s1 + $0x148] sm:$0xff] }
 0x3dd   : > { %21273 = vmatpush3.bf16.msra.mxu1 %v21270_v1  ;;  %21353 = vmatpush3.bf16.msra.mxu0 %v25171_v17  ;;  %v17535_v3 = vpop.f32.mrb[66].mxu1  ;;  %v23739_v1 = vld [vmem:[%s30004_s1 + $0x130] sm:$0xff]  ;;  %v23746_v62 = vld [vmem:[%s30004_s1 + $0x168] sm:$0xff] }
 0x3de   : > { %21355 = vmatprep.subr.bf16.mxu0 %v25186_v26  ;;  %v2822_v12 = vpop.f32.mrb[67].mxu1  ;;  %17649 = vmatprep.mubr.msk.f32.mxu1 %vm214_vm0, %v23727_v27  ;;  %v23751_v27 = vld [vmem:[%s30004_s1 + $0x190] sm:$0xff] }
 0x3df   : > { %17577 = vmatprep.mubr.f32.mxu0 %v2822_v12  ;;  %21275 = vmatprep.subr.bf16.mxu1 %v21274_v51  ;;  %v23750_v12 = vld [vmem:[%s30004_s1 + $0x188] sm:$0xff] }
 0x3e0   : > { %17578 = vmatmul.mubr.f32.gmra.mrb[26].mxu0 %v17535_v3  ;;  %17650 = vmatmul.mubr.msk.f32.gmra.mrb[82].mxu1 %vm214_vm0, %v23728_v54  ;;  %v23749_v3 = vld [vmem:[%s30004_s1 + $0x180] sm:$0xff] }
 0x3e1   : > { %21277 = vmatpush3.bf16.msra.mxu1 %v21274_v51  ;;  %21357 = vmatpush3.bf16.msra.mxu0 %v25186_v26  ;;  %v17538_v60 = vpop.f32.mrb[68].mxu1  ;;  %v23745_v51 = vld [vmem:[%s30004_s1 + $0x160] sm:$0xff] }
 0x3e2   : > { %21359 = vmatprep.subr.bf16.mxu0 %v25200_v45  ;;  %v2832_v56 = vpop.f32.mrb[69].mxu1  ;;  %17652 = vmatprep.mubr.msk.f32.mxu1 %vm214_vm0, %v23729_v21  ;;  %v23753_v54 = vld [vmem:[%s30004_s1 + $0x1a0] sm:$0xff]  ;;  %v23758_v21 = vld [vmem:[%s30004_s1 + $0x1c8] sm:$0xff] }
 0x3e3   : > { %17580 = vmatprep.mubr.f32.mxu0 %v2832_v56  ;;  %21279 = vmatprep.subr.bf16.mxu1 %v21278_v10  ;;  %v23757_v56 = vld [vmem:[%s30004_s1 + $0x1c0] sm:$0xff] }
 0x3e4   : > { %17581 = vmatmul.mubr.f32.gmra.mrb[28].mxu0 %v17538_v60  ;;  %17653 = vmatmul.mubr.msk.f32.gmra.mrb[84].mxu1 %vm214_vm0, %v23730_v28  ;;  %v23756_v60 = vld [vmem:[%s30004_s1 + $0x1b8] sm:$0xff]  ;;  %v23762_v28 = vld [vmem:[%s30004_s1 + $0x1e8] sm:$0xff] }
 0x3e5   : > { %21281 = vmatpush3.bf16.msra.mxu1 %v21278_v10  ;;  %21361 = vmatpush3.bf16.msra.mxu0 %v25200_v45  ;;  %v17541_v35 = vpop.f32.mrb[70].mxu1  ;;  %v23752_v10 = vld [vmem:[%s30004_s1 + $0x198] sm:$0xff] }
 0x3e6   : > { %21363 = vmatprep.subr.bf16.mxu0 %v25212_v43  ;;  %v2842_v44 = vpop.f32.mrb[71].mxu1  ;;  %17655 = vmatprep.mubr.msk.f32.mxu1 %vm214_vm0, %v23731_v31  ;;  %v23765_v31 = vld [vmem:[%s30004_s1 + $0x200] sm:$0xff] }
 0x3e7   : > { %17583 = vmatprep.mubr.f32.mxu0 %v2842_v44  ;;  %21283 = vmatprep.subr.bf16.mxu1 %v21282_v52  ;;  %v23764_v44 = vld [vmem:[%s30004_s1 + $0x1f8] sm:$0xff] }
 0x3e8   : > { %17584 = vmatmul.mubr.f32.gmra.mrb[30].mxu0 %v17541_v35  ;;  %17656 = vmatmul.mubr.msk.f32.gmra.mrb[86].mxu1 %vm214_vm0, %v23732_v37  ;;  %v23763_v35 = vld [vmem:[%s30004_s1 + $0x1f0] sm:$0xff]  ;;  %v23769_v37 = vld [vmem:[%s30004_s1 + $0x220] sm:$0xff] }
 0x3e9   : > { %21285 = vmatpush3.bf16.msra.mxu1 %v21282_v52  ;;  %21365 = vmatpush3.bf16.msra.mxu0 %v25212_v43  ;;  %v23759_v52 = vld [vmem:[%s30004_s1 + $0x1d0] sm:$0xff] }
 0x3ea   : > { %21399 = vmatprep.subr.bf16.mxu0 %v25171_v17  ;;  %21287 = vmatprep.subr.bf16.mxu1 %v21286_v7 }
 0x3eb   : > { %17790 = vmatprep.mubr.msk.f32.mxu0 %vm214_vm0, %v23733_v36  ;;  %v23771_v36 = vld [vmem:[%s30004_s1 + $0x230] sm:$0xff] }
 0x3ec   : > { %17791 = vmatmul.mubr.msk.f32.vlgmr.msra.gmra.mrb[32].mxu0 %vm214_vm0, %v23734_v25 }
 0x3ed   : > { %21289 = vmatpush3.bf16.msra.mxu1 %v21286_v7  ;;  %21401 = vmatpush3.bf16.msra.mxu0 %v25171_v17  ;;  %v23766_v7 = vld [vmem:[%s30004_s1 + $0x208] sm:$0xff] }
 0x3ee   : > { %21403 = vmatprep.subr.bf16.mxu0 %v25186_v26  ;;  %21291 = vmatprep.subr.bf16.mxu1 %v21290_v6 }
 0x3ef   : > { %17793 = vmatprep.mubr.msk.f32.mxu0 %vm214_vm0, %v23735_v42 }
 0x3f0   : > { %17794 = vmatmul.mubr.msk.f32.gmra.mrb[34].mxu0 %vm214_vm0, %v23736_v40 }
 0x3f1   : > { %21293 = vmatpush3.bf16.msra.mxu1 %v21290_v6  ;;  %21405 = vmatpush3.bf16.msra.mxu0 %v25186_v26  ;;  %v23770_v6 = vld [vmem:[%s30004_s1 + $0x228] sm:$0xff] }
 0x3f2   : > { %21407 = vmatprep.subr.bf16.mxu0 %v25200_v45  ;;  %21295 = vmatprep.subr.bf16.mxu1 %v21294_v16 }
 0x3f3   : > { %17796 = vmatprep.mubr.msk.f32.mxu0 %vm214_vm0, %v23737_v2 }
 0x3f4   : > { %17797 = vmatmul.mubr.msk.f32.gmra.mrb[36].mxu0 %vm214_vm0, %v23738_v47 }
 0x3f5   : > { %21297 = vmatpush3.bf16.msra.mxu1 %v21294_v16  ;;  %21409 = vmatpush3.bf16.msra.mxu0 %v25200_v45 }
 0x3f6   : > { %21411 = vmatprep.subr.bf16.mxu0 %v25212_v43  ;;  %21299 = vmatprep.subr.bf16.mxu1 %v21298_v49 }
 0x3f7   : > { %17799 = vmatprep.mubr.msk.f32.mxu0 %vm214_vm0, %v23739_v1 }
 0x3f8   : > { %17800 = vmatmul.mubr.msk.f32.gmra.mrb[38].mxu0 %vm214_vm0, %v23740_v61 }
 0x3f9   : > { %21301 = vmatpush3.bf16.msra.mxu1 %v21298_v49  ;;  %21413 = vmatpush3.bf16.msra.mxu0 %v25212_v43 }
 0x3fa   : > { %21303 = vmatprep.subr.bf16.mxu1 %v25171_v17  ;;  %21447 = vmatprep.subr.bf16.mxu0 %v25171_v17 }
 0x3fb   : > { %17862 = vmatprep.mubr.msk.f32.mxu0 %vm214_vm0, %v23741_v57 }
 0x3fc   : > { %17863 = vmatmul.mubr.msk.f32.vlgmr.msra.gmra.mrb[40].mxu0 %vm214_vm0, %v23742_v58  ;;  %v13665_v58 = vld [vmem:[%s30005_s2 + $0x608] sm:$0xff] }
 0x3fd   : > { %21449 = vmatpush3.bf16.msra.mxu0 %v25171_v17  ;;  %17865 = vmatprep.mubr.msk.f32.mxu0 %vm214_vm0, %v23743_v11 }
 0x3fe   : > { %21451 = vmatprep.subr.bf16.mxu0 %v25186_v26 }
 0x400   : > { %17866 = vmatmul.mubr.msk.f32.gmra.mrb[42].mxu0 %vm214_vm0, %v23744_v18 }
 0x401   : > { %21453 = vmatpush3.bf16.msra.mxu0 %v25186_v26  ;;  %17868 = vmatprep.mubr.msk.f32.mxu0 %vm214_vm0, %v23745_v51 }
 0x402   : > { %21455 = vmatprep.subr.bf16.mxu0 %v25200_v45 }
 0x404   : > { %17869 = vmatmul.mubr.msk.f32.gmra.mrb[44].mxu0 %vm214_vm0, %v23746_v62 }
 0x405   : > { %21457 = vmatpush3.bf16.msra.mxu0 %v25200_v45  ;;  %17871 = vmatprep.mubr.msk.f32.mxu0 %vm214_vm0, %v23747_v22  ;;  %v13666_v22 = vld [vmem:[%s30005_s2 + $0x610] sm:$0xff] }
 0x406   : > { %21459 = vmatprep.subr.bf16.mxu0 %v25212_v43 }
 0x408   : > { %17872 = vmatmul.mubr.msk.f32.gmra.mrb[46].mxu0 %vm214_vm0, %v23748_v29  ;;  %v13667_v29 = vld [vmem:[%s30005_s2 + $0x618] sm:$0xff] }
 0x409   : > { %21461 = vmatpush3.bf16.msra.mxu0 %v25212_v43  ;;  %17934 = vmatprep.mubr.msk.f32.mxu0 %vm214_vm0, %v23749_v3  ;;  %v21322_v3 = vpack.c.bf16 %v13667_v29, %v13666_v22 }
 0x40a   : > { %21495 = vmatprep.subr.bf16.mxu0 %v25171_v17 }
 0x40c   : > { %17935 = vmatmul.mubr.msk.f32.vlgmr.msra.gmra.mrb[48].mxu0 %vm214_vm0, %v23750_v12  ;;  %v13668_v12 = vld [vmem:[%s30005_s2 + $0x620] sm:$0xff] }
 0x40d   : > { %21497 = vmatpush3.bf16.msra.mxu0 %v25171_v17  ;;  %17937 = vmatprep.mubr.msk.f32.mxu0 %vm214_vm0, %v23751_v27  ;;  %v13669_v27 = vld [vmem:[%s30005_s2 + $0x628] sm:$0xff] }
 0x40e   : > { %21499 = vmatprep.subr.bf16.mxu0 %v25186_v26 }
 0x410   : > { %17938 = vmatmul.mubr.msk.f32.gmra.mrb[50].mxu0 %vm214_vm0, %v23752_v10  ;;  %v25682_v10 = vld [vmem:[%s30004_s1 + $0xd0] sm:$0xff] }
 0x411   : > { %21501 = vmatpush3.bf16.msra.mxu0 %v25186_v26  ;;  %17940 = vmatprep.mubr.msk.f32.mxu0 %vm214_vm0, %v23753_v54  ;;  %v21326_v54 = vpack.c.bf16 %v13669_v27, %v13668_v12 }
 0x412   : > { %21503 = vmatprep.subr.bf16.mxu0 %v25200_v45 }
 0x414   : > { %17941 = vmatmul.mubr.msk.f32.gmra.mrb[52].mxu0 %vm214_vm0, %v23754_v15  ;;  %v13670_v15 = vld [vmem:[%s30005_s2 + $0x630] sm:$0xff] }
 0x415   : > { %21505 = vmatpush3.bf16.msra.mxu0 %v25200_v45  ;;  %17943 = vmatprep.mubr.msk.f32.mxu0 %vm214_vm0, %v23755_v20  ;;  %v13671_v20 = vld [vmem:[%s30005_s2 + $0x638] sm:$0xff] }
 0x416   : > { %21507 = vmatprep.subr.bf16.mxu0 %v25212_v43 }
 0x418   : > { %17944 = vmatmul.mubr.msk.f32.gmra.mrb[54].mxu0 %vm214_vm0, %v23756_v60  ;;  %v25695_v60 = vld [vmem:[%s30004_s1 + $0xd8] sm:$0xff] }
 0x419   : > { %21509 = vmatpush3.bf16.msra.mxu0 %v25212_v43  ;;  %18006 = vmatprep.mubr.msk.f32.mxu0 %vm214_vm0, %v23757_v56  ;;  %v25702_v56 = vld [vmem:[%s30004_s1 + $0xe0] sm:$0xff] }
 0x41a   : > { %21543 = vmatprep.subr.bf16.mxu0 %v25171_v17 }
 0x41c   : > { %18007 = vmatmul.mubr.msk.f32.vlgmr.msra.gmra.mrb[56].mxu0 %vm214_vm0, %v23758_v21  ;;  %v21330_v21 = vpack.c.bf16 %v13671_v20, %v13670_v15 }
 0x41d   : > { %21545 = vmatpush3.bf16.msra.mxu0 %v25171_v17  ;;  %18009 = vmatprep.mubr.msk.f32.mxu0 %vm214_vm0, %v23759_v52  ;;  %v13672_v52 = vld [vmem:[%s30005_s2 + $0x640] sm:$0xff] }
 0x41e   : > { %21547 = vmatprep.subr.bf16.mxu0 %v25186_v26 }
 0x420   : > { %18010 = vmatmul.mubr.msk.f32.gmra.mrb[58].mxu0 %vm214_vm0, %v23760_v39  ;;  %v13673_v39 = vld [vmem:[%s30005_s2 + $0x648] sm:$0xff] }
 0x421   : > { %21549 = vmatpush3.bf16.msra.mxu0 %v25186_v26  ;;  %18012 = vmatprep.mubr.msk.f32.mxu0 %vm214_vm0, %v23761_v24  ;;  %v25715_v24 = vld [vmem:[%s30004_s1 + $0xe8] sm:$0xff] }
 0x422   : > { %21551 = vmatprep.subr.bf16.mxu0 %v25200_v45 }
 0x424   : > { %18013 = vmatmul.mubr.msk.f32.gmra.mrb[60].mxu0 %vm214_vm0, %v23762_v28  ;;  %v25722_v28 = vld [vmem:[%s30004_s1 + $0xf0] sm:$0xff] }
 0x425   : > { %21553 = vmatpush3.bf16.msra.mxu0 %v25200_v45  ;;  %18015 = vmatprep.mubr.msk.f32.mxu0 %vm214_vm0, %v23763_v35  ;;  %v21334_v35 = vpack.c.bf16 %v13673_v39, %v13672_v52 }
 0x426   : > { %21555 = vmatprep.subr.bf16.mxu0 %v25212_v43 }
 0x428   : > { %18016 = vmatmul.mubr.msk.f32.gmra.mrb[62].mxu0 %vm214_vm0, %v23764_v44  ;;  %v13674_v44 = vld [vmem:[%s30005_s2 + $0x650] sm:$0xff] }
 0x429   : > { %21557 = vmatpush3.bf16.msra.mxu0 %v25212_v43  ;;  %18078 = vmatprep.mubr.msk.f32.mxu0 %vm214_vm0, %v23765_v31  ;;  %v13675_v31 = vld [vmem:[%s30005_s2 + $0x658] sm:$0xff] }
 0x42c   : > { %18079 = vmatmul.mubr.msk.f32.vlgmr.msra.gmra.mrb[64].mxu0 %vm214_vm0, %v23766_v7  ;;  %v25735_v7 = vld [vmem:[%s30004_s1 + $0xf8] sm:$0xff] }
 0x42d   : > { %18081 = vmatprep.mubr.msk.f32.mxu0 %vm214_vm0, %v23767_v32  ;;  %v21338_v32 = vpack.c.bf16 %v13675_v31, %v13674_v44 }
 0x430   : > { %18082 = vmatmul.mubr.msk.f32.gmra.mrb[66].mxu0 %vm214_vm0, %v23768_v34  ;;  %v13676_v34 = vld [vmem:[%s30005_s2 + $0x660] sm:$0xff] }
 0x431   : > { %18084 = vmatprep.mubr.msk.f32.mxu0 %vm214_vm0, %v23769_v37  ;;  %v13677_v37 = vld [vmem:[%s30005_s2 + $0x668] sm:$0xff] }
 0x434   : > { %18085 = vmatmul.mubr.msk.f32.gmra.mrb[68].mxu0 %vm214_vm0, %v23770_v6  ;;  %v21342_v6 = vpack.c.bf16 %v13677_v37, %v13676_v34 }
 0x435   : > { %18087 = vmatprep.mubr.msk.f32.mxu0 %vm214_vm0, %v23771_v36  ;;  %v13678_v36 = vld [vmem:[%s30005_s2 + $0x670] sm:$0xff] }
 0x438   : > { %18088 = vmatmul.mubr.msk.f32.gmra.mrb[70].mxu0 %vm214_vm0, %v23772_v48  ;;  %v13679_v48 = vld [vmem:[%s30005_s2 + $0x678] sm:$0xff] }
 0x439   : > { %18150 = vmatprep.mubr.msk.f32.mxu0 %vm214_vm0, %v23773_v14  ;;  %v21346_v14 = vpack.c.bf16 %v13679_v48, %v13678_v36  ;;  %v13691_v36 = vld [vmem:[%s30005_s2 + $0x698] sm:$0xff] }
 0x4af   : > { %v17648_v25 = vpop.f32.mrb[80].mxu1  ;;  %v25624_v16 = vpop.f32.mrb[24].mxu0 }
 0x4b0   : > { %v3144_v42 = vpop.f32.mrb[81].mxu1  ;;  %v25626_v38 = vpop.f32.mrb[25].mxu0 }
 0x4b1   : > { %17690 = vmatprep.mubr.f32.mxu1 %v3144_v42  ;;  %v13689_v42 = vld [vmem:[%s30005_s2 + $0x688] sm:$0xff] }
 0x4b2   : > { %17691 = vmatmul.mubr.f32.vlgmr.msra.gmra.mrb[72].mxu1 %v17648_v25  ;;  %v13688_v25 = vld [vmem:[%s30005_s2 + $0x680] sm:$0xff] }
 0x4b3   : > { %21305 = vmatpush3.bf16.msra.mxu1 %v25171_v17  ;;  %v17651_v53 = vpop.f32.mrb[82].mxu1  ;;  %v25629_v40 = vpop.f32.mrb[26].mxu0  ;;  %v13664_v17 = vld [vmem:[%s30005_s2 + $0x600] sm:$0xff] }
 0x4b4   : > { %21307 = vmatprep.subr.bf16.mxu1 %v25186_v26  ;;  %v3154_v49 = vpop.f32.mrb[83].mxu1  ;;  %v25632_v2 = vpop.f32.mrb[27].mxu0  ;;  %v21318_v62 = vpack.c.bf16 %v13665_v58, %v13664_v17 }
 0x4b5   : > { %17693 = vmatprep.mubr.f32.mxu1 %v3154_v49 }
 0x4b6   : > { %17694 = vmatmul.mubr.f32.gmra.mrb[74].mxu1 %v17651_v53  ;;  %v21366_v53 = vpack.c.bf16 %v13689_v42, %v13688_v25 }
 0x4b7   : > { %21309 = vmatpush3.bf16.msra.mxu1 %v25186_v26  ;;  %v17654_v47 = vpop.f32.mrb[84].mxu1  ;;  %v25635_v1 = vpop.f32.mrb[28].mxu0 }
 0x4b8   : > { %21311 = vmatprep.subr.bf16.mxu1 %v25200_v45  ;;  %v3164_v61 = vpop.f32.mrb[85].mxu1  ;;  %v25638_v57 = vpop.f32.mrb[29].mxu0 }
 0x4b9   : > { %17696 = vmatprep.mubr.f32.mxu1 %v3164_v61 }
 0x4ba   : > { %17697 = vmatmul.mubr.f32.gmra.mrb[76].mxu1 %v17654_v47 }
 0x4bb   : > { %21313 = vmatpush3.bf16.msra.mxu1 %v25200_v45  ;;  %v17657_v26 = vpop.f32.mrb[86].mxu1  ;;  %v25647_v11 = vpop.f32.mrb[30].mxu0  ;;  %v25662_v45 = vld [vmem:[%s30004_s1 + $0xc0] sm:$0xff] }
 0x4bc   : > { %21315 = vmatprep.subr.bf16.mxu1 %v25212_v43  ;;  %v3174_v18 = vpop.f32.mrb[87].mxu1  ;;  %v25650_v51 = vpop.f32.mrb[31].mxu0 }
 0x4bd   : > { %17699 = vmatprep.mubr.f32.mxu1 %v3174_v18 }
 0x4be   : > { %17700 = vmatmul.mubr.f32.gmra.mrb[78].mxu1 %v17657_v26 }
 0x4bf   : > { %21317 = vmatpush3.bf16.msra.mxu1 %v25212_v43  ;;  %17718 = vmatprep.mubr.msk.f32.mxu1 %vm214_vm0, %v25662_v45  ;;  %v25675_v43 = vld [vmem:[%s30004_s1 + $0xc8] sm:$0xff]  ;;  %v25757_v49 = vpop.f32.mrb[32].mxu0 }
 0x4c0   : > { %21319 = vmatprep.subr.bf16.mxu1 %v21318_v62  ;;  %v3614_v47 = vpop.f32.mrb[33].mxu0 }
 0x4c2   : > { %17719 = vmatmul.mubr.msk.f32.vlgmr.msra.gmra.mrb[88].mxu1 %vm214_vm0, %v25675_v43 }
 0x4c3   : > { %17721 = vmatprep.mubr.msk.f32.mxu1 %vm214_vm0, %v25682_v10  ;;  %21321 = vmatpush3.bf16.msra.mxu1 %v21318_v62  ;;  %v25759_v61 = vpop.f32.mrb[34].mxu0 }
 0x4c4   : > { %21323 = vmatprep.subr.bf16.mxu1 %v21322_v3  ;;  %v25761_v17 = vpop.f32.mrb[35].mxu0 }
 0x4c6   : > { %17722 = vmatmul.mubr.msk.f32.gmra.mrb[90].mxu1 %vm214_vm0, %v25695_v60 }
 0x4c7   : > { %17724 = vmatprep.mubr.msk.f32.mxu1 %vm214_vm0, %v25702_v56  ;;  %21325 = vmatpush3.bf16.msra.mxu1 %v21322_v3  ;;  %v25763_v58 = vpop.f32.mrb[36].mxu0 }
 0x4c8   : > { %21327 = vmatprep.subr.bf16.mxu1 %v21326_v54  ;;  %v25765_v26 = vpop.f32.mrb[37].mxu0 }
 0x4ca   : > { %17725 = vmatmul.mubr.msk.f32.gmra.mrb[92].mxu1 %vm214_vm0, %v25715_v24 }
 0x4cb   : > { %17727 = vmatprep.mubr.msk.f32.mxu1 %vm214_vm0, %v25722_v28  ;;  %21329 = vmatpush3.bf16.msra.mxu1 %v21326_v54  ;;  %v25767_v18 = vpop.f32.mrb[38].mxu0 }
 0x4cc   : > { %21331 = vmatprep.subr.bf16.mxu1 %v21330_v21  ;;  %v25769_v62 = vpop.f32.mrb[39].mxu0 }
 0x4ce   : > { %17728 = vmatmul.mubr.msk.f32.gmra.mrb[94].mxu1 %vm214_vm0, %v25735_v7 }
 0x4cf   : > { %21333 = vmatpush3.bf16.msra.mxu1 %v21330_v21  ;;  %v25771_v22 = vpop.f32.mrb[40].mxu0 }
 0x4d0   : > { %21335 = vmatprep.subr.bf16.mxu1 %v21334_v35  ;;  %v25773_v29 = vpop.f32.mrb[41].mxu0 }
 0x4d3   : > { %21337 = vmatpush3.bf16.msra.mxu1 %v21334_v35  ;;  %v25775_v3 = vpop.f32.mrb[42].mxu0 }
 0x4d4   : > { %21339 = vmatprep.subr.bf16.mxu1 %v21338_v32  ;;  %v25777_v12 = vpop.f32.mrb[43].mxu0 }
 0x4d7   : > { %21341 = vmatpush3.bf16.msra.mxu1 %v21338_v32  ;;  %v25779_v27 = vpop.f32.mrb[44].mxu0 }
 0x4d8   : > { %21343 = vmatprep.subr.bf16.mxu1 %v21342_v6  ;;  %v25781_v54 = vpop.f32.mrb[45].mxu0 }
 0x4db   : > { %21345 = vmatpush3.bf16.msra.mxu1 %v21342_v6  ;;  %v25783_v15 = vpop.f32.mrb[46].mxu0  ;;  %v13690_v6 = vld [vmem:[%s30005_s2 + $0x690] sm:$0xff] }
 0x4dc   : > { %21347 = vmatprep.subr.bf16.mxu1 %v21346_v14  ;;  %v25785_v20 = vpop.f32.mrb[47].mxu0  ;;  %v21370_v42 = vpack.c.bf16 %v13691_v36, %v13690_v6  ;;  %v13695_v6 = vld [vmem:[%s30005_s2 + $0x6b8] sm:$0xff] }
 0x4df   : > { %21349 = vmatpush3.bf16.msra.mxu1 %v21346_v14  ;;  %v25787_v21 = vpop.f32.mrb[48].mxu0 }
 0x4e0   : > { %21367 = vmatprep.subr.bf16.mxu1 %v21366_v53  ;;  %v25789_v52 = vpop.f32.mrb[49].mxu0 }
 0x4e3   : > { %v25791_v39 = vpop.f32.mrb[50].mxu0 }
 0x4e4   : > { %v25793_v35 = vpop.f32.mrb[51].mxu0 }
 0x4e7   : > { %v25795_v44 = vpop.f32.mrb[52].mxu0 }
 0x4e8   : > { %v25797_v31 = vpop.f32.mrb[53].mxu0 }
 0x4eb   : > { %v25799_v32 = vpop.f32.mrb[54].mxu0 }
 0x4ec   : > { %v25801_v34 = vpop.f32.mrb[55].mxu0 }
 0x4ef   : > { %v25803_v37 = vpop.f32.mrb[56].mxu0 }
 0x4f0   : > { %v25811_v14 = vpop.f32.mrb[57].mxu0 }
 0x595   : > { %v17720_v48 = vpop.f32.mrb[88].mxu1 }
 0x596   : > { %v3379_v25 = vpop.f32.mrb[89].mxu1 }
 0x597   : > { %17762 = vmatprep.mubr.f32.mxu1 %v3379_v25  ;;  %v21378_v25 = vpack.c.bf16 %v13695_v6, %v13694_v46  ;;  %v13698_v46 = vld [vmem:[%s30005_s2 + $0x6d0] sm:$0xff]  ;;  %v25837_v6 = vpop.f32.mrb[58].mxu0 }
 0x598   : > { %17763 = vmatmul.mubr.f32.vlgmr.msra.gmra.mrb[72].mxu1 %v17720_v48 }
 0x599   : > { %21369 = vmatpush3.bf16.msra.mxu1 %v21366_v53  ;;  %v17723_v33 = vpop.f32.mrb[90].mxu1 }
 0x59a   : > { %21371 = vmatprep.subr.bf16.mxu1 %v21370_v42  ;;  %v3389_v0 = vpop.f32.mrb[91].mxu1 }
 0x59b   : > { %17765 = vmatprep.mubr.f32.mxu1 %v3389_v0  ;;  %v21382_v0 = vpack.c.bf16 %v13697_v59, %v13696_v50  ;;  %v13701_v50 = vld [vmem:[%s30005_s2 + $0x6e8] sm:$0xff] }
 0x59c   : > { %17766 = vmatmul.mubr.f32.gmra.mrb[74].mxu1 %v17723_v33 }
 0x59d   : > { %21373 = vmatpush3.bf16.msra.mxu1 %v21370_v42  ;;  %v17726_v36 = vpop.f32.mrb[92].mxu1  ;;  %v13699_v42 = vld [vmem:[%s30005_s2 + $0x6d8] sm:$0xff] }
 0x59e   : > { %21375 = vmatprep.subr.bf16.mxu1 %v21374_v23  ;;  %v3399_v48 = vpop.f32.mrb[93].mxu1 }
 0x59f   : > { %17768 = vmatprep.mubr.f32.mxu1 %v3399_v48  ;;  %v13700_v48 = vld [vmem:[%s30005_s2 + $0x6e0] sm:$0xff] }
 0x5a0   : > { %17769 = vmatmul.mubr.f32.gmra.mrb[76].mxu1 %v17726_v36  ;;  %v25839_v36 = vpop.f32.mrb[59].mxu0 }
 0x5a1   : > { %21377 = vmatpush3.bf16.msra.mxu1 %v21374_v23  ;;  %v17729_v53 = vpop.f32.mrb[94].mxu1  ;;  %v21386_v23 = vpack.c.bf16 %v13699_v42, %v13698_v46  ;;  %v25847_v59 = vpop.f32.mrb[60].mxu0 }
 0x5a2   : > { %21379 = vmatprep.subr.bf16.mxu1 %v21378_v25  ;;  %v3409_v33 = vpop.f32.mrb[95].mxu1 }
 0x5a3   : > { %17771 = vmatprep.mubr.f32.mxu1 %v3409_v33  ;;  %v13703_v33 = vld [vmem:[%s30005_s2 + $0x6f8] sm:$0xff] }
 0x5a4   : > { %17772 = vmatmul.mubr.f32.gmra.mrb[78].mxu1 %v17729_v53  ;;  %v13702_v53 = vld [vmem:[%s30005_s2 + $0x6f0] sm:$0xff] }
 0x5a5   : > { %21381 = vmatpush3.bf16.msra.mxu1 %v21378_v25  ;;  %17834 = vmatprep.mubr.f32.mxu1 %v3614_v47  ;;  %v21390_v25 = vpack.c.bf16 %v13701_v50, %v13700_v48  ;;  %v25849_v47 = vpop.f32.mrb[61].mxu0  ;;  %v21394_v42 = vpack.c.bf16 %v13703_v33, %v13702_v53  ;;  %v13712_v48 = vld [vmem:[%s30005_s2 + $0x700] sm:$0xff]  ;;  %v13713_v50 = vld [vmem:[%s30005_s2 + $0x708] sm:$0xff]  ;;  %v13714_v53 = vld [vmem:[%s30005_s2 + $0x710] sm:$0xff] }
 0x5a6   : > { %21383 = vmatprep.subr.bf16.mxu1 %v21382_v0  ;;  %v25857_v46 = vpop.f32.mrb[62].mxu0  ;;  %v21414_v63 = vpack.c.bf16 %v13713_v50, %v13712_v48  ;;  %v13715_v33 = vld [vmem:[%s30005_s2 + $0x718] sm:$0xff]  ;;  %v13717_v48 = vld [vmem:[%s30005_s2 + $0x728] sm:$0xff] }
 0x5a7   : > { %v21418_v30 = vpack.c.bf16 %v13715_v33, %v13714_v53  ;;  %v13718_v53 = vld [vmem:[%s30005_s2 + $0x730] sm:$0xff]  ;;  %v13719_v33 = vld [vmem:[%s30005_s2 + $0x738] sm:$0xff] }
 0x5a9   : > { %21385 = vmatpush3.bf16.msra.mxu1 %v21382_v0  ;;  %v25859_v0 = vpop.f32.mrb[63].mxu0 }
 0x5aa   : > { %21387 = vmatprep.subr.bf16.mxu1 %v21386_v23  ;;  %v25867_v4 = vpop.f32.mrb[64].mxu0 }
 0x5ad   : > { %21389 = vmatpush3.bf16.msra.mxu1 %v21386_v23  ;;  %v25869_v23 = vpop.f32.mrb[65].mxu0 }
 0x5ae   : > { %21391 = vmatprep.subr.bf16.mxu1 %v21390_v25  ;;  %v25877_v55 = vpop.f32.mrb[66].mxu0 }
 0x5af   : > { %v25886_v50 = vpop.f32.mrb[67].mxu0 }
 0x5b1   : > { %21393 = vmatpush3.bf16.msra.mxu1 %v21390_v25  ;;  %v13716_v25 = vld [vmem:[%s30005_s2 + $0x720] sm:$0xff] }
 0x5b2   : > { %21395 = vmatprep.subr.bf16.mxu1 %v21394_v42  ;;  %v21422_v13 = vpack.c.bf16 %v13717_v48, %v13716_v25  ;;  %v13720_v25 = vld [vmem:[%s30005_s2 + $0x740] sm:$0xff]  ;;  %v13721_v48 = vld [vmem:[%s30005_s2 + $0x748] sm:$0xff] }
 0x5b5   : > { %21397 = vmatpush3.bf16.msra.mxu1 %v21394_v42  ;;  %v25889_v42 = vpop.f32.mrb[68].mxu0 }
 0x5b6   : > { %21415 = vmatprep.subr.bf16.mxu1 %v21414_v63 }
 0x5b8   : > { %17835 = vmatmul.mubr.f32.vlgmr.msra.gmra.mrb[72].mxu1 %v25757_v49  ;;  %v25898_v49 = vpop.f32.mrb[69].mxu0 }
 0x5b9   : > { %21417 = vmatpush3.bf16.msra.mxu1 %v21414_v63  ;;  %17837 = vmatprep.mubr.f32.mxu1 %v25761_v17  ;;  %v25901_v63 = vpop.f32.mrb[70].mxu0  ;;  %v21426_v17 = vpack.c.bf16 %v13719_v33, %v13718_v53  ;;  %v13723_v53 = vld [vmem:[%s30005_s2 + $0x758] sm:$0xff] }
 0x5ba   : > { %21419 = vmatprep.subr.bf16.mxu1 %v21418_v30 }
 0x5bc   : > { %17838 = vmatmul.mubr.f32.gmra.mrb[74].mxu1 %v25759_v61  ;;  %v25910_v61 = vpop.f32.mrb[71].mxu0 }
 0x5bd   : > { %21421 = vmatpush3.bf16.msra.mxu1 %v21418_v30  ;;  %17840 = vmatprep.mubr.f32.mxu1 %v25765_v26  ;;  %v21430_v30 = vpack.c.bf16 %v13721_v48, %v13720_v25  ;;  %v13722_v26 = vld [vmem:[%s30005_s2 + $0x750] sm:$0xff]  ;;  %v13736_v25 = vld [vmem:[%s30005_s2 + $0x780] sm:$0xff]  ;;  %v13737_v48 = vld [vmem:[%s30005_s2 + $0x788] sm:$0xff] }
 0x5be   : > { %21423 = vmatprep.subr.bf16.mxu1 %v21422_v13 }
 0x5c0   : > { %17841 = vmatmul.mubr.f32.gmra.mrb[76].mxu1 %v25763_v58  ;;  %v21434_v58 = vpack.c.bf16 %v13723_v53, %v13722_v26  ;;  %v13738_v26 = vld [vmem:[%s30005_s2 + $0x790] sm:$0xff]  ;;  %v13739_v53 = vld [vmem:[%s30005_s2 + $0x798] sm:$0xff] }
 0x5c1   : > { %21425 = vmatpush3.bf16.msra.mxu1 %v21422_v13  ;;  %17843 = vmatprep.mubr.f32.mxu1 %v25769_v62  ;;  %v13724_v13 = vld [vmem:[%s30005_s2 + $0x760] sm:$0xff]  ;;  %v13725_v62 = vld [vmem:[%s30005_s2 + $0x768] sm:$0xff] }
 0x5c2   : > { %21427 = vmatprep.subr.bf16.mxu1 %v21426_v17  ;;  %v21438_v33 = vpack.c.bf16 %v13725_v62, %v13724_v13  ;;  %v13740_v13 = vld [vmem:[%s30005_s2 + $0x7a0] sm:$0xff]  ;;  %v13741_v62 = vld [vmem:[%s30005_s2 + $0x7a8] sm:$0xff] }
 0x5c4   : > { %17844 = vmatmul.mubr.f32.gmra.mrb[78].mxu1 %v25767_v18  ;;  %v13726_v18 = vld [vmem:[%s30005_s2 + $0x770] sm:$0xff] }
 0x5c5   : > { %21429 = vmatpush3.bf16.msra.mxu1 %v21426_v17  ;;  %17906 = vmatprep.mubr.f32.mxu1 %v25773_v29  ;;  %v13727_v29 = vld [vmem:[%s30005_s2 + $0x778] sm:$0xff] }
 0x5c6   : > { %21431 = vmatprep.subr.bf16.mxu1 %v21430_v30  ;;  %v21442_v17 = vpack.c.bf16 %v13727_v29, %v13726_v18  ;;  %v13742_v18 = vld [vmem:[%s30005_s2 + $0x7b0] sm:$0xff]  ;;  %v13743_v29 = vld [vmem:[%s30005_s2 + $0x7b8] sm:$0xff] }
 0x5c9   : > { %21433 = vmatpush3.bf16.msra.mxu1 %v21430_v30  ;;  %v21462_v30 = vpack.c.bf16 %v13737_v48, %v13736_v25  ;;  %v13747_v25 = vld [vmem:[%s30005_s2 + $0x7d8] sm:$0xff]  ;;  %v13749_v48 = vld [vmem:[%s30005_s2 + $0x7e8] sm:$0xff] }
 0x5ca   : > { %21435 = vmatprep.subr.bf16.mxu1 %v21434_v58 }
 0x5cd   : > { %21437 = vmatpush3.bf16.msra.mxu1 %v21434_v58  ;;  %v21466_v58 = vpack.c.bf16 %v13739_v53, %v13738_v26  ;;  %v13760_v53 = vld [vmem:[%s30005_s2 + $0x800] sm:$0xff] }
 0x5ce   : > { %21439 = vmatprep.subr.bf16.mxu1 %v21438_v33 }
 0x5d1   : > { %21441 = vmatpush3.bf16.msra.mxu1 %v21438_v33  ;;  %v21470_v33 = vpack.c.bf16 %v13741_v62, %v13740_v13  ;;  %v13762_v62 = vld [vmem:[%s30005_s2 + $0x810] sm:$0xff] }
 0x5d2   : > { %21443 = vmatprep.subr.bf16.mxu1 %v21442_v17 }
 0x5d5   : > { %21445 = vmatpush3.bf16.msra.mxu1 %v21442_v17  ;;  %v13745_v17 = vld [vmem:[%s30005_s2 + $0x7c8] sm:$0xff] }
 0x5d6   : > { %21463 = vmatprep.subr.bf16.mxu1 %v21462_v30 }
 0x5d8   : > { %17907 = vmatmul.mubr.f32.vlgmr.msra.gmra.mrb[72].mxu1 %v25771_v22  ;;  %v21474_v22 = vpack.c.bf16 %v13743_v29, %v13742_v18  ;;  %v13764_v29 = vld [vmem:[%s30005_s2 + $0x820] sm:$0xff] }
 0x5d9   : > { %21465 = vmatpush3.bf16.msra.mxu1 %v21462_v30  ;;  %17909 = vmatprep.mubr.f32.mxu1 %v25777_v12  ;;  %v13744_v12 = vld [vmem:[%s30005_s2 + $0x7c0] sm:$0xff] }
 0x5da   : > { %21467 = vmatprep.subr.bf16.mxu1 %v21466_v58 }
 0x5dc   : > { %17910 = vmatmul.mubr.f32.gmra.mrb[74].mxu1 %v25775_v3  ;;  %v21478_v3 = vpack.c.bf16 %v13745_v17, %v13744_v12  ;;  %v13766_v17 = vld [vmem:[%s30005_s2 + $0x830] sm:$0xff] }
 0x5dd   : > { %21469 = vmatpush3.bf16.msra.mxu1 %v21466_v58  ;;  %17912 = vmatprep.mubr.f32.mxu1 %v25781_v54  ;;  %v13746_v54 = vld [vmem:[%s30005_s2 + $0x7d0] sm:$0xff]  ;;  %v13761_v58 = vld [vmem:[%s30005_s2 + $0x808] sm:$0xff] }
 0x5de   : > { %21471 = vmatprep.subr.bf16.mxu1 %v21470_v33  ;;  %v21510_v13 = vpack.c.bf16 %v13761_v58, %v13760_v53  ;;  %v13787_v53 = vld [vmem:[%s30005_s2 + $0x898] sm:$0xff] }
 0x5e0   : > { %17913 = vmatmul.mubr.f32.gmra.mrb[76].mxu1 %v25779_v27  ;;  %v21482_v27 = vpack.c.bf16 %v13747_v25, %v13746_v54  ;;  %v13769_v54 = vld [vmem:[%s30005_s2 + $0x848] sm:$0xff]  ;;  %v13771_v25 = vld [vmem:[%s30005_s2 + $0x858] sm:$0xff] }
 0x5e1   : > { %21473 = vmatpush3.bf16.msra.mxu1 %v21470_v33  ;;  %17915 = vmatprep.mubr.f32.mxu1 %v25785_v20  ;;  %v13748_v20 = vld [vmem:[%s30005_s2 + $0x7e0] sm:$0xff]  ;;  %v13763_v33 = vld [vmem:[%s30005_s2 + $0x818] sm:$0xff] }
 0x5e2   : > { %21475 = vmatprep.subr.bf16.mxu1 %v21474_v22  ;;  %v21486_v30 = vpack.c.bf16 %v13749_v48, %v13748_v20  ;;  %v21514_v18 = vpack.c.bf16 %v13763_v33, %v13762_v62  ;;  %v13789_v62 = vld [vmem:[%s30005_s2 + $0x8a8] sm:$0xff] }
 0x5e4   : > { %17916 = vmatmul.mubr.f32.gmra.mrb[78].mxu1 %v25783_v15  ;;  %v13750_v15 = vld [vmem:[%s30005_s2 + $0x7f0] sm:$0xff] }
 0x5e5   : > { %21477 = vmatpush3.bf16.msra.mxu1 %v21474_v22  ;;  %17978 = vmatprep.mubr.f32.mxu1 %v25789_v52  ;;  %v13751_v52 = vld [vmem:[%s30005_s2 + $0x7f8] sm:$0xff]  ;;  %v13765_v22 = vld [vmem:[%s30005_s2 + $0x828] sm:$0xff] }
 0x5e6   : > { %21479 = vmatprep.subr.bf16.mxu1 %v21478_v3  ;;  %v21490_v26 = vpack.c.bf16 %v13751_v52, %v13750_v15  ;;  %v21518_v12 = vpack.c.bf16 %v13765_v22, %v13764_v29  ;;  %v13785_v15 = vld [vmem:[%s30005_s2 + $0x888] sm:$0xff]  ;;  %v13791_v29 = vld [vmem:[%s30005_s2 + $0x8b8] sm:$0xff] }
 0x5e7   : > { %v13793_v22 = vld [vmem:[%s30005_s2 + $0x8c8] sm:$0xff] }
 0x5e9   : > { %21481 = vmatpush3.bf16.msra.mxu1 %v21478_v3  ;;  %v13767_v3 = vld [vmem:[%s30005_s2 + $0x838] sm:$0xff] }
 0x5ea   : > { %21483 = vmatprep.subr.bf16.mxu1 %v21482_v27 }
 0x5ed   : > { %21485 = vmatpush3.bf16.msra.mxu1 %v21482_v27  ;;  %v13773_v27 = vld [vmem:[%s30005_s2 + $0x868] sm:$0xff] }
 0x5ee   : > { %21487 = vmatprep.subr.bf16.mxu1 %v21486_v30 }
 0x5f1   : > { %21489 = vmatpush3.bf16.msra.mxu1 %v21486_v30  ;;  %v13784_v30 = vld [vmem:[%s30005_s2 + $0x880] sm:$0xff] }
 0x5f2   : > { %21491 = vmatprep.subr.bf16.mxu1 %v21490_v26  ;;  %v21558_v52 = vpack.c.bf16 %v13785_v15, %v13784_v30 }
 0x5f5   : > { %21493 = vmatpush3.bf16.msra.mxu1 %v21490_v26  ;;  %v13786_v26 = vld [vmem:[%s30005_s2 + $0x890] sm:$0xff] }
 0x5f6   : > { %21511 = vmatprep.subr.bf16.mxu1 %v21510_v13  ;;  %v21562_v58 = vpack.c.bf16 %v13787_v53, %v13786_v26 }
 0x5f8   : > { %17979 = vmatmul.mubr.f32.vlgmr.msra.gmra.mrb[72].mxu1 %v25787_v21  ;;  %v21522_v21 = vpack.c.bf16 %v13767_v3, %v13766_v17  ;;  %v13797_v17 = vld [vmem:[%s30005_s2 + $0x8e8] sm:$0xff] }
 0x5f9   : > { %21513 = vmatpush3.bf16.msra.mxu1 %v21510_v13  ;;  %17981 = vmatprep.mubr.f32.mxu1 %v25793_v35  ;;  %v13768_v35 = vld [vmem:[%s30005_s2 + $0x840] sm:$0xff] }
 0x5fa   : > { %21515 = vmatprep.subr.bf16.mxu1 %v21514_v18  ;;  %v13788_v13 = vld [vmem:[%s30005_s2 + $0x8a0] sm:$0xff] }
 0x5fb   : > { %v21566_v33 = vpack.c.bf16 %v13789_v62, %v13788_v13 }
 0x5fc   : > { %17982 = vmatmul.mubr.f32.gmra.mrb[74].mxu1 %v25791_v39  ;;  %v21526_v39 = vpack.c.bf16 %v13769_v54, %v13768_v35 }
 0x5fd   : > { %21517 = vmatpush3.bf16.msra.mxu1 %v21514_v18  ;;  %17984 = vmatprep.mubr.f32.mxu1 %v25797_v31  ;;  %v13770_v31 = vld [vmem:[%s30005_s2 + $0x850] sm:$0xff] }
 0x5fe   : > { %21519 = vmatprep.subr.bf16.mxu1 %v21518_v12  ;;  %v13790_v18 = vld [vmem:[%s30005_s2 + $0x8b0] sm:$0xff] }
 0x600   : > { %17985 = vmatmul.mubr.f32.gmra.mrb[76].mxu1 %v25795_v44  ;;  %v21530_v44 = vpack.c.bf16 %v13771_v25, %v13770_v31 }
 0x601   : > { %21521 = vmatpush3.bf16.msra.mxu1 %v21518_v12  ;;  %17987 = vmatprep.mubr.f32.mxu1 %v25801_v34  ;;  %v13772_v34 = vld [vmem:[%s30005_s2 + $0x860] sm:$0xff]  ;;  %v13795_v12 = vld [vmem:[%s30005_s2 + $0x8d8] sm:$0xff] }
 0x602   : > { %21523 = vmatprep.subr.bf16.mxu1 %v21522_v21  ;;  %v21534_v20 = vpack.c.bf16 %v13773_v27, %v13772_v34 }
 0x604   : > { %17988 = vmatmul.mubr.f32.gmra.mrb[78].mxu1 %v25799_v32  ;;  %v13774_v32 = vld [vmem:[%s30005_s2 + $0x870] sm:$0xff] }
 0x605   : > { %21525 = vmatpush3.bf16.msra.mxu1 %v21522_v21  ;;  %18050 = vmatprep.mubr.f32.mxu1 %v25811_v14  ;;  %v13775_v14 = vld [vmem:[%s30005_s2 + $0x878] sm:$0xff] }
 0x606   : > { %21527 = vmatprep.subr.bf16.mxu1 %v21526_v39  ;;  %v21538_v48 = vpack.c.bf16 %v13775_v14, %v13774_v32 }
 0x609   : > { %21529 = vmatpush3.bf16.msra.mxu1 %v21526_v39 }
 0x60a   : > { %21531 = vmatprep.subr.bf16.mxu1 %v21530_v44 }
 0x60d   : > { %21533 = vmatpush3.bf16.msra.mxu1 %v21530_v44 }
 0x60e   : > { %21535 = vmatprep.subr.bf16.mxu1 %v21534_v20 }
 0x611   : > { %21537 = vmatpush3.bf16.msra.mxu1 %v21534_v20 }
 0x612   : > { %21539 = vmatprep.subr.bf16.mxu1 %v21538_v48 }
 0x615   : > { %21541 = vmatpush3.bf16.msra.mxu1 %v21538_v48 }
 0x616   : > { %21559 = vmatprep.subr.bf16.mxu1 %v21558_v52 }
 0x618   : > { %18051 = vmatmul.mubr.f32.vlgmr.msra.gmra.mrb[72].mxu1 %v25803_v37  ;;  %v21570_v37 = vpack.c.bf16 %v13791_v29, %v13790_v18  ;;  %v23783_v29 = vld [vmem:[%s30004_s1 + $0x10] sm:$0xff] }
 0x619   : > { %21561 = vmatpush3.bf16.msra.mxu1 %v21558_v52  ;;  %18053 = vmatprep.mubr.f32.mxu1 %v25839_v36  ;;  %v13792_v36 = vld [vmem:[%s30005_s2 + $0x8c0] sm:$0xff] }
 0x61a   : > { %21563 = vmatprep.subr.bf16.mxu1 %v21562_v58 }
 0x61c   : > { %18054 = vmatmul.mubr.f32.gmra.mrb[74].mxu1 %v25837_v6  ;;  %v21574_v6 = vpack.c.bf16 %v13793_v22, %v13792_v36  ;;  %v13835_v36 = vld [vmem:[%s30005_s2 + $0x988] sm:$0xff]  ;;  %v23788_v22 = vld [vmem:[%s30004_s1 + $0x38] sm:$0xff] }
 0x61d   : > { %21565 = vmatpush3.bf16.msra.mxu1 %v21562_v58  ;;  %18056 = vmatprep.mubr.f32.mxu1 %v25849_v47  ;;  %v13794_v47 = vld [vmem:[%s30005_s2 + $0x8d0] sm:$0xff] }
 0x61e   : > { %21567 = vmatprep.subr.bf16.mxu1 %v21566_v33 }
 0x620   : > { %18057 = vmatmul.mubr.f32.gmra.mrb[76].mxu1 %v25847_v59  ;;  %v21578_v59 = vpack.c.bf16 %v13795_v12, %v13794_v47  ;;  %v23792_v47 = vld [vmem:[%s30004_s1 + $0x108] sm:$0xff]  ;;  %v13836_v12 = vld [vmem:[%s30005_s2 + $0x990] sm:$0xff] }
 0x621   : > { %21569 = vmatpush3.bf16.msra.mxu1 %v21566_v33  ;;  %18059 = vmatprep.mubr.f32.mxu1 %v25859_v0  ;;  %v13796_v0 = vld [vmem:[%s30005_s2 + $0x8e0] sm:$0xff] }
 0x622   : > { %21571 = vmatprep.subr.bf16.mxu1 %v21570_v37  ;;  %v21582_v3 = vpack.c.bf16 %v13797_v17, %v13796_v0  ;;  %v23793_v0 = vld [vmem:[%s30004_s1 + $0x50] sm:$0xff] }
 0x623   : > { %v23794_v17 = vld [vmem:[%s30004_s1 + $0x110] sm:$0xff] }
 0x624   : > { %18060 = vmatmul.mubr.f32.gmra.mrb[78].mxu1 %v25857_v46  ;;  %v13798_v46 = vld [vmem:[%s30005_s2 + $0x8f0] sm:$0xff] }
 0x625   : > { %21573 = vmatpush3.bf16.msra.mxu1 %v21570_v37  ;;  %18122 = vmatprep.mubr.f32.mxu1 %v25869_v23  ;;  %v13799_v23 = vld [vmem:[%s30005_s2 + $0x8f8] sm:$0xff]  ;;  %v13834_v37 = vld [vmem:[%s30005_s2 + $0x980] sm:$0xff] }
 0x626   : > { %21575 = vmatprep.subr.bf16.mxu1 %v21574_v6  ;;  %v21586_v21 = vpack.c.bf16 %v13799_v23, %v13798_v46  ;;  %v23795_v46 = vld [vmem:[%s30004_s1 + $0x58] sm:$0xff] }
 0x627   : > { %v23796_v23 = vld [vmem:[%s30004_s1 + $0x118] sm:$0xff] }
 0x629   : > { %21577 = vmatpush3.bf16.msra.mxu1 %v21574_v6  ;;  %v23790_v6 = vld [vmem:[%s30004_s1 + $0x100] sm:$0xff] }
 0x62a   : > { %21579 = vmatprep.subr.bf16.mxu1 %v21578_v59 }
 0x62d   : > { %21581 = vmatpush3.bf16.msra.mxu1 %v21578_v59  ;;  %v13837_v59 = vld [vmem:[%s30005_s2 + $0x998] sm:$0xff] }
 0x62e   : > { %21583 = vmatprep.subr.bf16.mxu1 %v21582_v3 }
 0x631   : > { %21585 = vmatpush3.bf16.msra.mxu1 %v21582_v3  ;;  %v21626_v3 = vpack.c.bf16 %v13837_v59, %v13836_v12  ;;  %v23834_v59 = vld [vmem:[%s30004_s1 + $0x228] sm:$0xff] }
 0x632   : > { %21587 = vmatprep.subr.bf16.mxu1 %v21586_v21 }
 0x635   : > { %21589 = vmatpush3.bf16.msra.mxu1 %v21586_v21  ;;  %v23797_v21 = vld [vmem:[%s30004_s1 + $0x60] sm:$0xff] }
 0x638   : > { %18123 = vmatmul.mubr.f32.vlgmr.msra.gmra.mrb[72].mxu1 %v25867_v4  ;;  %v13801_v4 = vld [vmem:[%s30006_s3 + $0x1] ss:$0 sm:$0xff] }
 0x639   : > { %18125 = vmatprep.mubr.f32.mxu1 %v25886_v50 }
 0x63c   : > { %18126 = vmatmul.mubr.f32.gmra.mrb[74].mxu1 %v25877_v55 }
 0x63d   : > { %18128 = vmatprep.mubr.f32.mxu1 %v25898_v49 }
 0x640   : > { %18129 = vmatmul.mubr.f32.gmra.mrb[76].mxu1 %v25889_v42 }
 0x641   : > { %18131 = vmatprep.mubr.f32.mxu1 %v25910_v61 }
 0x644   : > { %18132 = vmatmul.mubr.f32.gmra.mrb[78].mxu1 %v25901_v63 }
 0x645   : > { %18366 = vmatprep.mubr.msk.f32.mxu1 %vm214_vm0, %v25662_v45 }
 0x70b   : > { %v18124_v35 = vpop.f32.mrb[72].mxu1 }
 0x70c   : > { %v23318_v50 = vadd.f32 %v18124_v35, %v25624_v16  ;;  %v4676_v54 = vpop.f32.mrb[73].mxu1  ;;  %v23798_v35 = vld [vmem:[%s30004_s1 + $0x120] sm:$0xff] }
 0x70d   : > { %v23319_v55 = vadd.f32 %v4676_v54, %v25626_v38  ;;  %v23799_v54 = vld [vmem:[%s30004_s1 + $0x68] sm:$0xff] }
 0x70e   : > { %v4732_v49 = vadd.f32 %v23318_v50, %v13801_v4  ;;  %v13839_v50 = vld [vmem:[%s30005_s2 + $0x9a8] sm:$0xff] }
 0x70f   : > { %v4731_v39 = vadd.f32 %v23319_v55, %v13801_v4  ;;  %v18127_v42 = vpop.f32.mrb[74].mxu1  ;;  %v23800_v55 = vld [vmem:[%s30004_s1 + $0x128] sm:$0xff] }
 0x710   : > { %v4740_v31 = vmax.f32 %v4732_v49, 0.0  ;;  %v23320_v61 = vadd.f32 %v18127_v42, %v25629_v40  ;;  %v4686_v63 = vpop.f32.mrb[75].mxu1  ;;  %v23801_v49 = vld [vmem:[%s30004_s1 + $0x70] sm:$0xff]  ;;  %v13841_v42 = vld [vmem:[%s30005_s2 + $0x9b8] sm:$0xff] }
 0x711   : > { %v4739_v25 = vmax.f32 %v4731_v39, 0.0  ;;  %v23321_v45 = vadd.f32 %v4686_v63, %v25632_v2  ;;  %v13840_v39 = vld [vmem:[%s30005_s2 + $0x9b0] sm:$0xff]  ;;  %v23803_v63 = vld [vmem:[%s30004_s1 + $0x78] sm:$0xff] }
 0x712   : > { %v4734_v44 = vadd.f32 %v23320_v61, %v13801_v4 }
 0x713   : > { %v26117_v34 = vpack.c.bf16 %v4740_v31, %v4739_v25  ;;  %v4733_v27 = vadd.f32 %v23321_v45, %v13801_v4  ;;  %v18130_v20 = vpop.f32.mrb[76].mxu1  ;;  %v23802_v31 = vld [vmem:[%s30004_s1 + $0x130] sm:$0xff]  ;;  %v23804_v25 = vld [vmem:[%s30004_s1 + $0x138] sm:$0xff]  ;;  %v21634_v45 = vpack.c.bf16 %v13841_v42, %v13840_v39 }
 0x714   : > { %v4742_v32 = vmax.f32 %v4734_v44, 0.0  ;;  %v23322_v16 = vadd.f32 %v18130_v20, %v25635_v1  ;;  %v4696_v14 = vpop.f32.mrb[77].mxu1  ;;  %v23805_v44 = vld [vmem:[%s30004_s1 + $0x140] sm:$0xff]  ;;  %v23807_v20 = vld [vmem:[%s30004_s1 + $0x150] sm:$0xff] }
 0x715   : > { %v4741_v38 = vmax.f32 %v4733_v27, 0.0  ;;  %v23323_v48 = vadd.f32 %v4696_v14, %v25638_v57  ;;  %21591 = vmatprep.subr.bf16.mxu0 %v26117_v34  ;;  %21735 = vmatprep.subr.bf16.mxu1 %v26117_v34  ;;  %v23806_v27 = vld [vmem:[%s30004_s1 + $0x148] sm:$0xff] }
 0x716   : > { %v4736_v40 = vadd.f32 %v23322_v16, %v13801_v4  ;;  %21593 = vmatpush3.bf16.msra.mxu0 %v26117_v34  ;;  %21737 = vmatpush3.bf16.msra.mxu1 %v26117_v34  ;;  %v23809_v16 = vld [vmem:[%s30004_s1 + $0x160] sm:$0xff]  ;;  %v23810_v14 = vld [vmem:[%s30004_s1 + $0x168] sm:$0xff] }
 0x717   : > { %v26125_v2 = vpack.c.bf16 %v4742_v32, %v4741_v38  ;;  %v4735_v30 = vadd.f32 %v23323_v48, %v13801_v4  ;;  %v18133_v15 = vpop.f32.mrb[78].mxu1  ;;  %v23808_v32 = vld [vmem:[%s30004_s1 + $0x158] sm:$0xff]  ;;  %v23811_v38 = vld [vmem:[%s30004_s1 + $0x170] sm:$0xff] }
 0x718   : > { %v4744_v52 = vmax.f32 %v4736_v40, 0.0  ;;  %v23324_v1 = vadd.f32 %v18133_v15, %v25647_v11  ;;  %v4706_v26 = vpop.f32.mrb[79].mxu1  ;;  %v23812_v48 = vld [vmem:[%s30004_s1 + $0x178] sm:$0xff]  ;;  %v23813_v40 = vld [vmem:[%s30004_s1 + $0x180] sm:$0xff]  ;;  %v23815_v15 = vld [vmem:[%s30004_s1 + $0x190] sm:$0xff] }
 0x719   : > { %v4743_v53 = vmax.f32 %v4735_v30, 0.0  ;;  %v23325_v57 = vadd.f32 %v4706_v26, %v25650_v51  ;;  %21595 = vmatprep.subr.bf16.mxu0 %v26125_v2  ;;  %21739 = vmatprep.subr.bf16.mxu1 %v26125_v2  ;;  %v23782_v51 = vld [vmem:[%s30004_s1 + $0x8] sm:$0xff] }
 0x71a   : > { %v4738_v58 = vadd.f32 %v23324_v1, %v13801_v4  ;;  %21597 = vmatpush3.bf16.msra.mxu0 %v26125_v2  ;;  %21741 = vmatpush3.bf16.msra.mxu1 %v26125_v2  ;;  %v23814_v30 = vld [vmem:[%s30004_s1 + $0x188] sm:$0xff]  ;;  %v23817_v1 = vld [vmem:[%s30004_s1 + $0x1a0] sm:$0xff] }
 0x71b   : > { %v26133_v13 = vpack.c.bf16 %v4744_v52, %v4743_v53  ;;  %v4737_v62 = vadd.f32 %v23325_v57, %v13801_v4  ;;  %v13838_v4 = vld [vmem:[%s30005_s2 + $0x9a0] sm:$0xff]  ;;  %v23816_v52 = vld [vmem:[%s30004_s1 + $0x198] sm:$0xff]  ;;  %v23818_v26 = vld [vmem:[%s30004_s1 + $0x1a8] sm:$0xff] }
 0x71c   : > { %v4746_v33 = vmax.f32 %v4738_v58, 0.0  ;;  %v21630_v61 = vpack.c.bf16 %v13839_v50, %v13838_v4  ;;  %v23819_v53 = vld [vmem:[%s30004_s1 + $0x1b0] sm:$0xff]  ;;  %v23820_v57 = vld [vmem:[%s30004_s1 + $0x1b8] sm:$0xff]  ;;  %v23821_v58 = vld [vmem:[%s30004_s1 + $0x1c0] sm:$0xff] }
 0x71d   : > { %v4745_v18 = vmax.f32 %v4737_v62, 0.0  ;;  %21599 = vmatprep.subr.bf16.mxu0 %v26133_v13  ;;  %21743 = vmatprep.subr.bf16.mxu1 %v26133_v13  ;;  %v23822_v62 = vld [vmem:[%s30004_s1 + $0x1c8] sm:$0xff]  ;;  %v13849_v4 = vld [vmem:[%s30005_s2 + $0x9f8] sm:$0xff] }
 0x71e   : > { %21601 = vmatpush3.bf16.msra.mxu0 %v26133_v13  ;;  %21745 = vmatpush3.bf16.msra.mxu1 %v26133_v13 }
 0x71f   : > { %v26139_v11 = vpack.c.bf16 %v4746_v33, %v4745_v18  ;;  %v23823_v33 = vld [vmem:[%s30004_s1 + $0x1d0] sm:$0xff]  ;;  %v23824_v18 = vld [vmem:[%s30004_s1 + $0x1d8] sm:$0xff] }
 0x721   : > { %21603 = vmatprep.subr.bf16.mxu0 %v26139_v11  ;;  %21747 = vmatprep.subr.bf16.mxu1 %v26139_v11 }
 0x722   : > { %21605 = vmatpush3.bf16.msra.mxu0 %v26139_v11  ;;  %21749 = vmatpush3.bf16.msra.mxu1 %v26139_v11 }
 0x723   : > { %21607 = vmatprep.subr.bf16.mxu0 %v26117_v34  ;;  %21783 = vmatprep.subr.bf16.mxu1 %v26117_v34 }
 0x725   : > { %18151 = vmatmul.mubr.msk.f32.vlgmr.msra.gmra.mrb[72].mxu0 %vm214_vm0, %v23782_v51  ;;  %18367 = vmatmul.mubr.msk.f32.vlgmr.msra.gmra.mrb[96].mxu1 %vm214_vm0, %v25675_v43  ;;  %v23784_v43 = vld [vmem:[%s30004_s1 + $0x18] sm:$0xff]  ;;  %v23825_v51 = vld [vmem:[%s30004_s1 + $0x1e0] sm:$0xff] }
 0x726   : > { %21609 = vmatpush3.bf16.msra.mxu0 %v26117_v34  ;;  %21785 = vmatpush3.bf16.msra.mxu1 %v26117_v34 }
 0x727   : > { %21611 = vmatprep.subr.bf16.mxu0 %v26125_v2  ;;  %21787 = vmatprep.subr.bf16.mxu1 %v26125_v2 }
 0x728   : > { %18153 = vmatprep.mubr.msk.f32.mxu0 %vm214_vm0, %v23783_v29  ;;  %18369 = vmatprep.mubr.msk.f32.mxu1 %vm214_vm0, %v25682_v10  ;;  %v23785_v10 = vld [vmem:[%s30004_s1 + $0x20] sm:$0xff]  ;;  %v23826_v29 = vld [vmem:[%s30004_s1 + $0x1e8] sm:$0xff] }
 0x729   : > { %18154 = vmatmul.mubr.msk.f32.gmra.mrb[74].mxu0 %vm214_vm0, %v23784_v43  ;;  %18370 = vmatmul.mubr.msk.f32.gmra.mrb[98].mxu1 %vm214_vm0, %v25695_v60  ;;  %v23786_v60 = vld [vmem:[%s30004_s1 + $0x28] sm:$0xff]  ;;  %v23827_v43 = vld [vmem:[%s30004_s1 + $0x1f0] sm:$0xff] }
 0x72a   : > { %21613 = vmatpush3.bf16.msra.mxu0 %v26125_v2  ;;  %21789 = vmatpush3.bf16.msra.mxu1 %v26125_v2 }
 0x72b   : > { %21615 = vmatprep.subr.bf16.mxu0 %v26133_v13  ;;  %21791 = vmatprep.subr.bf16.mxu1 %v26133_v13 }
 0x72c   : > { %18156 = vmatprep.mubr.msk.f32.mxu0 %vm214_vm0, %v23785_v10  ;;  %18372 = vmatprep.mubr.msk.f32.mxu1 %vm214_vm0, %v25702_v56  ;;  %v23787_v56 = vld [vmem:[%s30004_s1 + $0x30] sm:$0xff]  ;;  %v23828_v10 = vld [vmem:[%s30004_s1 + $0x1f8] sm:$0xff] }
 0x72d   : > { %18157 = vmatmul.mubr.msk.f32.gmra.mrb[76].mxu0 %vm214_vm0, %v23786_v60  ;;  %18373 = vmatmul.mubr.msk.f32.gmra.mrb[100].mxu1 %vm214_vm0, %v25715_v24  ;;  %v21622_v24 = vpack.c.bf16 %v13835_v36, %v13834_v37  ;;  %v23829_v60 = vld [vmem:[%s30004_s1 + $0x200] sm:$0xff]  ;;  %v23830_v37 = vld [vmem:[%s30004_s1 + $0x208] sm:$0xff]  ;;  %v23831_v36 = vld [vmem:[%s30004_s1 + $0x210] sm:$0xff] }
 0x72e   : > { %21617 = vmatpush3.bf16.msra.mxu0 %v26133_v13  ;;  %21793 = vmatpush3.bf16.msra.mxu1 %v26133_v13 }
 0x72f   : > { %21619 = vmatprep.subr.bf16.mxu0 %v26139_v11  ;;  %21795 = vmatprep.subr.bf16.mxu1 %v26139_v11 }
 0x730   : > { %18159 = vmatprep.mubr.msk.f32.mxu0 %vm214_vm0, %v23787_v56  ;;  %18375 = vmatprep.mubr.msk.f32.mxu1 %vm214_vm0, %v25722_v28  ;;  %v23789_v28 = vld [vmem:[%s30004_s1 + $0x40] sm:$0xff] }
 0x731   : > { %18160 = vmatmul.mubr.msk.f32.gmra.mrb[78].mxu0 %vm214_vm0, %v23788_v22  ;;  %18376 = vmatmul.mubr.msk.f32.gmra.mrb[102].mxu1 %vm214_vm0, %v25735_v7  ;;  %v23791_v7 = vld [vmem:[%s30004_s1 + $0x48] sm:$0xff]  ;;  %v13842_v56 = vld [vmem:[%s30005_s2 + $0x9c0] sm:$0xff] }
 0x732   : > { %21621 = vmatpush3.bf16.msra.mxu0 %v26139_v11  ;;  %21797 = vmatpush3.bf16.msra.mxu1 %v26139_v11 }
 0x733   : > { %21831 = vmatprep.subr.bf16.mxu1 %v26117_v34  ;;  %18178 = vmatprep.mubr.msk.f32.mxu0 %vm214_vm0, %v23789_v28  ;;  %v23832_v28 = vld [vmem:[%s30004_s1 + $0x218] sm:$0xff] }
 0x734   : > { %18438 = vmatprep.mubr.msk.f32.mxu1 %vm214_vm0, %v23790_v6  ;;  %21623 = vmatprep.subr.bf16.mxu0 %v21622_v24  ;;  %v23833_v6 = vld [vmem:[%s30004_s1 + $0x220] sm:$0xff] }
 0x735   : > { %18179 = vmatmul.mubr.msk.f32.vlgmr.msra.gmra.mrb[80].mxu0 %vm214_vm0, %v23791_v7  ;;  %18439 = vmatmul.mubr.msk.f32.vlgmr.msra.gmra.mrb[104].mxu1 %vm214_vm0, %v23792_v47  ;;  %v13844_v7 = vld [vmem:[%s30005_s2 + $0x9d0] sm:$0xff]  ;;  %v13845_v47 = vld [vmem:[%s30005_s2 + $0x9d8] sm:$0xff] }
 0x736   : > { %21833 = vmatpush3.bf16.msra.mxu1 %v26117_v34  ;;  %18181 = vmatprep.mubr.msk.f32.mxu0 %vm214_vm0, %v23793_v0  ;;  %v21642_v12 = vpack.c.bf16 %v13845_v47, %v13844_v7  ;;  %v23835_v0 = vld [vmem:[%s30004_s1 + $0x230] sm:$0xff]  ;;  %v13861_v7 = vld [vmem:[%s30005_s2 + $0xa18] sm:$0xff]  ;;  %v23838_v47 = vld [vmem:[%s30004_s1 + $0x80] sm:$0xff] }
 0x737   : > { %21835 = vmatprep.subr.bf16.mxu1 %v26125_v2  ;;  %18441 = vmatprep.mubr.msk.f32.mxu1 %vm214_vm0, %v23794_v17  ;;  %v13846_v17 = vld [vmem:[%s30005_s2 + $0x9e0] sm:$0xff] }
 0x738   : > { %21625 = vmatpush3.bf16.msra.mxu0 %v21622_v24  ;;  %v13843_v24 = vld [vmem:[%s30005_s2 + $0x9c8] sm:$0xff] }
 0x739   : > { %18182 = vmatmul.mubr.msk.f32.gmra.mrb[82].mxu0 %vm214_vm0, %v23795_v46  ;;  %18442 = vmatmul.mubr.msk.f32.gmra.mrb[106].mxu1 %vm214_vm0, %v23796_v23  ;;  %v21638_v22 = vpack.c.bf16 %v13843_v24, %v13842_v56  ;;  %v23836_v23 = vld [vmem:[%s30004_s1 + $0x238] sm:$0xff]  ;;  %v13824_v56 = vld [vmem:[%s30005_s2 + $0x970] sm:$0xff] }
 0x73a   : > { %21837 = vmatpush3.bf16.msra.mxu1 %v26125_v2  ;;  %18184 = vmatprep.mubr.msk.f32.mxu0 %vm214_vm0, %v23797_v21  ;;  %v23837_v21 = vld [vmem:[%s30004_s1] sm:$0xff]  ;;  %v13825_v24 = vld [vmem:[%s30005_s2 + $0x978] sm:$0xff] }
 0x73b   : > { %21839 = vmatprep.subr.bf16.mxu1 %v26133_v13  ;;  %18444 = vmatprep.mubr.msk.f32.mxu1 %vm214_vm0, %v23798_v35  ;;  %v13848_v35 = vld [vmem:[%s30005_s2 + $0x9f0] sm:$0xff] }
 0x73c   : > { %21627 = vmatprep.subr.bf16.mxu0 %v21626_v3  ;;  %v21650_v50 = vpack.c.bf16 %v13849_v4, %v13848_v35  ;;  %v13866_v4 = vld [vmem:[%s30005_s2 + $0xa40] sm:$0xff] }
 0x73d   : > { %18185 = vmatmul.mubr.msk.f32.gmra.mrb[84].mxu0 %vm214_vm0, %v23799_v54  ;;  %18445 = vmatmul.mubr.msk.f32.gmra.mrb[108].mxu1 %vm214_vm0, %v23800_v55  ;;  %v13810_v54 = vld [vmem:[%s30005_s2 + $0x900] sm:$0xff]  ;;  %v13811_v55 = vld [vmem:[%s30005_s2 + $0x908] sm:$0xff] }
 0x73e   : > { %21841 = vmatpush3.bf16.msra.mxu1 %v26133_v13  ;;  %18187 = vmatprep.mubr.msk.f32.mxu0 %vm214_vm0, %v23801_v49  ;;  %v21654_v49 = vpack.c.bf16 %v13811_v55, %v13810_v54  ;;  %v23843_v54 = vld [vmem:[%s30004_s1 + $0xa8] sm:$0xff]  ;;  %v23844_v55 = vld [vmem:[%s30004_s1 + $0xb0] sm:$0xff] }
 0x73f   : > { %21843 = vmatprep.subr.bf16.mxu1 %v26139_v11  ;;  %18447 = vmatprep.mubr.msk.f32.mxu1 %vm214_vm0, %v23802_v31 }
 0x740   : > { %21629 = vmatpush3.bf16.msra.mxu0 %v21626_v3  ;;  %v13847_v3 = vld [vmem:[%s30005_s2 + $0x9e8] sm:$0xff] }
 0x741   : > { %18188 = vmatmul.mubr.msk.f32.gmra.mrb[86].mxu0 %vm214_vm0, %v23803_v63  ;;  %18448 = vmatmul.mubr.msk.f32.gmra.mrb[110].mxu1 %vm214_vm0, %v23804_v25  ;;  %v21646_v46 = vpack.c.bf16 %v13847_v3, %v13846_v17  ;;  %v13864_v3 = vld [vmem:[%s30005_s2 + $0xa30] sm:$0xff] }
 0x742   : > { %21845 = vmatpush3.bf16.msra.mxu1 %v26139_v11  ;;  %18510 = vmatprep.mubr.msk.f32.mxu1 %vm214_vm0, %v23805_v44 }
 0x743   : > { %21879 = vmatprep.subr.bf16.mxu1 %v26117_v34  ;;  %21631 = vmatprep.subr.bf16.mxu0 %v21630_v61 }
 0x744   : > { %21633 = vmatpush3.bf16.msra.mxu0 %v21630_v61 }
 0x745   : > { %18511 = vmatmul.mubr.msk.f32.vlgmr.msra.gmra.mrb[112].mxu1 %vm214_vm0, %v23806_v27  ;;  %21635 = vmatprep.subr.bf16.mxu0 %v21634_v45  ;;  %v13812_v27 = vld [vmem:[%s30005_s2 + $0x910] sm:$0xff] }
 0x746   : > { %21881 = vmatpush3.bf16.msra.mxu1 %v26117_v34  ;;  %18513 = vmatprep.mubr.msk.f32.mxu1 %vm214_vm0, %v23807_v20  ;;  %v13813_v20 = vld [vmem:[%s30005_s2 + $0x918] sm:$0xff] }
 0x747   : > { %21883 = vmatprep.subr.bf16.mxu1 %v26125_v2 }
 0x748   : > { %21637 = vmatpush3.bf16.msra.mxu0 %v21634_v45 }
 0x749   : > { %18514 = vmatmul.mubr.msk.f32.gmra.mrb[114].mxu1 %vm214_vm0, %v23808_v32  ;;  %21639 = vmatprep.subr.bf16.mxu0 %v21638_v22 }
 0x74a   : > { %21885 = vmatpush3.bf16.msra.mxu1 %v26125_v2  ;;  %18516 = vmatprep.mubr.msk.f32.mxu1 %vm214_vm0, %v23809_v16 }
 0x74b   : > { %21887 = vmatprep.subr.bf16.mxu1 %v26133_v13 }
 0x74c   : > { %21641 = vmatpush3.bf16.msra.mxu0 %v21638_v22  ;;  %v21682_v22 = vpack.c.bf16 %v13825_v24, %v13824_v56 }
 0x74d   : > { %18517 = vmatmul.mubr.msk.f32.gmra.mrb[116].mxu1 %vm214_vm0, %v23810_v14  ;;  %21643 = vmatprep.subr.bf16.mxu0 %v21642_v12  ;;  %v21658_v14 = vpack.c.bf16 %v13813_v20, %v13812_v27  ;;  %v13873_v27 = vld [vmem:[%s30005_s2 + $0xa78] sm:$0xff] }
 0x74e   : > { %21889 = vmatpush3.bf16.msra.mxu1 %v26133_v13  ;;  %18519 = vmatprep.mubr.msk.f32.mxu1 %vm214_vm0, %v23811_v38  ;;  %v13814_v38 = vld [vmem:[%s30005_s2 + $0x920] sm:$0xff] }
 0x74f   : > { %21891 = vmatprep.subr.bf16.mxu1 %v26139_v11 }
 0x750   : > { %21645 = vmatpush3.bf16.msra.mxu0 %v21642_v12  ;;  %v13862_v12 = vld [vmem:[%s30005_s2 + $0xa20] sm:$0xff] }
 0x751   : > { %18520 = vmatmul.mubr.msk.f32.gmra.mrb[118].mxu1 %vm214_vm0, %v23812_v48  ;;  %21647 = vmatprep.subr.bf16.mxu0 %v21646_v46  ;;  %v13815_v48 = vld [vmem:[%s30005_s2 + $0x928] sm:$0xff] }
 0x752   : > { %21893 = vmatpush3.bf16.msra.mxu1 %v26139_v11  ;;  %18582 = vmatprep.mubr.msk.f32.mxu1 %vm214_vm0, %v23813_v40 }
 0x753   : > { %21927 = vmatprep.subr.bf16.mxu1 %v26117_v34 }
 0x754   : > { %21649 = vmatpush3.bf16.msra.mxu0 %v21646_v46  ;;  %v13865_v46 = vld [vmem:[%s30005_s2 + $0xa38] sm:$0xff] }
 0x755   : > { %18583 = vmatmul.mubr.msk.f32.vlgmr.msra.gmra.mrb[120].mxu1 %vm214_vm0, %v23814_v30  ;;  %21651 = vmatprep.subr.bf16.mxu0 %v21650_v50  ;;  %v21714_v35 = vpack.c.bf16 %v13865_v46, %v13864_v3  ;;  %v13888_v3 = vld [vmem:[%s30005_s2 + $0xab0] sm:$0xff]  ;;  %v13889_v46 = vld [vmem:[%s30005_s2 + $0xab8] sm:$0xff] }
 0x756   : > { %21929 = vmatpush3.bf16.msra.mxu1 %v26117_v34  ;;  %18585 = vmatprep.mubr.msk.f32.mxu1 %vm214_vm0, %v23815_v15  ;;  %v21662_v15 = vpack.c.bf16 %v13815_v48, %v13814_v38 }
 0x757   : > { %21931 = vmatprep.subr.bf16.mxu1 %v26125_v2 }
 0x758   : > { %21653 = vmatpush3.bf16.msra.mxu0 %v21650_v50  ;;  %v13867_v50 = vld [vmem:[%s30005_s2 + $0xa48] sm:$0xff] }
 0x759   : > { %18586 = vmatmul.mubr.msk.f32.gmra.mrb[122].mxu1 %vm214_vm0, %v23816_v52  ;;  %21655 = vmatprep.subr.bf16.mxu0 %v21654_v49  ;;  %v13816_v52 = vld [vmem:[%s30005_s2 + $0x930] sm:$0xff] }
 0x75a   : > { %21933 = vmatpush3.bf16.msra.mxu1 %v26125_v2  ;;  %18588 = vmatprep.mubr.msk.f32.mxu1 %vm214_vm0, %v23817_v1  ;;  %v13817_v1 = vld [vmem:[%s30005_s2 + $0x938] sm:$0xff] }
 0x75b   : > { %21935 = vmatprep.subr.bf16.mxu1 %v26133_v13 }
 0x75d   : > { %18589 = vmatmul.mubr.msk.f32.gmra.mrb[124].mxu1 %vm214_vm0, %v23818_v26 }
 0x75e   : > { %21937 = vmatpush3.bf16.msra.mxu1 %v26133_v13  ;;  %18591 = vmatprep.mubr.msk.f32.mxu1 %vm214_vm0, %v23819_v53 }
 0x75f   : > { %21939 = vmatprep.subr.bf16.mxu1 %v26139_v11 }
 0x761   : > { %18592 = vmatmul.mubr.msk.f32.gmra.mrb[126].mxu1 %vm214_vm0, %v23820_v57  ;;  %v21666_v57 = vpack.c.bf16 %v13817_v1, %v13816_v52 }
 0x762   : > { %21941 = vmatpush3.bf16.msra.mxu1 %v26139_v11  ;;  %18654 = vmatprep.mubr.msk.f32.mxu1 %vm214_vm0, %v23821_v58  ;;  %v13818_v58 = vld [vmem:[%s30005_s2 + $0x940] sm:$0xff] }
 0x763   : > { %21975 = vmatprep.subr.bf16.mxu1 %v26117_v34 }
 0x765   : > { %18655 = vmatmul.mubr.msk.f32.vlgmr.msra.gmra.mrb[128].mxu1 %vm214_vm0, %v23822_v62  ;;  %v13819_v62 = vld [vmem:[%s30005_s2 + $0x948] sm:$0xff] }
 0x766   : > { %21977 = vmatpush3.bf16.msra.mxu1 %v26117_v34  ;;  %18657 = vmatprep.mubr.msk.f32.mxu1 %vm214_vm0, %v23823_v33 }
 0x767   : > { %21979 = vmatprep.subr.bf16.mxu1 %v26125_v2 }
 0x769   : > { %18658 = vmatmul.mubr.msk.f32.gmra.mrb[130].mxu1 %vm214_vm0, %v23824_v18 }
 0x76a   : > { %21981 = vmatpush3.bf16.msra.mxu1 %v26125_v2  ;;  %18660 = vmatprep.mubr.msk.f32.mxu1 %vm214_vm0, %v23825_v51  ;;  %v21670_v51 = vpack.c.bf16 %v13819_v62, %v13818_v58 }
 0x76b   : > { %21983 = vmatprep.subr.bf16.mxu1 %v26133_v13 }
 0x76d   : > { %18661 = vmatmul.mubr.msk.f32.gmra.mrb[132].mxu1 %vm214_vm0, %v23826_v29  ;;  %v13820_v29 = vld [vmem:[%s30005_s2 + $0x950] sm:$0xff] }
 0x76e   : > { %21985 = vmatpush3.bf16.msra.mxu1 %v26133_v13  ;;  %18663 = vmatprep.mubr.msk.f32.mxu1 %vm214_vm0, %v23827_v43  ;;  %v13821_v43 = vld [vmem:[%s30005_s2 + $0x958] sm:$0xff] }
 0x76f   : > { %21987 = vmatprep.subr.bf16.mxu1 %v26139_v11 }
 0x771   : > { %18664 = vmatmul.mubr.msk.f32.gmra.mrb[134].mxu1 %vm214_vm0, %v23828_v10  ;;  %v21674_v10 = vpack.c.bf16 %v13821_v43, %v13820_v29 }
 0x772   : > { %21989 = vmatpush3.bf16.msra.mxu1 %v26139_v11  ;;  %18726 = vmatprep.mubr.msk.f32.mxu1 %vm214_vm0, %v23829_v60  ;;  %v13822_v60 = vld [vmem:[%s30005_s2 + $0x960] sm:$0xff] }
 0x775   : > { %18727 = vmatmul.mubr.msk.f32.vlgmr.msra.gmra.mrb[136].mxu1 %vm214_vm0, %v23830_v37  ;;  %v13823_v37 = vld [vmem:[%s30005_s2 + $0x968] sm:$0xff] }
 0x776   : > { %18729 = vmatprep.mubr.msk.f32.mxu1 %vm214_vm0, %v23831_v36  ;;  %v21678_v36 = vpack.c.bf16 %v13823_v37, %v13822_v60 }
 0x779   : > { %18730 = vmatmul.mubr.msk.f32.gmra.mrb[138].mxu1 %vm214_vm0, %v23832_v28  ;;  %v13858_v28 = vld [vmem:[%s30005_s2 + $0xa00] sm:$0xff] }
 0x77a   : > { %18732 = vmatprep.mubr.msk.f32.mxu1 %vm214_vm0, %v23833_v6  ;;  %v13859_v6 = vld [vmem:[%s30005_s2 + $0xa08] sm:$0xff] }
 0x77d   : > { %18733 = vmatmul.mubr.msk.f32.gmra.mrb[140].mxu1 %vm214_vm0, %v23834_v59  ;;  %v13863_v59 = vld [vmem:[%s30005_s2 + $0xa28] sm:$0xff] }
 0x77e   : > { %18735 = vmatprep.mubr.msk.f32.mxu1 %vm214_vm0, %v23835_v0  ;;  %v23840_v0 = vld [vmem:[%s30004_s1 + $0x90] sm:$0xff]  ;;  %v21710_v17 = vpack.c.bf16 %v13863_v59, %v13862_v12  ;;  %v13886_v12 = vld [vmem:[%s30005_s2 + $0xaa0] sm:$0xff]  ;;  %v13887_v59 = vld [vmem:[%s30005_s2 + $0xaa8] sm:$0xff] }
 0x781   : > { %18736 = vmatmul.mubr.msk.f32.gmra.mrb[142].mxu1 %vm214_vm0, %v23836_v23  ;;  %v23841_v23 = vld [vmem:[%s30004_s1 + $0x98] sm:$0xff] }
 0x782   : > { %18798 = vmatprep.mubr.msk.f32.mxu1 %vm214_vm0, %v23837_v21  ;;  %v23842_v21 = vld [vmem:[%s30004_s1 + $0xa0] sm:$0xff] }
 0x7f8   : > { %v18152_v39 = vpop.f32.mrb[72].mxu0  ;;  %v26633_v38 = vpop.f32.mrb[96].mxu1 }
 0x7f9   : > { %v4813_v42 = vpop.f32.mrb[73].mxu0  ;;  %v5502_v48 = vpop.f32.mrb[97].mxu1 }
 0x7fc   : > { %v26485_v31 = vpop.f32.mrb[74].mxu0 }
 0x7fd   : > { %v4823_v61 = vpop.f32.mrb[75].mxu0 }
 0x800   : > { %v26487_v63 = vpop.f32.mrb[76].mxu0 }
 0x801   : > { %v4833_v25 = vpop.f32.mrb[77].mxu0 }
 0x804   : > { %v26489_v45 = vpop.f32.mrb[78].mxu0 }
 0x805   : > { %v26491_v44 = vpop.f32.mrb[79].mxu0 }
 0x808   : > { %v18180_v32 = vpop.f32.mrb[80].mxu0 }
 0x809   : > { %v4935_v16 = vpop.f32.mrb[81].mxu0 }
 0x80a   : > { %18222 = vmatprep.mubr.f32.mxu0 %v4935_v16  ;;  %v13883_v16 = vld [vmem:[%s30005_s2 + $0xa88] sm:$0xff] }
 0x80b   : > { %18223 = vmatmul.mubr.f32.vlgmr.msra.gmra.mrb[88].mxu0 %v18180_v32  ;;  %v13882_v32 = vld [vmem:[%s30005_s2 + $0xa80] sm:$0xff] }
 0x80c   : > { %21657 = vmatpush3.bf16.msra.mxu0 %v21654_v49  ;;  %v18183_v40 = vpop.f32.mrb[82].mxu0  ;;  %v21718_v49 = vpack.c.bf16 %v13867_v50, %v13866_v4  ;;  %v13890_v4 = vld [vmem:[%s30005_s2 + $0xac0] sm:$0xff]  ;;  %v13891_v50 = vld [vmem:[%s30005_s2 + $0xac8] sm:$0xff] }
 0x80d   : > { %v4945_v30 = vpop.f32.mrb[83].mxu0  ;;  %21659 = vmatprep.subr.bf16.mxu0 %v21658_v14 }
 0x80e   : > { %18225 = vmatprep.mubr.f32.mxu0 %v4945_v30 }
 0x80f   : > { %18226 = vmatmul.mubr.f32.gmra.mrb[90].mxu0 %v18183_v40  ;;  %v26635_v40 = vpop.f32.mrb[98].mxu1 }
 0x810   : > { %21661 = vmatpush3.bf16.msra.mxu0 %v21658_v14  ;;  %v18186_v26 = vpop.f32.mrb[84].mxu0  ;;  %v21750_v14 = vpack.c.bf16 %v13883_v16, %v13882_v32  ;;  %v26637_v30 = vpop.f32.mrb[99].mxu1  ;;  %v13896_v32 = vld [vmem:[%s30005_s2 + $0xaf0] sm:$0xff]  ;;  %v13897_v16 = vld [vmem:[%s30005_s2 + $0xaf8] sm:$0xff] }
 0x811   : > { %v4955_v53 = vpop.f32.mrb[85].mxu0  ;;  %21663 = vmatprep.subr.bf16.mxu0 %v21662_v15 }
 0x812   : > { %18228 = vmatprep.mubr.f32.mxu0 %v4955_v53 }
 0x813   : > { %18229 = vmatmul.mubr.f32.gmra.mrb[92].mxu0 %v18186_v26 }
 0x814   : > { %21665 = vmatpush3.bf16.msra.mxu0 %v21662_v15  ;;  %v18189_v33 = vpop.f32.mrb[86].mxu0  ;;  %v26639_v15 = vpop.f32.mrb[100].mxu1 }
 0x815   : > { %v4965_v18 = vpop.f32.mrb[87].mxu0  ;;  %21667 = vmatprep.subr.bf16.mxu0 %v21666_v57  ;;  %v26641_v52 = vpop.f32.mrb[101].mxu1 }
 0x816   : > { %18231 = vmatprep.mubr.f32.mxu0 %v4965_v18  ;;  %v26643_v1 = vpop.f32.mrb[102].mxu1 }
 0x817   : > { %18232 = vmatmul.mubr.f32.gmra.mrb[94].mxu0 %v18189_v33  ;;  %v26645_v26 = vpop.f32.mrb[103].mxu1 }
 0x818   : > { %21669 = vmatpush3.bf16.msra.mxu0 %v21666_v57  ;;  %18266 = vmatprep.mubr.f32.mxu0 %v4813_v42  ;;  %v13869_v42 = vld [vmem:[%s30005_s2 + $0xa58] sm:$0xff]  ;;  %v26647_v53 = vpop.f32.mrb[104].mxu1 }
 0x819   : > { %21671 = vmatprep.subr.bf16.mxu0 %v21670_v51  ;;  %v26649_v57 = vpop.f32.mrb[105].mxu1 }
 0x81a   : > { %v26651_v58 = vpop.f32.mrb[106].mxu1 }
 0x81b   : > { %v26653_v62 = vpop.f32.mrb[107].mxu1 }
 0x81c   : > { %21673 = vmatpush3.bf16.msra.mxu0 %v21670_v51  ;;  %v26655_v33 = vpop.f32.mrb[108].mxu1 }
 0x81d   : > { %21675 = vmatprep.subr.bf16.mxu0 %v21674_v10  ;;  %v26657_v18 = vpop.f32.mrb[109].mxu1 }
 0x81e   : > { %v26659_v51 = vpop.f32.mrb[110].mxu1 }
 0x81f   : > { %v26661_v29 = vpop.f32.mrb[111].mxu1 }
 0x820   : > { %21677 = vmatpush3.bf16.msra.mxu0 %v21674_v10  ;;  %v26663_v43 = vpop.f32.mrb[112].mxu1 }
 0x821   : > { %21679 = vmatprep.subr.bf16.mxu0 %v21678_v36  ;;  %v26665_v10 = vpop.f32.mrb[113].mxu1 }
 0x822   : > { %v26667_v60 = vpop.f32.mrb[114].mxu1 }
 0x823   : > { %v26669_v37 = vpop.f32.mrb[115].mxu1 }
 0x824   : > { %21681 = vmatpush3.bf16.msra.mxu0 %v21678_v36  ;;  %v26671_v36 = vpop.f32.mrb[116].mxu1 }
 0x825   : > { %21683 = vmatprep.subr.bf16.mxu0 %v21682_v22  ;;  %v26673_v56 = vpop.f32.mrb[117].mxu1 }
 0x826   : > { %v26675_v24 = vpop.f32.mrb[118].mxu1 }
 0x828   : > { %21685 = vmatpush3.bf16.msra.mxu0 %v21682_v22  ;;  %v26677_v22 = vpop.f32.mrb[119].mxu1 }
 0x829   : > { %21687 = vmatprep.subr.bf16.mxu0 %v26117_v34 }
 0x82b   : > { %18267 = vmatmul.mubr.f32.vlgmr.msra.gmra.mrb[88].mxu0 %v18152_v39  ;;  %v13868_v39 = vld [vmem:[%s30005_s2 + $0xa50] sm:$0xff] }
 0x82c   : > { %18269 = vmatprep.mubr.f32.mxu0 %v4823_v61  ;;  %21689 = vmatpush3.bf16.msra.mxu0 %v26117_v34  ;;  %v21702_v34 = vpack.c.bf16 %v13859_v6, %v13858_v28  ;;  %v21722_v61 = vpack.c.bf16 %v13869_v42, %v13868_v39  ;;  %v26679_v28 = vpop.f32.mrb[120].mxu1  ;;  %v13884_v6 = vld [vmem:[%s30005_s2 + $0xa90] sm:$0xff]  ;;  %v13893_v42 = vld [vmem:[%s30005_s2 + $0xad8] sm:$0xff] }
 0x82d   : > { %21691 = vmatprep.subr.bf16.mxu0 %v26125_v2  ;;  %v13892_v39 = vld [vmem:[%s30005_s2 + $0xad0] sm:$0xff] }
 0x82f   : > { %18270 = vmatmul.mubr.f32.gmra.mrb[90].mxu0 %v26485_v31  ;;  %v23845_v31 = vld [vmem:[%s30004_s1 + $0xb8] sm:$0xff] }
 0x830   : > { %18272 = vmatprep.mubr.f32.mxu0 %v4833_v25  ;;  %21693 = vmatpush3.bf16.msra.mxu0 %v26125_v2  ;;  %v13860_v2 = vld [vmem:[%s30005_s2 + $0xa10] sm:$0xff]  ;;  %v13871_v25 = vld [vmem:[%s30005_s2 + $0xa68] sm:$0xff] }
 0x831   : > { %21695 = vmatprep.subr.bf16.mxu0 %v26133_v13 }
 0x833   : > { %18273 = vmatmul.mubr.f32.gmra.mrb[92].mxu0 %v26487_v63  ;;  %v13870_v63 = vld [vmem:[%s30005_s2 + $0xa60] sm:$0xff] }
 0x834   : > { %18275 = vmatprep.mubr.f32.mxu0 %v26491_v44  ;;  %21697 = vmatpush3.bf16.msra.mxu0 %v26133_v13  ;;  %v21706_v13 = vpack.c.bf16 %v13861_v7, %v13860_v2  ;;  %v13872_v44 = vld [vmem:[%s30005_s2 + $0xa70] sm:$0xff]  ;;  %v26687_v7 = vpop.f32.mrb[121].mxu1 }
 0x835   : > { %21699 = vmatprep.subr.bf16.mxu0 %v26139_v11  ;;  %v21730_v20 = vpack.c.bf16 %v13873_v27, %v13872_v44 }
 0x837   : > { %18276 = vmatmul.mubr.f32.gmra.mrb[94].mxu0 %v26489_v45  ;;  %v21726_v45 = vpack.c.bf16 %v13871_v25, %v13870_v63  ;;  %v13894_v25 = vld [vmem:[%s30005_s2 + $0xae0] sm:$0xff] }
 0x838   : > { %21701 = vmatpush3.bf16.msra.mxu0 %v26139_v11  ;;  %18294 = vmatprep.mubr.msk.f32.mxu0 %vm214_vm0, %v23838_v47  ;;  %v23839_v11 = vld [vmem:[%s30004_s1 + $0x88] sm:$0xff] }
 0x839   : > { %21703 = vmatprep.subr.bf16.mxu0 %v21702_v34 }
 0x83b   : > { %18295 = vmatmul.mubr.msk.f32.vlgmr.msra.gmra.mrb[96].mxu0 %vm214_vm0, %v23839_v11 }
 0x83c   : > { %18297 = vmatprep.mubr.msk.f32.mxu0 %vm214_vm0, %v23840_v0  ;;  %21705 = vmatpush3.bf16.msra.mxu0 %v21702_v34  ;;  %v13885_v34 = vld [vmem:[%s30005_s2 + $0xa98] sm:$0xff]  ;;  %v21758_v0 = vpack.c.bf16 %v13887_v59, %v13886_v12  ;;  %v13908_v12 = vld [vmem:[%s30005_s2 + $0xb10] sm:$0xff] }
 0x83d   : > { %21707 = vmatprep.subr.bf16.mxu0 %v21706_v13  ;;  %v13909_v59 = vld [vmem:[%s30005_s2 + $0xb18] sm:$0xff] }
 0x83f   : > { %18298 = vmatmul.mubr.msk.f32.gmra.mrb[98].mxu0 %vm214_vm0, %v23841_v23 }
 0x840   : > { %18300 = vmatprep.mubr.msk.f32.mxu0 %vm214_vm0, %v23842_v21  ;;  %21709 = vmatpush3.bf16.msra.mxu0 %v21706_v13  ;;  %v21754_v13 = vpack.c.bf16 %v13885_v34, %v13884_v6  ;;  %v21762_v21 = vpack.c.bf16 %v13889_v46, %v13888_v3  ;;  %v13906_v34 = vld [vmem:[%s30005_s2 + $0xb00] sm:$0xff]  ;;  %v13911_v3 = vld [vmem:[%s30005_s2 + $0xb28] sm:$0xff] }
 0x841   : > { %21711 = vmatprep.subr.bf16.mxu0 %v21710_v17 }
 0x843   : > { %18301 = vmatmul.mubr.msk.f32.gmra.mrb[100].mxu0 %vm214_vm0, %v23843_v54 }
 0x844   : > { %18303 = vmatprep.mubr.msk.f32.mxu0 %vm214_vm0, %v23844_v55  ;;  %21713 = vmatpush3.bf16.msra.mxu0 %v21710_v17  ;;  %v21766_v55 = vpack.c.bf16 %v13891_v50, %v13890_v4  ;;  %v13917_v4 = vld [vmem:[%s30005_s2 + $0xb58] sm:$0xff] }
 0x845   : > { %21715 = vmatprep.subr.bf16.mxu0 %v21714_v35 }
 0x847   : > { %18304 = vmatmul.mubr.msk.f32.gmra.mrb[102].mxu0 %vm214_vm0, %v23845_v31  ;;  %v26713_v31 = vpop.f32.mrb[122].mxu1 }
 0x848   : > { %21717 = vmatpush3.bf16.msra.mxu0 %v21714_v35  ;;  %v26715_v63 = vpop.f32.mrb[123].mxu1 }
 0x849   : > { %21719 = vmatprep.subr.bf16.mxu0 %v21718_v49  ;;  %v26723_v44 = vpop.f32.mrb[124].mxu1 }
 0x84c   : > { %21721 = vmatpush3.bf16.msra.mxu0 %v21718_v49 }
 0x84d   : > { %21723 = vmatprep.subr.bf16.mxu0 %v21722_v61 }
 0x850   : > { %21725 = vmatpush3.bf16.msra.mxu0 %v21722_v61  ;;  %v21770_v61 = vpack.c.bf16 %v13893_v42, %v13892_v39  ;;  %v13920_v39 = vld [vmem:[%s30005_s2 + $0xb70] sm:$0xff]  ;;  %v13921_v42 = vld [vmem:[%s30005_s2 + $0xb78] sm:$0xff] }
 0x851   : > { %21727 = vmatprep.subr.bf16.mxu0 %v21726_v45 }
 0x854   : > { %21729 = vmatpush3.bf16.msra.mxu0 %v21726_v45  ;;  %v13895_v45 = vld [vmem:[%s30005_s2 + $0xae8] sm:$0xff] }
 0x855   : > { %21731 = vmatprep.subr.bf16.mxu0 %v21730_v20  ;;  %v21774_v27 = vpack.c.bf16 %v13895_v45, %v13894_v25  ;;  %v21826_v25 = vpack.c.bf16 %v13921_v42, %v13920_v39  ;;  %v13955_v39 = vld [vmem:[%s30005_s2 + $0xc08] sm:$0xff] }
 0x858   : > { %21733 = vmatpush3.bf16.msra.mxu0 %v21730_v20  ;;  %v26725_v20 = vpop.f32.mrb[125].mxu1 }
 0x859   : > { %21751 = vmatprep.subr.bf16.mxu0 %v21750_v14 }
 0x90e   : > { %v18296_v2 = vpop.f32.mrb[96].mxu0 }
 0x90f   : > { %v5267_v47 = vpop.f32.mrb[97].mxu0 }
 0x910   : > { %18338 = vmatprep.mubr.f32.mxu0 %v5267_v47 }
 0x911   : > { %18339 = vmatmul.mubr.f32.vlgmr.msra.gmra.mrb[88].mxu0 %v18296_v2  ;;  %v13907_v2 = vld [vmem:[%s30005_s2 + $0xb08] sm:$0xff] }
 0x912   : > { %21753 = vmatpush3.bf16.msra.mxu0 %v21750_v14  ;;  %v18299_v11 = vpop.f32.mrb[98].mxu0  ;;  %v26733_v14 = vpop.f32.mrb[126].mxu1  ;;  %v21798_v47 = vpack.c.bf16 %v13907_v2, %v13906_v34  ;;  %v13932_v2 = vld [vmem:[%s30005_s2 + $0xb90] sm:$0xff] }
 0x913   : > { %21755 = vmatprep.subr.bf16.mxu0 %v21754_v13  ;;  %v5277_v17 = vpop.f32.mrb[99].mxu0  ;;  %v26735_v6 = vpop.f32.mrb[127].mxu1 }
 0x914   : > { %18341 = vmatprep.mubr.f32.mxu0 %v5277_v17  ;;  %v13910_v17 = vld [vmem:[%s30005_s2 + $0xb20] sm:$0xff] }
 0x915   : > { %18342 = vmatmul.mubr.f32.gmra.mrb[90].mxu0 %v18299_v11  ;;  %v21806_v46 = vpack.c.bf16 %v13911_v3, %v13910_v17  ;;  %v13935_v17 = vld [vmem:[%s30005_s2 + $0xba8] sm:$0xff] }
 0x916   : > { %21757 = vmatpush3.bf16.msra.mxu0 %v21754_v13  ;;  %v18302_v23 = vpop.f32.mrb[100].mxu0  ;;  %v26743_v13 = vpop.f32.mrb[128].mxu1 }
 0x917   : > { %21759 = vmatprep.subr.bf16.mxu0 %v21758_v0  ;;  %v5287_v35 = vpop.f32.mrb[101].mxu0  ;;  %v26751_v11 = vpop.f32.mrb[129].mxu1 }
 0x918   : > { %18344 = vmatprep.mubr.f32.mxu0 %v5287_v35  ;;  %v13915_v35 = vld [vmem:[%s30005_s2 + $0xb48] sm:$0xff]  ;;  %v26785_v50 = vpop.f32.mrb[130].mxu1 }
 0x919   : > { %18345 = vmatmul.mubr.f32.gmra.mrb[92].mxu0 %v18302_v23  ;;  %v13912_v23 = vld [vmem:[%s30005_s2 + $0xb30] sm:$0xff] }
 0x91a   : > { %21761 = vmatpush3.bf16.msra.mxu0 %v21758_v0  ;;  %v18305_v54 = vpop.f32.mrb[102].mxu0  ;;  %v21802_v0 = vpack.c.bf16 %v13909_v59, %v13908_v12 }
 0x91b   : > { %21763 = vmatprep.subr.bf16.mxu0 %v21762_v21  ;;  %v5297_v49 = vpop.f32.mrb[103].mxu0 }
 0x91c   : > { %18347 = vmatprep.mubr.f32.mxu0 %v5297_v49 }
 0x91d   : > { %18348 = vmatmul.mubr.f32.gmra.mrb[94].mxu0 %v18305_v54  ;;  %v13918_v54 = vld [vmem:[%s30005_s2 + $0xb60] sm:$0xff] }
 0x91e   : > { %21765 = vmatpush3.bf16.msra.mxu0 %v21762_v21  ;;  %18410 = vmatprep.mubr.f32.mxu0 %v5502_v48  ;;  %v21778_v48 = vpack.c.bf16 %v13897_v16, %v13896_v32  ;;  %v13913_v21 = vld [vmem:[%s30005_s2 + $0xb38] sm:$0xff]  ;;  %v13931_v32 = vld [vmem:[%s30005_s2 + $0xb88] sm:$0xff] }
 0x91f   : > { %21767 = vmatprep.subr.bf16.mxu0 %v21766_v55 }
 0x922   : > { %21769 = vmatpush3.bf16.msra.mxu0 %v21766_v55  ;;  %v13919_v55 = vld [vmem:[%s30005_s2 + $0xb68] sm:$0xff] }
 0x923   : > { %21771 = vmatprep.subr.bf16.mxu0 %v21770_v61 }
 0x926   : > { %21773 = vmatpush3.bf16.msra.mxu0 %v21770_v61 }
 0x927   : > { %21775 = vmatprep.subr.bf16.mxu0 %v21774_v27 }
 0x92a   : > { %21777 = vmatpush3.bf16.msra.mxu0 %v21774_v27  ;;  %v13930_v27 = vld [vmem:[%s30005_s2 + $0xb80] sm:$0xff] }
 0x92b   : > { %21779 = vmatprep.subr.bf16.mxu0 %v21778_v48 }
 0x92e   : > { %21781 = vmatpush3.bf16.msra.mxu0 %v21778_v48  ;;  %v21846_v48 = vpack.c.bf16 %v13931_v32, %v13930_v27  ;;  %v13957_v27 = vld [vmem:[%s30005_s2 + $0xc18] sm:$0xff] }
 0x92f   : > { %21799 = vmatprep.subr.bf16.mxu0 %v21798_v47 }
 0x931   : > { %18411 = vmatmul.mubr.f32.vlgmr.msra.gmra.mrb[88].mxu0 %v26633_v38  ;;  %v21810_v38 = vpack.c.bf16 %v13913_v21, %v13912_v23  ;;  %v13936_v21 = vld [vmem:[%s30005_s2 + $0xbb0] sm:$0xff] }
 0x932   : > { %21801 = vmatpush3.bf16.msra.mxu0 %v21798_v47  ;;  %18413 = vmatprep.mubr.f32.mxu0 %v26637_v30  ;;  %v13914_v30 = vld [vmem:[%s30005_s2 + $0xb40] sm:$0xff]  ;;  %v13933_v47 = vld [vmem:[%s30005_s2 + $0xb98] sm:$0xff] }
 0x933   : > { %21803 = vmatprep.subr.bf16.mxu0 %v21802_v0  ;;  %v21850_v59 = vpack.c.bf16 %v13933_v47, %v13932_v2  ;;  %v13959_v2 = vld [vmem:[%s30005_s2 + $0xc28] sm:$0xff] }
 0x935   : > { %18414 = vmatmul.mubr.f32.gmra.mrb[90].mxu0 %v26635_v40  ;;  %v21814_v40 = vpack.c.bf16 %v13915_v35, %v13914_v30  ;;  %v13938_v35 = vld [vmem:[%s30005_s2 + $0xbc0] sm:$0xff] }
 0x936   : > { %21805 = vmatpush3.bf16.msra.mxu0 %v21802_v0  ;;  %18416 = vmatprep.mubr.f32.mxu0 %v26641_v52  ;;  %v13916_v52 = vld [vmem:[%s30005_s2 + $0xb50] sm:$0xff]  ;;  %v13934_v0 = vld [vmem:[%s30005_s2 + $0xba0] sm:$0xff] }
 0x937   : > { %21807 = vmatprep.subr.bf16.mxu0 %v21806_v46  ;;  %v21854_v23 = vpack.c.bf16 %v13935_v17, %v13934_v0  ;;  %v13961_v0 = vld [vmem:[%s30005_s2 + $0xc38] sm:$0xff]  ;;  %v13963_v17 = vld [vmem:[%s30005_s2 + $0xc48] sm:$0xff] }
 0x939   : > { %18417 = vmatmul.mubr.f32.gmra.mrb[92].mxu0 %v26639_v15  ;;  %v21818_v15 = vpack.c.bf16 %v13917_v4, %v13916_v52  ;;  %v13940_v52 = vld [vmem:[%s30005_s2 + $0xbd0] sm:$0xff]  ;;  %v13941_v4 = vld [vmem:[%s30005_s2 + $0xbd8] sm:$0xff] }
 0x93a   : > { %21809 = vmatpush3.bf16.msra.mxu0 %v21806_v46  ;;  %18419 = vmatprep.mubr.f32.mxu0 %v26645_v26  ;;  %v26787_v26 = vpop.f32.mrb[131].mxu1 }
 0x93b   : > { %21811 = vmatprep.subr.bf16.mxu0 %v21810_v38  ;;  %v26795_v49 = vpop.f32.mrb[132].mxu1 }
 0x93d   : > { %18420 = vmatmul.mubr.f32.gmra.mrb[94].mxu0 %v26643_v1  ;;  %v21822_v1 = vpack.c.bf16 %v13919_v55, %v13918_v54 }
 0x93e   : > { %21813 = vmatpush3.bf16.msra.mxu0 %v21810_v38  ;;  %18482 = vmatprep.mubr.f32.mxu0 %v26649_v57  ;;  %v26797_v57 = vpop.f32.mrb[133].mxu1  ;;  %v13937_v38 = vld [vmem:[%s30005_s2 + $0xbb8] sm:$0xff] }
 0x93f   : > { %21815 = vmatprep.subr.bf16.mxu0 %v21814_v40  ;;  %v26805_v61 = vpop.f32.mrb[134].mxu1  ;;  %v21858_v30 = vpack.c.bf16 %v13937_v38, %v13936_v21  ;;  %v13967_v21 = vld [vmem:[%s30005_s2 + $0xc68] sm:$0xff] }
 0x940   : > { %v26807_v45 = vpop.f32.mrb[135].mxu1 }
 0x941   : > { %v26815_v16 = vpop.f32.mrb[136].mxu1 }
 0x942   : > { %21817 = vmatpush3.bf16.msra.mxu0 %v21814_v40  ;;  %v26817_v34 = vpop.f32.mrb[137].mxu1  ;;  %v13939_v40 = vld [vmem:[%s30005_s2 + $0xbc8] sm:$0xff] }
 0x943   : > { %21819 = vmatprep.subr.bf16.mxu0 %v21818_v15  ;;  %v26825_v12 = vpop.f32.mrb[138].mxu1 }
 0x944   : > { %v26834_v3 = vpop.f32.mrb[139].mxu1 }
 0x945   : > { %v26837_v46 = vpop.f32.mrb[140].mxu1 }
 0x946   : > { %21821 = vmatpush3.bf16.msra.mxu0 %v21818_v15  ;;  %v13943_v15 = vld [vmem:[%s30005_s2 + $0xbe8] sm:$0xff] }
 0x947   : > { %21823 = vmatprep.subr.bf16.mxu0 %v21822_v1 }
 0x94a   : > { %21825 = vmatpush3.bf16.msra.mxu0 %v21822_v1  ;;  %v13954_v1 = vld [vmem:[%s30005_s2 + $0xc00] sm:$0xff] }
 0x94b   : > { %21827 = vmatprep.subr.bf16.mxu0 %v21826_v25  ;;  %v21894_v42 = vpack.c.bf16 %v13955_v39, %v13954_v1  ;;  %v13989_v1 = vld [vmem:[%s30005_s2 + $0xcd8] sm:$0xff]  ;;  %v13991_v39 = vld [vmem:[%s30005_s2 + $0xce8] sm:$0xff] }
 0x94e   : > { %21829 = vmatpush3.bf16.msra.mxu0 %v21826_v25  ;;  %v13956_v25 = vld [vmem:[%s30005_s2 + $0xc10] sm:$0xff] }
 0x94f   : > { %21847 = vmatprep.subr.bf16.mxu0 %v21846_v48  ;;  %v21898_v32 = vpack.c.bf16 %v13957_v27, %v13956_v25  ;;  %v14002_v27 = vld [vmem:[%s30005_s2 + $0xd00] sm:$0xff] }
 0x951   : > { %18483 = vmatmul.mubr.f32.vlgmr.msra.gmra.mrb[88].mxu0 %v26647_v53  ;;  %v26846_v53 = vpop.f32.mrb[141].mxu1 }
 0x952   : > { %21849 = vmatpush3.bf16.msra.mxu0 %v21846_v48  ;;  %18485 = vmatprep.mubr.f32.mxu0 %v26653_v62  ;;  %v26849_v62 = vpop.f32.mrb[142].mxu1  ;;  %v13958_v48 = vld [vmem:[%s30005_s2 + $0xc20] sm:$0xff] }
 0x953   : > { %21851 = vmatprep.subr.bf16.mxu0 %v21850_v59  ;;  %v21902_v47 = vpack.c.bf16 %v13959_v2, %v13958_v48  ;;  %v14004_v2 = vld [vmem:[%s30005_s2 + $0xd10] sm:$0xff] }
 0x955   : > { %18486 = vmatmul.mubr.f32.gmra.mrb[90].mxu0 %v26651_v58  ;;  %v26858_v58 = vpop.f32.mrb[143].mxu1 }
 0x956   : > { %21853 = vmatpush3.bf16.msra.mxu0 %v21850_v59  ;;  %18488 = vmatprep.mubr.f32.mxu0 %v26657_v18  ;;  %v21862_v18 = vpack.c.bf16 %v13939_v40, %v13938_v35  ;;  %v13960_v59 = vld [vmem:[%s30005_s2 + $0xc30] sm:$0xff]  ;;  %v13978_v35 = vld [vmem:[%s30005_s2 + $0xc80] sm:$0xff]  ;;  %v13979_v40 = vld [vmem:[%s30005_s2 + $0xc88] sm:$0xff] }
 0x957   : > { %21855 = vmatprep.subr.bf16.mxu0 %v21854_v23 }
 0x959   : > { %18489 = vmatmul.mubr.f32.gmra.mrb[92].mxu0 %v26655_v33  ;;  %v21866_v33 = vpack.c.bf16 %v13941_v4, %v13940_v52  ;;  %v13980_v52 = vld [vmem:[%s30005_s2 + $0xc90] sm:$0xff]  ;;  %v13981_v4 = vld [vmem:[%s30005_s2 + $0xc98] sm:$0xff] }
 0x95a   : > { %21857 = vmatpush3.bf16.msra.mxu0 %v21854_v23  ;;  %18491 = vmatprep.mubr.f32.mxu0 %v26661_v29  ;;  %v13942_v29 = vld [vmem:[%s30005_s2 + $0xbe0] sm:$0xff]  ;;  %v13965_v23 = vld [vmem:[%s30005_s2 + $0xc58] sm:$0xff] }
 0x95b   : > { %21859 = vmatprep.subr.bf16.mxu0 %v21858_v30  ;;  %v21870_v54 = vpack.c.bf16 %v13943_v15, %v13942_v29  ;;  %v13982_v29 = vld [vmem:[%s30005_s2 + $0xca0] sm:$0xff]  ;;  %v13983_v15 = vld [vmem:[%s30005_s2 + $0xca8] sm:$0xff] }
 0x95d   : > { %18492 = vmatmul.mubr.f32.gmra.mrb[94].mxu0 %v26659_v51  ;;  %v13944_v51 = vld [vmem:[%s30005_s2 + $0xbf0] sm:$0xff] }
 0x95e   : > { %21861 = vmatpush3.bf16.msra.mxu0 %v21858_v30  ;;  %18554 = vmatprep.mubr.f32.mxu0 %v26665_v10  ;;  %v13945_v10 = vld [vmem:[%s30005_s2 + $0xbf8] sm:$0xff] }
 0x95f   : > { %21863 = vmatprep.subr.bf16.mxu0 %v21862_v18  ;;  %v21874_v55 = vpack.c.bf16 %v13945_v10, %v13944_v51  ;;  %v13984_v51 = vld [vmem:[%s30005_s2 + $0xcb0] sm:$0xff]  ;;  %v13985_v10 = vld [vmem:[%s30005_s2 + $0xcb8] sm:$0xff] }
 0x962   : > { %21865 = vmatpush3.bf16.msra.mxu0 %v21862_v18  ;;  %v21942_v18 = vpack.c.bf16 %v13979_v40, %v13978_v35 }
 0x963   : > { %21867 = vmatprep.subr.bf16.mxu0 %v21866_v33 }
 0x966   : > { %21869 = vmatpush3.bf16.msra.mxu0 %v21866_v33  ;;  %v21946_v33 = vpack.c.bf16 %v13981_v4, %v13980_v52 }
 0x967   : > { %21871 = vmatprep.subr.bf16.mxu0 %v21870_v54 }
 0x96a   : > { %21873 = vmatpush3.bf16.msra.mxu0 %v21870_v54  ;;  %v21950_v54 = vpack.c.bf16 %v13983_v15, %v13982_v29 }
 0x96b   : > { %21875 = vmatprep.subr.bf16.mxu0 %v21874_v55 }
 0x96e   : > { %21877 = vmatpush3.bf16.msra.mxu0 %v21874_v55  ;;  %v13987_v55 = vld [vmem:[%s30005_s2 + $0xcc8] sm:$0xff] }
 0x96f   : > { %21895 = vmatprep.subr.bf16.mxu0 %v21894_v42 }
 0x971   : > { %18555 = vmatmul.mubr.f32.vlgmr.msra.gmra.mrb[88].mxu0 %v26663_v43  ;;  %v21906_v43 = vpack.c.bf16 %v13961_v0, %v13960_v59  ;;  %v14006_v0 = vld [vmem:[%s30005_s2 + $0xd20] sm:$0xff] }
 0x972   : > { %21897 = vmatpush3.bf16.msra.mxu0 %v21894_v42  ;;  %18557 = vmatprep.mubr.f32.mxu0 %v26669_v37  ;;  %v13962_v37 = vld [vmem:[%s30005_s2 + $0xc40] sm:$0xff] }
 0x973   : > { %21899 = vmatprep.subr.bf16.mxu0 %v21898_v32 }
 0x975   : > { %18558 = vmatmul.mubr.f32.gmra.mrb[90].mxu0 %v26667_v60  ;;  %v21910_v60 = vpack.c.bf16 %v13963_v17, %v13962_v37  ;;  %v14008_v17 = vld [vmem:[%s30005_s2 + $0xd30] sm:$0xff] }
 0x976   : > { %21901 = vmatpush3.bf16.msra.mxu0 %v21898_v32  ;;  %18560 = vmatprep.mubr.f32.mxu0 %v26673_v56  ;;  %v13964_v56 = vld [vmem:[%s30005_s2 + $0xc50] sm:$0xff]  ;;  %v14003_v32 = vld [vmem:[%s30005_s2 + $0xd08] sm:$0xff] }
 0x977   : > { %21903 = vmatprep.subr.bf16.mxu0 %v21902_v47  ;;  %v21990_v48 = vpack.c.bf16 %v14003_v32, %v14002_v27 }
 0x979   : > { %18561 = vmatmul.mubr.f32.gmra.mrb[92].mxu0 %v26671_v36  ;;  %v21914_v36 = vpack.c.bf16 %v13965_v23, %v13964_v56  ;;  %v14011_v56 = vld [vmem:[%s30005_s2 + $0xd48] sm:$0xff]  ;;  %v14013_v23 = vld [vmem:[%s30005_s2 + $0xd58] sm:$0xff] }
 0x97a   : > { %21905 = vmatpush3.bf16.msra.mxu0 %v21902_v47  ;;  %18563 = vmatprep.mubr.f32.mxu0 %v26677_v22  ;;  %v13966_v22 = vld [vmem:[%s30005_s2 + $0xc60] sm:$0xff]  ;;  %v14005_v47 = vld [vmem:[%s30005_s2 + $0xd18] sm:$0xff] }
 0x97b   : > { %21907 = vmatprep.subr.bf16.mxu0 %v21906_v43  ;;  %v21918_v38 = vpack.c.bf16 %v13967_v21, %v13966_v22  ;;  %v21994_v59 = vpack.c.bf16 %v14005_v47, %v14004_v2  ;;  %v30031_v2 = vld [vmem:[#allocation4_spill] sm:$0xff] }
 0x97c   : > { %v30032_v47 = vmax.f32 %v30031_v2, 0.0  ;;  %v23877_v2 = vld [vmem:[%s30004_s1 + $0x140] sm:$0xff] }
 0x97d   : > { %18564 = vmatmul.mubr.f32.gmra.mrb[94].mxu0 %v26675_v24  ;;  %v13968_v24 = vld [vmem:[%s30005_s2 + $0xc70] sm:$0xff] }
 0x97e   : > { %21909 = vmatpush3.bf16.msra.mxu0 %v21906_v43  ;;  %18626 = vmatprep.mubr.f32.mxu0 %v26687_v7  ;;  %v13969_v7 = vld [vmem:[%s30005_s2 + $0xc78] sm:$0xff]  ;;  %v14007_v43 = vld [vmem:[%s30005_s2 + $0xd28] sm:$0xff] }
 0x97f   : > { %21911 = vmatprep.subr.bf16.mxu0 %v21910_v60  ;;  %v21922_v30 = vpack.c.bf16 %v13969_v7, %v13968_v24  ;;  %v21998_v37 = vpack.c.bf16 %v14007_v43, %v14006_v0 }
 0x982   : > { %21913 = vmatpush3.bf16.msra.mxu0 %v21910_v60  ;;  %v14009_v60 = vld [vmem:[%s30005_s2 + $0xd38] sm:$0xff] }
 0x983   : > { %21915 = vmatprep.subr.bf16.mxu0 %v21914_v36 }
 0x986   : > { %21917 = vmatpush3.bf16.msra.mxu0 %v21914_v36  ;;  %v14015_v36 = vld [vmem:[%s30005_s2 + $0xd68] sm:$0xff] }
 0x987   : > { %21919 = vmatprep.subr.bf16.mxu0 %v21918_v38 }
 0x98a   : > { %21921 = vmatpush3.bf16.msra.mxu0 %v21918_v38  ;;  %v23846_v38 = vld [vmem:[%s30004_s1 + $0xc0] sm:$0xff] }
 0x98b   : > { %21923 = vmatprep.subr.bf16.mxu0 %v21922_v30 }
 0x98e   : > { %21925 = vmatpush3.bf16.msra.mxu0 %v21922_v30 }
 0x98f   : > { %21943 = vmatprep.subr.bf16.mxu0 %v21942_v18 }
 0x991   : > { %18627 = vmatmul.mubr.f32.vlgmr.msra.gmra.mrb[88].mxu0 %v26679_v28  ;;  %v21954_v28 = vpack.c.bf16 %v13985_v10, %v13984_v51 }
 0x992   : > { %21945 = vmatpush3.bf16.msra.mxu0 %v21942_v18  ;;  %18629 = vmatprep.mubr.f32.mxu0 %v26715_v63  ;;  %v13986_v63 = vld [vmem:[%s30005_s2 + $0xcc0] sm:$0xff] }
 0x993   : > { %21947 = vmatprep.subr.bf16.mxu0 %v21946_v33 }
 0x995   : > { %18630 = vmatmul.mubr.f32.gmra.mrb[90].mxu0 %v26713_v31  ;;  %v21958_v31 = vpack.c.bf16 %v13987_v55, %v13986_v63  ;;  %v30026_v55 = vmax.f32 %v25179_v8, 0.0 }
 0x996   : > { %21949 = vmatpush3.bf16.msra.mxu0 %v21946_v33  ;;  %18632 = vmatprep.mubr.f32.mxu0 %v26725_v20  ;;  %v13988_v20 = vld [vmem:[%s30005_s2 + $0xcd0] sm:$0xff]  ;;  %v30024_v33 = vmax.f32 %v25165_v19, 0.0 }
 0x997   : > { %21951 = vmatprep.subr.bf16.mxu0 %v21950_v54 }
 0x999   : > { %18633 = vmatmul.mubr.f32.gmra.mrb[92].mxu0 %v26723_v44  ;;  %v21962_v44 = vpack.c.bf16 %v13989_v1, %v13988_v20  ;;  %v30027_v20 = vld [vmem:[#allocation2_spill] sm:$0xff] }
 0x99a   : > { %21953 = vmatpush3.bf16.msra.mxu0 %v21950_v54  ;;  %18635 = vmatprep.mubr.f32.mxu0 %v26735_v6  ;;  %v13990_v6 = vld [vmem:[%s30005_s2 + $0xce0] sm:$0xff]  ;;  %v30028_v1 = vmax.f32 %v30027_v20, 0.0  ;;  %v23873_v20 = vld [vmem:[%s30004_s1 + $0x70] sm:$0xff] }
 0x99b   : > { %21955 = vmatprep.subr.bf16.mxu0 %v21954_v28  ;;  %v21966_v42 = vpack.c.bf16 %v13991_v39, %v13990_v6 }
 0x99d   : > { %18636 = vmatmul.mubr.f32.gmra.mrb[94].mxu0 %v26733_v14  ;;  %v13992_v14 = vld [vmem:[%s30005_s2 + $0xcf0] sm:$0xff] }
 0x99e   : > { %21957 = vmatpush3.bf16.msra.mxu0 %v21954_v28  ;;  %18698 = vmatprep.mubr.f32.mxu0 %v26751_v11  ;;  %v13993_v11 = vld [vmem:[%s30005_s2 + $0xcf8] sm:$0xff] }
 0x99f   : > { %21959 = vmatprep.subr.bf16.mxu0 %v21958_v31  ;;  %v21970_v25 = vpack.c.bf16 %v13993_v11, %v13992_v14 }
 0x9a2   : > { %21961 = vmatpush3.bf16.msra.mxu0 %v21958_v31 }
 0x9a3   : > { %21963 = vmatprep.subr.bf16.mxu0 %v21962_v44 }
 0x9a6   : > { %21965 = vmatpush3.bf16.msra.mxu0 %v21962_v44 }
 0x9a7   : > { %21967 = vmatprep.subr.bf16.mxu0 %v21966_v42 }
 0x9aa   : > { %21969 = vmatpush3.bf16.msra.mxu0 %v21966_v42 }
 0x9ab   : > { %21971 = vmatprep.subr.bf16.mxu0 %v21970_v25 }
 0x9ae   : > { %21973 = vmatpush3.bf16.msra.mxu0 %v21970_v25  ;;  %v30029_v25 = vld [vmem:[#allocation3_spill] sm:$0xff] }
 0x9af   : > { %21991 = vmatprep.subr.bf16.mxu0 %v21990_v48  ;;  %v30030_v27 = vmax.f32 %v30029_v25, 0.0  ;;  %v23876_v25 = vld [vmem:[%s30004_s1 + $0x138] sm:$0xff] }
 0x9b1   : > { %18699 = vmatmul.mubr.f32.vlgmr.msra.gmra.mrb[88].mxu0 %v26743_v13  ;;  %v22002_v13 = vpack.c.bf16 %v14009_v60, %v14008_v17  ;;  %v23847_v17 = vld [vmem:[%s30004_s1 + $0x8] sm:$0xff] }
 0x9b2   : > { %21993 = vmatpush3.bf16.msra.mxu0 %v21990_v48  ;;  %18701 = vmatprep.mubr.f32.mxu0 %v26787_v26  ;;  %v14010_v26 = vld [vmem:[%s30005_s2 + $0xd40] sm:$0xff]  ;;  %v23848_v60 = vld [vmem:[%s30004_s1 + $0xc8] sm:$0xff] }
 0x9b3   : > { %21995 = vmatprep.subr.bf16.mxu0 %v21994_v59 }
 0x9b5   : > { %18702 = vmatmul.mubr.f32.gmra.mrb[90].mxu0 %v26785_v50  ;;  %v22006_v50 = vpack.c.bf16 %v14011_v56, %v14010_v26  ;;  %v23850_v26 = vld [vmem:[%s30004_s1 + $0xd0] sm:$0xff]  ;;  %v23851_v56 = vld [vmem:[%s30004_s1 + $0x18] sm:$0xff] }
 0x9b6   : > { %21997 = vmatpush3.bf16.msra.mxu0 %v21994_v59  ;;  %18704 = vmatprep.mubr.f32.mxu0 %v26797_v57  ;;  %v14012_v57 = vld [vmem:[%s30005_s2 + $0xd50] sm:$0xff] }
 0x9b7   : > { %21999 = vmatprep.subr.bf16.mxu0 %v21998_v37 }
 0x9b9   : > { %18705 = vmatmul.mubr.f32.gmra.mrb[92].mxu0 %v26795_v49  ;;  %v22010_v49 = vpack.c.bf16 %v14013_v23, %v14012_v57  ;;  %v23853_v57 = vld [vmem:[%s30004_s1 + $0x20] sm:$0xff] }
 0x9ba   : > { %22001 = vmatpush3.bf16.msra.mxu0 %v21998_v37  ;;  %18707 = vmatprep.mubr.f32.mxu0 %v26807_v45  ;;  %v14014_v45 = vld [vmem:[%s30005_s2 + $0xd60] sm:$0xff] }
 0x9bb   : > { %22003 = vmatprep.subr.bf16.mxu0 %v22002_v13  ;;  %v22014_v22 = vpack.c.bf16 %v14015_v36, %v14014_v45  ;;  %v23854_v23 = vld [vmem:[%s30004_s1 + $0xe0] sm:$0xff]  ;;  %v23856_v45 = vld [vmem:[%s30004_s1 + $0xe8] sm:$0xff] }
 0x9bc   : > { %v14052_v36 = vld [vmem:[%s30005_s2 + $0xe00] sm:$0xff] }
 0x9bd   : > { %18708 = vmatmul.mubr.f32.gmra.mrb[94].mxu0 %v26805_v61  ;;  %v14016_v61 = vld [vmem:[%s30005_s2 + $0xd70] sm:$0xff] }
 0x9be   : > { %22005 = vmatpush3.bf16.msra.mxu0 %v22002_v13  ;;  %18770 = vmatprep.mubr.f32.mxu0 %v26817_v34  ;;  %v14017_v34 = vld [vmem:[%s30005_s2 + $0xd78] sm:$0xff]  ;;  %v23849_v13 = vld [vmem:[%s30004_s1 + $0x10] sm:$0xff] }
 0x9bf   : > { %22007 = vmatprep.subr.bf16.mxu0 %v22006_v50  ;;  %v22018_v21 = vpack.c.bf16 %v14017_v34, %v14016_v61  ;;  %v23857_v61 = vld [vmem:[%s30004_s1 + $0x30] sm:$0xff] }
 0x9c0   : > { %v23858_v34 = vld [vmem:[%s30004_s1 + $0xf0] sm:$0xff] }
 0x9c2   : > { %22009 = vmatpush3.bf16.msra.mxu0 %v22006_v50  ;;  %v23852_v50 = vld [vmem:[%s30004_s1 + $0xd8] sm:$0xff] }
 0x9c3   : > { %22011 = vmatprep.subr.bf16.mxu0 %v22010_v49 }
 0x9c6   : > { %22013 = vmatpush3.bf16.msra.mxu0 %v22010_v49  ;;  %v23855_v49 = vld [vmem:[%s30004_s1 + $0x28] sm:$0xff] }
 0x9c7   : > { %22015 = vmatprep.subr.bf16.mxu0 %v22014_v22 }
 0x9ca   : > { %22017 = vmatpush3.bf16.msra.mxu0 %v22014_v22  ;;  %v14053_v22 = vld [vmem:[%s30005_s2 + $0xe08] sm:$0xff] }
 0x9cb   : > { %22019 = vmatprep.subr.bf16.mxu0 %v22018_v21 }
 0x9ce   : > { %22021 = vmatpush3.bf16.msra.mxu0 %v22018_v21  ;;  %v22054_v21 = vpack.c.bf16 %v14053_v22, %v14052_v36  ;;  %v23889_v36 = vld [vmem:[%s30004_s1 + $0x1a0] sm:$0xff]  ;;  %v23890_v22 = vld [vmem:[%s30004_s1 + $0x1a8] sm:$0xff] }
 0x9d1   : > { %18771 = vmatmul.mubr.f32.vlgmr.msra.gmra.mrb[88].mxu0 %v26815_v16  ;;  %v14019_v16 = vld [vmem:[%s30006_s3 + $0x2] ss:$0 sm:$0xff] }
 0x9d2   : > { %18773 = vmatprep.mubr.f32.mxu0 %v26834_v3 }
 0x9d5   : > { %18774 = vmatmul.mubr.f32.gmra.mrb[90].mxu0 %v26825_v12 }
 0x9d6   : > { %18776 = vmatprep.mubr.f32.mxu0 %v26846_v53 }
 0x9d9   : > { %18777 = vmatmul.mubr.f32.gmra.mrb[92].mxu0 %v26837_v46  ;;  %v30022_v46 = vmax.f32 %v25159_v41, 0.0 }
 0x9da   : > { %18779 = vmatprep.mubr.f32.mxu0 %v26858_v58 }
 0x9dd   : > { %18780 = vmatmul.mubr.f32.gmra.mrb[94].mxu0 %v26849_v62  ;;  %v30023_v62 = vmax.f32 %v25161_v9, 0.0  ;;  %v30025_v9 = vmax.f32 %v25173_v5, 0.0 }
 0x9de   : > { %19014 = vmatprep.mubr.msk.f32.mxu0 %vm214_vm0, %v23846_v38  ;;  %v23859_v38 = vld [vmem:[%s30004_s1 + $0x38] sm:$0xff] }
 0xaa4   : > { %v18772_v3 = vpop.f32.mrb[88].mxu0 }
 0xaa5   : > { %v6855_v12 = vadd.f32 %v18772_v3, %v14019_v16  ;;  %v6799_v24 = vpop.f32.mrb[89].mxu0  ;;  %v23861_v3 = vld [vmem:[%s30004_s1 + $0x40] sm:$0xff] }
 0xaa6   : > { %v6854_v53 = vadd.f32 %v14019_v16, %v6799_v24  ;;  %v23863_v24 = vld [vmem:[%s30004_s1 + $0x48] sm:$0xff] }
 0xaa7   : > { %v27065_v7 = vadd.f32 %v6855_v12, %v30022_v46  ;;  %v23862_v12 = vld [vmem:[%s30004_s1 + $0x100] sm:$0xff]  ;;  %v14054_v46 = vld [vmem:[%s30005_s2 + $0xe10] sm:$0xff] }
 0xaa8   : > { %v27069_v58 = vadd.f32 %v6854_v53, %v30023_v62  ;;  %v18775_v30 = vpop.f32.mrb[90].mxu0  ;;  %v23864_v53 = vld [vmem:[%s30004_s1 + $0x108] sm:$0xff]  ;;  %v14055_v62 = vld [vmem:[%s30005_s2 + $0xe18] sm:$0xff] }
 0xaa9   : > { %v6871_v35 = vmax.f32 %v27065_v7, 0.0  ;;  %v6857_v40 = vadd.f32 %v18775_v30, %v14019_v16  ;;  %v6809_v18 = vpop.f32.mrb[91].mxu0  ;;  %v23865_v30 = vld [vmem:[%s30004_s1 + $0x50] sm:$0xff] }
 0xaaa   : > { %v6870_v52 = vmax.f32 %v27069_v58, 0.0  ;;  %v6856_v4 = vadd.f32 %v14019_v16, %v6809_v18  ;;  %v22058_v18 = vpack.c.bf16 %v14055_v62, %v14054_v46  ;;  %v23900_v46 = vld [vmem:[%s30004_s1 + $0x1f8] sm:$0xff]  ;;  %v23901_v62 = vld [vmem:[%s30004_s1 + $0x200] sm:$0xff] }
 0xaab   : > { %v27075_v29 = vadd.f32 %v6857_v40, %v30024_v33  ;;  %v23866_v40 = vld [vmem:[%s30004_s1 + $0x110] sm:$0xff]  ;;  %v23868_v33 = vld [vmem:[%s30004_s1 + $0x118] sm:$0xff] }
 0xaac   : > { %v27081_v41 = vpack.c.bf16 %v6871_v35, %v6870_v52  ;;  %v27085_v15 = vadd.f32 %v6856_v4, %v30025_v9  ;;  %v18778_v54 = vpop.f32.mrb[92].mxu0  ;;  %v23867_v4 = vld [vmem:[%s30004_s1 + $0x58] sm:$0xff]  ;;  %v23869_v9 = vld [vmem:[%s30004_s1 + $0x60] sm:$0xff] }
 0xaad   : > { %v6873_v51 = vmax.f32 %v27075_v29, 0.0  ;;  %v6859_v10 = vadd.f32 %v18778_v54, %v14019_v16  ;;  %v6819_v28 = vpop.f32.mrb[93].mxu0  ;;  %v23870_v54 = vld [vmem:[%s30004_s1 + $0x120] sm:$0xff] }
 0xaae   : > { %v6872_v63 = vmax.f32 %v27085_v15, 0.0  ;;  %v6858_v19 = vadd.f32 %v14019_v16, %v6819_v28  ;;  %22023 = vmatprep.subr.bf16.mxu1 %v27081_v41  ;;  %22167 = vmatprep.subr.bf16.mxu0 %v27081_v41  ;;  %v14057_v28 = vld [vmem:[%s30005_s2 + $0xe28] sm:$0xff] }
 0xaaf   : > { %v27093_v31 = vadd.f32 %v6859_v10, %v30026_v55  ;;  %22025 = vmatpush3.bf16.msra.mxu1 %v27081_v41  ;;  %22169 = vmatpush3.bf16.msra.mxu0 %v27081_v41  ;;  %v14056_v10 = vld [vmem:[%s30005_s2 + $0xe20] sm:$0xff]  ;;  %v23872_v55 = vld [vmem:[%s30004_s1 + $0x128] sm:$0xff] }
 0xab0   : > { %v27101_v5 = vpack.c.bf16 %v6873_v51, %v6872_v63  ;;  %v27105_v44 = vadd.f32 %v6858_v19, %v30028_v1  ;;  %v18781_v6 = vpop.f32.mrb[94].mxu0  ;;  %v23871_v19 = vld [vmem:[%s30004_s1 + $0x68] sm:$0xff]  ;;  %v14058_v1 = vld [vmem:[%s30005_s2 + $0xe30] sm:$0xff] }
 0xab1   : > { %v6875_v39 = vmax.f32 %v27093_v31, 0.0  ;;  %v6861_v8 = vadd.f32 %v18781_v6, %v14019_v16  ;;  %v6829_v42 = vpop.f32.mrb[95].mxu0  ;;  %v14059_v6 = vld [vmem:[%s30005_s2 + $0xe38] sm:$0xff] }
 0xab2   : > { %v6874_v14 = vmax.f32 %v27105_v44, 0.0  ;;  %v6860_v11 = vadd.f32 %v14019_v16, %v6829_v42  ;;  %22027 = vmatprep.subr.bf16.mxu1 %v27101_v5  ;;  %22171 = vmatprep.subr.bf16.mxu0 %v27101_v5  ;;  %v23860_v16 = vld [vmem:[%s30004_s1 + $0xf8] sm:$0xff]  ;;  %v22062_v42 = vpack.c.bf16 %v14057_v28, %v14056_v10  ;;  %v14062_v10 = vld [vmem:[%s30005_s2 + $0xe50] sm:$0xff] }
 0xab3   : > { %v27113_v32 = vadd.f32 %v6861_v8, %v30030_v27  ;;  %22029 = vmatpush3.bf16.msra.mxu1 %v27101_v5  ;;  %22173 = vmatpush3.bf16.msra.mxu0 %v27101_v5  ;;  %v23874_v8 = vld [vmem:[%s30004_s1 + $0x130] sm:$0xff]  ;;  %v22066_v27 = vpack.c.bf16 %v14059_v6, %v14058_v1  ;;  %v14063_v28 = vld [vmem:[%s30005_s2 + $0xe58] sm:$0xff]  ;;  %v14064_v1 = vld [vmem:[%s30005_s2 + $0xe60] sm:$0xff] }
 0xab4   : > { %v27121_v48 = vpack.c.bf16 %v6875_v39, %v6874_v14  ;;  %v27125_v59 = vadd.f32 %v6860_v11, %v30032_v47  ;;  %v23875_v11 = vld [vmem:[%s30004_s1 + $0x78] sm:$0xff]  ;;  %v23878_v47 = vld [vmem:[%s30004_s1 + $0x148] sm:$0xff] }
 0xab5   : > { %v6877_v0 = vmax.f32 %v27113_v32, 0.0  ;;  %v14065_v6 = vld [vmem:[%s30005_s2 + $0xe68] sm:$0xff] }
 0xab6   : > { %v6876_v43 = vmax.f32 %v27125_v59, 0.0  ;;  %22031 = vmatprep.subr.bf16.mxu1 %v27121_v48  ;;  %22175 = vmatprep.subr.bf16.mxu0 %v27121_v48  ;;  %v23991_v59 = vld [vmem:[%s30004_s1 + $0x8] sm:$0xff] }
 0xab7   : > { %22033 = vmatpush3.bf16.msra.mxu1 %v27121_v48  ;;  %22177 = vmatpush3.bf16.msra.mxu0 %v27121_v48 }
 0xab8   : > { %v27137_v37 = vpack.c.bf16 %v6877_v0, %v6876_v43 }
 0xaba   : > { %22035 = vmatprep.subr.bf16.mxu1 %v27137_v37  ;;  %22179 = vmatprep.subr.bf16.mxu0 %v27137_v37 }
 0xabb   : > { %22037 = vmatpush3.bf16.msra.mxu1 %v27137_v37  ;;  %22181 = vmatpush3.bf16.msra.mxu0 %v27137_v37 }
 0xabc   : > { %22039 = vmatprep.subr.bf16.mxu1 %v27081_v41  ;;  %22215 = vmatprep.subr.bf16.mxu0 %v27081_v41 }
 0xabe   : > { %18799 = vmatmul.mubr.msk.f32.vlgmr.msra.gmra.mrb[144].mxu1 %vm214_vm0, %v23847_v17  ;;  %19015 = vmatmul.mubr.msk.f32.vlgmr.msra.gmra.mrb[104].mxu0 %vm214_vm0, %v23848_v60  ;;  %v23879_v17 = vld [vmem:[%s30004_s1 + $0x150] sm:$0xff]  ;;  %v23880_v60 = vld [vmem:[%s30004_s1 + $0x158] sm:$0xff] }
 0xabf   : > { %22041 = vmatpush3.bf16.msra.mxu1 %v27081_v41  ;;  %22217 = vmatpush3.bf16.msra.mxu0 %v27081_v41 }
 0xac0   : > { %22043 = vmatprep.subr.bf16.mxu1 %v27101_v5  ;;  %22219 = vmatprep.subr.bf16.mxu0 %v27101_v5 }
 0xac1   : > { %18801 = vmatprep.mubr.msk.f32.mxu1 %vm214_vm0, %v23849_v13  ;;  %19017 = vmatprep.mubr.msk.f32.mxu0 %vm214_vm0, %v23850_v26  ;;  %v23881_v13 = vld [vmem:[%s30004_s1 + $0x160] sm:$0xff]  ;;  %v23882_v26 = vld [vmem:[%s30004_s1 + $0x168] sm:$0xff] }
 0xac2   : > { %18802 = vmatmul.mubr.msk.f32.gmra.mrb[146].mxu1 %vm214_vm0, %v23851_v56  ;;  %19018 = vmatmul.mubr.msk.f32.gmra.mrb[106].mxu0 %vm214_vm0, %v23852_v50  ;;  %v23883_v56 = vld [vmem:[%s30004_s1 + $0x170] sm:$0xff]  ;;  %v23884_v50 = vld [vmem:[%s30004_s1 + $0x178] sm:$0xff] }
 0xac3   : > { %22045 = vmatpush3.bf16.msra.mxu1 %v27101_v5  ;;  %22221 = vmatpush3.bf16.msra.mxu0 %v27101_v5 }
 0xac4   : > { %22047 = vmatprep.subr.bf16.mxu1 %v27121_v48  ;;  %22223 = vmatprep.subr.bf16.mxu0 %v27121_v48 }
 0xac5   : > { %18804 = vmatprep.mubr.msk.f32.mxu1 %vm214_vm0, %v23853_v57  ;;  %19020 = vmatprep.mubr.msk.f32.mxu0 %vm214_vm0, %v23854_v23  ;;  %v23885_v57 = vld [vmem:[%s30004_s1 + $0x180] sm:$0xff]  ;;  %v23886_v23 = vld [vmem:[%s30004_s1 + $0x188] sm:$0xff] }
 0xac6   : > { %18805 = vmatmul.mubr.msk.f32.gmra.mrb[148].mxu1 %vm214_vm0, %v23855_v49  ;;  %19021 = vmatmul.mubr.msk.f32.gmra.mrb[108].mxu0 %vm214_vm0, %v23856_v45  ;;  %v23887_v49 = vld [vmem:[%s30004_s1 + $0x190] sm:$0xff]  ;;  %v23888_v45 = vld [vmem:[%s30004_s1 + $0x198] sm:$0xff] }
 0xac7   : > { %22049 = vmatpush3.bf16.msra.mxu1 %v27121_v48  ;;  %22225 = vmatpush3.bf16.msra.mxu0 %v27121_v48 }
 0xac8   : > { %22051 = vmatprep.subr.bf16.mxu1 %v27137_v37  ;;  %22227 = vmatprep.subr.bf16.mxu0 %v27137_v37 }
 0xac9   : > { %18807 = vmatprep.mubr.msk.f32.mxu1 %vm214_vm0, %v23857_v61  ;;  %19023 = vmatprep.mubr.msk.f32.mxu0 %vm214_vm0, %v23858_v34  ;;  %v23891_v61 = vld [vmem:[%s30004_s1 + $0x1b0] sm:$0xff]  ;;  %v23892_v34 = vld [vmem:[%s30004_s1 + $0x1b8] sm:$0xff] }
 0xaca   : > { %18808 = vmatmul.mubr.msk.f32.gmra.mrb[150].mxu1 %vm214_vm0, %v23859_v38  ;;  %19024 = vmatmul.mubr.msk.f32.gmra.mrb[110].mxu0 %vm214_vm0, %v23860_v16  ;;  %v23894_v38 = vld [vmem:[%s30004_s1 + $0x1c8] sm:$0xff]  ;;  %v23895_v16 = vld [vmem:[%s30004_s1 + $0x1d0] sm:$0xff] }
 0xacb   : > { %22053 = vmatpush3.bf16.msra.mxu1 %v27137_v37  ;;  %22229 = vmatpush3.bf16.msra.mxu0 %v27137_v37 }
 0xacc   : > { %22263 = vmatprep.subr.bf16.mxu0 %v27081_v41  ;;  %18826 = vmatprep.mubr.msk.f32.mxu1 %vm214_vm0, %v23861_v3  ;;  %v23896_v3 = vld [vmem:[%s30004_s1 + $0x1d8] sm:$0xff] }
 0xacd   : > { %19086 = vmatprep.mubr.msk.f32.mxu0 %vm214_vm0, %v23862_v12  ;;  %22055 = vmatprep.subr.bf16.mxu1 %v22054_v21  ;;  %v23897_v12 = vld [vmem:[%s30004_s1 + $0x1e0] sm:$0xff] }
 0xace   : > { %18827 = vmatmul.mubr.msk.f32.vlgmr.msra.gmra.mrb[152].mxu1 %vm214_vm0, %v23863_v24  ;;  %19087 = vmatmul.mubr.msk.f32.vlgmr.msra.gmra.mrb[112].mxu0 %vm214_vm0, %v23864_v53  ;;  %v23898_v24 = vld [vmem:[%s30004_s1 + $0x1e8] sm:$0xff]  ;;  %v23899_v53 = vld [vmem:[%s30004_s1 + $0x1f0] sm:$0xff] }
 0xacf   : > { %22265 = vmatpush3.bf16.msra.mxu0 %v27081_v41  ;;  %18829 = vmatprep.mubr.msk.f32.mxu1 %vm214_vm0, %v23865_v30  ;;  %v23902_v30 = vld [vmem:[%s30004_s1 + $0x208] sm:$0xff] }
 0xad0   : > { %22267 = vmatprep.subr.bf16.mxu0 %v27101_v5  ;;  %19089 = vmatprep.mubr.msk.f32.mxu0 %vm214_vm0, %v23866_v40  ;;  %v23903_v40 = vld [vmem:[%s30004_s1 + $0x210] sm:$0xff] }
 0xad1   : > { %22057 = vmatpush3.bf16.msra.mxu1 %v22054_v21  ;;  %v23893_v21 = vld [vmem:[%s30004_s1 + $0x1c0] sm:$0xff] }
 0xad2   : > { %18830 = vmatmul.mubr.msk.f32.gmra.mrb[154].mxu1 %vm214_vm0, %v23867_v4  ;;  %19090 = vmatmul.mubr.msk.f32.gmra.mrb[114].mxu0 %vm214_vm0, %v23868_v33  ;;  %v14061_v4 = vld [vmem:[%s30005_s2 + $0xe48] sm:$0xff] }
 0xad3   : > { %22269 = vmatpush3.bf16.msra.mxu0 %v27101_v5  ;;  %18832 = vmatprep.mubr.msk.f32.mxu1 %vm214_vm0, %v23869_v9  ;;  %v23904_v9 = vld [vmem:[%s30004_s1 + $0x218] sm:$0xff] }
 0xad4   : > { %22271 = vmatprep.subr.bf16.mxu0 %v27121_v48  ;;  %19092 = vmatprep.mubr.msk.f32.mxu0 %vm214_vm0, %v23870_v54  ;;  %v23905_v54 = vld [vmem:[%s30004_s1 + $0x220] sm:$0xff] }
 0xad5   : > { %22059 = vmatprep.subr.bf16.mxu1 %v22058_v18 }
 0xad6   : > { %18833 = vmatmul.mubr.msk.f32.gmra.mrb[156].mxu1 %vm214_vm0, %v23871_v19  ;;  %19093 = vmatmul.mubr.msk.f32.gmra.mrb[116].mxu0 %vm214_vm0, %v23872_v55  ;;  %v22074_v19 = vpack.c.bf16 %v14063_v28, %v14062_v10  ;;  %v23906_v55 = vld [vmem:[%s30004_s1 + $0x228] sm:$0xff]  ;;  %v14038_v10 = vld [vmem:[%s30005_s2 + $0xdd0] sm:$0xff]  ;;  %v14039_v28 = vld [vmem:[%s30005_s2 + $0xdd8] sm:$0xff] }
 0xad7   : > { %22273 = vmatpush3.bf16.msra.mxu0 %v27121_v48  ;;  %18835 = vmatprep.mubr.msk.f32.mxu1 %vm214_vm0, %v23873_v20  ;;  %v23907_v20 = vld [vmem:[%s30004_s1 + $0x230] sm:$0xff] }
 0xad8   : > { %22275 = vmatprep.subr.bf16.mxu0 %v27137_v37  ;;  %19095 = vmatprep.mubr.msk.f32.mxu0 %vm214_vm0, %v23874_v8  ;;  %v22078_v8 = vpack.c.bf16 %v14065_v6, %v14064_v1  ;;  %v14042_v6 = vld [vmem:[%s30005_s2 + $0xdf0] sm:$0xff] }
 0xad9   : > { %22061 = vmatpush3.bf16.msra.mxu1 %v22058_v18  ;;  %v14060_v18 = vld [vmem:[%s30005_s2 + $0xe40] sm:$0xff] }
 0xada   : > { %18836 = vmatmul.mubr.msk.f32.gmra.mrb[158].mxu1 %vm214_vm0, %v23875_v11  ;;  %19096 = vmatmul.mubr.msk.f32.gmra.mrb[118].mxu0 %vm214_vm0, %v23876_v25  ;;  %v22070_v33 = vpack.c.bf16 %v14061_v4, %v14060_v18  ;;  %v23909_v11 = vld [vmem:[%s30004_s1] sm:$0xff]  ;;  %v14066_v25 = vld [vmem:[%s30005_s2 + $0xe70] sm:$0xff]  ;;  %v14037_v4 = vld [vmem:[%s30005_s2 + $0xdc8] sm:$0xff] }
 0xadb   : > { %22277 = vmatpush3.bf16.msra.mxu0 %v27137_v37  ;;  %19158 = vmatprep.mubr.msk.f32.mxu0 %vm214_vm0, %v23877_v2  ;;  %v14036_v18 = vld [vmem:[%s30005_s2 + $0xdc0] sm:$0xff] }
 0xadc   : > { %22311 = vmatprep.subr.bf16.mxu0 %v27081_v41  ;;  %22063 = vmatprep.subr.bf16.mxu1 %v22062_v42 }
 0xadd   : > { %22065 = vmatpush3.bf16.msra.mxu1 %v22062_v42  ;;  %v23908_v42 = vld [vmem:[%s30004_s1 + $0x238] sm:$0xff] }
 0xade   : > { %19159 = vmatmul.mubr.msk.f32.vlgmr.msra.gmra.mrb[120].mxu0 %vm214_vm0, %v23878_v47  ;;  %22067 = vmatprep.subr.bf16.mxu1 %v22066_v27  ;;  %v14028_v47 = vld [vmem:[%s30005_s2 + $0xd80] sm:$0xff] }
 0xadf   : > { %22313 = vmatpush3.bf16.msra.mxu0 %v27081_v41  ;;  %19161 = vmatprep.mubr.msk.f32.mxu0 %vm214_vm0, %v23879_v17  ;;  %v14029_v17 = vld [vmem:[%s30005_s2 + $0xd88] sm:$0xff] }
 0xae0   : > { %22315 = vmatprep.subr.bf16.mxu0 %v27101_v5 }
 0xae1   : > { %22069 = vmatpush3.bf16.msra.mxu1 %v22066_v27  ;;  %v14067_v27 = vld [vmem:[%s30005_s2 + $0xe78] sm:$0xff] }
 0xae2   : > { %19162 = vmatmul.mubr.msk.f32.gmra.mrb[122].mxu0 %vm214_vm0, %v23880_v60  ;;  %22071 = vmatprep.subr.bf16.mxu1 %v22070_v33  ;;  %v22082_v2 = vpack.c.bf16 %v14067_v27, %v14066_v25  ;;  %v22086_v60 = vpack.c.bf16 %v14029_v17, %v14028_v47  ;;  %v14077_v25 = vld [vmem:[%s30005_s2 + $0xe88] sm:$0xff]  ;;  %v14079_v27 = vld [vmem:[%s30005_s2 + $0xe98] sm:$0xff]  ;;  %v14080_v47 = vld [vmem:[%s30005_s2 + $0xea0] sm:$0xff] }
 0xae3   : > { %22317 = vmatpush3.bf16.msra.mxu0 %v27101_v5  ;;  %19164 = vmatprep.mubr.msk.f32.mxu0 %vm214_vm0, %v23881_v13  ;;  %v14081_v17 = vld [vmem:[%s30005_s2 + $0xea8] sm:$0xff] }
 0xae4   : > { %22319 = vmatprep.subr.bf16.mxu0 %v27121_v48 }
 0xae5   : > { %22073 = vmatpush3.bf16.msra.mxu1 %v22070_v33 }
 0xae6   : > { %19165 = vmatmul.mubr.msk.f32.gmra.mrb[124].mxu0 %vm214_vm0, %v23882_v26  ;;  %22075 = vmatprep.subr.bf16.mxu1 %v22074_v19 }
 0xae7   : > { %22321 = vmatpush3.bf16.msra.mxu0 %v27121_v48  ;;  %19167 = vmatprep.mubr.msk.f32.mxu0 %vm214_vm0, %v23883_v56 }
 0xae8   : > { %22323 = vmatprep.subr.bf16.mxu0 %v27137_v37 }
 0xae9   : > { %22077 = vmatpush3.bf16.msra.mxu1 %v22074_v19  ;;  %v22106_v19 = vpack.c.bf16 %v14039_v28, %v14038_v10 }
 0xaea   : > { %19168 = vmatmul.mubr.msk.f32.gmra.mrb[126].mxu0 %vm214_vm0, %v23884_v50  ;;  %22079 = vmatprep.subr.bf16.mxu1 %v22078_v8 }
 0xaeb   : > { %22325 = vmatpush3.bf16.msra.mxu0 %v27137_v37  ;;  %19230 = vmatprep.mubr.msk.f32.mxu0 %vm214_vm0, %v23885_v57 }
 0xaec   : > { %22359 = vmatprep.subr.bf16.mxu0 %v27081_v41 }
 0xaed   : > { %22081 = vmatpush3.bf16.msra.mxu1 %v22078_v8  ;;  %v14043_v8 = vld [vmem:[%s30005_s2 + $0xdf8] sm:$0xff] }
 0xaee   : > { %19231 = vmatmul.mubr.msk.f32.vlgmr.msra.gmra.mrb[128].mxu0 %vm214_vm0, %v23886_v23  ;;  %22083 = vmatprep.subr.bf16.mxu1 %v22082_v2 }
 0xaef   : > { %22361 = vmatpush3.bf16.msra.mxu0 %v27081_v41  ;;  %19233 = vmatprep.mubr.msk.f32.mxu0 %vm214_vm0, %v23887_v49 }
 0xaf0   : > { %22363 = vmatprep.subr.bf16.mxu0 %v27101_v5 }
 0xaf1   : > { %22085 = vmatpush3.bf16.msra.mxu1 %v22082_v2  ;;  %v23910_v2 = vld [vmem:[%s30004_s1 + $0x80] sm:$0xff] }
 0xaf2   : > { %19234 = vmatmul.mubr.msk.f32.gmra.mrb[130].mxu0 %vm214_vm0, %v23888_v45  ;;  %22087 = vmatprep.subr.bf16.mxu1 %v22086_v60 }
 0xaf3   : > { %22365 = vmatpush3.bf16.msra.mxu0 %v27101_v5  ;;  %19236 = vmatprep.mubr.msk.f32.mxu0 %vm214_vm0, %v23889_v36  ;;  %v14030_v36 = vld [vmem:[%s30005_s2 + $0xd90] sm:$0xff] }
 0xaf4   : > { %22367 = vmatprep.subr.bf16.mxu0 %v27121_v48 }
 0xaf6   : > { %19237 = vmatmul.mubr.msk.f32.gmra.mrb[132].mxu0 %vm214_vm0, %v23890_v22  ;;  %v14031_v22 = vld [vmem:[%s30005_s2 + $0xd98] sm:$0xff] }
 0xaf7   : > { %22369 = vmatpush3.bf16.msra.mxu0 %v27121_v48  ;;  %19239 = vmatprep.mubr.msk.f32.mxu0 %vm214_vm0, %v23891_v61 }
 0xaf8   : > { %22371 = vmatprep.subr.bf16.mxu0 %v27137_v37 }
 0xafa   : > { %19240 = vmatmul.mubr.msk.f32.gmra.mrb[134].mxu0 %vm214_vm0, %v23892_v34 }
 0xafb   : > { %22373 = vmatpush3.bf16.msra.mxu0 %v27137_v37  ;;  %19302 = vmatprep.mubr.msk.f32.mxu0 %vm214_vm0, %v23893_v21  ;;  %v22090_v21 = vpack.c.bf16 %v14031_v22, %v14030_v36  ;;  %v23915_v36 = vld [vmem:[%s30004_s1 + $0xa8] sm:$0xff]  ;;  %v23916_v22 = vld [vmem:[%s30004_s1 + $0xb0] sm:$0xff] }
 0xafc   : > { %22407 = vmatprep.subr.bf16.mxu0 %v27081_v41 }
 0xafe   : > { %19303 = vmatmul.mubr.msk.f32.vlgmr.msra.gmra.mrb[136].mxu0 %vm214_vm0, %v23894_v38  ;;  %v14032_v38 = vld [vmem:[%s30005_s2 + $0xda0] sm:$0xff] }
 0xaff   : > { %22409 = vmatpush3.bf16.msra.mxu0 %v27081_v41  ;;  %19305 = vmatprep.mubr.msk.f32.mxu0 %vm214_vm0, %v23895_v16  ;;  %v14033_v16 = vld [vmem:[%s30005_s2 + $0xda8] sm:$0xff] }
 0xb00   : > { %22411 = vmatprep.subr.bf16.mxu0 %v27101_v5 }
 0xb02   : > { %19306 = vmatmul.mubr.msk.f32.gmra.mrb[138].mxu0 %vm214_vm0, %v23896_v3 }
 0xb03   : > { %22413 = vmatpush3.bf16.msra.mxu0 %v27101_v5  ;;  %19308 = vmatprep.mubr.msk.f32.mxu0 %vm214_vm0, %v23897_v12 }
 0xb04   : > { %22415 = vmatprep.subr.bf16.mxu0 %v27121_v48 }
 0xb06   : > { %19309 = vmatmul.mubr.msk.f32.gmra.mrb[140].mxu0 %vm214_vm0, %v23898_v24  ;;  %v22094_v24 = vpack.c.bf16 %v14033_v16, %v14032_v38  ;;  %v23917_v38 = vld [vmem:[%s30004_s1 + $0xb8] sm:$0xff] }
 0xb07   : > { %22417 = vmatpush3.bf16.msra.mxu0 %v27121_v48  ;;  %19311 = vmatprep.mubr.msk.f32.mxu0 %vm214_vm0, %v23899_v53  ;;  %v14034_v53 = vld [vmem:[%s30005_s2 + $0xdb0] sm:$0xff] }
 0xb08   : > { %22419 = vmatprep.subr.bf16.mxu0 %v27137_v37 }
 0xb0a   : > { %19312 = vmatmul.mubr.msk.f32.gmra.mrb[142].mxu0 %vm214_vm0, %v23900_v46  ;;  %v14035_v46 = vld [vmem:[%s30005_s2 + $0xdb8] sm:$0xff] }
 0xb0b   : > { %22421 = vmatpush3.bf16.msra.mxu0 %v27137_v37  ;;  %19374 = vmatprep.mubr.msk.f32.mxu0 %vm214_vm0, %v23901_v62 }
 0xb0e   : > { %19375 = vmatmul.mubr.msk.f32.vlgmr.msra.gmra.mrb[144].mxu0 %vm214_vm0, %v23902_v30 }
 0xb0f   : > { %19377 = vmatprep.mubr.msk.f32.mxu0 %vm214_vm0, %v23903_v40  ;;  %v22098_v40 = vpack.c.bf16 %v14035_v46, %v14034_v53  ;;  %v14090_v53 = vld [vmem:[%s30005_s2 + $0xef0] sm:$0xff]  ;;  %v14091_v46 = vld [vmem:[%s30005_s2 + $0xef8] sm:$0xff] }
 0xb12   : > { %19378 = vmatmul.mubr.msk.f32.gmra.mrb[146].mxu0 %vm214_vm0, %v23904_v9 }
 0xb13   : > { %19380 = vmatprep.mubr.msk.f32.mxu0 %vm214_vm0, %v23905_v54  ;;  %v22102_v54 = vpack.c.bf16 %v14037_v4, %v14036_v18 }
 0xb16   : > { %19381 = vmatmul.mubr.msk.f32.gmra.mrb[148].mxu0 %vm214_vm0, %v23906_v55  ;;  %v14040_v55 = vld [vmem:[%s30005_s2 + $0xde0] sm:$0xff] }
 0xb17   : > { %19383 = vmatprep.mubr.msk.f32.mxu0 %vm214_vm0, %v23907_v20  ;;  %v14041_v20 = vld [vmem:[%s30005_s2 + $0xde8] sm:$0xff] }
 0xb18   : > { %v22110_v1 = vpack.c.bf16 %v14041_v20, %v14040_v55 }
 0xb1a   : > { %19384 = vmatmul.mubr.msk.f32.gmra.mrb[150].mxu0 %vm214_vm0, %v23908_v42  ;;  %v22114_v42 = vpack.c.bf16 %v14043_v8, %v14042_v6 }
 0xb1b   : > { %19446 = vmatprep.mubr.msk.f32.mxu0 %vm214_vm0, %v23909_v11  ;;  %v14076_v11 = vld [vmem:[%s30005_s2 + $0xe80] sm:$0xff] }
 0xb91   : > { %v18800_v13 = vpop.f32.mrb[144].mxu1  ;;  %v27645_v4 = vpop.f32.mrb[104].mxu0 }
 0xb92   : > { %v6944_v26 = vpop.f32.mrb[145].mxu1 }
 0xb95   : > { %v27497_v56 = vpop.f32.mrb[146].mxu1 }
 0xb96   : > { %v6954_v50 = vpop.f32.mrb[147].mxu1 }
 0xb99   : > { %v27499_v57 = vpop.f32.mrb[148].mxu1 }
 0xb9a   : > { %v6964_v23 = vpop.f32.mrb[149].mxu1 }
 0xb9d   : > { %v27501_v49 = vpop.f32.mrb[150].mxu1 }
 0xb9e   : > { %v27503_v45 = vpop.f32.mrb[151].mxu1 }
 0xba1   : > { %v18828_v61 = vpop.f32.mrb[152].mxu1 }
 0xba2   : > { %v7066_v34 = vpop.f32.mrb[153].mxu1 }
 0xba3   : > { %18870 = vmatprep.mubr.f32.mxu1 %v7066_v34  ;;  %v14086_v34 = vld [vmem:[%s30005_s2 + $0xed0] sm:$0xff] }
 0xba4   : > { %18871 = vmatmul.mubr.f32.vlgmr.msra.gmra.mrb[160].mxu1 %v18828_v61 }
 0xba5   : > { %22089 = vmatpush3.bf16.msra.mxu1 %v22086_v60  ;;  %v18831_v3 = vpop.f32.mrb[154].mxu1  ;;  %v23912_v60 = vld [vmem:[%s30004_s1 + $0x90] sm:$0xff] }
 0xba6   : > { %v7076_v12 = vpop.f32.mrb[155].mxu1  ;;  %22091 = vmatprep.subr.bf16.mxu1 %v22090_v21 }
 0xba7   : > { %18873 = vmatprep.mubr.f32.mxu1 %v7076_v12  ;;  %v14089_v12 = vld [vmem:[%s30005_s2 + $0xee8] sm:$0xff] }
 0xba8   : > { %18874 = vmatmul.mubr.f32.gmra.mrb[162].mxu1 %v18831_v3  ;;  %v14088_v3 = vld [vmem:[%s30005_s2 + $0xee0] sm:$0xff] }
 0xba9   : > { %22093 = vmatpush3.bf16.msra.mxu1 %v22090_v21  ;;  %v18834_v62 = vpop.f32.mrb[156].mxu1  ;;  %v14087_v21 = vld [vmem:[%s30005_s2 + $0xed8] sm:$0xff] }
 0xbaa   : > { %v7086_v30 = vpop.f32.mrb[157].mxu1  ;;  %22095 = vmatprep.subr.bf16.mxu1 %v22094_v24  ;;  %v22154_v16 = vpack.c.bf16 %v14087_v21, %v14086_v34  ;;  %v14106_v21 = vld [vmem:[%s30005_s2 + $0xf30] sm:$0xff] }
 0xbab   : > { %18876 = vmatprep.mubr.f32.mxu1 %v7086_v30  ;;  %v14100_v30 = vld [vmem:[%s30005_s2 + $0xf00] sm:$0xff] }
 0xbac   : > { %18877 = vmatmul.mubr.f32.gmra.mrb[164].mxu1 %v18834_v62  ;;  %v22162_v62 = vpack.c.bf16 %v14091_v46, %v14090_v53  ;;  %v14109_v53 = vld [vmem:[%s30005_s2 + $0xf48] sm:$0xff] }
 0xbad   : > { %22097 = vmatpush3.bf16.msra.mxu1 %v22094_v24  ;;  %v18837_v33 = vpop.f32.mrb[158].mxu1  ;;  %v22158_v24 = vpack.c.bf16 %v14089_v12, %v14088_v3 }
 0xbae   : > { %v7096_v9 = vpop.f32.mrb[159].mxu1  ;;  %22099 = vmatprep.subr.bf16.mxu1 %v22098_v40 }
 0xbaf   : > { %18879 = vmatprep.mubr.f32.mxu1 %v7096_v9 }
 0xbb0   : > { %18880 = vmatmul.mubr.f32.gmra.mrb[166].mxu1 %v18837_v33  ;;  %v7633_v33 = vpop.f32.mrb[105].mxu0 }
 0xbb1   : > { %22101 = vmatpush3.bf16.msra.mxu1 %v22098_v40  ;;  %18914 = vmatprep.mubr.f32.mxu1 %v6944_v26  ;;  %v14082_v26 = vld [vmem:[%s30005_s2 + $0xeb0] sm:$0xff]  ;;  %v14101_v40 = vld [vmem:[%s30005_s2 + $0xf08] sm:$0xff]  ;;  %v27647_v9 = vpop.f32.mrb[106].mxu0 }
 0xbb2   : > { %22103 = vmatprep.subr.bf16.mxu1 %v22102_v54  ;;  %v22182_v18 = vpack.c.bf16 %v14101_v40, %v14100_v30  ;;  %v14110_v40 = vld [vmem:[%s30005_s2 + $0xf50] sm:$0xff] }
 0xbb5   : > { %22105 = vmatpush3.bf16.msra.mxu1 %v22102_v54  ;;  %v27649_v54 = vpop.f32.mrb[107].mxu0 }
 0xbb6   : > { %22107 = vmatprep.subr.bf16.mxu1 %v22106_v19  ;;  %v27651_v10 = vpop.f32.mrb[108].mxu0 }
 0xbb7   : > { %v27653_v28 = vpop.f32.mrb[109].mxu0 }
 0xbb9   : > { %22109 = vmatpush3.bf16.msra.mxu1 %v22106_v19  ;;  %v27655_v19 = vpop.f32.mrb[110].mxu0 }
 0xbba   : > { %22111 = vmatprep.subr.bf16.mxu1 %v22110_v1  ;;  %v27657_v55 = vpop.f32.mrb[111].mxu0 }
 0xbbb   : > { %v27659_v20 = vpop.f32.mrb[112].mxu0 }
 0xbbd   : > { %22113 = vmatpush3.bf16.msra.mxu1 %v22110_v1  ;;  %v27661_v1 = vpop.f32.mrb[113].mxu0 }
 0xbbe   : > { %22115 = vmatprep.subr.bf16.mxu1 %v22114_v42  ;;  %v27663_v6 = vpop.f32.mrb[114].mxu0 }
 0xbbf   : > { %v27665_v8 = vpop.f32.mrb[115].mxu0 }
 0xbc1   : > { %22117 = vmatpush3.bf16.msra.mxu1 %v22114_v42  ;;  %v27667_v42 = vpop.f32.mrb[116].mxu0 }
 0xbc2   : > { %22119 = vmatprep.subr.bf16.mxu1 %v27081_v41 }
 0xbc4   : > { %18915 = vmatmul.mubr.f32.vlgmr.msra.gmra.mrb[160].mxu1 %v18800_v13  ;;  %v22142_v13 = vpack.c.bf16 %v14081_v17, %v14080_v47 }
 0xbc5   : > { %18917 = vmatprep.mubr.f32.mxu1 %v6954_v50  ;;  %22121 = vmatpush3.bf16.msra.mxu1 %v27081_v41  ;;  %v22134_v41 = vpack.c.bf16 %v14077_v25, %v14076_v11  ;;  %v23913_v50 = vld [vmem:[%s30004_s1 + $0x98] sm:$0xff]  ;;  %v27669_v11 = vpop.f32.mrb[117].mxu0 }
 0xbc6   : > { %22123 = vmatprep.subr.bf16.mxu1 %v27101_v5  ;;  %v27671_v25 = vpop.f32.mrb[118].mxu0 }
 0xbc8   : > { %18918 = vmatmul.mubr.f32.gmra.mrb[162].mxu1 %v27497_v56  ;;  %v14083_v56 = vld [vmem:[%s30005_s2 + $0xeb8] sm:$0xff] }
 0xbc9   : > { %18920 = vmatprep.mubr.f32.mxu1 %v6964_v23  ;;  %22125 = vmatpush3.bf16.msra.mxu1 %v27101_v5  ;;  %v14078_v5 = vld [vmem:[%s30005_s2 + $0xe90] sm:$0xff]  ;;  %v22146_v23 = vpack.c.bf16 %v14083_v56, %v14082_v26  ;;  %v14103_v56 = vld [vmem:[%s30005_s2 + $0xf18] sm:$0xff] }
 0xbca   : > { %22127 = vmatprep.subr.bf16.mxu1 %v27121_v48  ;;  %v14102_v26 = vld [vmem:[%s30005_s2 + $0xf10] sm:$0xff] }
 0xbcc   : > { %18921 = vmatmul.mubr.f32.gmra.mrb[164].mxu1 %v27499_v57  ;;  %v23914_v57 = vld [vmem:[%s30004_s1 + $0xa0] sm:$0xff] }
 0xbcd   : > { %18923 = vmatprep.mubr.f32.mxu1 %v27503_v45  ;;  %22129 = vmatpush3.bf16.msra.mxu1 %v27121_v48  ;;  %v22138_v48 = vpack.c.bf16 %v14079_v27, %v14078_v5  ;;  %v14085_v45 = vld [vmem:[%s30005_s2 + $0xec8] sm:$0xff] }
 0xbce   : > { %22131 = vmatprep.subr.bf16.mxu1 %v27137_v37 }
 0xbd0   : > { %18924 = vmatmul.mubr.f32.gmra.mrb[166].mxu1 %v27501_v49  ;;  %v14084_v49 = vld [vmem:[%s30005_s2 + $0xec0] sm:$0xff] }
 0xbd1   : > { %22133 = vmatpush3.bf16.msra.mxu1 %v27137_v37  ;;  %18942 = vmatprep.mubr.msk.f32.mxu1 %vm214_vm0, %v23910_v2  ;;  %v23911_v37 = vld [vmem:[%s30004_s1 + $0x88] sm:$0xff]  ;;  %v22150_v61 = vpack.c.bf16 %v14085_v45, %v14084_v49  ;;  %v22186_v49 = vpack.c.bf16 %v14103_v56, %v14102_v26  ;;  %v14104_v45 = vld [vmem:[%s30005_s2 + $0xf20] sm:$0xff] }
 0xbd2   : > { %22135 = vmatprep.subr.bf16.mxu1 %v22134_v41 }
 0xbd4   : > { %18943 = vmatmul.mubr.msk.f32.vlgmr.msra.gmra.mrb[168].mxu1 %vm214_vm0, %v23911_v37 }
 0xbd5   : > { %18945 = vmatprep.mubr.msk.f32.mxu1 %vm214_vm0, %v23912_v60  ;;  %22137 = vmatpush3.bf16.msra.mxu1 %v22134_v41  ;;  %v27673_v41 = vpop.f32.mrb[119].mxu0 }
 0xbd6   : > { %22139 = vmatprep.subr.bf16.mxu1 %v22138_v48  ;;  %v27675_v5 = vpop.f32.mrb[120].mxu0 }
 0xbd7   : > { %v27677_v27 = vpop.f32.mrb[121].mxu0 }
 0xbd8   : > { %18946 = vmatmul.mubr.msk.f32.gmra.mrb[170].mxu1 %vm214_vm0, %v23913_v50  ;;  %v27679_v2 = vpop.f32.mrb[122].mxu0 }
 0xbd9   : > { %18948 = vmatprep.mubr.msk.f32.mxu1 %vm214_vm0, %v23914_v57  ;;  %22141 = vmatpush3.bf16.msra.mxu1 %v22138_v48  ;;  %v27681_v48 = vpop.f32.mrb[123].mxu0 }
 0xbda   : > { %22143 = vmatprep.subr.bf16.mxu1 %v22142_v13  ;;  %v27683_v47 = vpop.f32.mrb[124].mxu0 }
 0xbdb   : > { %v27685_v17 = vpop.f32.mrb[125].mxu0 }
 0xbdc   : > { %18949 = vmatmul.mubr.msk.f32.gmra.mrb[172].mxu1 %vm214_vm0, %v23915_v36  ;;  %v27687_v37 = vpop.f32.mrb[126].mxu0  ;;  %v14105_v36 = vld [vmem:[%s30005_s2 + $0xf28] sm:$0xff] }
 0xbdd   : > { %18951 = vmatprep.mubr.msk.f32.mxu1 %vm214_vm0, %v23916_v22  ;;  %22145 = vmatpush3.bf16.msra.mxu1 %v22142_v13  ;;  %v27689_v60 = vpop.f32.mrb[127].mxu0 }
 0xbde   : > { %22147 = vmatprep.subr.bf16.mxu1 %v22146_v23  ;;  %v27691_v13 = vpop.f32.mrb[128].mxu0 }
 0xbdf   : > { %v27699_v57 = vpop.f32.mrb[129].mxu0 }
 0xbe0   : > { %18952 = vmatmul.mubr.msk.f32.gmra.mrb[174].mxu1 %vm214_vm0, %v23917_v38  ;;  %v14107_v38 = vld [vmem:[%s30005_s2 + $0xf38] sm:$0xff]  ;;  %v27725_v26 = vpop.f32.mrb[130].mxu0 }
 0xbe1   : > { %22149 = vmatpush3.bf16.msra.mxu1 %v22146_v23  ;;  %v22194_v3 = vpack.c.bf16 %v14107_v38, %v14106_v21 }
 0xbe2   : > { %22151 = vmatprep.subr.bf16.mxu1 %v22150_v61 }
 0xbe5   : > { %22153 = vmatpush3.bf16.msra.mxu1 %v22150_v61  ;;  %v22190_v61 = vpack.c.bf16 %v14105_v36, %v14104_v45 }
 0xbe6   : > { %22155 = vmatprep.subr.bf16.mxu1 %v22154_v16 }
 0xbe9   : > { %22157 = vmatpush3.bf16.msra.mxu1 %v22154_v16 }
 0xbea   : > { %22159 = vmatprep.subr.bf16.mxu1 %v22158_v24 }
 0xbed   : > { %22161 = vmatpush3.bf16.msra.mxu1 %v22158_v24  ;;  %v14108_v24 = vld [vmem:[%s30005_s2 + $0xf40] sm:$0xff] }
 0xbee   : > { %22163 = vmatprep.subr.bf16.mxu1 %v22162_v62 }
 0xbf1   : > { %22165 = vmatpush3.bf16.msra.mxu1 %v22162_v62  ;;  %v22198_v62 = vpack.c.bf16 %v14109_v53, %v14108_v24  ;;  %v14126_v53 = vld [vmem:[%s30005_s2 + $0xf90] sm:$0xff] }
 0xbf2   : > { %22183 = vmatprep.subr.bf16.mxu1 %v22182_v18 }
 0xca7   : > { %v18944_v50 = vpop.f32.mrb[168].mxu1 }
 0xca8   : > { %v7398_v23 = vpop.f32.mrb[169].mxu1 }
 0xca9   : > { %18986 = vmatprep.mubr.f32.mxu1 %v7398_v23  ;;  %v14112_v23 = vld [vmem:[%s30005_s2 + $0xf60] sm:$0xff] }
 0xcaa   : > { %18987 = vmatmul.mubr.f32.vlgmr.msra.gmra.mrb[160].mxu1 %v18944_v50  ;;  %v27727_v50 = vpop.f32.mrb[131].mxu0 }
 0xcab   : > { %22185 = vmatpush3.bf16.msra.mxu1 %v22182_v18  ;;  %v18947_v22 = vpop.f32.mrb[170].mxu1  ;;  %v14111_v18 = vld [vmem:[%s30005_s2 + $0xf58] sm:$0xff]  ;;  %v27735_v45 = vpop.f32.mrb[132].mxu0 }
 0xcac   : > { %22187 = vmatprep.subr.bf16.mxu1 %v22186_v49  ;;  %v7408_v34 = vpop.f32.mrb[171].mxu1  ;;  %v22202_v56 = vpack.c.bf16 %v14111_v18, %v14110_v40  ;;  %v14128_v40 = vld [vmem:[%s30005_s2 + $0xfa0] sm:$0xff]  ;;  %v14129_v18 = vld [vmem:[%s30005_s2 + $0xfa8] sm:$0xff] }
 0xcad   : > { %18989 = vmatprep.mubr.f32.mxu1 %v7408_v34 }
 0xcae   : > { %18990 = vmatmul.mubr.f32.gmra.mrb[162].mxu1 %v18947_v22  ;;  %v14114_v22 = vld [vmem:[%s30005_s2 + $0xf70] sm:$0xff] }
 0xcaf   : > { %22189 = vmatpush3.bf16.msra.mxu1 %v22186_v49  ;;  %v18950_v16 = vpop.f32.mrb[172].mxu1  ;;  %v14113_v49 = vld [vmem:[%s30005_s2 + $0xf68] sm:$0xff] }
 0xcb0   : > { %22191 = vmatprep.subr.bf16.mxu1 %v22190_v61  ;;  %v7418_v12 = vpop.f32.mrb[173].mxu1  ;;  %v22206_v36 = vpack.c.bf16 %v14113_v49, %v14112_v23  ;;  %v14130_v23 = vld [vmem:[%s30005_s2 + $0xfb0] sm:$0xff]  ;;  %v14131_v49 = vld [vmem:[%s30005_s2 + $0xfb8] sm:$0xff] }
 0xcb1   : > { %18992 = vmatprep.mubr.f32.mxu1 %v7418_v12 }
 0xcb2   : > { %18993 = vmatmul.mubr.f32.gmra.mrb[164].mxu1 %v18950_v16  ;;  %v14124_v16 = vld [vmem:[%s30005_s2 + $0xf80] sm:$0xff] }
 0xcb3   : > { %22193 = vmatpush3.bf16.msra.mxu1 %v22190_v61  ;;  %v18953_v46 = vpop.f32.mrb[174].mxu1  ;;  %v14115_v61 = vld [vmem:[%s30005_s2 + $0xf78] sm:$0xff] }
 0xcb4   : > { %22195 = vmatprep.subr.bf16.mxu1 %v22194_v3  ;;  %v7428_v30 = vpop.f32.mrb[175].mxu1  ;;  %v22210_v21 = vpack.c.bf16 %v14115_v61, %v14114_v22  ;;  %v14135_v22 = vld [vmem:[%s30005_s2 + $0xfd8] sm:$0xff] }
 0xcb5   : > { %18995 = vmatprep.mubr.f32.mxu1 %v7428_v30 }
 0xcb6   : > { %18996 = vmatmul.mubr.f32.gmra.mrb[166].mxu1 %v18953_v46  ;;  %v14127_v46 = vld [vmem:[%s30005_s2 + $0xf98] sm:$0xff] }
 0xcb7   : > { %22197 = vmatpush3.bf16.msra.mxu1 %v22194_v3  ;;  %19058 = vmatprep.mubr.f32.mxu1 %v7633_v33  ;;  %v27737_v33 = vpop.f32.mrb[133].mxu0  ;;  %v14125_v3 = vld [vmem:[%s30005_s2 + $0xf88] sm:$0xff]  ;;  %v22234_v30 = vpack.c.bf16 %v14127_v46, %v14126_v53  ;;  %v14139_v53 = vld [vmem:[%s30005_s2 + $0xff8] sm:$0xff] }
 0xcb8   : > { %22199 = vmatprep.subr.bf16.mxu1 %v22198_v62  ;;  %v27745_v34 = vpop.f32.mrb[134].mxu0  ;;  %v22230_v12 = vpack.c.bf16 %v14125_v3, %v14124_v16  ;;  %v14137_v16 = vld [vmem:[%s30005_s2 + $0xfe8] sm:$0xff] }
 0xcb9   : > { %v27747_v38 = vpop.f32.mrb[135].mxu0 }
 0xcba   : > { %v27755_v24 = vpop.f32.mrb[136].mxu0 }
 0xcbb   : > { %22201 = vmatpush3.bf16.msra.mxu1 %v22198_v62  ;;  %v27763_v62 = vpop.f32.mrb[137].mxu0 }
 0xcbc   : > { %22203 = vmatprep.subr.bf16.mxu1 %v22202_v56  ;;  %v27797_v61 = vpop.f32.mrb[138].mxu0 }
 0xcbf   : > { %22205 = vmatpush3.bf16.msra.mxu1 %v22202_v56  ;;  %v22238_v56 = vpack.c.bf16 %v14129_v18, %v14128_v40  ;;  %v14148_v18 = vld [vmem:[%s30005_s2 + $0x1000] sm:$0xff] }
 0xcc0   : > { %22207 = vmatprep.subr.bf16.mxu1 %v22206_v36 }
 0xcc3   : > { %22209 = vmatpush3.bf16.msra.mxu1 %v22206_v36  ;;  %v14133_v36 = vld [vmem:[%s30005_s2 + $0xfc8] sm:$0xff] }
 0xcc4   : > { %22211 = vmatprep.subr.bf16.mxu1 %v22210_v21 }
 0xcc7   : > { %22213 = vmatpush3.bf16.msra.mxu1 %v22210_v21  ;;  %v14136_v21 = vld [vmem:[%s30005_s2 + $0xfe0] sm:$0xff] }
 0xcc8   : > { %22231 = vmatprep.subr.bf16.mxu1 %v22230_v12 }
 0xcca   : > { %19059 = vmatmul.mubr.f32.vlgmr.msra.gmra.mrb[160].mxu1 %v27645_v4  ;;  %v22242_v4 = vpack.c.bf16 %v14131_v49, %v14130_v23 }
 0xccb   : > { %22233 = vmatpush3.bf16.msra.mxu1 %v22230_v12  ;;  %19061 = vmatprep.mubr.f32.mxu1 %v27649_v54  ;;  %v14132_v54 = vld [vmem:[%s30005_s2 + $0xfc0] sm:$0xff]  ;;  %v14138_v12 = vld [vmem:[%s30005_s2 + $0xff0] sm:$0xff] }
 0xccc   : > { %22235 = vmatprep.subr.bf16.mxu1 %v22234_v30 }
 0xcce   : > { %19062 = vmatmul.mubr.f32.gmra.mrb[162].mxu1 %v27647_v9  ;;  %v22246_v9 = vpack.c.bf16 %v14133_v36, %v14132_v54  ;;  %v14150_v54 = vld [vmem:[%s30005_s2 + $0x1010] sm:$0xff]  ;;  %v14151_v36 = vld [vmem:[%s30005_s2 + $0x1018] sm:$0xff] }
 0xccf   : > { %22237 = vmatpush3.bf16.msra.mxu1 %v22234_v30  ;;  %19064 = vmatprep.mubr.f32.mxu1 %v27653_v28  ;;  %v14134_v28 = vld [vmem:[%s30005_s2 + $0xfd0] sm:$0xff]  ;;  %v22258_v30 = vpack.c.bf16 %v14139_v53, %v14138_v12  ;;  %v14155_v53 = vld [vmem:[%s30005_s2 + $0x1038] sm:$0xff] }
 0xcd0   : > { %22239 = vmatprep.subr.bf16.mxu1 %v22238_v56  ;;  %v14154_v12 = vld [vmem:[%s30005_s2 + $0x1030] sm:$0xff] }
 0xcd2   : > { %19065 = vmatmul.mubr.f32.gmra.mrb[164].mxu1 %v27651_v10  ;;  %v22250_v10 = vpack.c.bf16 %v14135_v22, %v14134_v28  ;;  %v22282_v28 = vpack.c.bf16 %v14151_v36, %v14150_v54  ;;  %v14152_v22 = vld [vmem:[%s30005_s2 + $0x1020] sm:$0xff]  ;;  %v14159_v54 = vld [vmem:[%s30005_s2 + $0x1058] sm:$0xff]  ;;  %v14161_v36 = vld [vmem:[%s30005_s2 + $0x1068] sm:$0xff] }
 0xcd3   : > { %22241 = vmatpush3.bf16.msra.mxu1 %v22238_v56  ;;  %19067 = vmatprep.mubr.f32.mxu1 %v27657_v55  ;;  %v27799_v55 = vpop.f32.mrb[139].mxu0  ;;  %v14149_v56 = vld [vmem:[%s30005_s2 + $0x1008] sm:$0xff] }
 0xcd4   : > { %22243 = vmatprep.subr.bf16.mxu1 %v22242_v4  ;;  %v27807_v3 = vpop.f32.mrb[140].mxu0  ;;  %v22278_v49 = vpack.c.bf16 %v14149_v56, %v14148_v18  ;;  %v14156_v18 = vld [vmem:[%s30005_s2 + $0x1040] sm:$0xff]  ;;  %v14157_v56 = vld [vmem:[%s30005_s2 + $0x1048] sm:$0xff] }
 0xcd6   : > { %19068 = vmatmul.mubr.f32.gmra.mrb[166].mxu1 %v27655_v19  ;;  %v22254_v19 = vpack.c.bf16 %v14137_v16, %v14136_v21 }
 0xcd7   : > { %22245 = vmatpush3.bf16.msra.mxu1 %v22242_v4  ;;  %19130 = vmatprep.mubr.f32.mxu1 %v27661_v1  ;;  %v27809_v1 = vpop.f32.mrb[141].mxu0 }
 0xcd8   : > { %22247 = vmatprep.subr.bf16.mxu1 %v22246_v9  ;;  %v27817_v46 = vpop.f32.mrb[142].mxu0 }
 0xcd9   : > { %v27819_v40 = vpop.f32.mrb[143].mxu0 }
 0xcda   : > { %v27827_v23 = vpop.f32.mrb[144].mxu0 }
 0xcdb   : > { %22249 = vmatpush3.bf16.msra.mxu1 %v22246_v9  ;;  %v27829_v4 = vpop.f32.mrb[145].mxu0 }
 0xcdc   : > { %22251 = vmatprep.subr.bf16.mxu1 %v22250_v10  ;;  %v27837_v9 = vpop.f32.mrb[146].mxu0 }
 0xcdd   : > { %v27846_v21 = vpop.f32.mrb[147].mxu0 }
 0xcde   : > { %v27849_v16 = vpop.f32.mrb[148].mxu0 }
 0xcdf   : > { %22253 = vmatpush3.bf16.msra.mxu1 %v22250_v10  ;;  %v14153_v10 = vld [vmem:[%s30005_s2 + $0x1028] sm:$0xff] }
 0xce0   : > { %22255 = vmatprep.subr.bf16.mxu1 %v22254_v19 }
 0xce3   : > { %22257 = vmatpush3.bf16.msra.mxu1 %v22254_v19  ;;  %v22286_v19 = vpack.c.bf16 %v14153_v10, %v14152_v22  ;;  %v14172_v10 = vld [vmem:[%s30005_s2 + $0x1080] sm:$0xff] }
 0xce4   : > { %22259 = vmatprep.subr.bf16.mxu1 %v22258_v30 }
 0xce7   : > { %22261 = vmatpush3.bf16.msra.mxu1 %v22258_v30  ;;  %v22290_v30 = vpack.c.bf16 %v14155_v53, %v14154_v12  ;;  %v14174_v53 = vld [vmem:[%s30005_s2 + $0x1090] sm:$0xff] }
 0xce8   : > { %22279 = vmatprep.subr.bf16.mxu1 %v22278_v49 }
 0xcea   : > { %19131 = vmatmul.mubr.f32.vlgmr.msra.gmra.mrb[160].mxu1 %v27659_v20  ;;  %v27858_v20 = vpop.f32.mrb[149].mxu0 }
 0xceb   : > { %22281 = vmatpush3.bf16.msra.mxu1 %v22278_v49  ;;  %19133 = vmatprep.mubr.f32.mxu1 %v27665_v8  ;;  %v27861_v8 = vpop.f32.mrb[150].mxu0  ;;  %v14158_v49 = vld [vmem:[%s30005_s2 + $0x1050] sm:$0xff] }
 0xcec   : > { %22283 = vmatprep.subr.bf16.mxu1 %v22282_v28 }
 0xcee   : > { %19134 = vmatmul.mubr.f32.gmra.mrb[162].mxu1 %v27663_v6  ;;  %v27870_v6 = vpop.f32.mrb[151].mxu0 }
 0xcef   : > { %22285 = vmatpush3.bf16.msra.mxu1 %v22282_v28  ;;  %19136 = vmatprep.mubr.f32.mxu1 %v27669_v11  ;;  %v22294_v11 = vpack.c.bf16 %v14157_v56, %v14156_v18  ;;  %v14176_v56 = vld [vmem:[%s30005_s2 + $0x10a0] sm:$0xff] }
 0xcf0   : > { %22287 = vmatprep.subr.bf16.mxu1 %v22286_v19 }
 0xcf2   : > { %19137 = vmatmul.mubr.f32.gmra.mrb[164].mxu1 %v27667_v42  ;;  %v22298_v42 = vpack.c.bf16 %v14159_v54, %v14158_v49  ;;  %v14178_v54 = vld [vmem:[%s30005_s2 + $0x10b0] sm:$0xff] }
 0xcf3   : > { %22289 = vmatpush3.bf16.msra.mxu1 %v22286_v19  ;;  %19139 = vmatprep.mubr.f32.mxu1 %v27673_v41  ;;  %v14160_v41 = vld [vmem:[%s30005_s2 + $0x1060] sm:$0xff]  ;;  %v14173_v19 = vld [vmem:[%s30005_s2 + $0x1088] sm:$0xff] }
 0xcf4   : > { %22291 = vmatprep.subr.bf16.mxu1 %v22290_v30  ;;  %v22302_v28 = vpack.c.bf16 %v14161_v36, %v14160_v41  ;;  %v22326_v12 = vpack.c.bf16 %v14173_v19, %v14172_v10  ;;  %v14181_v41 = vld [vmem:[%s30005_s2 + $0x10c8] sm:$0xff]  ;;  %v14183_v36 = vld [vmem:[%s30005_s2 + $0x10d8] sm:$0xff] }
 0xcf5   : > { %v14197_v10 = vld [vmem:[%s30005_s2 + $0x1108] sm:$0xff] }
 0xcf6   : > { %19140 = vmatmul.mubr.f32.gmra.mrb[166].mxu1 %v27671_v25  ;;  %v14162_v25 = vld [vmem:[%s30005_s2 + $0x1070] sm:$0xff] }
 0xcf7   : > { %22293 = vmatpush3.bf16.msra.mxu1 %v22290_v30  ;;  %19202 = vmatprep.mubr.f32.mxu1 %v27677_v27  ;;  %v14163_v27 = vld [vmem:[%s30005_s2 + $0x1078] sm:$0xff] }
 0xcf8   : > { %22295 = vmatprep.subr.bf16.mxu1 %v22294_v11  ;;  %v22306_v22 = vpack.c.bf16 %v14163_v27, %v14162_v25  ;;  %v14175_v30 = vld [vmem:[%s30005_s2 + $0x1098] sm:$0xff] }
 0xcf9   : > { %v22330_v18 = vpack.c.bf16 %v14175_v30, %v14174_v53  ;;  %v14199_v53 = vld [vmem:[%s30005_s2 + $0x1118] sm:$0xff] }
 0xcfb   : > { %22297 = vmatpush3.bf16.msra.mxu1 %v22294_v11  ;;  %v14177_v11 = vld [vmem:[%s30005_s2 + $0x10a8] sm:$0xff] }
 0xcfc   : > { %22299 = vmatprep.subr.bf16.mxu1 %v22298_v42  ;;  %v22334_v49 = vpack.c.bf16 %v14177_v11, %v14176_v56  ;;  %v14201_v56 = vld [vmem:[%s30005_s2 + $0x1128] sm:$0xff] }
 0xcff   : > { %22301 = vmatpush3.bf16.msra.mxu1 %v22298_v42  ;;  %v14179_v42 = vld [vmem:[%s30005_s2 + $0x10b8] sm:$0xff] }
 0xd00   : > { %22303 = vmatprep.subr.bf16.mxu1 %v22302_v28 }
 0xd03   : > { %22305 = vmatpush3.bf16.msra.mxu1 %v22302_v28  ;;  %v14185_v28 = vld [vmem:[%s30005_s2 + $0x10e8] sm:$0xff] }
 0xd04   : > { %22307 = vmatprep.subr.bf16.mxu1 %v22306_v22 }
 0xd07   : > { %22309 = vmatpush3.bf16.msra.mxu1 %v22306_v22  ;;  %v14196_v22 = vld [vmem:[%s30005_s2 + $0x1100] sm:$0xff] }
 0xd08   : > { %22327 = vmatprep.subr.bf16.mxu1 %v22326_v12  ;;  %v22374_v19 = vpack.c.bf16 %v14197_v10, %v14196_v22  ;;  %v14226_v22 = vld [vmem:[%s30005_s2 + $0x11b0] sm:$0xff]  ;;  %v14227_v10 = vld [vmem:[%s30005_s2 + $0x11b8] sm:$0xff] }
 0xd0a   : > { %19203 = vmatmul.mubr.f32.vlgmr.msra.gmra.mrb[160].mxu1 %v27675_v5  ;;  %v22338_v5 = vpack.c.bf16 %v14179_v42, %v14178_v54  ;;  %v14203_v54 = vld [vmem:[%s30005_s2 + $0x1138] sm:$0xff]  ;;  %v14205_v42 = vld [vmem:[%s30005_s2 + $0x1148] sm:$0xff] }
 0xd0b   : > { %22329 = vmatpush3.bf16.msra.mxu1 %v22326_v12  ;;  %19205 = vmatprep.mubr.f32.mxu1 %v27681_v48  ;;  %v14180_v48 = vld [vmem:[%s30005_s2 + $0x10c0] sm:$0xff]  ;;  %v14198_v12 = vld [vmem:[%s30005_s2 + $0x1110] sm:$0xff] }
 0xd0c   : > { %22331 = vmatprep.subr.bf16.mxu1 %v22330_v18  ;;  %v22378_v30 = vpack.c.bf16 %v14199_v53, %v14198_v12  ;;  %v14231_v12 = vld [vmem:[%s30005_s2 + $0x11d8] sm:$0xff]  ;;  %v14233_v53 = vld [vmem:[%s30005_s2 + $0x11e8] sm:$0xff] }
 0xd0e   : > { %19206 = vmatmul.mubr.f32.gmra.mrb[162].mxu1 %v27679_v2  ;;  %v22342_v2 = vpack.c.bf16 %v14181_v41, %v14180_v48  ;;  %v14209_v48 = vld [vmem:[%s30005_s2 + $0x1168] sm:$0xff] }
 0xd0f   : > { %22333 = vmatpush3.bf16.msra.mxu1 %v22330_v18  ;;  %19208 = vmatprep.mubr.f32.mxu1 %v27685_v17  ;;  %v14182_v17 = vld [vmem:[%s30005_s2 + $0x10d0] sm:$0xff]  ;;  %v14200_v18 = vld [vmem:[%s30005_s2 + $0x1120] sm:$0xff] }
 0xd10   : > { %22335 = vmatprep.subr.bf16.mxu1 %v22334_v49  ;;  %v22382_v11 = vpack.c.bf16 %v14201_v56, %v14200_v18  ;;  %v23918_v56 = vld [vmem:[%s30004_s1 + $0xc0] sm:$0xff] }
 0xd12   : > { %19209 = vmatmul.mubr.f32.gmra.mrb[164].mxu1 %v27683_v47  ;;  %v22346_v47 = vpack.c.bf16 %v14183_v36, %v14182_v17  ;;  %v14220_v17 = vld [vmem:[%s30005_s2 + $0x1180] sm:$0xff]  ;;  %v14221_v36 = vld [vmem:[%s30005_s2 + $0x1188] sm:$0xff] }
 0xd13   : > { %22337 = vmatpush3.bf16.msra.mxu1 %v22334_v49  ;;  %19211 = vmatprep.mubr.f32.mxu1 %v27689_v60  ;;  %v14184_v60 = vld [vmem:[%s30005_s2 + $0x10e0] sm:$0xff]  ;;  %v14202_v49 = vld [vmem:[%s30005_s2 + $0x1130] sm:$0xff] }
 0xd14   : > { %22339 = vmatprep.subr.bf16.mxu1 %v22338_v5  ;;  %v22350_v25 = vpack.c.bf16 %v14185_v28, %v14184_v60  ;;  %v14222_v60 = vld [vmem:[%s30005_s2 + $0x1190] sm:$0xff]  ;;  %v14223_v28 = vld [vmem:[%s30005_s2 + $0x1198] sm:$0xff] }
 0xd16   : > { %19212 = vmatmul.mubr.f32.gmra.mrb[166].mxu1 %v27687_v37  ;;  %v14186_v37 = vld [vmem:[%s30005_s2 + $0x10f0] sm:$0xff] }
 0xd17   : > { %22341 = vmatpush3.bf16.msra.mxu1 %v22338_v5  ;;  %19274 = vmatprep.mubr.f32.mxu1 %v27699_v57  ;;  %v14187_v57 = vld [vmem:[%s30005_s2 + $0x10f8] sm:$0xff] }
 0xd18   : > { %22343 = vmatprep.subr.bf16.mxu1 %v22342_v2  ;;  %v22354_v27 = vpack.c.bf16 %v14187_v57, %v14186_v37  ;;  %v14207_v5 = vld [vmem:[%s30005_s2 + $0x1158] sm:$0xff]  ;;  %v14224_v37 = vld [vmem:[%s30005_s2 + $0x11a0] sm:$0xff]  ;;  %v14225_v57 = vld [vmem:[%s30005_s2 + $0x11a8] sm:$0xff] }
 0xd1b   : > { %22345 = vmatpush3.bf16.msra.mxu1 %v22342_v2 }
 0xd1c   : > { %22347 = vmatprep.subr.bf16.mxu1 %v22346_v47 }
 0xd1f   : > { %22349 = vmatpush3.bf16.msra.mxu1 %v22346_v47  ;;  %v22422_v47 = vpack.c.bf16 %v14221_v36, %v14220_v17 }
 0xd20   : > { %22351 = vmatprep.subr.bf16.mxu1 %v22350_v25 }
 0xd23   : > { %22353 = vmatpush3.bf16.msra.mxu1 %v22350_v25  ;;  %v22426_v25 = vpack.c.bf16 %v14223_v28, %v14222_v60 }
 0xd24   : > { %22355 = vmatprep.subr.bf16.mxu1 %v22354_v27 }
 0xd27   : > { %22357 = vmatpush3.bf16.msra.mxu1 %v22354_v27  ;;  %v22430_v27 = vpack.c.bf16 %v14225_v57, %v14224_v37  ;;  %v23919_v37 = vld [vmem:[%s30004_s1 + $0x8] sm:$0xff] }
 0xd28   : > { %22375 = vmatprep.subr.bf16.mxu1 %v22374_v19  ;;  %v23920_v57 = vld [vmem:[%s30004_s1 + $0xc8] sm:$0xff] }
 0xd2a   : > { %19275 = vmatmul.mubr.f32.vlgmr.msra.gmra.mrb[160].mxu1 %v27691_v13  ;;  %v22386_v13 = vpack.c.bf16 %v14203_v54, %v14202_v49 }
 0xd2b   : > { %22377 = vmatpush3.bf16.msra.mxu1 %v22374_v19  ;;  %19277 = vmatprep.mubr.f32.mxu1 %v27727_v50  ;;  %v14204_v50 = vld [vmem:[%s30005_s2 + $0x1140] sm:$0xff]  ;;  %v14229_v19 = vld [vmem:[%s30005_s2 + $0x11c8] sm:$0xff] }
 0xd2c   : > { %22379 = vmatprep.subr.bf16.mxu1 %v22378_v30 }
 0xd2e   : > { %19278 = vmatmul.mubr.f32.gmra.mrb[162].mxu1 %v27725_v26  ;;  %v22390_v26 = vpack.c.bf16 %v14205_v42, %v14204_v50 }
 0xd2f   : > { %22381 = vmatpush3.bf16.msra.mxu1 %v22378_v30  ;;  %19280 = vmatprep.mubr.f32.mxu1 %v27737_v33  ;;  %v14206_v33 = vld [vmem:[%s30005_s2 + $0x1150] sm:$0xff] }
 0xd30   : > { %22383 = vmatprep.subr.bf16.mxu1 %v22382_v11 }
 0xd32   : > { %19281 = vmatmul.mubr.f32.gmra.mrb[164].mxu1 %v27735_v45  ;;  %v22394_v45 = vpack.c.bf16 %v14207_v5, %v14206_v33 }
 0xd33   : > { %22385 = vmatpush3.bf16.msra.mxu1 %v22382_v11  ;;  %19283 = vmatprep.mubr.f32.mxu1 %v27747_v38  ;;  %v14208_v38 = vld [vmem:[%s30005_s2 + $0x1160] sm:$0xff] }
 0xd34   : > { %22387 = vmatprep.subr.bf16.mxu1 %v22386_v13  ;;  %v22398_v41 = vpack.c.bf16 %v14209_v48, %v14208_v38 }
 0xd36   : > { %19284 = vmatmul.mubr.f32.gmra.mrb[166].mxu1 %v27745_v34  ;;  %v14210_v34 = vld [vmem:[%s30005_s2 + $0x1170] sm:$0xff] }
 0xd37   : > { %22389 = vmatpush3.bf16.msra.mxu1 %v22386_v13  ;;  %19346 = vmatprep.mubr.f32.mxu1 %v27763_v62  ;;  %v14211_v62 = vld [vmem:[%s30005_s2 + $0x1178] sm:$0xff] }
 0xd38   : > { %22391 = vmatprep.subr.bf16.mxu1 %v22390_v26  ;;  %v22402_v2 = vpack.c.bf16 %v14211_v62, %v14210_v34 }
 0xd3b   : > { %22393 = vmatpush3.bf16.msra.mxu1 %v22390_v26 }
 0xd3c   : > { %22395 = vmatprep.subr.bf16.mxu1 %v22394_v45 }
 0xd3f   : > { %22397 = vmatpush3.bf16.msra.mxu1 %v22394_v45 }
 0xd40   : > { %22399 = vmatprep.subr.bf16.mxu1 %v22398_v41 }
 0xd43   : > { %22401 = vmatpush3.bf16.msra.mxu1 %v22398_v41 }
 0xd44   : > { %22403 = vmatprep.subr.bf16.mxu1 %v22402_v2 }
 0xd47   : > { %22405 = vmatpush3.bf16.msra.mxu1 %v22402_v2 }
 0xd48   : > { %22423 = vmatprep.subr.bf16.mxu1 %v22422_v47 }
 0xd4a   : > { %19347 = vmatmul.mubr.f32.vlgmr.msra.gmra.mrb[160].mxu1 %v27755_v24  ;;  %v22434_v24 = vpack.c.bf16 %v14227_v10, %v14226_v22  ;;  %v23922_v22 = vld [vmem:[%s30004_s1 + $0xd0] sm:$0xff]  ;;  %v23923_v10 = vld [vmem:[%s30004_s1 + $0x18] sm:$0xff] }
 0xd4b   : > { %22425 = vmatpush3.bf16.msra.mxu1 %v22422_v47  ;;  %19349 = vmatprep.mubr.f32.mxu1 %v27799_v55  ;;  %v14228_v55 = vld [vmem:[%s30005_s2 + $0x11c0] sm:$0xff] }
 0xd4c   : > { %22427 = vmatprep.subr.bf16.mxu1 %v22426_v25 }
 0xd4e   : > { %19350 = vmatmul.mubr.f32.gmra.mrb[162].mxu1 %v27797_v61  ;;  %v22438_v61 = vpack.c.bf16 %v14229_v19, %v14228_v55  ;;  %v23925_v55 = vld [vmem:[%s30004_s1 + $0x20] sm:$0xff] }
 0xd4f   : > { %22429 = vmatpush3.bf16.msra.mxu1 %v22426_v25  ;;  %19352 = vmatprep.mubr.f32.mxu1 %v27809_v1  ;;  %v14230_v1 = vld [vmem:[%s30005_s2 + $0x11d0] sm:$0xff]  ;;  %v23926_v19 = vld [vmem:[%s30004_s1 + $0xe0] sm:$0xff] }
 0xd50   : > { %22431 = vmatprep.subr.bf16.mxu1 %v22430_v27 }
 0xd52   : > { %19353 = vmatmul.mubr.f32.gmra.mrb[164].mxu1 %v27807_v3  ;;  %v22442_v3 = vpack.c.bf16 %v14231_v12, %v14230_v1  ;;  %v23928_v1 = vld [vmem:[%s30004_s1 + $0xe8] sm:$0xff]  ;;  %v14270_v12 = vld [vmem:[%s30005_s2 + $0x1280] sm:$0xff] }
 0xd53   : > { %22433 = vmatpush3.bf16.msra.mxu1 %v22430_v27  ;;  %19355 = vmatprep.mubr.f32.mxu1 %v27819_v40  ;;  %v14232_v40 = vld [vmem:[%s30005_s2 + $0x11e0] sm:$0xff]  ;;  %v23921_v27 = vld [vmem:[%s30004_s1 + $0x10] sm:$0xff] }
 0xd54   : > { %22435 = vmatprep.subr.bf16.mxu1 %v22434_v24  ;;  %v22446_v30 = vpack.c.bf16 %v14233_v53, %v14232_v40  ;;  %v23929_v40 = vld [vmem:[%s30004_s1 + $0x30] sm:$0xff] }
 0xd55   : > { %v23930_v53 = vld [vmem:[%s30004_s1 + $0xf0] sm:$0xff] }
 0xd56   : > { %19356 = vmatmul.mubr.f32.gmra.mrb[166].mxu1 %v27817_v46  ;;  %v14234_v46 = vld [vmem:[%s30005_s2 + $0x11f0] sm:$0xff] }
 0xd57   : > { %22437 = vmatpush3.bf16.msra.mxu1 %v22434_v24  ;;  %19418 = vmatprep.mubr.f32.mxu1 %v27829_v4  ;;  %v14235_v4 = vld [vmem:[%s30005_s2 + $0x11f8] sm:$0xff] }
 0xd58   : > { %22439 = vmatprep.subr.bf16.mxu1 %v22438_v61  ;;  %v22450_v18 = vpack.c.bf16 %v14235_v4, %v14234_v46  ;;  %v23924_v24 = vld [vmem:[%s30004_s1 + $0xd8] sm:$0xff] }
 0xd59   : > { %v23931_v46 = vld [vmem:[%s30004_s1 + $0x38] sm:$0xff] }
 0xd5a   : > { %v23932_v4 = vld [vmem:[%s30004_s1 + $0xf8] sm:$0xff] }
 0xd5b   : > { %22441 = vmatpush3.bf16.msra.mxu1 %v22438_v61  ;;  %v23927_v61 = vld [vmem:[%s30004_s1 + $0x28] sm:$0xff] }
 0xd5c   : > { %22443 = vmatprep.subr.bf16.mxu1 %v22442_v3 }
 0xd5f   : > { %22445 = vmatpush3.bf16.msra.mxu1 %v22442_v3  ;;  %v14271_v3 = vld [vmem:[%s30005_s2 + $0x1288] sm:$0xff] }
 0xd60   : > { %22447 = vmatprep.subr.bf16.mxu1 %v22446_v30 }
 0xd63   : > { %22449 = vmatpush3.bf16.msra.mxu1 %v22446_v30  ;;  %v22486_v30 = vpack.c.bf16 %v14271_v3, %v14270_v12  ;;  %v23961_v12 = vld [vmem:[%s30004_s1 + $0x1a0] sm:$0xff]  ;;  %v23962_v3 = vld [vmem:[%s30004_s1 + $0x1a8] sm:$0xff] }
 0xd64   : > { %22451 = vmatprep.subr.bf16.mxu1 %v22450_v18 }
 0xd67   : > { %22453 = vmatpush3.bf16.msra.mxu1 %v22450_v18  ;;  %v23933_v18 = vld [vmem:[%s30004_s1 + $0x40] sm:$0xff] }
 0xd6a   : > { %19419 = vmatmul.mubr.f32.vlgmr.msra.gmra.mrb[160].mxu1 %v27827_v23  ;;  %v14237_v23 = vld [vmem:[%s30006_s3 + $0x3] ss:$0 sm:$0xff] }
 0xd6b   : > { %19421 = vmatprep.mubr.f32.mxu1 %v27846_v21 }
 0xd6e   : > { %19422 = vmatmul.mubr.f32.gmra.mrb[162].mxu1 %v27837_v9 }
 0xd6f   : > { %19424 = vmatprep.mubr.f32.mxu1 %v27858_v20 }
 0xd72   : > { %19425 = vmatmul.mubr.f32.gmra.mrb[164].mxu1 %v27849_v16 }
 0xd73   : > { %19427 = vmatprep.mubr.f32.mxu1 %v27870_v6 }
 0xd76   : > { %19428 = vmatmul.mubr.f32.gmra.mrb[166].mxu1 %v27861_v8 }
 0xd77   : > { %19662 = vmatprep.mubr.msk.f32.mxu1 %vm214_vm0, %v23918_v56  ;;  %v23934_v56 = vld [vmem:[%s30004_s1 + $0x100] sm:$0xff] }
 0xe3d   : > { %v19420_v21 = vpop.f32.mrb[160].mxu1 }
 0xe3e   : > { %v8986_v9 = vadd.f32 %v19420_v21, %v14237_v23  ;;  %v8930_v11 = vpop.f32.mrb[161].mxu1  ;;  %v23936_v21 = vld [vmem:[%s30004_s1 + $0x108] sm:$0xff] }
 0xe3f   : > { %v8985_v20 = vadd.f32 %v14237_v23, %v8930_v11  ;;  %v14273_v11 = vld [vmem:[%s30005_s2 + $0x1298] sm:$0xff] }
 0xe40   : > { %v8994_v49 = vmax.f32 %v8986_v9, 0.0  ;;  %v14272_v9 = vld [vmem:[%s30005_s2 + $0x1290] sm:$0xff] }
 0xe41   : > { %v8993_v16 = vmax.f32 %v8985_v20, 0.0  ;;  %v19423_v54 = vpop.f32.mrb[162].mxu1  ;;  %v23937_v20 = vld [vmem:[%s30004_s1 + $0x50] sm:$0xff] }
 0xe42   : > { %v8988_v6 = vadd.f32 %v19423_v54, %v14237_v23  ;;  %v8940_v13 = vpop.f32.mrb[163].mxu1  ;;  %v23939_v54 = vld [vmem:[%s30004_s1 + $0x58] sm:$0xff] }
 0xe43   : > { %v28075_v8 = vpack.c.bf16 %v8994_v49, %v8993_v16  ;;  %v8987_v50 = vadd.f32 %v14237_v23, %v8940_v13  ;;  %v23938_v49 = vld [vmem:[%s30004_s1 + $0x110] sm:$0xff]  ;;  %v22490_v16 = vpack.c.bf16 %v14273_v11, %v14272_v9  ;;  %v23941_v13 = vld [vmem:[%s30004_s1 + $0x60] sm:$0xff]  ;;  %v23972_v9 = vld [vmem:[%s30004_s1 + $0x1f8] sm:$0xff] }
 0xe44   : > { %v8996_v42 = vmax.f32 %v8988_v6, 0.0  ;;  %v23940_v6 = vld [vmem:[%s30004_s1 + $0x118] sm:$0xff]  ;;  %v23973_v11 = vld [vmem:[%s30004_s1 + $0x200] sm:$0xff] }
 0xe45   : > { %v8995_v26 = vmax.f32 %v8987_v50, 0.0  ;;  %v19426_v33 = vpop.f32.mrb[164].mxu1  ;;  %22455 = vmatprep.subr.bf16.mxu0 %v28075_v8  ;;  %22599 = vmatprep.subr.bf16.mxu1 %v28075_v8  ;;  %v23942_v50 = vld [vmem:[%s30004_s1 + $0x120] sm:$0xff] }
 0xe46   : > { %v8990_v5 = vadd.f32 %v19426_v33, %v14237_v23  ;;  %v8950_v45 = vpop.f32.mrb[165].mxu1  ;;  %22457 = vmatpush3.bf16.msra.mxu0 %v28075_v8  ;;  %22601 = vmatpush3.bf16.msra.mxu1 %v28075_v8  ;;  %v23943_v33 = vld [vmem:[%s30004_s1 + $0x68] sm:$0xff] }
 0xe47   : > { %v28081_v38 = vpack.c.bf16 %v8996_v42, %v8995_v26  ;;  %v8989_v48 = vadd.f32 %v14237_v23, %v8950_v45  ;;  %v14274_v42 = vld [vmem:[%s30005_s2 + $0x12a0] sm:$0xff]  ;;  %v14275_v26 = vld [vmem:[%s30005_s2 + $0x12a8] sm:$0xff]  ;;  %v23945_v45 = vld [vmem:[%s30004_s1 + $0x70] sm:$0xff] }
 0xe48   : > { %v8998_v41 = vmax.f32 %v8990_v5, 0.0  ;;  %v23944_v5 = vld [vmem:[%s30004_s1 + $0x128] sm:$0xff] }
 0xe49   : > { %v8997_v34 = vmax.f32 %v8989_v48, 0.0  ;;  %v19429_v62 = vpop.f32.mrb[166].mxu1  ;;  %22459 = vmatprep.subr.bf16.mxu0 %v28081_v38  ;;  %22603 = vmatprep.subr.bf16.mxu1 %v28081_v38  ;;  %v14276_v48 = vld [vmem:[%s30005_s2 + $0x12b0] sm:$0xff] }
 0xe4a   : > { %v8992_v2 = vadd.f32 %v19429_v62, %v14237_v23  ;;  %v8960_v17 = vpop.f32.mrb[167].mxu1  ;;  %22461 = vmatpush3.bf16.msra.mxu0 %v28081_v38  ;;  %22605 = vmatpush3.bf16.msra.mxu1 %v28081_v38  ;;  %v22494_v62 = vpack.c.bf16 %v14275_v26, %v14274_v42  ;;  %v14280_v42 = vld [vmem:[%s30005_s2 + $0x12d0] sm:$0xff]  ;;  %v14281_v26 = vld [vmem:[%s30005_s2 + $0x12d8] sm:$0xff] }
 0xe4b   : > { %v28087_v36 = vpack.c.bf16 %v8998_v41, %v8997_v34  ;;  %v8991_v47 = vadd.f32 %v14237_v23, %v8960_v17  ;;  %v23935_v23 = vld [vmem:[%s30004_s1 + $0x48] sm:$0xff]  ;;  %v14277_v41 = vld [vmem:[%s30005_s2 + $0x12b8] sm:$0xff]  ;;  %v23946_v34 = vld [vmem:[%s30004_s1 + $0x130] sm:$0xff] }
 0xe4c   : > { %v9000_v60 = vmax.f32 %v8992_v2, 0.0  ;;  %v23947_v2 = vld [vmem:[%s30004_s1 + $0x78] sm:$0xff] }
 0xe4d   : > { %v8999_v28 = vmax.f32 %v8991_v47, 0.0  ;;  %22463 = vmatprep.subr.bf16.mxu0 %v28087_v36  ;;  %22607 = vmatprep.subr.bf16.mxu1 %v28087_v36  ;;  %v23948_v17 = vld [vmem:[%s30004_s1 + $0x138] sm:$0xff]  ;;  %v22498_v47 = vpack.c.bf16 %v14277_v41, %v14276_v48  ;;  %v14282_v48 = vld [vmem:[%s30005_s2 + $0x12e0] sm:$0xff]  ;;  %v14283_v41 = vld [vmem:[%s30005_s2 + $0x12e8] sm:$0xff] }
 0xe4e   : > { %22465 = vmatpush3.bf16.msra.mxu0 %v28087_v36  ;;  %22609 = vmatpush3.bf16.msra.mxu1 %v28087_v36 }
 0xe4f   : > { %v28093_v25 = vpack.c.bf16 %v9000_v60, %v8999_v28  ;;  %v23949_v60 = vld [vmem:[%s30004_s1 + $0x140] sm:$0xff]  ;;  %v23950_v28 = vld [vmem:[%s30004_s1 + $0x148] sm:$0xff] }
 0xe51   : > { %22467 = vmatprep.subr.bf16.mxu0 %v28093_v25  ;;  %22611 = vmatprep.subr.bf16.mxu1 %v28093_v25 }
 0xe52   : > { %22469 = vmatpush3.bf16.msra.mxu0 %v28093_v25  ;;  %22613 = vmatpush3.bf16.msra.mxu1 %v28093_v25 }
 0xe53   : > { %22471 = vmatprep.subr.bf16.mxu0 %v28075_v8  ;;  %22647 = vmatprep.subr.bf16.mxu1 %v28075_v8 }
 0xe55   : > { %19447 = vmatmul.mubr.msk.f32.vlgmr.msra.gmra.mrb[152].mxu0 %vm214_vm0, %v23919_v37  ;;  %19663 = vmatmul.mubr.msk.f32.vlgmr.msra.gmra.mrb[176].mxu1 %vm214_vm0, %v23920_v57  ;;  %v23951_v37 = vld [vmem:[%s30004_s1 + $0x150] sm:$0xff]  ;;  %v23952_v57 = vld [vmem:[%s30004_s1 + $0x158] sm:$0xff] }
 0xe56   : > { %22473 = vmatpush3.bf16.msra.mxu0 %v28075_v8  ;;  %22649 = vmatpush3.bf16.msra.mxu1 %v28075_v8 }
 0xe57   : > { %22475 = vmatprep.subr.bf16.mxu0 %v28081_v38  ;;  %22651 = vmatprep.subr.bf16.mxu1 %v28081_v38 }
 0xe58   : > { %19449 = vmatprep.mubr.msk.f32.mxu0 %vm214_vm0, %v23921_v27  ;;  %19665 = vmatprep.mubr.msk.f32.mxu1 %vm214_vm0, %v23922_v22  ;;  %v23953_v27 = vld [vmem:[%s30004_s1 + $0x160] sm:$0xff]  ;;  %v23954_v22 = vld [vmem:[%s30004_s1 + $0x168] sm:$0xff] }
 0xe59   : > { %19450 = vmatmul.mubr.msk.f32.gmra.mrb[154].mxu0 %vm214_vm0, %v23923_v10  ;;  %19666 = vmatmul.mubr.msk.f32.gmra.mrb[178].mxu1 %vm214_vm0, %v23924_v24  ;;  %v23955_v10 = vld [vmem:[%s30004_s1 + $0x170] sm:$0xff]  ;;  %v23956_v24 = vld [vmem:[%s30004_s1 + $0x178] sm:$0xff] }
 0xe5a   : > { %22477 = vmatpush3.bf16.msra.mxu0 %v28081_v38  ;;  %22653 = vmatpush3.bf16.msra.mxu1 %v28081_v38 }
 0xe5b   : > { %22479 = vmatprep.subr.bf16.mxu0 %v28087_v36  ;;  %22655 = vmatprep.subr.bf16.mxu1 %v28087_v36 }
 0xe5c   : > { %19452 = vmatprep.mubr.msk.f32.mxu0 %vm214_vm0, %v23925_v55  ;;  %19668 = vmatprep.mubr.msk.f32.mxu1 %vm214_vm0, %v23926_v19  ;;  %v23957_v55 = vld [vmem:[%s30004_s1 + $0x180] sm:$0xff]  ;;  %v23958_v19 = vld [vmem:[%s30004_s1 + $0x188] sm:$0xff] }
 0xe5d   : > { %19453 = vmatmul.mubr.msk.f32.gmra.mrb[156].mxu0 %vm214_vm0, %v23927_v61  ;;  %19669 = vmatmul.mubr.msk.f32.gmra.mrb[180].mxu1 %vm214_vm0, %v23928_v1  ;;  %v23959_v61 = vld [vmem:[%s30004_s1 + $0x190] sm:$0xff]  ;;  %v23960_v1 = vld [vmem:[%s30004_s1 + $0x198] sm:$0xff] }
 0xe5e   : > { %22481 = vmatpush3.bf16.msra.mxu0 %v28087_v36  ;;  %22657 = vmatpush3.bf16.msra.mxu1 %v28087_v36 }
 0xe5f   : > { %22483 = vmatprep.subr.bf16.mxu0 %v28093_v25  ;;  %22659 = vmatprep.subr.bf16.mxu1 %v28093_v25 }
 0xe60   : > { %19455 = vmatprep.mubr.msk.f32.mxu0 %vm214_vm0, %v23929_v40  ;;  %19671 = vmatprep.mubr.msk.f32.mxu1 %vm214_vm0, %v23930_v53  ;;  %v23963_v40 = vld [vmem:[%s30004_s1 + $0x1b0] sm:$0xff]  ;;  %v23964_v53 = vld [vmem:[%s30004_s1 + $0x1b8] sm:$0xff] }
 0xe61   : > { %19456 = vmatmul.mubr.msk.f32.gmra.mrb[158].mxu0 %vm214_vm0, %v23931_v46  ;;  %19672 = vmatmul.mubr.msk.f32.gmra.mrb[182].mxu1 %vm214_vm0, %v23932_v4  ;;  %v23966_v46 = vld [vmem:[%s30004_s1 + $0x1c8] sm:$0xff]  ;;  %v23967_v4 = vld [vmem:[%s30004_s1 + $0x1d0] sm:$0xff] }
 0xe62   : > { %22485 = vmatpush3.bf16.msra.mxu0 %v28093_v25  ;;  %22661 = vmatpush3.bf16.msra.mxu1 %v28093_v25 }
 0xe63   : > { %22695 = vmatprep.subr.bf16.mxu1 %v28075_v8  ;;  %19474 = vmatprep.mubr.msk.f32.mxu0 %vm214_vm0, %v23933_v18  ;;  %v23968_v18 = vld [vmem:[%s30004_s1 + $0x1d8] sm:$0xff] }
 0xe64   : > { %19734 = vmatprep.mubr.msk.f32.mxu1 %vm214_vm0, %v23934_v56  ;;  %22487 = vmatprep.subr.bf16.mxu0 %v22486_v30  ;;  %v23969_v56 = vld [vmem:[%s30004_s1 + $0x1e0] sm:$0xff] }
 0xe65   : > { %19475 = vmatmul.mubr.msk.f32.vlgmr.msra.gmra.mrb[160].mxu0 %vm214_vm0, %v23935_v23  ;;  %19735 = vmatmul.mubr.msk.f32.vlgmr.msra.gmra.mrb[184].mxu1 %vm214_vm0, %v23936_v21  ;;  %v23970_v23 = vld [vmem:[%s30004_s1 + $0x1e8] sm:$0xff]  ;;  %v23971_v21 = vld [vmem:[%s30004_s1 + $0x1f0] sm:$0xff] }
 0xe66   : > { %22697 = vmatpush3.bf16.msra.mxu1 %v28075_v8  ;;  %19477 = vmatprep.mubr.msk.f32.mxu0 %vm214_vm0, %v23937_v20  ;;  %v23974_v20 = vld [vmem:[%s30004_s1 + $0x208] sm:$0xff] }
 0xe67   : > { %22699 = vmatprep.subr.bf16.mxu1 %v28081_v38  ;;  %19737 = vmatprep.mubr.msk.f32.mxu1 %vm214_vm0, %v23938_v49  ;;  %v23975_v49 = vld [vmem:[%s30004_s1 + $0x210] sm:$0xff] }
 0xe68   : > { %22489 = vmatpush3.bf16.msra.mxu0 %v22486_v30  ;;  %v23965_v30 = vld [vmem:[%s30004_s1 + $0x1c0] sm:$0xff] }
 0xe69   : > { %19478 = vmatmul.mubr.msk.f32.gmra.mrb[162].mxu0 %vm214_vm0, %v23939_v54  ;;  %19738 = vmatmul.mubr.msk.f32.gmra.mrb[186].mxu1 %vm214_vm0, %v23940_v6  ;;  %v14279_v54 = vld [vmem:[%s30005_s2 + $0x12c8] sm:$0xff] }
 0xe6a   : > { %22701 = vmatpush3.bf16.msra.mxu1 %v28081_v38  ;;  %19480 = vmatprep.mubr.msk.f32.mxu0 %vm214_vm0, %v23941_v13  ;;  %v23976_v13 = vld [vmem:[%s30004_s1 + $0x218] sm:$0xff] }
 0xe6b   : > { %22703 = vmatprep.subr.bf16.mxu1 %v28087_v36  ;;  %19740 = vmatprep.mubr.msk.f32.mxu1 %vm214_vm0, %v23942_v50  ;;  %v23977_v50 = vld [vmem:[%s30004_s1 + $0x220] sm:$0xff] }
 0xe6c   : > { %22491 = vmatprep.subr.bf16.mxu0 %v22490_v16 }
 0xe6d   : > { %19481 = vmatmul.mubr.msk.f32.gmra.mrb[164].mxu0 %vm214_vm0, %v23943_v33  ;;  %19741 = vmatmul.mubr.msk.f32.gmra.mrb[188].mxu1 %vm214_vm0, %v23944_v5  ;;  %v22506_v33 = vpack.c.bf16 %v14281_v26, %v14280_v42  ;;  %v23978_v5 = vld [vmem:[%s30004_s1 + $0x228] sm:$0xff]  ;;  %v14256_v42 = vld [vmem:[%s30005_s2 + $0x1250] sm:$0xff]  ;;  %v14257_v26 = vld [vmem:[%s30005_s2 + $0x1258] sm:$0xff] }
 0xe6e   : > { %22705 = vmatpush3.bf16.msra.mxu1 %v28087_v36  ;;  %19483 = vmatprep.mubr.msk.f32.mxu0 %vm214_vm0, %v23945_v45  ;;  %v23979_v45 = vld [vmem:[%s30004_s1 + $0x230] sm:$0xff] }
 0xe6f   : > { %22707 = vmatprep.subr.bf16.mxu1 %v28093_v25  ;;  %19743 = vmatprep.mubr.msk.f32.mxu1 %vm214_vm0, %v23946_v34  ;;  %v22510_v34 = vpack.c.bf16 %v14283_v41, %v14282_v48  ;;  %v14260_v41 = vld [vmem:[%s30005_s2 + $0x1270] sm:$0xff] }
 0xe70   : > { %22493 = vmatpush3.bf16.msra.mxu0 %v22490_v16  ;;  %v14278_v16 = vld [vmem:[%s30005_s2 + $0x12c0] sm:$0xff] }
 0xe71   : > { %19484 = vmatmul.mubr.msk.f32.gmra.mrb[166].mxu0 %vm214_vm0, %v23947_v2  ;;  %19744 = vmatmul.mubr.msk.f32.gmra.mrb[190].mxu1 %vm214_vm0, %v23948_v17  ;;  %v22502_v6 = vpack.c.bf16 %v14279_v54, %v14278_v16  ;;  %v23981_v2 = vld [vmem:[%s30004_s1] sm:$0xff]  ;;  %v14284_v17 = vld [vmem:[%s30005_s2 + $0x12f0] sm:$0xff]  ;;  %v14255_v54 = vld [vmem:[%s30005_s2 + $0x1248] sm:$0xff] }
 0xe72   : > { %22709 = vmatpush3.bf16.msra.mxu1 %v28093_v25  ;;  %19806 = vmatprep.mubr.msk.f32.mxu1 %vm214_vm0, %v23949_v60  ;;  %v14254_v16 = vld [vmem:[%s30005_s2 + $0x1240] sm:$0xff] }
 0xe73   : > { %22743 = vmatprep.subr.bf16.mxu1 %v28075_v8  ;;  %22495 = vmatprep.subr.bf16.mxu0 %v22494_v62 }
 0xe74   : > { %22497 = vmatpush3.bf16.msra.mxu0 %v22494_v62  ;;  %v23980_v62 = vld [vmem:[%s30004_s1 + $0x238] sm:$0xff] }
 0xe75   : > { %19807 = vmatmul.mubr.msk.f32.vlgmr.msra.gmra.mrb[192].mxu1 %vm214_vm0, %v23950_v28  ;;  %22499 = vmatprep.subr.bf16.mxu0 %v22498_v47  ;;  %v14246_v28 = vld [vmem:[%s30005_s2 + $0x1200] sm:$0xff] }
 0xe76   : > { %22745 = vmatpush3.bf16.msra.mxu1 %v28075_v8  ;;  %19809 = vmatprep.mubr.msk.f32.mxu1 %vm214_vm0, %v23951_v37  ;;  %v14247_v37 = vld [vmem:[%s30005_s2 + $0x1208] sm:$0xff] }
 0xe77   : > { %22747 = vmatprep.subr.bf16.mxu1 %v28081_v38 }
 0xe78   : > { %22501 = vmatpush3.bf16.msra.mxu0 %v22498_v47  ;;  %v14285_v47 = vld [vmem:[%s30005_s2 + $0x12f8] sm:$0xff] }
 0xe79   : > { %19810 = vmatmul.mubr.msk.f32.gmra.mrb[194].mxu1 %vm214_vm0, %v23952_v57  ;;  %22503 = vmatprep.subr.bf16.mxu0 %v22502_v6  ;;  %v22514_v60 = vpack.c.bf16 %v14285_v47, %v14284_v17  ;;  %v22518_v57 = vpack.c.bf16 %v14247_v37, %v14246_v28  ;;  %v14295_v17 = vld [vmem:[%s30005_s2 + $0x1308] sm:$0xff]  ;;  %v14297_v47 = vld [vmem:[%s30005_s2 + $0x1318] sm:$0xff]  ;;  %v14298_v28 = vld [vmem:[%s30005_s2 + $0x1320] sm:$0xff] }
 0xe7a   : > { %22749 = vmatpush3.bf16.msra.mxu1 %v28081_v38  ;;  %19812 = vmatprep.mubr.msk.f32.mxu1 %vm214_vm0, %v23953_v27  ;;  %v14299_v37 = vld [vmem:[%s30005_s2 + $0x1328] sm:$0xff] }
 0xe7b   : > { %22751 = vmatprep.subr.bf16.mxu1 %v28087_v36 }
 0xe7c   : > { %22505 = vmatpush3.bf16.msra.mxu0 %v22502_v6 }
 0xe7d   : > { %19813 = vmatmul.mubr.msk.f32.gmra.mrb[196].mxu1 %vm214_vm0, %v23954_v22  ;;  %22507 = vmatprep.subr.bf16.mxu0 %v22506_v33 }
 0xe7e   : > { %22753 = vmatpush3.bf16.msra.mxu1 %v28087_v36  ;;  %19815 = vmatprep.mubr.msk.f32.mxu1 %vm214_vm0, %v23955_v10 }
 0xe7f   : > { %22755 = vmatprep.subr.bf16.mxu1 %v28093_v25 }
 0xe80   : > { %22509 = vmatpush3.bf16.msra.mxu0 %v22506_v33  ;;  %v22538_v33 = vpack.c.bf16 %v14257_v26, %v14256_v42 }
 0xe81   : > { %19816 = vmatmul.mubr.msk.f32.gmra.mrb[198].mxu1 %vm214_vm0, %v23956_v24  ;;  %22511 = vmatprep.subr.bf16.mxu0 %v22510_v34 }
 0xe82   : > { %22757 = vmatpush3.bf16.msra.mxu1 %v28093_v25  ;;  %19878 = vmatprep.mubr.msk.f32.mxu1 %vm214_vm0, %v23957_v55 }
 0xe83   : > { %22791 = vmatprep.subr.bf16.mxu1 %v28075_v8 }
 0xe84   : > { %22513 = vmatpush3.bf16.msra.mxu0 %v22510_v34  ;;  %v14261_v34 = vld [vmem:[%s30005_s2 + $0x1278] sm:$0xff] }
 0xe85   : > { %19879 = vmatmul.mubr.msk.f32.vlgmr.msra.gmra.mrb[200].mxu1 %vm214_vm0, %v23958_v19  ;;  %22515 = vmatprep.subr.bf16.mxu0 %v22514_v60 }
 0xe86   : > { %22793 = vmatpush3.bf16.msra.mxu1 %v28075_v8  ;;  %19881 = vmatprep.mubr.msk.f32.mxu1 %vm214_vm0, %v23959_v61 }
 0xe87   : > { %22795 = vmatprep.subr.bf16.mxu1 %v28081_v38 }
 0xe88   : > { %22517 = vmatpush3.bf16.msra.mxu0 %v22514_v60  ;;  %v23982_v60 = vld [vmem:[%s30004_s1 + $0x80] sm:$0xff] }
 0xe89   : > { %19882 = vmatmul.mubr.msk.f32.gmra.mrb[202].mxu1 %vm214_vm0, %v23960_v1  ;;  %22519 = vmatprep.subr.bf16.mxu0 %v22518_v57 }
 0xe8a   : > { %22797 = vmatpush3.bf16.msra.mxu1 %v28081_v38  ;;  %19884 = vmatprep.mubr.msk.f32.mxu1 %vm214_vm0, %v23961_v12  ;;  %v14248_v12 = vld [vmem:[%s30005_s2 + $0x1210] sm:$0xff] }
 0xe8b   : > { %22799 = vmatprep.subr.bf16.mxu1 %v28087_v36 }
 0xe8d   : > { %19885 = vmatmul.mubr.msk.f32.gmra.mrb[204].mxu1 %vm214_vm0, %v23962_v3  ;;  %v14249_v3 = vld [vmem:[%s30005_s2 + $0x1218] sm:$0xff] }
 0xe8e   : > { %22801 = vmatpush3.bf16.msra.mxu1 %v28087_v36  ;;  %19887 = vmatprep.mubr.msk.f32.mxu1 %vm214_vm0, %v23963_v40 }
 0xe8f   : > { %22803 = vmatprep.subr.bf16.mxu1 %v28093_v25 }
 0xe91   : > { %19888 = vmatmul.mubr.msk.f32.gmra.mrb[206].mxu1 %vm214_vm0, %v23964_v53 }
 0xe92   : > { %22805 = vmatpush3.bf16.msra.mxu1 %v28093_v25  ;;  %19950 = vmatprep.mubr.msk.f32.mxu1 %vm214_vm0, %v23965_v30  ;;  %v22522_v30 = vpack.c.bf16 %v14249_v3, %v14248_v12  ;;  %v23987_v12 = vld [vmem:[%s30004_s1 + $0xa8] sm:$0xff]  ;;  %v23988_v3 = vld [vmem:[%s30004_s1 + $0xb0] sm:$0xff] }
 0xe93   : > { %22839 = vmatprep.subr.bf16.mxu1 %v28075_v8 }
 0xe95   : > { %19951 = vmatmul.mubr.msk.f32.vlgmr.msra.gmra.mrb[208].mxu1 %vm214_vm0, %v23966_v46  ;;  %v14250_v46 = vld [vmem:[%s30005_s2 + $0x1220] sm:$0xff] }
 0xe96   : > { %22841 = vmatpush3.bf16.msra.mxu1 %v28075_v8  ;;  %19953 = vmatprep.mubr.msk.f32.mxu1 %vm214_vm0, %v23967_v4  ;;  %v14251_v4 = vld [vmem:[%s30005_s2 + $0x1228] sm:$0xff] }
 0xe97   : > { %22843 = vmatprep.subr.bf16.mxu1 %v28081_v38 }
 0xe99   : > { %19954 = vmatmul.mubr.msk.f32.gmra.mrb[210].mxu1 %vm214_vm0, %v23968_v18 }
 0xe9a   : > { %22845 = vmatpush3.bf16.msra.mxu1 %v28081_v38  ;;  %19956 = vmatprep.mubr.msk.f32.mxu1 %vm214_vm0, %v23969_v56 }
 0xe9b   : > { %22847 = vmatprep.subr.bf16.mxu1 %v28087_v36 }
 0xe9d   : > { %19957 = vmatmul.mubr.msk.f32.gmra.mrb[212].mxu1 %vm214_vm0, %v23970_v23  ;;  %v22526_v23 = vpack.c.bf16 %v14251_v4, %v14250_v46  ;;  %v23989_v46 = vld [vmem:[%s30004_s1 + $0xb8] sm:$0xff] }
 0xe9e   : > { %22849 = vmatpush3.bf16.msra.mxu1 %v28087_v36  ;;  %19959 = vmatprep.mubr.msk.f32.mxu1 %vm214_vm0, %v23971_v21  ;;  %v14252_v21 = vld [vmem:[%s30005_s2 + $0x1230] sm:$0xff] }
 0xe9f   : > { %22851 = vmatprep.subr.bf16.mxu1 %v28093_v25 }
 0xea1   : > { %19960 = vmatmul.mubr.msk.f32.gmra.mrb[214].mxu1 %vm214_vm0, %v23972_v9  ;;  %v14253_v9 = vld [vmem:[%s30005_s2 + $0x1238] sm:$0xff] }
 0xea2   : > { %22853 = vmatpush3.bf16.msra.mxu1 %v28093_v25  ;;  %20022 = vmatprep.mubr.msk.f32.mxu1 %vm214_vm0, %v23973_v11 }
 0xea5   : > { %20023 = vmatmul.mubr.msk.f32.vlgmr.msra.gmra.mrb[216].mxu1 %vm214_vm0, %v23974_v20 }
 0xea6   : > { %20025 = vmatprep.mubr.msk.f32.mxu1 %vm214_vm0, %v23975_v49  ;;  %v22530_v49 = vpack.c.bf16 %v14253_v9, %v14252_v21  ;;  %v14308_v21 = vld [vmem:[%s30005_s2 + $0x1370] sm:$0xff]  ;;  %v14309_v9 = vld [vmem:[%s30005_s2 + $0x1378] sm:$0xff] }
 0xea9   : > { %20026 = vmatmul.mubr.msk.f32.gmra.mrb[218].mxu1 %vm214_vm0, %v23976_v13 }
 0xeaa   : > { %20028 = vmatprep.mubr.msk.f32.mxu1 %vm214_vm0, %v23977_v50  ;;  %v22534_v50 = vpack.c.bf16 %v14255_v54, %v14254_v16 }
 0xead   : > { %20029 = vmatmul.mubr.msk.f32.gmra.mrb[220].mxu1 %vm214_vm0, %v23978_v5  ;;  %v14258_v5 = vld [vmem:[%s30005_s2 + $0x1260] sm:$0xff] }
 0xeae   : > { %20031 = vmatprep.mubr.msk.f32.mxu1 %vm214_vm0, %v23979_v45  ;;  %v14259_v45 = vld [vmem:[%s30005_s2 + $0x1268] sm:$0xff] }
 0xeaf   : > { %v22542_v48 = vpack.c.bf16 %v14259_v45, %v14258_v5 }
 0xeb1   : > { %20032 = vmatmul.mubr.msk.f32.gmra.mrb[222].mxu1 %vm214_vm0, %v23980_v62  ;;  %v22546_v62 = vpack.c.bf16 %v14261_v34, %v14260_v41 }
 0xeb2   : > { %20094 = vmatprep.mubr.msk.f32.mxu1 %vm214_vm0, %v23981_v2  ;;  %v14294_v2 = vld [vmem:[%s30005_s2 + $0x1300] sm:$0xff] }
 0xf28   : > { %v19448_v27 = vpop.f32.mrb[152].mxu0  ;;  %v28601_v54 = vpop.f32.mrb[176].mxu1 }
 0xf29   : > { %v9067_v22 = vpop.f32.mrb[153].mxu0 }
 0xf2c   : > { %v28453_v10 = vpop.f32.mrb[154].mxu0 }
 0xf2d   : > { %v9077_v24 = vpop.f32.mrb[155].mxu0 }
 0xf30   : > { %v28455_v55 = vpop.f32.mrb[156].mxu0 }
 0xf31   : > { %v9087_v19 = vpop.f32.mrb[157].mxu0 }
 0xf34   : > { %v28457_v61 = vpop.f32.mrb[158].mxu0 }
 0xf35   : > { %v28459_v1 = vpop.f32.mrb[159].mxu0 }
 0xf38   : > { %v19476_v40 = vpop.f32.mrb[160].mxu0 }
 0xf39   : > { %v9189_v53 = vpop.f32.mrb[161].mxu0 }
 0xf3a   : > { %19518 = vmatprep.mubr.f32.mxu0 %v9189_v53  ;;  %v14304_v53 = vld [vmem:[%s30005_s2 + $0x1350] sm:$0xff] }
 0xf3b   : > { %19519 = vmatmul.mubr.f32.vlgmr.msra.gmra.mrb[168].mxu0 %v19476_v40 }
 0xf3c   : > { %22521 = vmatpush3.bf16.msra.mxu0 %v22518_v57  ;;  %v19479_v18 = vpop.f32.mrb[162].mxu0  ;;  %v23984_v57 = vld [vmem:[%s30004_s1 + $0x90] sm:$0xff] }
 0xf3d   : > { %v9199_v56 = vpop.f32.mrb[163].mxu0  ;;  %22523 = vmatprep.subr.bf16.mxu0 %v22522_v30 }
 0xf3e   : > { %19521 = vmatprep.mubr.f32.mxu0 %v9199_v56  ;;  %v14307_v56 = vld [vmem:[%s30005_s2 + $0x1368] sm:$0xff] }
 0xf3f   : > { %19522 = vmatmul.mubr.f32.gmra.mrb[170].mxu0 %v19479_v18  ;;  %v14306_v18 = vld [vmem:[%s30005_s2 + $0x1360] sm:$0xff] }
 0xf40   : > { %22525 = vmatpush3.bf16.msra.mxu0 %v22522_v30  ;;  %v19482_v11 = vpop.f32.mrb[164].mxu0  ;;  %v14305_v30 = vld [vmem:[%s30005_s2 + $0x1358] sm:$0xff] }
 0xf41   : > { %v9209_v20 = vpop.f32.mrb[165].mxu0  ;;  %22527 = vmatprep.subr.bf16.mxu0 %v22526_v23  ;;  %v22586_v4 = vpack.c.bf16 %v14305_v30, %v14304_v53  ;;  %v14324_v30 = vld [vmem:[%s30005_s2 + $0x13b0] sm:$0xff] }
 0xf42   : > { %19524 = vmatprep.mubr.f32.mxu0 %v9209_v20  ;;  %v14318_v20 = vld [vmem:[%s30005_s2 + $0x1380] sm:$0xff] }
 0xf43   : > { %19525 = vmatmul.mubr.f32.gmra.mrb[172].mxu0 %v19482_v11  ;;  %v22594_v11 = vpack.c.bf16 %v14309_v9, %v14308_v21  ;;  %v14327_v21 = vld [vmem:[%s30005_s2 + $0x13c8] sm:$0xff] }
 0xf44   : > { %22529 = vmatpush3.bf16.msra.mxu0 %v22526_v23  ;;  %v19485_v6 = vpop.f32.mrb[166].mxu0  ;;  %v22590_v23 = vpack.c.bf16 %v14307_v56, %v14306_v18 }
 0xf45   : > { %v9219_v13 = vpop.f32.mrb[167].mxu0  ;;  %22531 = vmatprep.subr.bf16.mxu0 %v22530_v49 }
 0xf46   : > { %19527 = vmatprep.mubr.f32.mxu0 %v9219_v13 }
 0xf47   : > { %19528 = vmatmul.mubr.f32.gmra.mrb[174].mxu0 %v19485_v6  ;;  %v9756_v6 = vpop.f32.mrb[177].mxu1 }
 0xf48   : > { %22533 = vmatpush3.bf16.msra.mxu0 %v22530_v49  ;;  %19562 = vmatprep.mubr.f32.mxu0 %v9067_v22  ;;  %v14300_v22 = vld [vmem:[%s30005_s2 + $0x1330] sm:$0xff]  ;;  %v14319_v49 = vld [vmem:[%s30005_s2 + $0x1388] sm:$0xff]  ;;  %v28603_v13 = vpop.f32.mrb[178].mxu1 }
 0xf49   : > { %22535 = vmatprep.subr.bf16.mxu0 %v22534_v50  ;;  %v22614_v16 = vpack.c.bf16 %v14319_v49, %v14318_v20  ;;  %v14328_v49 = vld [vmem:[%s30005_s2 + $0x13d0] sm:$0xff] }
 0xf4c   : > { %22537 = vmatpush3.bf16.msra.mxu0 %v22534_v50  ;;  %v28605_v50 = vpop.f32.mrb[179].mxu1 }
 0xf4d   : > { %22539 = vmatprep.subr.bf16.mxu0 %v22538_v33  ;;  %v28607_v42 = vpop.f32.mrb[180].mxu1 }
 0xf4e   : > { %v28609_v26 = vpop.f32.mrb[181].mxu1 }
 0xf50   : > { %22541 = vmatpush3.bf16.msra.mxu0 %v22538_v33  ;;  %v28611_v33 = vpop.f32.mrb[182].mxu1 }
 0xf51   : > { %22543 = vmatprep.subr.bf16.mxu0 %v22542_v48  ;;  %v28613_v5 = vpop.f32.mrb[183].mxu1 }
 0xf52   : > { %v28615_v45 = vpop.f32.mrb[184].mxu1 }
 0xf54   : > { %22545 = vmatpush3.bf16.msra.mxu0 %v22542_v48  ;;  %v28617_v48 = vpop.f32.mrb[185].mxu1 }
 0xf55   : > { %22547 = vmatprep.subr.bf16.mxu0 %v22546_v62  ;;  %v28619_v41 = vpop.f32.mrb[186].mxu1 }
 0xf56   : > { %v28621_v34 = vpop.f32.mrb[187].mxu1 }
 0xf58   : > { %22549 = vmatpush3.bf16.msra.mxu0 %v22546_v62  ;;  %v28623_v62 = vpop.f32.mrb[188].mxu1 }
 0xf59   : > { %22551 = vmatprep.subr.bf16.mxu0 %v28075_v8 }
 0xf5b   : > { %19563 = vmatmul.mubr.f32.vlgmr.msra.gmra.mrb[168].mxu0 %v19448_v27  ;;  %v22574_v27 = vpack.c.bf16 %v14299_v37, %v14298_v28 }
 0xf5c   : > { %19565 = vmatprep.mubr.f32.mxu0 %v9077_v24  ;;  %22553 = vmatpush3.bf16.msra.mxu0 %v28075_v8  ;;  %v22566_v8 = vpack.c.bf16 %v14295_v17, %v14294_v2  ;;  %v23985_v24 = vld [vmem:[%s30004_s1 + $0x98] sm:$0xff]  ;;  %v28625_v2 = vpop.f32.mrb[189].mxu1 }
 0xf5d   : > { %22555 = vmatprep.subr.bf16.mxu0 %v28081_v38  ;;  %v28627_v17 = vpop.f32.mrb[190].mxu1 }
 0xf5f   : > { %19566 = vmatmul.mubr.f32.gmra.mrb[170].mxu0 %v28453_v10  ;;  %v14301_v10 = vld [vmem:[%s30005_s2 + $0x1338] sm:$0xff] }
 0xf60   : > { %19568 = vmatprep.mubr.f32.mxu0 %v9087_v19  ;;  %22557 = vmatpush3.bf16.msra.mxu0 %v28081_v38  ;;  %v14296_v38 = vld [vmem:[%s30005_s2 + $0x1310] sm:$0xff]  ;;  %v22578_v19 = vpack.c.bf16 %v14301_v10, %v14300_v22  ;;  %v14321_v10 = vld [vmem:[%s30005_s2 + $0x1398] sm:$0xff] }
 0xf61   : > { %22559 = vmatprep.subr.bf16.mxu0 %v28087_v36  ;;  %v14320_v22 = vld [vmem:[%s30005_s2 + $0x1390] sm:$0xff] }
 0xf63   : > { %19569 = vmatmul.mubr.f32.gmra.mrb[172].mxu0 %v28455_v55  ;;  %v23986_v55 = vld [vmem:[%s30004_s1 + $0xa0] sm:$0xff] }
 0xf64   : > { %19571 = vmatprep.mubr.f32.mxu0 %v28459_v1  ;;  %22561 = vmatpush3.bf16.msra.mxu0 %v28087_v36  ;;  %v22570_v36 = vpack.c.bf16 %v14297_v47, %v14296_v38  ;;  %v14303_v1 = vld [vmem:[%s30005_s2 + $0x1348] sm:$0xff] }
 0xf65   : > { %22563 = vmatprep.subr.bf16.mxu0 %v28093_v25 }
 0xf67   : > { %19572 = vmatmul.mubr.f32.gmra.mrb[174].mxu0 %v28457_v61  ;;  %v14302_v61 = vld [vmem:[%s30005_s2 + $0x1340] sm:$0xff] }
 0xf68   : > { %22565 = vmatpush3.bf16.msra.mxu0 %v28093_v25  ;;  %19590 = vmatprep.mubr.msk.f32.mxu0 %vm214_vm0, %v23982_v60  ;;  %v23983_v25 = vld [vmem:[%s30004_s1 + $0x88] sm:$0xff]  ;;  %v22582_v40 = vpack.c.bf16 %v14303_v1, %v14302_v61  ;;  %v22618_v61 = vpack.c.bf16 %v14321_v10, %v14320_v22  ;;  %v14322_v1 = vld [vmem:[%s30005_s2 + $0x13a0] sm:$0xff] }
 0xf69   : > { %22567 = vmatprep.subr.bf16.mxu0 %v22566_v8 }
 0xf6b   : > { %19591 = vmatmul.mubr.msk.f32.vlgmr.msra.gmra.mrb[176].mxu0 %vm214_vm0, %v23983_v25 }
 0xf6c   : > { %19593 = vmatprep.mubr.msk.f32.mxu0 %vm214_vm0, %v23984_v57  ;;  %22569 = vmatpush3.bf16.msra.mxu0 %v22566_v8  ;;  %v28629_v8 = vpop.f32.mrb[191].mxu1 }
 0xf6d   : > { %22571 = vmatprep.subr.bf16.mxu0 %v22570_v36  ;;  %v28631_v38 = vpop.f32.mrb[192].mxu1 }
 0xf6e   : > { %v28633_v47 = vpop.f32.mrb[193].mxu1 }
 0xf6f   : > { %19594 = vmatmul.mubr.msk.f32.gmra.mrb[178].mxu0 %vm214_vm0, %v23985_v24  ;;  %v28635_v60 = vpop.f32.mrb[194].mxu1 }
 0xf70   : > { %19596 = vmatprep.mubr.msk.f32.mxu0 %vm214_vm0, %v23986_v55  ;;  %22573 = vmatpush3.bf16.msra.mxu0 %v22570_v36  ;;  %v28637_v36 = vpop.f32.mrb[195].mxu1 }
 0xf71   : > { %22575 = vmatprep.subr.bf16.mxu0 %v22574_v27  ;;  %v28639_v28 = vpop.f32.mrb[196].mxu1 }
 0xf72   : > { %v28641_v37 = vpop.f32.mrb[197].mxu1 }
 0xf73   : > { %19597 = vmatmul.mubr.msk.f32.gmra.mrb[180].mxu0 %vm214_vm0, %v23987_v12  ;;  %v28643_v25 = vpop.f32.mrb[198].mxu1  ;;  %v14323_v12 = vld [vmem:[%s30005_s2 + $0x13a8] sm:$0xff] }
 0xf74   : > { %19599 = vmatprep.mubr.msk.f32.mxu0 %vm214_vm0, %v23988_v3  ;;  %22577 = vmatpush3.bf16.msra.mxu0 %v22574_v27  ;;  %v28645_v57 = vpop.f32.mrb[199].mxu1 }
 0xf75   : > { %22579 = vmatprep.subr.bf16.mxu0 %v22578_v19  ;;  %v28647_v27 = vpop.f32.mrb[200].mxu1 }
 0xf76   : > { %v28655_v55 = vpop.f32.mrb[201].mxu1 }
 0xf77   : > { %19600 = vmatmul.mubr.msk.f32.gmra.mrb[182].mxu0 %vm214_vm0, %v23989_v46  ;;  %v14325_v46 = vld [vmem:[%s30005_s2 + $0x13b8] sm:$0xff]  ;;  %v28681_v22 = vpop.f32.mrb[202].mxu1 }
 0xf78   : > { %22581 = vmatpush3.bf16.msra.mxu0 %v22578_v19  ;;  %v22626_v18 = vpack.c.bf16 %v14325_v46, %v14324_v30 }
 0xf79   : > { %22583 = vmatprep.subr.bf16.mxu0 %v22582_v40 }
 0xf7c   : > { %22585 = vmatpush3.bf16.msra.mxu0 %v22582_v40  ;;  %v22622_v40 = vpack.c.bf16 %v14323_v12, %v14322_v1 }
 0xf7d   : > { %22587 = vmatprep.subr.bf16.mxu0 %v22586_v4 }
 0xf80   : > { %22589 = vmatpush3.bf16.msra.mxu0 %v22586_v4 }
 0xf81   : > { %22591 = vmatprep.subr.bf16.mxu0 %v22590_v23 }
 0xf84   : > { %22593 = vmatpush3.bf16.msra.mxu0 %v22590_v23  ;;  %v14326_v23 = vld [vmem:[%s30005_s2 + $0x13c0] sm:$0xff] }
 0xf85   : > { %22595 = vmatprep.subr.bf16.mxu0 %v22594_v11 }
 0xf88   : > { %22597 = vmatpush3.bf16.msra.mxu0 %v22594_v11  ;;  %v22630_v11 = vpack.c.bf16 %v14327_v21, %v14326_v23  ;;  %v14344_v21 = vld [vmem:[%s30005_s2 + $0x1410] sm:$0xff] }
 0xf89   : > { %22615 = vmatprep.subr.bf16.mxu0 %v22614_v16 }
0x103e   : > { %v19592_v24 = vpop.f32.mrb[176].mxu0 }
0x103f   : > { %v9521_v19 = vpop.f32.mrb[177].mxu0 }
0x1040   : > { %19634 = vmatprep.mubr.f32.mxu0 %v9521_v19  ;;  %v14330_v19 = vld [vmem:[%s30005_s2 + $0x13e0] sm:$0xff] }
0x1041   : > { %19635 = vmatmul.mubr.f32.vlgmr.msra.gmra.mrb[168].mxu0 %v19592_v24  ;;  %v28683_v24 = vpop.f32.mrb[203].mxu1 }
0x1042   : > { %22617 = vmatpush3.bf16.msra.mxu0 %v22614_v16  ;;  %v19595_v3 = vpop.f32.mrb[178].mxu0  ;;  %v14329_v16 = vld [vmem:[%s30005_s2 + $0x13d8] sm:$0xff]  ;;  %v28691_v1 = vpop.f32.mrb[204].mxu1 }
0x1043   : > { %22619 = vmatprep.subr.bf16.mxu0 %v22618_v61  ;;  %v9531_v53 = vpop.f32.mrb[179].mxu0  ;;  %v22634_v10 = vpack.c.bf16 %v14329_v16, %v14328_v49  ;;  %v14346_v49 = vld [vmem:[%s30005_s2 + $0x1420] sm:$0xff]  ;;  %v14347_v16 = vld [vmem:[%s30005_s2 + $0x1428] sm:$0xff] }
0x1044   : > { %19637 = vmatprep.mubr.f32.mxu0 %v9531_v53 }
0x1045   : > { %19638 = vmatmul.mubr.f32.gmra.mrb[170].mxu0 %v19595_v3  ;;  %v14332_v3 = vld [vmem:[%s30005_s2 + $0x13f0] sm:$0xff] }
0x1046   : > { %22621 = vmatpush3.bf16.msra.mxu0 %v22618_v61  ;;  %v19598_v4 = vpop.f32.mrb[180].mxu0  ;;  %v14331_v61 = vld [vmem:[%s30005_s2 + $0x13e8] sm:$0xff] }
0x1047   : > { %22623 = vmatprep.subr.bf16.mxu0 %v22622_v40  ;;  %v9541_v56 = vpop.f32.mrb[181].mxu0  ;;  %v22638_v12 = vpack.c.bf16 %v14331_v61, %v14330_v19  ;;  %v14348_v19 = vld [vmem:[%s30005_s2 + $0x1430] sm:$0xff]  ;;  %v14349_v61 = vld [vmem:[%s30005_s2 + $0x1438] sm:$0xff] }
0x1048   : > { %19640 = vmatprep.mubr.f32.mxu0 %v9541_v56 }
0x1049   : > { %19641 = vmatmul.mubr.f32.gmra.mrb[172].mxu0 %v19598_v4  ;;  %v14342_v4 = vld [vmem:[%s30005_s2 + $0x1400] sm:$0xff] }
0x104a   : > { %22625 = vmatpush3.bf16.msra.mxu0 %v22622_v40  ;;  %v19601_v9 = vpop.f32.mrb[182].mxu0  ;;  %v14333_v40 = vld [vmem:[%s30005_s2 + $0x13f8] sm:$0xff] }
0x104b   : > { %22627 = vmatprep.subr.bf16.mxu0 %v22626_v18  ;;  %v9551_v20 = vpop.f32.mrb[183].mxu0  ;;  %v22642_v30 = vpack.c.bf16 %v14333_v40, %v14332_v3  ;;  %v14353_v3 = vld [vmem:[%s30005_s2 + $0x1458] sm:$0xff] }
0x104c   : > { %19643 = vmatprep.mubr.f32.mxu0 %v9551_v20 }
0x104d   : > { %19644 = vmatmul.mubr.f32.gmra.mrb[174].mxu0 %v19601_v9  ;;  %v14345_v9 = vld [vmem:[%s30005_s2 + $0x1418] sm:$0xff] }
0x104e   : > { %22629 = vmatpush3.bf16.msra.mxu0 %v22626_v18  ;;  %19706 = vmatprep.mubr.f32.mxu0 %v9756_v6  ;;  %v28693_v6 = vpop.f32.mrb[205].mxu1  ;;  %v14343_v18 = vld [vmem:[%s30005_s2 + $0x1408] sm:$0xff]  ;;  %v22666_v20 = vpack.c.bf16 %v14345_v9, %v14344_v21  ;;  %v14357_v21 = vld [vmem:[%s30005_s2 + $0x1478] sm:$0xff] }
0x104f   : > { %22631 = vmatprep.subr.bf16.mxu0 %v22630_v11  ;;  %v28701_v53 = vpop.f32.mrb[206].mxu1  ;;  %v22662_v56 = vpack.c.bf16 %v14343_v18, %v14342_v4  ;;  %v14355_v4 = vld [vmem:[%s30005_s2 + $0x1468] sm:$0xff] }
0x1050   : > { %v28703_v46 = vpop.f32.mrb[207].mxu1 }
0x1051   : > { %v28711_v23 = vpop.f32.mrb[208].mxu1 }
0x1052   : > { %22633 = vmatpush3.bf16.msra.mxu0 %v22630_v11  ;;  %v28719_v11 = vpop.f32.mrb[209].mxu1 }
0x1053   : > { %22635 = vmatprep.subr.bf16.mxu0 %v22634_v10  ;;  %v28753_v40 = vpop.f32.mrb[210].mxu1 }
0x1056   : > { %22637 = vmatpush3.bf16.msra.mxu0 %v22634_v10  ;;  %v22670_v10 = vpack.c.bf16 %v14347_v16, %v14346_v49  ;;  %v14366_v16 = vld [vmem:[%s30005_s2 + $0x1480] sm:$0xff] }
0x1057   : > { %22639 = vmatprep.subr.bf16.mxu0 %v22638_v12 }
0x105a   : > { %22641 = vmatpush3.bf16.msra.mxu0 %v22638_v12  ;;  %v14351_v12 = vld [vmem:[%s30005_s2 + $0x1448] sm:$0xff] }
0x105b   : > { %22643 = vmatprep.subr.bf16.mxu0 %v22642_v30 }
0x105e   : > { %22645 = vmatpush3.bf16.msra.mxu0 %v22642_v30  ;;  %v14354_v30 = vld [vmem:[%s30005_s2 + $0x1460] sm:$0xff] }
0x105f   : > { %22663 = vmatprep.subr.bf16.mxu0 %v22662_v56 }
0x1061   : > { %19707 = vmatmul.mubr.f32.vlgmr.msra.gmra.mrb[168].mxu0 %v28601_v54  ;;  %v22674_v54 = vpack.c.bf16 %v14349_v61, %v14348_v19 }
0x1062   : > { %22665 = vmatpush3.bf16.msra.mxu0 %v22662_v56  ;;  %19709 = vmatprep.mubr.f32.mxu0 %v28605_v50  ;;  %v14350_v50 = vld [vmem:[%s30005_s2 + $0x1440] sm:$0xff]  ;;  %v14356_v56 = vld [vmem:[%s30005_s2 + $0x1470] sm:$0xff] }
0x1063   : > { %22667 = vmatprep.subr.bf16.mxu0 %v22666_v20 }
0x1065   : > { %19710 = vmatmul.mubr.f32.gmra.mrb[170].mxu0 %v28603_v13  ;;  %v22678_v13 = vpack.c.bf16 %v14351_v12, %v14350_v50  ;;  %v14368_v50 = vld [vmem:[%s30005_s2 + $0x1490] sm:$0xff]  ;;  %v14369_v12 = vld [vmem:[%s30005_s2 + $0x1498] sm:$0xff] }
0x1066   : > { %22669 = vmatpush3.bf16.msra.mxu0 %v22666_v20  ;;  %19712 = vmatprep.mubr.f32.mxu0 %v28609_v26  ;;  %v14352_v26 = vld [vmem:[%s30005_s2 + $0x1450] sm:$0xff]  ;;  %v22690_v20 = vpack.c.bf16 %v14357_v21, %v14356_v56  ;;  %v14373_v21 = vld [vmem:[%s30005_s2 + $0x14b8] sm:$0xff] }
0x1067   : > { %22671 = vmatprep.subr.bf16.mxu0 %v22670_v10  ;;  %v14372_v56 = vld [vmem:[%s30005_s2 + $0x14b0] sm:$0xff] }
0x1069   : > { %19713 = vmatmul.mubr.f32.gmra.mrb[172].mxu0 %v28607_v42  ;;  %v22682_v42 = vpack.c.bf16 %v14353_v3, %v14352_v26  ;;  %v22714_v26 = vpack.c.bf16 %v14369_v12, %v14368_v50  ;;  %v14370_v3 = vld [vmem:[%s30005_s2 + $0x14a0] sm:$0xff]  ;;  %v14377_v50 = vld [vmem:[%s30005_s2 + $0x14d8] sm:$0xff]  ;;  %v14379_v12 = vld [vmem:[%s30005_s2 + $0x14e8] sm:$0xff] }
0x106a   : > { %22673 = vmatpush3.bf16.msra.mxu0 %v22670_v10  ;;  %19715 = vmatprep.mubr.f32.mxu0 %v28613_v5  ;;  %v28755_v5 = vpop.f32.mrb[211].mxu1  ;;  %v14367_v10 = vld [vmem:[%s30005_s2 + $0x1488] sm:$0xff] }
0x106b   : > { %22675 = vmatprep.subr.bf16.mxu0 %v22674_v54  ;;  %v28763_v18 = vpop.f32.mrb[212].mxu1  ;;  %v22710_v61 = vpack.c.bf16 %v14367_v10, %v14366_v16  ;;  %v14374_v16 = vld [vmem:[%s30005_s2 + $0x14c0] sm:$0xff]  ;;  %v14375_v10 = vld [vmem:[%s30005_s2 + $0x14c8] sm:$0xff] }
0x106d   : > { %19716 = vmatmul.mubr.f32.gmra.mrb[174].mxu0 %v28611_v33  ;;  %v22686_v33 = vpack.c.bf16 %v14355_v4, %v14354_v30 }
0x106e   : > { %22677 = vmatpush3.bf16.msra.mxu0 %v22674_v54  ;;  %19778 = vmatprep.mubr.f32.mxu0 %v28617_v48  ;;  %v28765_v48 = vpop.f32.mrb[213].mxu1 }
0x106f   : > { %22679 = vmatprep.subr.bf16.mxu0 %v22678_v13  ;;  %v28773_v9 = vpop.f32.mrb[214].mxu1 }
0x1070   : > { %v28775_v49 = vpop.f32.mrb[215].mxu1 }
0x1071   : > { %v28783_v19 = vpop.f32.mrb[216].mxu1 }
0x1072   : > { %22681 = vmatpush3.bf16.msra.mxu0 %v22678_v13  ;;  %v28785_v54 = vpop.f32.mrb[217].mxu1 }
0x1073   : > { %22683 = vmatprep.subr.bf16.mxu0 %v22682_v42  ;;  %v28793_v13 = vpop.f32.mrb[218].mxu1 }
0x1074   : > { %v28802_v30 = vpop.f32.mrb[219].mxu1 }
0x1075   : > { %v28805_v4 = vpop.f32.mrb[220].mxu1 }
0x1076   : > { %22685 = vmatpush3.bf16.msra.mxu0 %v22682_v42  ;;  %v14371_v42 = vld [vmem:[%s30005_s2 + $0x14a8] sm:$0xff] }
0x1077   : > { %22687 = vmatprep.subr.bf16.mxu0 %v22686_v33 }
0x107a   : > { %22689 = vmatpush3.bf16.msra.mxu0 %v22686_v33  ;;  %v22718_v33 = vpack.c.bf16 %v14371_v42, %v14370_v3  ;;  %v14390_v42 = vld [vmem:[%s30005_s2 + $0x1500] sm:$0xff] }
0x107b   : > { %22691 = vmatprep.subr.bf16.mxu0 %v22690_v20 }
0x107e   : > { %22693 = vmatpush3.bf16.msra.mxu0 %v22690_v20  ;;  %v22722_v20 = vpack.c.bf16 %v14373_v21, %v14372_v56  ;;  %v14392_v21 = vld [vmem:[%s30005_s2 + $0x1510] sm:$0xff] }
0x107f   : > { %22711 = vmatprep.subr.bf16.mxu0 %v22710_v61 }
0x1081   : > { %19779 = vmatmul.mubr.f32.vlgmr.msra.gmra.mrb[168].mxu0 %v28615_v45  ;;  %v28814_v45 = vpop.f32.mrb[221].mxu1 }
0x1082   : > { %22713 = vmatpush3.bf16.msra.mxu0 %v22710_v61  ;;  %19781 = vmatprep.mubr.f32.mxu0 %v28621_v34  ;;  %v28817_v34 = vpop.f32.mrb[222].mxu1  ;;  %v14376_v61 = vld [vmem:[%s30005_s2 + $0x14d0] sm:$0xff] }
0x1083   : > { %22715 = vmatprep.subr.bf16.mxu0 %v22714_v26 }
0x1085   : > { %19782 = vmatmul.mubr.f32.gmra.mrb[170].mxu0 %v28619_v41  ;;  %v28826_v41 = vpop.f32.mrb[223].mxu1 }
0x1086   : > { %22717 = vmatpush3.bf16.msra.mxu0 %v22714_v26  ;;  %19784 = vmatprep.mubr.f32.mxu0 %v28625_v2  ;;  %v22726_v2 = vpack.c.bf16 %v14375_v10, %v14374_v16  ;;  %v14394_v10 = vld [vmem:[%s30005_s2 + $0x1520] sm:$0xff] }
0x1087   : > { %22719 = vmatprep.subr.bf16.mxu0 %v22718_v33 }
0x1089   : > { %19785 = vmatmul.mubr.f32.gmra.mrb[172].mxu0 %v28623_v62  ;;  %v22730_v62 = vpack.c.bf16 %v14377_v50, %v14376_v61  ;;  %v14396_v50 = vld [vmem:[%s30005_s2 + $0x1530] sm:$0xff] }
0x108a   : > { %22721 = vmatpush3.bf16.msra.mxu0 %v22718_v33  ;;  %19787 = vmatprep.mubr.f32.mxu0 %v28629_v8  ;;  %v14378_v8 = vld [vmem:[%s30005_s2 + $0x14e0] sm:$0xff]  ;;  %v14391_v33 = vld [vmem:[%s30005_s2 + $0x1508] sm:$0xff] }
0x108b   : > { %22723 = vmatprep.subr.bf16.mxu0 %v22722_v20  ;;  %v22734_v26 = vpack.c.bf16 %v14379_v12, %v14378_v8  ;;  %v22758_v56 = vpack.c.bf16 %v14391_v33, %v14390_v42  ;;  %v14399_v8 = vld [vmem:[%s30005_s2 + $0x1548] sm:$0xff]  ;;  %v14401_v12 = vld [vmem:[%s30005_s2 + $0x1558] sm:$0xff] }
0x108c   : > { %v14415_v42 = vld [vmem:[%s30005_s2 + $0x1588] sm:$0xff] }
0x108d   : > { %19788 = vmatmul.mubr.f32.gmra.mrb[174].mxu0 %v28627_v17  ;;  %v14380_v17 = vld [vmem:[%s30005_s2 + $0x14f0] sm:$0xff] }
0x108e   : > { %22725 = vmatpush3.bf16.msra.mxu0 %v22722_v20  ;;  %19850 = vmatprep.mubr.f32.mxu0 %v28633_v47  ;;  %v14381_v47 = vld [vmem:[%s30005_s2 + $0x14f8] sm:$0xff] }
0x108f   : > { %22727 = vmatprep.subr.bf16.mxu0 %v22726_v2  ;;  %v22738_v3 = vpack.c.bf16 %v14381_v47, %v14380_v17  ;;  %v14393_v20 = vld [vmem:[%s30005_s2 + $0x1518] sm:$0xff] }
0x1090   : > { %v22762_v16 = vpack.c.bf16 %v14393_v20, %v14392_v21  ;;  %v14417_v21 = vld [vmem:[%s30005_s2 + $0x1598] sm:$0xff] }
0x1092   : > { %22729 = vmatpush3.bf16.msra.mxu0 %v22726_v2  ;;  %v14395_v2 = vld [vmem:[%s30005_s2 + $0x1528] sm:$0xff] }
0x1093   : > { %22731 = vmatprep.subr.bf16.mxu0 %v22730_v62  ;;  %v22766_v61 = vpack.c.bf16 %v14395_v2, %v14394_v10  ;;  %v14419_v10 = vld [vmem:[%s30005_s2 + $0x15a8] sm:$0xff] }
0x1096   : > { %22733 = vmatpush3.bf16.msra.mxu0 %v22730_v62  ;;  %v14397_v62 = vld [vmem:[%s30005_s2 + $0x1538] sm:$0xff] }
0x1097   : > { %22735 = vmatprep.subr.bf16.mxu0 %v22734_v26 }
0x109a   : > { %22737 = vmatpush3.bf16.msra.mxu0 %v22734_v26  ;;  %v14403_v26 = vld [vmem:[%s30005_s2 + $0x1568] sm:$0xff] }
0x109b   : > { %22739 = vmatprep.subr.bf16.mxu0 %v22738_v3 }
0x109e   : > { %22741 = vmatpush3.bf16.msra.mxu0 %v22738_v3  ;;  %v14414_v3 = vld [vmem:[%s30005_s2 + $0x1580] sm:$0xff] }
0x109f   : > { %22759 = vmatprep.subr.bf16.mxu0 %v22758_v56  ;;  %v22806_v33 = vpack.c.bf16 %v14415_v42, %v14414_v3  ;;  %v14444_v3 = vld [vmem:[%s30005_s2 + $0x1630] sm:$0xff]  ;;  %v14445_v42 = vld [vmem:[%s30005_s2 + $0x1638] sm:$0xff] }
0x10a1   : > { %19851 = vmatmul.mubr.f32.vlgmr.msra.gmra.mrb[168].mxu0 %v28631_v38  ;;  %v22770_v38 = vpack.c.bf16 %v14397_v62, %v14396_v50  ;;  %v14421_v50 = vld [vmem:[%s30005_s2 + $0x15b8] sm:$0xff]  ;;  %v14423_v62 = vld [vmem:[%s30005_s2 + $0x15c8] sm:$0xff] }
0x10a2   : > { %22761 = vmatpush3.bf16.msra.mxu0 %v22758_v56  ;;  %19853 = vmatprep.mubr.f32.mxu0 %v28637_v36  ;;  %v14398_v36 = vld [vmem:[%s30005_s2 + $0x1540] sm:$0xff]  ;;  %v14416_v56 = vld [vmem:[%s30005_s2 + $0x1590] sm:$0xff] }
0x10a3   : > { %22763 = vmatprep.subr.bf16.mxu0 %v22762_v16  ;;  %v22810_v20 = vpack.c.bf16 %v14417_v21, %v14416_v56  ;;  %v14449_v56 = vld [vmem:[%s30005_s2 + $0x1658] sm:$0xff]  ;;  %v14451_v21 = vld [vmem:[%s30005_s2 + $0x1668] sm:$0xff] }
0x10a5   : > { %19854 = vmatmul.mubr.f32.gmra.mrb[170].mxu0 %v28635_v60  ;;  %v22774_v60 = vpack.c.bf16 %v14399_v8, %v14398_v36  ;;  %v14427_v36 = vld [vmem:[%s30005_s2 + $0x15e8] sm:$0xff] }
0x10a6   : > { %22765 = vmatpush3.bf16.msra.mxu0 %v22762_v16  ;;  %19856 = vmatprep.mubr.f32.mxu0 %v28641_v37  ;;  %v14400_v37 = vld [vmem:[%s30005_s2 + $0x1550] sm:$0xff]  ;;  %v14418_v16 = vld [vmem:[%s30005_s2 + $0x15a0] sm:$0xff] }
0x10a7   : > { %22767 = vmatprep.subr.bf16.mxu0 %v22766_v61  ;;  %v22814_v2 = vpack.c.bf16 %v14419_v10, %v14418_v16  ;;  %v23990_v10 = vld [vmem:[%s30004_s1 + $0xc0] sm:$0xff] }
0x10a9   : > { %19857 = vmatmul.mubr.f32.gmra.mrb[172].mxu0 %v28639_v28  ;;  %v22778_v28 = vpack.c.bf16 %v14401_v12, %v14400_v37  ;;  %v14438_v37 = vld [vmem:[%s30005_s2 + $0x1600] sm:$0xff]  ;;  %v14439_v12 = vld [vmem:[%s30005_s2 + $0x1608] sm:$0xff] }
0x10aa   : > { %22769 = vmatpush3.bf16.msra.mxu0 %v22766_v61  ;;  %19859 = vmatprep.mubr.f32.mxu0 %v28645_v57  ;;  %v14402_v57 = vld [vmem:[%s30005_s2 + $0x1560] sm:$0xff]  ;;  %v14420_v61 = vld [vmem:[%s30005_s2 + $0x15b0] sm:$0xff] }
0x10ab   : > { %22771 = vmatprep.subr.bf16.mxu0 %v22770_v38  ;;  %v22782_v17 = vpack.c.bf16 %v14403_v26, %v14402_v57  ;;  %v14440_v57 = vld [vmem:[%s30005_s2 + $0x1610] sm:$0xff]  ;;  %v14441_v26 = vld [vmem:[%s30005_s2 + $0x1618] sm:$0xff] }
0x10ad   : > { %19860 = vmatmul.mubr.f32.gmra.mrb[174].mxu0 %v28643_v25  ;;  %v14404_v25 = vld [vmem:[%s30005_s2 + $0x1570] sm:$0xff] }
0x10ae   : > { %22773 = vmatpush3.bf16.msra.mxu0 %v22770_v38  ;;  %19922 = vmatprep.mubr.f32.mxu0 %v28655_v55  ;;  %v14405_v55 = vld [vmem:[%s30005_s2 + $0x1578] sm:$0xff] }
0x10af   : > { %22775 = vmatprep.subr.bf16.mxu0 %v22774_v60  ;;  %v22786_v47 = vpack.c.bf16 %v14405_v55, %v14404_v25  ;;  %v14425_v38 = vld [vmem:[%s30005_s2 + $0x15d8] sm:$0xff]  ;;  %v14442_v25 = vld [vmem:[%s30005_s2 + $0x1620] sm:$0xff]  ;;  %v14443_v55 = vld [vmem:[%s30005_s2 + $0x1628] sm:$0xff] }
0x10b2   : > { %22777 = vmatpush3.bf16.msra.mxu0 %v22774_v60 }
0x10b3   : > { %22779 = vmatprep.subr.bf16.mxu0 %v22778_v28 }
0x10b6   : > { %22781 = vmatpush3.bf16.msra.mxu0 %v22778_v28  ;;  %v22854_v28 = vpack.c.bf16 %v14439_v12, %v14438_v37  ;;  %v23994_v12 = vld [vmem:[%s30004_s1 + $0xd0] sm:$0xff] }
0x10b7   : > { %22783 = vmatprep.subr.bf16.mxu0 %v22782_v17 }
0x10ba   : > { %22785 = vmatpush3.bf16.msra.mxu0 %v22782_v17  ;;  %v22858_v17 = vpack.c.bf16 %v14441_v26, %v14440_v57  ;;  %v23996_v57 = vld [vmem:[%s30004_s1 + $0xd8] sm:$0xff]  ;;  %v23997_v26 = vld [vmem:[%s30004_s1 + $0x20] sm:$0xff] }
0x10bb   : > { %22787 = vmatprep.subr.bf16.mxu0 %v22786_v47 }
0x10be   : > { %22789 = vmatpush3.bf16.msra.mxu0 %v22786_v47  ;;  %v22862_v47 = vpack.c.bf16 %v14443_v55, %v14442_v25  ;;  %v23999_v25 = vld [vmem:[%s30004_s1 + $0x28] sm:$0xff] }
0x10bf   : > { %22807 = vmatprep.subr.bf16.mxu0 %v22806_v33  ;;  %v24000_v55 = vld [vmem:[%s30004_s1 + $0xe8] sm:$0xff] }
0x10c1   : > { %19923 = vmatmul.mubr.f32.vlgmr.msra.gmra.mrb[168].mxu0 %v28647_v27  ;;  %v22818_v27 = vpack.c.bf16 %v14421_v50, %v14420_v61 }
0x10c2   : > { %22809 = vmatpush3.bf16.msra.mxu0 %v22806_v33  ;;  %19925 = vmatprep.mubr.f32.mxu0 %v28683_v24  ;;  %v14422_v24 = vld [vmem:[%s30005_s2 + $0x15c0] sm:$0xff]  ;;  %v14447_v33 = vld [vmem:[%s30005_s2 + $0x1648] sm:$0xff] }
0x10c3   : > { %22811 = vmatprep.subr.bf16.mxu0 %v22810_v20 }
0x10c5   : > { %19926 = vmatmul.mubr.f32.gmra.mrb[170].mxu0 %v28681_v22  ;;  %v22822_v22 = vpack.c.bf16 %v14423_v62, %v14422_v24 }
0x10c6   : > { %22813 = vmatpush3.bf16.msra.mxu0 %v22810_v20  ;;  %19928 = vmatprep.mubr.f32.mxu0 %v28693_v6  ;;  %v14424_v6 = vld [vmem:[%s30005_s2 + $0x15d0] sm:$0xff] }
0x10c7   : > { %22815 = vmatprep.subr.bf16.mxu0 %v22814_v2 }
0x10c9   : > { %19929 = vmatmul.mubr.f32.gmra.mrb[172].mxu0 %v28691_v1  ;;  %v22826_v1 = vpack.c.bf16 %v14425_v38, %v14424_v6 }
0x10ca   : > { %22817 = vmatpush3.bf16.msra.mxu0 %v22814_v2  ;;  %19931 = vmatprep.mubr.f32.mxu0 %v28703_v46  ;;  %v14426_v46 = vld [vmem:[%s30005_s2 + $0x15e0] sm:$0xff] }
0x10cb   : > { %22819 = vmatprep.subr.bf16.mxu0 %v22818_v27  ;;  %v22830_v8 = vpack.c.bf16 %v14427_v36, %v14426_v46 }
0x10cd   : > { %19932 = vmatmul.mubr.f32.gmra.mrb[174].mxu0 %v28701_v53  ;;  %v14428_v53 = vld [vmem:[%s30005_s2 + $0x15f0] sm:$0xff] }
0x10ce   : > { %22821 = vmatpush3.bf16.msra.mxu0 %v22818_v27  ;;  %19994 = vmatprep.mubr.f32.mxu0 %v28719_v11  ;;  %v14429_v11 = vld [vmem:[%s30005_s2 + $0x15f8] sm:$0xff] }
0x10cf   : > { %22823 = vmatprep.subr.bf16.mxu0 %v22822_v22  ;;  %v22834_v60 = vpack.c.bf16 %v14429_v11, %v14428_v53 }
0x10d2   : > { %22825 = vmatpush3.bf16.msra.mxu0 %v22822_v22 }
0x10d3   : > { %22827 = vmatprep.subr.bf16.mxu0 %v22826_v1 }
0x10d6   : > { %22829 = vmatpush3.bf16.msra.mxu0 %v22826_v1 }
0x10d7   : > { %22831 = vmatprep.subr.bf16.mxu0 %v22830_v8 }
0x10da   : > { %22833 = vmatpush3.bf16.msra.mxu0 %v22830_v8 }
0x10db   : > { %22835 = vmatprep.subr.bf16.mxu0 %v22834_v60 }
0x10de   : > { %22837 = vmatpush3.bf16.msra.mxu0 %v22834_v60 }
0x10df   : > { %22855 = vmatprep.subr.bf16.mxu0 %v22854_v28 }
0x10e1   : > { %19995 = vmatmul.mubr.f32.vlgmr.msra.gmra.mrb[168].mxu0 %v28711_v23  ;;  %v22866_v23 = vpack.c.bf16 %v14445_v42, %v14444_v3  ;;  %v14489_v3 = vld [vmem:[%s30005_s2 + $0x1708] sm:$0xff]  ;;  %v24001_v42 = vld [vmem:[%s30004_s1 + $0x30] sm:$0xff] }
0x10e2   : > { %22857 = vmatpush3.bf16.msra.mxu0 %v22854_v28  ;;  %19997 = vmatprep.mubr.f32.mxu0 %v28755_v5  ;;  %v14446_v5 = vld [vmem:[%s30005_s2 + $0x1640] sm:$0xff]  ;;  %v23995_v28 = vld [vmem:[%s30004_s1 + $0x18] sm:$0xff] }
0x10e3   : > { %22859 = vmatprep.subr.bf16.mxu0 %v22858_v17 }
0x10e5   : > { %19998 = vmatmul.mubr.f32.gmra.mrb[170].mxu0 %v28753_v40  ;;  %v22870_v40 = vpack.c.bf16 %v14447_v33, %v14446_v5  ;;  %v24003_v33 = vld [vmem:[%s30004_s1 + $0x38] sm:$0xff] }
0x10e6   : > { %22861 = vmatpush3.bf16.msra.mxu0 %v22858_v17  ;;  %20000 = vmatprep.mubr.f32.mxu0 %v28765_v48  ;;  %v14448_v48 = vld [vmem:[%s30005_s2 + $0x1650] sm:$0xff]  ;;  %v23998_v17 = vld [vmem:[%s30004_s1 + $0xe0] sm:$0xff] }
0x10e7   : > { %22863 = vmatprep.subr.bf16.mxu0 %v22862_v47 }
0x10e9   : > { %20001 = vmatmul.mubr.f32.gmra.mrb[172].mxu0 %v28763_v18  ;;  %v22874_v18 = vpack.c.bf16 %v14449_v56, %v14448_v48  ;;  %v24005_v48 = vld [vmem:[%s30004_s1 + $0x40] sm:$0xff] }
0x10ea   : > { %22865 = vmatpush3.bf16.msra.mxu0 %v22862_v47  ;;  %20003 = vmatprep.mubr.f32.mxu0 %v28775_v49  ;;  %v14450_v49 = vld [vmem:[%s30005_s2 + $0x1660] sm:$0xff] }
0x10eb   : > { %22867 = vmatprep.subr.bf16.mxu0 %v22866_v23  ;;  %v22878_v20 = vpack.c.bf16 %v14451_v21, %v14450_v49  ;;  %v14488_v47 = vld [vmem:[%s30005_s2 + $0x1700] sm:$0xff]  ;;  %v24008_v49 = vld [vmem:[%s30004_s1 + $0x108] sm:$0xff]  ;;  %v14490_v21 = vld [vmem:[%s30005_s2 + $0x1710] sm:$0xff] }
0x10ec   : > { %v22918_v5 = vpack.c.bf16 %v14489_v3, %v14488_v47  ;;  %v24006_v56 = vld [vmem:[%s30004_s1 + $0x100] sm:$0xff]  ;;  %v14497_v47 = vld [vmem:[%s30005_s2 + $0x1748] sm:$0xff] }
0x10ed   : > { %20004 = vmatmul.mubr.f32.gmra.mrb[174].mxu0 %v28773_v9  ;;  %v14452_v9 = vld [vmem:[%s30005_s2 + $0x1670] sm:$0xff] }
0x10ee   : > { %22869 = vmatpush3.bf16.msra.mxu0 %v22866_v23  ;;  %20066 = vmatprep.mubr.f32.mxu0 %v28785_v54  ;;  %v14453_v54 = vld [vmem:[%s30005_s2 + $0x1678] sm:$0xff]  ;;  %v24002_v23 = vld [vmem:[%s30004_s1 + $0xf0] sm:$0xff] }
0x10ef   : > { %22871 = vmatprep.subr.bf16.mxu0 %v22870_v40  ;;  %v22882_v16 = vpack.c.bf16 %v14453_v54, %v14452_v9  ;;  %v24009_v9 = vld [vmem:[%s30004_s1 + $0x50] sm:$0xff] }
0x10f0   : > { %v24010_v54 = vld [vmem:[%s30004_s1 + $0x110] sm:$0xff] }
0x10f2   : > { %22873 = vmatpush3.bf16.msra.mxu0 %v22870_v40  ;;  %v24004_v40 = vld [vmem:[%s30004_s1 + $0xf8] sm:$0xff] }
0x10f3   : > { %22875 = vmatprep.subr.bf16.mxu0 %v22874_v18 }
0x10f6   : > { %22877 = vmatpush3.bf16.msra.mxu0 %v22874_v18  ;;  %v24007_v18 = vld [vmem:[%s30004_s1 + $0x48] sm:$0xff] }
0x10f7   : > { %22879 = vmatprep.subr.bf16.mxu0 %v22878_v20 }
0x10fa   : > { %22881 = vmatpush3.bf16.msra.mxu0 %v22878_v20  ;;  %v14491_v20 = vld [vmem:[%s30005_s2 + $0x1718] sm:$0xff] }
0x10fb   : > { %22883 = vmatprep.subr.bf16.mxu0 %v22882_v16 }
0x10fe   : > { %22885 = vmatpush3.bf16.msra.mxu0 %v22882_v16  ;;  %v22922_v16 = vpack.c.bf16 %v14491_v20, %v14490_v21  ;;  %v24052_v20 = vld [vmem:[%s30004_s1 + $0x238] sm:$0xff] }
0x1101   : > { %20067 = vmatmul.mubr.f32.vlgmr.msra.gmra.mrb[168].mxu0 %v28783_v19  ;;  %v14455_v19 = vld [vmem:[%s30006_s3 + $0x4] ss:$0 sm:$0xff] }
0x1102   : > { %20069 = vmatprep.mubr.f32.mxu0 %v28802_v30 }
0x1105   : > { %20070 = vmatmul.mubr.f32.gmra.mrb[170].mxu0 %v28793_v13 }
0x1106   : > { %20072 = vmatprep.mubr.f32.mxu0 %v28814_v45 }
0x1109   : > { %20073 = vmatmul.mubr.f32.gmra.mrb[172].mxu0 %v28805_v4 }
0x110a   : > { %20075 = vmatprep.mubr.f32.mxu0 %v28826_v41 }
0x110d   : > { %20076 = vmatmul.mubr.f32.gmra.mrb[174].mxu0 %v28817_v34 }
0x110e   : > { %20310 = vmatprep.mubr.msk.f32.mxu0 %vm214_vm0, %v23990_v10  ;;  %v24011_v10 = vld [vmem:[%s30004_s1 + $0x58] sm:$0xff] }
0x11d4   : > { %v20068_v30 = vpop.f32.mrb[168].mxu0 }
0x11d5   : > { %v11109_v13 = vadd.f32 %v20068_v30, %v14455_v19  ;;  %v11053_v2 = vpop.f32.mrb[169].mxu0  ;;  %v24013_v30 = vld [vmem:[%s30004_s1 + $0x60] sm:$0xff] }
0x11d6   : > { %v11108_v45 = vadd.f32 %v14455_v19, %v11053_v2  ;;  %v14492_v2 = vld [vmem:[%s30005_s2 + $0x1720] sm:$0xff] }
0x11d7   : > { %v11117_v4 = vadd.f32 %v11109_v13, %v6871_v35  ;;  %v24014_v13 = vld [vmem:[%s30004_s1 + $0x120] sm:$0xff] }
0x11d8   : > { %v11116_v34 = vadd.f32 %v11108_v45, %v6870_v52  ;;  %v20071_v41 = vpop.f32.mrb[170].mxu0  ;;  %v14493_v45 = vld [vmem:[%s30005_s2 + $0x1728] sm:$0xff] }
0x11d9   : > { %v11125_v61 = vmax.f32 %v11117_v4, 0.0  ;;  %v11111_v50 = vadd.f32 %v20071_v41, %v14455_v19  ;;  %v11063_v27 = vpop.f32.mrb[171].mxu0  ;;  %v24015_v4 = vld [vmem:[%s30004_s1 + $0x68] sm:$0xff]  ;;  %v24017_v41 = vld [vmem:[%s30004_s1 + $0x70] sm:$0xff] }
0x11da   : > { %v11124_v24 = vmax.f32 %v11116_v34, 0.0  ;;  %v11110_v62 = vadd.f32 %v14455_v19, %v11063_v27  ;;  %v24016_v34 = vld [vmem:[%s30004_s1 + $0x128] sm:$0xff]  ;;  %v24018_v27 = vld [vmem:[%s30004_s1 + $0x130] sm:$0xff] }
0x11db   : > { %v11119_v22 = vadd.f32 %v11111_v50, %v6873_v51  ;;  %v14495_v50 = vld [vmem:[%s30005_s2 + $0x1738] sm:$0xff] }
0x11dc   : > { %v29037_v6 = vpack.c.bf16 %v11125_v61, %v11124_v24  ;;  %v11118_v38 = vadd.f32 %v11110_v62, %v6872_v63  ;;  %v20074_v1 = vpop.f32.mrb[172].mxu0  ;;  %v14494_v61 = vld [vmem:[%s30005_s2 + $0x1730] sm:$0xff]  ;;  %v22926_v24 = vpack.c.bf16 %v14493_v45, %v14492_v2  ;;  %v24019_v62 = vld [vmem:[%s30004_s1 + $0x78] sm:$0xff] }
0x11dd   : > { %v11127_v7 = vmax.f32 %v11119_v22, 0.0  ;;  %v11113_v35 = vadd.f32 %v20074_v1, %v14455_v19  ;;  %v11073_v46 = vpop.f32.mrb[173].mxu0  ;;  %v24020_v22 = vld [vmem:[%s30004_s1 + $0x138] sm:$0xff]  ;;  %v24021_v1 = vld [vmem:[%s30004_s1 + $0x140] sm:$0xff] }
0x11de   : > { %v11126_v58 = vmax.f32 %v11118_v38, 0.0  ;;  %v11112_v52 = vadd.f32 %v14455_v19, %v11073_v46  ;;  %22887 = vmatprep.subr.bf16.mxu1 %v29037_v6  ;;  %23031 = vmatprep.subr.bf16.mxu0 %v29037_v6  ;;  %v22930_v38 = vpack.c.bf16 %v14495_v50, %v14494_v61  ;;  %v24024_v46 = vld [vmem:[%s30004_s1 + $0x158] sm:$0xff] }
0x11df   : > { %v11121_v36 = vadd.f32 %v11113_v35, %v6875_v39  ;;  %22889 = vmatpush3.bf16.msra.mxu1 %v29037_v6  ;;  %23033 = vmatpush3.bf16.msra.mxu0 %v29037_v6  ;;  %v24023_v35 = vld [vmem:[%s30004_s1 + $0x150] sm:$0xff] }
0x11e0   : > { %v29047_v29 = vpack.c.bf16 %v11127_v7, %v11126_v58  ;;  %v11120_v15 = vadd.f32 %v11112_v52, %v6874_v14  ;;  %v20077_v51 = vpop.f32.mrb[174].mxu0  ;;  %v24022_v7 = vld [vmem:[%s30004_s1 + $0x148] sm:$0xff]  ;;  %v24025_v58 = vld [vmem:[%s30004_s1 + $0x160] sm:$0xff] }
0x11e1   : > { %v11129_v63 = vmax.f32 %v11121_v36, 0.0  ;;  %v11115_v8 = vadd.f32 %v20077_v51, %v14455_v19  ;;  %v11083_v53 = vpop.f32.mrb[175].mxu0  ;;  %v24026_v52 = vld [vmem:[%s30004_s1 + $0x168] sm:$0xff]  ;;  %v24027_v36 = vld [vmem:[%s30004_s1 + $0x170] sm:$0xff]  ;;  %v24029_v51 = vld [vmem:[%s30004_s1 + $0x180] sm:$0xff] }
0x11e2   : > { %v11128_v11 = vmax.f32 %v11120_v15, 0.0  ;;  %v11114_v60 = vadd.f32 %v14455_v19, %v11083_v53  ;;  %22891 = vmatprep.subr.bf16.mxu1 %v29047_v29  ;;  %23035 = vmatprep.subr.bf16.mxu0 %v29047_v29  ;;  %v24012_v19 = vld [vmem:[%s30004_s1 + $0x118] sm:$0xff] }
0x11e3   : > { %v11123_v31 = vadd.f32 %v11115_v8, %v6877_v0  ;;  %22893 = vmatpush3.bf16.msra.mxu1 %v29047_v29  ;;  %23037 = vmatpush3.bf16.msra.mxu0 %v29047_v29  ;;  %v23992_v0 = vld [vmem:[%s30004_s1 + $0xc8] sm:$0xff]  ;;  %v24028_v15 = vld [vmem:[%s30004_s1 + $0x178] sm:$0xff]  ;;  %v24031_v8 = vld [vmem:[%s30004_s1 + $0x190] sm:$0xff] }
0x11e4   : > { %v29057_v39 = vpack.c.bf16 %v11129_v63, %v11128_v11  ;;  %v11122_v44 = vadd.f32 %v11114_v60, %v6876_v43  ;;  %v23993_v43 = vld [vmem:[%s30004_s1 + $0x10] sm:$0xff]  ;;  %v24030_v63 = vld [vmem:[%s30004_s1 + $0x188] sm:$0xff]  ;;  %v24032_v53 = vld [vmem:[%s30004_s1 + $0x198] sm:$0xff] }
0x11e5   : > { %v11131_v14 = vmax.f32 %v11123_v31, 0.0  ;;  %v24033_v11 = vld [vmem:[%s30004_s1 + $0x1a0] sm:$0xff]  ;;  %v24034_v60 = vld [vmem:[%s30004_s1 + $0x1a8] sm:$0xff]  ;;  %v24035_v31 = vld [vmem:[%s30004_s1 + $0x1b0] sm:$0xff] }
0x11e6   : > { %v11130_v37 = vmax.f32 %v11122_v44, 0.0  ;;  %22895 = vmatprep.subr.bf16.mxu1 %v29057_v39  ;;  %23039 = vmatprep.subr.bf16.mxu0 %v29057_v39  ;;  %v24036_v44 = vld [vmem:[%s30004_s1 + $0x1b8] sm:$0xff] }
0x11e7   : > { %22897 = vmatpush3.bf16.msra.mxu1 %v29057_v39  ;;  %23041 = vmatpush3.bf16.msra.mxu0 %v29057_v39 }
0x11e8   : > { %v29065_v32 = vpack.c.bf16 %v11131_v14, %v11130_v37  ;;  %v24037_v14 = vld [vmem:[%s30004_s1 + $0x1c0] sm:$0xff]  ;;  %v24038_v37 = vld [vmem:[%s30004_s1 + $0x1c8] sm:$0xff] }
0x11ea   : > { %22899 = vmatprep.subr.bf16.mxu1 %v29065_v32  ;;  %23043 = vmatprep.subr.bf16.mxu0 %v29065_v32 }
0x11eb   : > { %22901 = vmatpush3.bf16.msra.mxu1 %v29065_v32  ;;  %23045 = vmatpush3.bf16.msra.mxu0 %v29065_v32 }
0x11ec   : > { %22903 = vmatprep.subr.bf16.mxu1 %v29037_v6  ;;  %23079 = vmatprep.subr.bf16.mxu0 %v29037_v6 }
0x11ee   : > { %20095 = vmatmul.mubr.msk.f32.vlgmr.msra.gmra.mrb[224].mxu1 %vm214_vm0, %v23991_v59  ;;  %20311 = vmatmul.mubr.msk.f32.vlgmr.msra.gmra.mrb[184].mxu0 %vm214_vm0, %v23992_v0  ;;  %v24039_v59 = vld [vmem:[%s30004_s1 + $0x1d0] sm:$0xff]  ;;  %v24040_v0 = vld [vmem:[%s30004_s1 + $0x1d8] sm:$0xff] }
0x11ef   : > { %22905 = vmatpush3.bf16.msra.mxu1 %v29037_v6  ;;  %23081 = vmatpush3.bf16.msra.mxu0 %v29037_v6 }
0x11f0   : > { %22907 = vmatprep.subr.bf16.mxu1 %v29047_v29  ;;  %23083 = vmatprep.subr.bf16.mxu0 %v29047_v29 }
0x11f1   : > { %20097 = vmatprep.mubr.msk.f32.mxu1 %vm214_vm0, %v23993_v43  ;;  %20313 = vmatprep.mubr.msk.f32.mxu0 %vm214_vm0, %v23994_v12  ;;  %v24041_v43 = vld [vmem:[%s30004_s1 + $0x1e0] sm:$0xff]  ;;  %v24042_v12 = vld [vmem:[%s30004_s1 + $0x1e8] sm:$0xff] }
0x11f2   : > { %20098 = vmatmul.mubr.msk.f32.gmra.mrb[226].mxu1 %vm214_vm0, %v23995_v28  ;;  %20314 = vmatmul.mubr.msk.f32.gmra.mrb[186].mxu0 %vm214_vm0, %v23996_v57  ;;  %v24043_v28 = vld [vmem:[%s30004_s1 + $0x1f0] sm:$0xff]  ;;  %v24044_v57 = vld [vmem:[%s30004_s1 + $0x1f8] sm:$0xff] }
0x11f3   : > { %22909 = vmatpush3.bf16.msra.mxu1 %v29047_v29  ;;  %23085 = vmatpush3.bf16.msra.mxu0 %v29047_v29 }
0x11f4   : > { %22911 = vmatprep.subr.bf16.mxu1 %v29057_v39  ;;  %23087 = vmatprep.subr.bf16.mxu0 %v29057_v39 }
0x11f5   : > { %20100 = vmatprep.mubr.msk.f32.mxu1 %vm214_vm0, %v23997_v26  ;;  %20316 = vmatprep.mubr.msk.f32.mxu0 %vm214_vm0, %v23998_v17  ;;  %v24045_v26 = vld [vmem:[%s30004_s1 + $0x200] sm:$0xff]  ;;  %v24046_v17 = vld [vmem:[%s30004_s1 + $0x208] sm:$0xff] }
0x11f6   : > { %20101 = vmatmul.mubr.msk.f32.gmra.mrb[228].mxu1 %vm214_vm0, %v23999_v25  ;;  %20317 = vmatmul.mubr.msk.f32.gmra.mrb[188].mxu0 %vm214_vm0, %v24000_v55  ;;  %v24047_v25 = vld [vmem:[%s30004_s1 + $0x210] sm:$0xff]  ;;  %v14496_v55 = vld [vmem:[%s30005_s2 + $0x1740] sm:$0xff] }
0x11f7   : > { %22913 = vmatpush3.bf16.msra.mxu1 %v29057_v39  ;;  %23089 = vmatpush3.bf16.msra.mxu0 %v29057_v39  ;;  %v22934_v3 = vpack.c.bf16 %v14497_v47, %v14496_v55  ;;  %v24053_v55 = vld [vmem:[%s30004_s1 + $0x80] sm:$0xff] }
0x11f8   : > { %22915 = vmatprep.subr.bf16.mxu1 %v29065_v32  ;;  %23091 = vmatprep.subr.bf16.mxu0 %v29065_v32  ;;  %v14516_v47 = vld [vmem:[%s30005_s2 + $0x17a0] sm:$0xff] }
0x11f9   : > { %20103 = vmatprep.mubr.msk.f32.mxu1 %vm214_vm0, %v24001_v42  ;;  %20319 = vmatprep.mubr.msk.f32.mxu0 %vm214_vm0, %v24002_v23  ;;  %v24048_v42 = vld [vmem:[%s30004_s1 + $0x218] sm:$0xff]  ;;  %v24049_v23 = vld [vmem:[%s30004_s1 + $0x220] sm:$0xff] }
0x11fa   : > { %20104 = vmatmul.mubr.msk.f32.gmra.mrb[230].mxu1 %vm214_vm0, %v24003_v33  ;;  %20320 = vmatmul.mubr.msk.f32.gmra.mrb[190].mxu0 %vm214_vm0, %v24004_v40  ;;  %v14499_v33 = vld [vmem:[%s30005_s2 + $0x1758] sm:$0xff] }
0x11fb   : > { %22917 = vmatpush3.bf16.msra.mxu1 %v29065_v32  ;;  %23093 = vmatpush3.bf16.msra.mxu0 %v29065_v32 }
0x11fc   : > { %23127 = vmatprep.subr.bf16.mxu0 %v29037_v6  ;;  %20122 = vmatprep.mubr.msk.f32.mxu1 %vm214_vm0, %v24005_v48  ;;  %v24050_v48 = vld [vmem:[%s30004_s1 + $0x228] sm:$0xff] }
0x11fd   : > { %20382 = vmatprep.mubr.msk.f32.mxu0 %vm214_vm0, %v24006_v56  ;;  %22919 = vmatprep.subr.bf16.mxu1 %v22918_v5  ;;  %v24051_v56 = vld [vmem:[%s30004_s1 + $0x230] sm:$0xff] }
0x11fe   : > { %20123 = vmatmul.mubr.msk.f32.vlgmr.msra.gmra.mrb[232].mxu1 %vm214_vm0, %v24007_v18  ;;  %20383 = vmatmul.mubr.msk.f32.vlgmr.msra.gmra.mrb[192].mxu0 %vm214_vm0, %v24008_v49  ;;  %v14500_v18 = vld [vmem:[%s30005_s2 + $0x1760] sm:$0xff]  ;;  %v14501_v49 = vld [vmem:[%s30005_s2 + $0x1768] sm:$0xff] }
0x11ff   : > { %23129 = vmatpush3.bf16.msra.mxu0 %v29037_v6  ;;  %20125 = vmatprep.mubr.msk.f32.mxu1 %vm214_vm0, %v24009_v9  ;;  %v22942_v21 = vpack.c.bf16 %v14501_v49, %v14500_v18  ;;  %v14502_v9 = vld [vmem:[%s30005_s2 + $0x1770] sm:$0xff]  ;;  %v14520_v18 = vld [vmem:[%s30005_s2 + $0x17c0] sm:$0xff]  ;;  %v14521_v49 = vld [vmem:[%s30005_s2 + $0x17c8] sm:$0xff] }
0x1200   : > { %23131 = vmatprep.subr.bf16.mxu0 %v29047_v29  ;;  %20385 = vmatprep.mubr.msk.f32.mxu0 %vm214_vm0, %v24010_v54  ;;  %v14503_v54 = vld [vmem:[%s30005_s2 + $0x1778] sm:$0xff] }
0x1201   : > { %22921 = vmatpush3.bf16.msra.mxu1 %v22918_v5  ;;  %v14498_v5 = vld [vmem:[%s30005_s2 + $0x1750] sm:$0xff] }
0x1202   : > { %20126 = vmatmul.mubr.msk.f32.gmra.mrb[234].mxu1 %vm214_vm0, %v24011_v10  ;;  %20386 = vmatmul.mubr.msk.f32.gmra.mrb[194].mxu0 %vm214_vm0, %v24012_v19  ;;  %v22938_v40 = vpack.c.bf16 %v14499_v33, %v14498_v5  ;;  %v14464_v10 = vld [vmem:[%s30005_s2 + $0x1680] sm:$0xff]  ;;  %v14465_v19 = vld [vmem:[%s30005_s2 + $0x1688] sm:$0xff]  ;;  %v14518_v5 = vld [vmem:[%s30005_s2 + $0x17b0] sm:$0xff] }
0x1203   : > { %23133 = vmatpush3.bf16.msra.mxu0 %v29047_v29  ;;  %20128 = vmatprep.mubr.msk.f32.mxu1 %vm214_vm0, %v24013_v30  ;;  %v22950_v30 = vpack.c.bf16 %v14465_v19, %v14464_v10  ;;  %v14519_v33 = vld [vmem:[%s30005_s2 + $0x17b8] sm:$0xff] }
0x1204   : > { %23135 = vmatprep.subr.bf16.mxu0 %v29057_v39  ;;  %20388 = vmatprep.mubr.msk.f32.mxu0 %vm214_vm0, %v24014_v13  ;;  %v24060_v10 = vld [vmem:[%s30004_s1 + $0xb8] sm:$0xff] }
0x1205   : > { %22923 = vmatprep.subr.bf16.mxu1 %v22922_v16 }
0x1206   : > { %20129 = vmatmul.mubr.msk.f32.gmra.mrb[236].mxu1 %vm214_vm0, %v24015_v4  ;;  %20389 = vmatmul.mubr.msk.f32.gmra.mrb[196].mxu0 %vm214_vm0, %v24016_v34 }
0x1207   : > { %23137 = vmatpush3.bf16.msra.mxu0 %v29057_v39  ;;  %20131 = vmatprep.mubr.msk.f32.mxu1 %vm214_vm0, %v24017_v41 }
0x1208   : > { %23139 = vmatprep.subr.bf16.mxu0 %v29065_v32  ;;  %20391 = vmatprep.mubr.msk.f32.mxu0 %vm214_vm0, %v24018_v27  ;;  %v14466_v27 = vld [vmem:[%s30005_s2 + $0x1690] sm:$0xff] }
0x1209   : > { %22925 = vmatpush3.bf16.msra.mxu1 %v22922_v16  ;;  %v22946_v16 = vpack.c.bf16 %v14503_v54, %v14502_v9  ;;  %v23014_v9 = vpack.c.bf16 %v14521_v49, %v14520_v18  ;;  %v14522_v54 = vld [vmem:[%s30005_s2 + $0x17d0] sm:$0xff]  ;;  %v14547_v49 = vld [vmem:[%s30005_s2 + $0x1858] sm:$0xff] }
0x120a   : > { %20132 = vmatmul.mubr.msk.f32.gmra.mrb[238].mxu1 %vm214_vm0, %v24019_v62  ;;  %20392 = vmatmul.mubr.msk.f32.gmra.mrb[198].mxu0 %vm214_vm0, %v24020_v22  ;;  %v14546_v18 = vld [vmem:[%s30005_s2 + $0x1850] sm:$0xff] }
0x120b   : > { %23141 = vmatpush3.bf16.msra.mxu0 %v29065_v32  ;;  %20454 = vmatprep.mubr.msk.f32.mxu0 %vm214_vm0, %v24021_v1  ;;  %v14468_v1 = vld [vmem:[%s30005_s2 + $0x16a0] sm:$0xff] }
0x120c   : > { %23175 = vmatprep.subr.bf16.mxu0 %v29037_v6  ;;  %22927 = vmatprep.subr.bf16.mxu1 %v22926_v24 }
0x120d   : > { %22929 = vmatpush3.bf16.msra.mxu1 %v22926_v24  ;;  %v14467_v24 = vld [vmem:[%s30005_s2 + $0x1698] sm:$0xff] }
0x120e   : > { %20455 = vmatmul.mubr.msk.f32.vlgmr.msra.gmra.mrb[200].mxu0 %vm214_vm0, %v24022_v7  ;;  %22931 = vmatprep.subr.bf16.mxu1 %v22930_v38  ;;  %v14469_v7 = vld [vmem:[%s30005_s2 + $0x16a8] sm:$0xff] }
0x120f   : > { %23177 = vmatpush3.bf16.msra.mxu0 %v29037_v6  ;;  %20457 = vmatprep.mubr.msk.f32.mxu0 %vm214_vm0, %v24023_v35 }
0x1210   : > { %23179 = vmatprep.subr.bf16.mxu0 %v29047_v29 }
0x1211   : > { %22933 = vmatpush3.bf16.msra.mxu1 %v22930_v38  ;;  %v22954_v38 = vpack.c.bf16 %v14467_v24, %v14466_v27 }
0x1212   : > { %20458 = vmatmul.mubr.msk.f32.gmra.mrb[202].mxu0 %vm214_vm0, %v24024_v46  ;;  %22935 = vmatprep.subr.bf16.mxu1 %v22934_v3 }
0x1213   : > { %23181 = vmatpush3.bf16.msra.mxu0 %v29047_v29  ;;  %20460 = vmatprep.mubr.msk.f32.mxu0 %vm214_vm0, %v24025_v58  ;;  %v22958_v58 = vpack.c.bf16 %v14469_v7, %v14468_v1 }
0x1214   : > { %23183 = vmatprep.subr.bf16.mxu0 %v29057_v39 }
0x1215   : > { %22937 = vmatpush3.bf16.msra.mxu1 %v22934_v3  ;;  %v14517_v3 = vld [vmem:[%s30005_s2 + $0x17a8] sm:$0xff] }
0x1216   : > { %20461 = vmatmul.mubr.msk.f32.gmra.mrb[204].mxu0 %vm214_vm0, %v24026_v52  ;;  %22939 = vmatprep.subr.bf16.mxu1 %v22938_v40  ;;  %v14470_v52 = vld [vmem:[%s30005_s2 + $0x16b0] sm:$0xff] }
0x1217   : > { %23185 = vmatpush3.bf16.msra.mxu0 %v29057_v39  ;;  %20463 = vmatprep.mubr.msk.f32.mxu0 %vm214_vm0, %v24027_v36  ;;  %v14471_v36 = vld [vmem:[%s30005_s2 + $0x16b8] sm:$0xff] }
0x1218   : > { %23187 = vmatprep.subr.bf16.mxu0 %v29065_v32 }
0x1219   : > { %22941 = vmatpush3.bf16.msra.mxu1 %v22938_v40  ;;  %v24056_v40 = vld [vmem:[%s30004_s1 + $0x98] sm:$0xff] }
0x121a   : > { %20464 = vmatmul.mubr.msk.f32.gmra.mrb[206].mxu0 %vm214_vm0, %v24028_v15  ;;  %22943 = vmatprep.subr.bf16.mxu1 %v22942_v21 }
0x121b   : > { %23189 = vmatpush3.bf16.msra.mxu0 %v29065_v32  ;;  %20526 = vmatprep.mubr.msk.f32.mxu0 %vm214_vm0, %v24029_v51 }
0x121c   : > { %23223 = vmatprep.subr.bf16.mxu0 %v29037_v6 }
0x121d   : > { %22945 = vmatpush3.bf16.msra.mxu1 %v22942_v21  ;;  %v24058_v21 = vld [vmem:[%s30004_s1 + $0xa8] sm:$0xff] }
0x121e   : > { %20527 = vmatmul.mubr.msk.f32.vlgmr.msra.gmra.mrb[208].mxu0 %vm214_vm0, %v24030_v63  ;;  %22947 = vmatprep.subr.bf16.mxu1 %v22946_v16  ;;  %v22962_v63 = vpack.c.bf16 %v14471_v36, %v14470_v52 }
0x121f   : > { %23225 = vmatpush3.bf16.msra.mxu0 %v29037_v6  ;;  %20529 = vmatprep.mubr.msk.f32.mxu0 %vm214_vm0, %v24031_v8  ;;  %v14472_v8 = vld [vmem:[%s30005_s2 + $0x16c0] sm:$0xff] }
0x1220   : > { %23227 = vmatprep.subr.bf16.mxu0 %v29047_v29 }
0x1221   : > { %22949 = vmatpush3.bf16.msra.mxu1 %v22946_v16  ;;  %v14523_v16 = vld [vmem:[%s30005_s2 + $0x17d8] sm:$0xff] }
0x1222   : > { %20530 = vmatmul.mubr.msk.f32.gmra.mrb[210].mxu0 %vm214_vm0, %v24032_v53  ;;  %22951 = vmatprep.subr.bf16.mxu1 %v22950_v30  ;;  %v14473_v53 = vld [vmem:[%s30005_s2 + $0x16c8] sm:$0xff]  ;;  %v23018_v19 = vpack.c.bf16 %v14523_v16, %v14522_v54 }
0x1223   : > { %23229 = vmatpush3.bf16.msra.mxu0 %v29047_v29  ;;  %20532 = vmatprep.mubr.msk.f32.mxu0 %vm214_vm0, %v24033_v11  ;;  %v14549_v54 = vld [vmem:[%s30005_s2 + $0x1868] sm:$0xff] }
0x1224   : > { %23231 = vmatprep.subr.bf16.mxu0 %v29057_v39 }
0x1226   : > { %20533 = vmatmul.mubr.msk.f32.gmra.mrb[212].mxu0 %vm214_vm0, %v24034_v60 }
0x1227   : > { %23233 = vmatpush3.bf16.msra.mxu0 %v29057_v39  ;;  %20535 = vmatprep.mubr.msk.f32.mxu0 %vm214_vm0, %v24035_v31  ;;  %v22966_v31 = vpack.c.bf16 %v14473_v53, %v14472_v8 }
0x1228   : > { %23235 = vmatprep.subr.bf16.mxu0 %v29065_v32 }
0x122a   : > { %20536 = vmatmul.mubr.msk.f32.gmra.mrb[214].mxu0 %vm214_vm0, %v24036_v44  ;;  %v14474_v44 = vld [vmem:[%s30005_s2 + $0x16d0] sm:$0xff] }
0x122b   : > { %23237 = vmatpush3.bf16.msra.mxu0 %v29065_v32  ;;  %20598 = vmatprep.mubr.msk.f32.mxu0 %vm214_vm0, %v24037_v14  ;;  %v14475_v14 = vld [vmem:[%s30005_s2 + $0x16d8] sm:$0xff] }
0x122c   : > { %23271 = vmatprep.subr.bf16.mxu0 %v29037_v6 }
0x122e   : > { %20599 = vmatmul.mubr.msk.f32.vlgmr.msra.gmra.mrb[216].mxu0 %vm214_vm0, %v24038_v37  ;;  %v22970_v37 = vpack.c.bf16 %v14475_v14, %v14474_v44 }
0x122f   : > { %23273 = vmatpush3.bf16.msra.mxu0 %v29037_v6  ;;  %20601 = vmatprep.mubr.msk.f32.mxu0 %vm214_vm0, %v24039_v59  ;;  %v14476_v59 = vld [vmem:[%s30005_s2 + $0x16e0] sm:$0xff] }
0x1230   : > { %23275 = vmatprep.subr.bf16.mxu0 %v29047_v29 }
0x1232   : > { %20602 = vmatmul.mubr.msk.f32.gmra.mrb[218].mxu0 %vm214_vm0, %v24040_v0  ;;  %v14477_v0 = vld [vmem:[%s30005_s2 + $0x16e8] sm:$0xff] }
0x1233   : > { %23277 = vmatpush3.bf16.msra.mxu0 %v29047_v29  ;;  %20604 = vmatprep.mubr.msk.f32.mxu0 %vm214_vm0, %v24041_v43  ;;  %v22974_v43 = vpack.c.bf16 %v14477_v0, %v14476_v59 }
0x1234   : > { %23279 = vmatprep.subr.bf16.mxu0 %v29057_v39 }
0x1236   : > { %20605 = vmatmul.mubr.msk.f32.gmra.mrb[220].mxu0 %vm214_vm0, %v24042_v12  ;;  %v14478_v12 = vld [vmem:[%s30005_s2 + $0x16f0] sm:$0xff] }
0x1237   : > { %23281 = vmatpush3.bf16.msra.mxu0 %v29057_v39  ;;  %20607 = vmatprep.mubr.msk.f32.mxu0 %vm214_vm0, %v24043_v28  ;;  %v14479_v28 = vld [vmem:[%s30005_s2 + $0x16f8] sm:$0xff] }
0x1238   : > { %23283 = vmatprep.subr.bf16.mxu0 %v29065_v32 }
0x123a   : > { %20608 = vmatmul.mubr.msk.f32.gmra.mrb[222].mxu0 %vm214_vm0, %v24044_v57  ;;  %v22978_v57 = vpack.c.bf16 %v14479_v28, %v14478_v12  ;;  %v14539_v12 = vld [vmem:[%s30005_s2 + $0x1818] sm:$0xff] }
0x123b   : > { %23285 = vmatpush3.bf16.msra.mxu0 %v29065_v32  ;;  %20670 = vmatprep.mubr.msk.f32.mxu0 %vm214_vm0, %v24045_v26  ;;  %v14512_v26 = vld [vmem:[%s30005_s2 + $0x1780] sm:$0xff] }
0x123e   : > { %20671 = vmatmul.mubr.msk.f32.vlgmr.msra.gmra.mrb[224].mxu0 %vm214_vm0, %v24046_v17  ;;  %v14513_v17 = vld [vmem:[%s30005_s2 + $0x1788] sm:$0xff] }
0x123f   : > { %20673 = vmatprep.mubr.msk.f32.mxu0 %vm214_vm0, %v24047_v25  ;;  %v14515_v25 = vld [vmem:[%s30005_s2 + $0x1798] sm:$0xff] }
0x1242   : > { %20674 = vmatmul.mubr.msk.f32.gmra.mrb[226].mxu0 %vm214_vm0, %v24048_v42  ;;  %v24055_v42 = vld [vmem:[%s30004_s1 + $0x90] sm:$0xff] }
0x1243   : > { %20676 = vmatprep.mubr.msk.f32.mxu0 %vm214_vm0, %v24049_v23  ;;  %v23006_v23 = vpack.c.bf16 %v14517_v3, %v14516_v47  ;;  %v14542_v47 = vld [vmem:[%s30005_s2 + $0x1830] sm:$0xff]  ;;  %v14543_v3 = vld [vmem:[%s30005_s2 + $0x1838] sm:$0xff] }
0x1246   : > { %20677 = vmatmul.mubr.msk.f32.gmra.mrb[228].mxu0 %vm214_vm0, %v24050_v48  ;;  %v24057_v48 = vld [vmem:[%s30004_s1 + $0xa0] sm:$0xff] }
0x1247   : > { %20679 = vmatprep.mubr.msk.f32.mxu0 %vm214_vm0, %v24051_v56  ;;  %v23010_v56 = vpack.c.bf16 %v14519_v33, %v14518_v5  ;;  %v14544_v5 = vld [vmem:[%s30005_s2 + $0x1840] sm:$0xff]  ;;  %v14545_v33 = vld [vmem:[%s30005_s2 + $0x1848] sm:$0xff] }
0x124a   : > { %20680 = vmatmul.mubr.msk.f32.gmra.mrb[230].mxu0 %vm214_vm0, %v24052_v20  ;;  %v24059_v20 = vld [vmem:[%s30004_s1 + $0xb0] sm:$0xff] }
0x12c1   : > { %v20096_v13 = vpop.f32.mrb[224].mxu1  ;;  %v29569_v27 = vpop.f32.mrb[184].mxu0 }
0x12c2   : > { %v11198_v2 = vpop.f32.mrb[225].mxu1  ;;  %v11887_v24 = vpop.f32.mrb[185].mxu0 }
0x12c5   : > { %v29421_v45 = vpop.f32.mrb[226].mxu1 }
0x12c6   : > { %v11208_v4 = vpop.f32.mrb[227].mxu1 }
0x12c9   : > { %v29423_v34 = vpop.f32.mrb[228].mxu1 }
0x12ca   : > { %v11218_v41 = vpop.f32.mrb[229].mxu1 }
0x12cd   : > { %v29425_v61 = vpop.f32.mrb[230].mxu1 }
0x12ce   : > { %v29427_v50 = vpop.f32.mrb[231].mxu1 }
0x12d1   : > { %v20124_v62 = vpop.f32.mrb[232].mxu1 }
0x12d2   : > { %v11320_v22 = vpop.f32.mrb[233].mxu1 }
0x12d3   : > { %20166 = vmatprep.mubr.f32.mxu1 %v11320_v22 }
0x12d4   : > { %20167 = vmatmul.mubr.f32.vlgmr.msra.gmra.mrb[240].mxu1 %v20124_v62  ;;  %v29571_v62 = vpop.f32.mrb[186].mxu0 }
0x12d5   : > { %22953 = vmatpush3.bf16.msra.mxu1 %v22950_v30  ;;  %v20127_v35 = vpop.f32.mrb[234].mxu1  ;;  %v14524_v30 = vld [vmem:[%s30005_s2 + $0x17e0] sm:$0xff]  ;;  %v29573_v22 = vpop.f32.mrb[187].mxu0 }
0x12d6   : > { %v11330_v46 = vpop.f32.mrb[235].mxu1  ;;  %22955 = vmatprep.subr.bf16.mxu1 %v22954_v38 }
0x12d7   : > { %20169 = vmatprep.mubr.f32.mxu1 %v11330_v46 }
0x12d8   : > { %20170 = vmatmul.mubr.f32.gmra.mrb[242].mxu1 %v20127_v35 }
0x12d9   : > { %22957 = vmatpush3.bf16.msra.mxu1 %v22954_v38  ;;  %v20130_v15 = vpop.f32.mrb[236].mxu1  ;;  %v29575_v38 = vpop.f32.mrb[188].mxu0 }
0x12da   : > { %v11340_v51 = vpop.f32.mrb[237].mxu1  ;;  %22959 = vmatprep.subr.bf16.mxu1 %v22958_v58  ;;  %v29577_v1 = vpop.f32.mrb[189].mxu0 }
0x12db   : > { %20172 = vmatprep.mubr.f32.mxu1 %v11340_v51  ;;  %v29579_v7 = vpop.f32.mrb[190].mxu0 }
0x12dc   : > { %20173 = vmatmul.mubr.f32.gmra.mrb[244].mxu1 %v20130_v15  ;;  %v29581_v35 = vpop.f32.mrb[191].mxu0 }
0x12dd   : > { %22961 = vmatpush3.bf16.msra.mxu1 %v22958_v58  ;;  %v20133_v11 = vpop.f32.mrb[238].mxu1  ;;  %v29583_v46 = vpop.f32.mrb[192].mxu0 }
0x12de   : > { %v11350_v60 = vpop.f32.mrb[239].mxu1  ;;  %22963 = vmatprep.subr.bf16.mxu1 %v22962_v63  ;;  %v29585_v58 = vpop.f32.mrb[193].mxu0 }
0x12df   : > { %20175 = vmatprep.mubr.f32.mxu1 %v11350_v60  ;;  %v29587_v52 = vpop.f32.mrb[194].mxu0 }
0x12e0   : > { %20176 = vmatmul.mubr.f32.gmra.mrb[246].mxu1 %v20133_v11  ;;  %v29589_v36 = vpop.f32.mrb[195].mxu0 }
0x12e1   : > { %22965 = vmatpush3.bf16.msra.mxu1 %v22962_v63  ;;  %20210 = vmatprep.mubr.f32.mxu1 %v11198_v2  ;;  %v29591_v15 = vpop.f32.mrb[196].mxu0 }
0x12e2   : > { %22967 = vmatprep.subr.bf16.mxu1 %v22966_v31  ;;  %v29593_v51 = vpop.f32.mrb[197].mxu0 }
0x12e3   : > { %v29595_v63 = vpop.f32.mrb[198].mxu0 }
0x12e4   : > { %v29597_v8 = vpop.f32.mrb[199].mxu0 }
0x12e5   : > { %22969 = vmatpush3.bf16.msra.mxu1 %v22966_v31  ;;  %v29599_v53 = vpop.f32.mrb[200].mxu0 }
0x12e6   : > { %22971 = vmatprep.subr.bf16.mxu1 %v22970_v37  ;;  %v29601_v11 = vpop.f32.mrb[201].mxu0 }
0x12e7   : > { %v29603_v60 = vpop.f32.mrb[202].mxu0 }
0x12e8   : > { %v29605_v31 = vpop.f32.mrb[203].mxu0 }
0x12e9   : > { %22973 = vmatpush3.bf16.msra.mxu1 %v22970_v37  ;;  %v29607_v44 = vpop.f32.mrb[204].mxu0 }
0x12ea   : > { %22975 = vmatprep.subr.bf16.mxu1 %v22974_v43  ;;  %v29609_v14 = vpop.f32.mrb[205].mxu0 }
0x12ed   : > { %22977 = vmatpush3.bf16.msra.mxu1 %v22974_v43  ;;  %v29611_v37 = vpop.f32.mrb[206].mxu0  ;;  %v14538_v43 = vld [vmem:[%s30005_s2 + $0x1810] sm:$0xff] }
0x12ee   : > { %22979 = vmatprep.subr.bf16.mxu1 %v22978_v57  ;;  %v29613_v59 = vpop.f32.mrb[207].mxu0 }
0x12f1   : > { %22981 = vmatpush3.bf16.msra.mxu1 %v22978_v57  ;;  %v29615_v0 = vpop.f32.mrb[208].mxu0 }
0x12f2   : > { %22983 = vmatprep.subr.bf16.mxu1 %v29037_v6  ;;  %v29623_v57 = vpop.f32.mrb[209].mxu0 }
0x12f4   : > { %20211 = vmatmul.mubr.f32.vlgmr.msra.gmra.mrb[240].mxu1 %v20096_v13  ;;  %v14525_v13 = vld [vmem:[%s30005_s2 + $0x17e8] sm:$0xff] }
0x12f5   : > { %20213 = vmatprep.mubr.f32.mxu1 %v11208_v4  ;;  %22985 = vmatpush3.bf16.msra.mxu1 %v29037_v6  ;;  %v22998_v6 = vpack.c.bf16 %v14513_v17, %v14512_v26  ;;  %v23022_v2 = vpack.c.bf16 %v14525_v13, %v14524_v30  ;;  %v14527_v4 = vld [vmem:[%s30005_s2 + $0x17f8] sm:$0xff]  ;;  %v23050_v17 = vpack.c.bf16 %v14539_v12, %v14538_v43  ;;  %v14550_v30 = vld [vmem:[%s30005_s2 + $0x1870] sm:$0xff] }
0x12f6   : > { %22987 = vmatprep.subr.bf16.mxu1 %v29047_v29  ;;  %v14551_v13 = vld [vmem:[%s30005_s2 + $0x1878] sm:$0xff]  ;;  %v14562_v43 = vld [vmem:[%s30005_s2 + $0x1890] sm:$0xff] }
0x12f7   : > { %v14563_v12 = vld [vmem:[%s30005_s2 + $0x1898] sm:$0xff] }
0x12f8   : > { %20214 = vmatmul.mubr.f32.gmra.mrb[242].mxu1 %v29421_v45  ;;  %v14526_v45 = vld [vmem:[%s30005_s2 + $0x17f0] sm:$0xff] }
0x12f9   : > { %20216 = vmatprep.mubr.f32.mxu1 %v11218_v41  ;;  %22989 = vmatpush3.bf16.msra.mxu1 %v29047_v29  ;;  %v14514_v29 = vld [vmem:[%s30005_s2 + $0x1790] sm:$0xff]  ;;  %v14536_v41 = vld [vmem:[%s30005_s2 + $0x1800] sm:$0xff] }
0x12fa   : > { %22991 = vmatprep.subr.bf16.mxu1 %v29057_v39 }
0x12fc   : > { %20217 = vmatmul.mubr.f32.gmra.mrb[244].mxu1 %v29423_v34  ;;  %v23026_v34 = vpack.c.bf16 %v14527_v4, %v14526_v45  ;;  %v23074_v45 = vpack.c.bf16 %v14551_v13, %v14550_v30 }
0x12fd   : > { %20219 = vmatprep.mubr.f32.mxu1 %v29427_v50  ;;  %22993 = vmatpush3.bf16.msra.mxu1 %v29057_v39  ;;  %v23002_v39 = vpack.c.bf16 %v14515_v25, %v14514_v29  ;;  %v14541_v29 = vld [vmem:[%s30005_s2 + $0x1828] sm:$0xff] }
0x12fe   : > { %22995 = vmatprep.subr.bf16.mxu1 %v29065_v32 }
0x1300   : > { %20220 = vmatmul.mubr.f32.gmra.mrb[246].mxu1 %v29425_v61  ;;  %v14537_v61 = vld [vmem:[%s30005_s2 + $0x1808] sm:$0xff] }
0x1301   : > { %22997 = vmatpush3.bf16.msra.mxu1 %v29065_v32  ;;  %20238 = vmatprep.mubr.msk.f32.mxu1 %vm214_vm0, %v24053_v55  ;;  %v24054_v32 = vld [vmem:[%s30004_s1 + $0x88] sm:$0xff]  ;;  %v23046_v50 = vpack.c.bf16 %v14537_v61, %v14536_v41 }
0x1302   : > { %22999 = vmatprep.subr.bf16.mxu1 %v22998_v6  ;;  %v14561_v41 = vld [vmem:[%s30005_s2 + $0x1888] sm:$0xff] }
0x1304   : > { %20239 = vmatmul.mubr.msk.f32.vlgmr.msra.gmra.mrb[248].mxu1 %vm214_vm0, %v24054_v32 }
0x1305   : > { %20241 = vmatprep.mubr.msk.f32.mxu1 %vm214_vm0, %v24055_v42  ;;  %23001 = vmatpush3.bf16.msra.mxu1 %v22998_v6  ;;  %v14540_v6 = vld [vmem:[%s30005_s2 + $0x1820] sm:$0xff]  ;;  %v23058_v42 = vpack.c.bf16 %v14543_v3, %v14542_v47  ;;  %v14571_v47 = vld [vmem:[%s30005_s2 + $0x18d8] sm:$0xff] }
0x1306   : > { %23003 = vmatprep.subr.bf16.mxu1 %v23002_v39  ;;  %v23054_v55 = vpack.c.bf16 %v14541_v29, %v14540_v6  ;;  %v14565_v6 = vld [vmem:[%s30005_s2 + $0x18a8] sm:$0xff] }
0x1308   : > { %20242 = vmatmul.mubr.msk.f32.gmra.mrb[250].mxu1 %vm214_vm0, %v24056_v40 }
0x1309   : > { %20244 = vmatprep.mubr.msk.f32.mxu1 %vm214_vm0, %v24057_v48  ;;  %23005 = vmatpush3.bf16.msra.mxu1 %v23002_v39  ;;  %v23062_v48 = vpack.c.bf16 %v14545_v33, %v14544_v5  ;;  %v14574_v5 = vld [vmem:[%s30005_s2 + $0x18f0] sm:$0xff]  ;;  %v14575_v33 = vld [vmem:[%s30005_s2 + $0x18f8] sm:$0xff] }
0x130a   : > { %23007 = vmatprep.subr.bf16.mxu1 %v23006_v23 }
0x130c   : > { %20245 = vmatmul.mubr.msk.f32.gmra.mrb[252].mxu1 %vm214_vm0, %v24058_v21  ;;  %v23066_v21 = vpack.c.bf16 %v14547_v49, %v14546_v18  ;;  %v14584_v18 = vld [vmem:[%s30005_s2 + $0x1900] sm:$0xff]  ;;  %v14585_v49 = vld [vmem:[%s30005_s2 + $0x1908] sm:$0xff] }
0x130d   : > { %20247 = vmatprep.mubr.msk.f32.mxu1 %vm214_vm0, %v24059_v20  ;;  %23009 = vmatpush3.bf16.msra.mxu1 %v23006_v23  ;;  %v29649_v20 = vpop.f32.mrb[210].mxu0 }
0x130e   : > { %23011 = vmatprep.subr.bf16.mxu1 %v23010_v56  ;;  %v29657_v16 = vpop.f32.mrb[211].mxu0 }
0x1310   : > { %20248 = vmatmul.mubr.msk.f32.gmra.mrb[254].mxu1 %vm214_vm0, %v24060_v10 }
0x1311   : > { %23013 = vmatpush3.bf16.msra.mxu1 %v23010_v56 }
0x1312   : > { %23015 = vmatprep.subr.bf16.mxu1 %v23014_v9 }
0x1315   : > { %23017 = vmatpush3.bf16.msra.mxu1 %v23014_v9  ;;  %v14548_v9 = vld [vmem:[%s30005_s2 + $0x1860] sm:$0xff] }
0x1316   : > { %23019 = vmatprep.subr.bf16.mxu1 %v23018_v19  ;;  %v23070_v10 = vpack.c.bf16 %v14549_v54, %v14548_v9  ;;  %v14586_v54 = vld [vmem:[%s30005_s2 + $0x1910] sm:$0xff] }
0x1319   : > { %23021 = vmatpush3.bf16.msra.mxu1 %v23018_v19  ;;  %v29659_v19 = vpop.f32.mrb[212].mxu0 }
0x131a   : > { %23023 = vmatprep.subr.bf16.mxu1 %v23022_v2 }
0x131d   : > { %23025 = vmatpush3.bf16.msra.mxu1 %v23022_v2  ;;  %v29667_v2 = vpop.f32.mrb[213].mxu0 }
0x131e   : > { %23027 = vmatprep.subr.bf16.mxu1 %v23026_v34  ;;  %v29669_v4 = vpop.f32.mrb[214].mxu0 }
0x131f   : > { %v29677_v61 = vpop.f32.mrb[215].mxu0 }
0x1321   : > { %23029 = vmatpush3.bf16.msra.mxu1 %v23026_v34  ;;  %v14560_v34 = vld [vmem:[%s30005_s2 + $0x1880] sm:$0xff] }
0x1322   : > { %23047 = vmatprep.subr.bf16.mxu1 %v23046_v50 }
0x13d7   : > { %v20240_v28 = vpop.f32.mrb[248].mxu1 }
0x13d8   : > { %v11652_v26 = vpop.f32.mrb[249].mxu1 }
0x13d9   : > { %20282 = vmatprep.mubr.f32.mxu1 %v11652_v26  ;;  %v23098_v26 = vpack.c.bf16 %v14563_v12, %v14562_v43  ;;  %v14590_v12 = vld [vmem:[%s30005_s2 + $0x1930] sm:$0xff] }
0x13da   : > { %20283 = vmatmul.mubr.f32.vlgmr.msra.gmra.mrb[240].mxu1 %v20240_v28 }
0x13db   : > { %23049 = vmatpush3.bf16.msra.mxu1 %v23046_v50  ;;  %v20243_v25 = vpop.f32.mrb[250].mxu1  ;;  %v23094_v50 = vpack.c.bf16 %v14561_v41, %v14560_v34  ;;  %v14589_v34 = vld [vmem:[%s30005_s2 + $0x1928] sm:$0xff] }
0x13dc   : > { %23051 = vmatprep.subr.bf16.mxu1 %v23050_v17  ;;  %v11662_v39 = vpop.f32.mrb[251].mxu1 }
0x13dd   : > { %20285 = vmatprep.mubr.f32.mxu1 %v11662_v39  ;;  %v14569_v39 = vld [vmem:[%s30005_s2 + $0x18c8] sm:$0xff] }
0x13de   : > { %20286 = vmatmul.mubr.f32.gmra.mrb[242].mxu1 %v20243_v25  ;;  %v14566_v25 = vld [vmem:[%s30005_s2 + $0x18b0] sm:$0xff] }
0x13df   : > { %23053 = vmatpush3.bf16.msra.mxu1 %v23050_v17  ;;  %v20246_v32 = vpop.f32.mrb[252].mxu1  ;;  %v14564_v17 = vld [vmem:[%s30005_s2 + $0x18a0] sm:$0xff] }
0x13e0   : > { %23055 = vmatprep.subr.bf16.mxu1 %v23054_v55  ;;  %v11672_v23 = vpop.f32.mrb[253].mxu1  ;;  %v23102_v29 = vpack.c.bf16 %v14565_v6, %v14564_v17  ;;  %v14592_v6 = vld [vmem:[%s30005_s2 + $0x1940] sm:$0xff] }
0x13e1   : > { %20288 = vmatprep.mubr.f32.mxu1 %v11672_v23 }
0x13e2   : > { %20289 = vmatmul.mubr.f32.gmra.mrb[244].mxu1 %v20246_v32  ;;  %v14572_v32 = vld [vmem:[%s30005_s2 + $0x18e0] sm:$0xff] }
0x13e3   : > { %23057 = vmatpush3.bf16.msra.mxu1 %v23054_v55  ;;  %v20249_v40 = vpop.f32.mrb[254].mxu1  ;;  %v14567_v55 = vld [vmem:[%s30005_s2 + $0x18b8] sm:$0xff] }
0x13e4   : > { %23059 = vmatprep.subr.bf16.mxu1 %v23058_v42  ;;  %v11682_v56 = vpop.f32.mrb[255].mxu1 }
0x13e5   : > { %20291 = vmatprep.mubr.f32.mxu1 %v11682_v56 }
0x13e6   : > { %20292 = vmatmul.mubr.f32.gmra.mrb[246].mxu1 %v20249_v40 }
0x13e7   : > { %23061 = vmatpush3.bf16.msra.mxu1 %v23058_v42  ;;  %20354 = vmatprep.mubr.f32.mxu1 %v11887_v24  ;;  %v29679_v24 = vpop.f32.mrb[216].mxu0  ;;  %v14573_v42 = vld [vmem:[%s30005_s2 + $0x18e8] sm:$0xff] }
0x13e8   : > { %23063 = vmatprep.subr.bf16.mxu1 %v23062_v48  ;;  %v29687_v28 = vpop.f32.mrb[217].mxu0 }
0x13e9   : > { %v29721_v3 = vpop.f32.mrb[218].mxu0 }
0x13eb   : > { %23065 = vmatpush3.bf16.msra.mxu1 %v23062_v48  ;;  %v23122_v48 = vpack.c.bf16 %v14575_v33, %v14574_v5  ;;  %v14612_v5 = vld [vmem:[%s30005_s2 + $0x19a0] sm:$0xff]  ;;  %v14613_v33 = vld [vmem:[%s30005_s2 + $0x19a8] sm:$0xff] }
0x13ec   : > { %23067 = vmatprep.subr.bf16.mxu1 %v23066_v21 }
0x13ef   : > { %23069 = vmatpush3.bf16.msra.mxu1 %v23066_v21  ;;  %v23142_v21 = vpack.c.bf16 %v14585_v49, %v14584_v18  ;;  %v14614_v18 = vld [vmem:[%s30005_s2 + $0x19b0] sm:$0xff]  ;;  %v14615_v49 = vld [vmem:[%s30005_s2 + $0x19b8] sm:$0xff] }
0x13f0   : > { %23071 = vmatprep.subr.bf16.mxu1 %v23070_v10 }
0x13f3   : > { %23073 = vmatpush3.bf16.msra.mxu1 %v23070_v10  ;;  %v14587_v10 = vld [vmem:[%s30005_s2 + $0x1918] sm:$0xff] }
0x13f4   : > { %23075 = vmatprep.subr.bf16.mxu1 %v23074_v45  ;;  %v23146_v13 = vpack.c.bf16 %v14587_v10, %v14586_v54  ;;  %v14619_v54 = vld [vmem:[%s30005_s2 + $0x19d8] sm:$0xff]  ;;  %v14621_v10 = vld [vmem:[%s30005_s2 + $0x19e8] sm:$0xff] }
0x13f7   : > { %23077 = vmatpush3.bf16.msra.mxu1 %v23074_v45  ;;  %v14588_v45 = vld [vmem:[%s30005_s2 + $0x1920] sm:$0xff] }
0x13f8   : > { %23095 = vmatprep.subr.bf16.mxu1 %v23094_v50  ;;  %v23150_v43 = vpack.c.bf16 %v14589_v34, %v14588_v45  ;;  %v14632_v34 = vld [vmem:[%s30005_s2 + $0x1a00] sm:$0xff] }
0x13fa   : > { %20355 = vmatmul.mubr.f32.vlgmr.msra.gmra.mrb[240].mxu1 %v29569_v27  ;;  %v23106_v27 = vpack.c.bf16 %v14567_v55, %v14566_v25  ;;  %v14594_v55 = vld [vmem:[%s30005_s2 + $0x1950] sm:$0xff] }
0x13fb   : > { %23097 = vmatpush3.bf16.msra.mxu1 %v23094_v50  ;;  %20357 = vmatprep.mubr.f32.mxu1 %v29573_v22  ;;  %v14568_v22 = vld [vmem:[%s30005_s2 + $0x18c0] sm:$0xff] }
0x13fc   : > { %23099 = vmatprep.subr.bf16.mxu1 %v23098_v26 }
0x13fe   : > { %20358 = vmatmul.mubr.f32.gmra.mrb[242].mxu1 %v29571_v62  ;;  %v23110_v62 = vpack.c.bf16 %v14569_v39, %v14568_v22  ;;  %v14597_v22 = vld [vmem:[%s30005_s2 + $0x1968] sm:$0xff] }
0x13ff   : > { %23101 = vmatpush3.bf16.msra.mxu1 %v23098_v26  ;;  %20360 = vmatprep.mubr.f32.mxu1 %v29577_v1  ;;  %v14570_v1 = vld [vmem:[%s30005_s2 + $0x18d0] sm:$0xff]  ;;  %v14591_v26 = vld [vmem:[%s30005_s2 + $0x1938] sm:$0xff] }
0x1400   : > { %23103 = vmatprep.subr.bf16.mxu1 %v23102_v29  ;;  %v23154_v17 = vpack.c.bf16 %v14591_v26, %v14590_v12  ;;  %v14634_v26 = vld [vmem:[%s30005_s2 + $0x1a10] sm:$0xff] }
0x1402   : > { %20361 = vmatmul.mubr.f32.gmra.mrb[244].mxu1 %v29575_v38  ;;  %v23114_v38 = vpack.c.bf16 %v14571_v47, %v14570_v1  ;;  %v14608_v1 = vld [vmem:[%s30005_s2 + $0x1980] sm:$0xff]  ;;  %v14609_v47 = vld [vmem:[%s30005_s2 + $0x1988] sm:$0xff] }
0x1403   : > { %23105 = vmatpush3.bf16.msra.mxu1 %v23102_v29  ;;  %20363 = vmatprep.mubr.f32.mxu1 %v29581_v35  ;;  %v29723_v35 = vpop.f32.mrb[219].mxu0  ;;  %v14593_v29 = vld [vmem:[%s30005_s2 + $0x1948] sm:$0xff] }
0x1404   : > { %23107 = vmatprep.subr.bf16.mxu1 %v23106_v27  ;;  %v29731_v23 = vpop.f32.mrb[220].mxu0  ;;  %v23158_v25 = vpack.c.bf16 %v14593_v29, %v14592_v6  ;;  %v14636_v29 = vld [vmem:[%s30005_s2 + $0x1a20] sm:$0xff] }
0x1406   : > { %20364 = vmatmul.mubr.f32.gmra.mrb[246].mxu1 %v29579_v7  ;;  %v23118_v7 = vpack.c.bf16 %v14573_v42, %v14572_v32  ;;  %v14610_v32 = vld [vmem:[%s30005_s2 + $0x1990] sm:$0xff]  ;;  %v14611_v42 = vld [vmem:[%s30005_s2 + $0x1998] sm:$0xff] }
0x1407   : > { %23109 = vmatpush3.bf16.msra.mxu1 %v23106_v27  ;;  %20426 = vmatprep.mubr.f32.mxu1 %v29585_v58  ;;  %v29733_v58 = vpop.f32.mrb[221].mxu0  ;;  %v14595_v27 = vld [vmem:[%s30005_s2 + $0x1958] sm:$0xff] }
0x1408   : > { %23111 = vmatprep.subr.bf16.mxu1 %v23110_v62  ;;  %v29741_v40 = vpop.f32.mrb[222].mxu0 }
0x1409   : > { %v29743_v56 = vpop.f32.mrb[223].mxu0 }
0x140a   : > { %v29751_v9 = vpop.f32.mrb[224].mxu0 }
0x140b   : > { %23113 = vmatpush3.bf16.msra.mxu1 %v23110_v62  ;;  %v29759_v30 = vpop.f32.mrb[225].mxu0 }
0x140c   : > { %23115 = vmatprep.subr.bf16.mxu1 %v23114_v38  ;;  %v29768_v41 = vpop.f32.mrb[226].mxu0 }
0x140d   : > { %v29771_v50 = vpop.f32.mrb[227].mxu0 }
0x140f   : > { %23117 = vmatpush3.bf16.msra.mxu1 %v23114_v38  ;;  %v23190_v38 = vpack.c.bf16 %v14609_v47, %v14608_v1  ;;  %v14657_v1 = vld [vmem:[%s30005_s2 + $0x1a88] sm:$0xff] }
0x1410   : > { %23119 = vmatprep.subr.bf16.mxu1 %v23118_v7 }
0x1413   : > { %23121 = vmatpush3.bf16.msra.mxu1 %v23118_v7  ;;  %v23194_v7 = vpack.c.bf16 %v14611_v42, %v14610_v32  ;;  %v14659_v32 = vld [vmem:[%s30005_s2 + $0x1a98] sm:$0xff] }
0x1414   : > { %23123 = vmatprep.subr.bf16.mxu1 %v23122_v48 }
0x1417   : > { %23125 = vmatpush3.bf16.msra.mxu1 %v23122_v48  ;;  %v23198_v48 = vpack.c.bf16 %v14613_v33, %v14612_v5  ;;  %v14661_v5 = vld [vmem:[%s30005_s2 + $0x1aa8] sm:$0xff] }
0x1418   : > { %23143 = vmatprep.subr.bf16.mxu1 %v23142_v21 }
0x141a   : > { %20427 = vmatmul.mubr.f32.vlgmr.msra.gmra.mrb[240].mxu1 %v29583_v46  ;;  %v29780_v46 = vpop.f32.mrb[228].mxu0 }
0x141b   : > { %23145 = vmatpush3.bf16.msra.mxu1 %v23142_v21  ;;  %20429 = vmatprep.mubr.f32.mxu1 %v29589_v36  ;;  %v29783_v36 = vpop.f32.mrb[229].mxu0  ;;  %v14617_v21 = vld [vmem:[%s30005_s2 + $0x19c8] sm:$0xff] }
0x141c   : > { %23147 = vmatprep.subr.bf16.mxu1 %v23146_v13 }
0x141e   : > { %20430 = vmatmul.mubr.f32.gmra.mrb[242].mxu1 %v29587_v52  ;;  %v29792_v52 = vpop.f32.mrb[230].mxu0 }
0x141f   : > { %23149 = vmatpush3.bf16.msra.mxu1 %v23146_v13  ;;  %20432 = vmatprep.mubr.f32.mxu1 %v29593_v51  ;;  %v29795_v51 = vpop.f32.mrb[231].mxu0 }
0x1420   : > { %23151 = vmatprep.subr.bf16.mxu1 %v23150_v43 }
0x1422   : > { %20433 = vmatmul.mubr.f32.gmra.mrb[244].mxu1 %v29591_v15  ;;  %v23162_v15 = vpack.c.bf16 %v14595_v27, %v14594_v55  ;;  %v14638_v27 = vld [vmem:[%s30005_s2 + $0x1a30] sm:$0xff] }
0x1423   : > { %23153 = vmatpush3.bf16.msra.mxu1 %v23150_v43  ;;  %20435 = vmatprep.mubr.f32.mxu1 %v29597_v8  ;;  %v14596_v8 = vld [vmem:[%s30005_s2 + $0x1960] sm:$0xff]  ;;  %v14633_v43 = vld [vmem:[%s30005_s2 + $0x1a08] sm:$0xff] }
0x1424   : > { %23155 = vmatprep.subr.bf16.mxu1 %v23154_v17  ;;  %v23166_v39 = vpack.c.bf16 %v14597_v22, %v14596_v8  ;;  %v23238_v12 = vpack.c.bf16 %v14633_v43, %v14632_v34  ;;  %v14641_v8 = vld [vmem:[%s30005_s2 + $0x1a48] sm:$0xff]  ;;  %v14643_v22 = vld [vmem:[%s30005_s2 + $0x1a58] sm:$0xff] }
0x1426   : > { %20436 = vmatmul.mubr.f32.gmra.mrb[246].mxu1 %v29595_v63  ;;  %v14598_v63 = vld [vmem:[%s30005_s2 + $0x1970] sm:$0xff] }
0x1427   : > { %23157 = vmatpush3.bf16.msra.mxu1 %v23154_v17  ;;  %20498 = vmatprep.mubr.f32.mxu1 %v29601_v11  ;;  %v14599_v11 = vld [vmem:[%s30005_s2 + $0x1978] sm:$0xff] }
0x1428   : > { %23159 = vmatprep.subr.bf16.mxu1 %v23158_v25  ;;  %v23170_v62 = vpack.c.bf16 %v14599_v11, %v14598_v63  ;;  %v14635_v17 = vld [vmem:[%s30005_s2 + $0x1a18] sm:$0xff] }
0x1429   : > { %v23242_v6 = vpack.c.bf16 %v14635_v17, %v14634_v26 }
0x142b   : > { %23161 = vmatpush3.bf16.msra.mxu1 %v23158_v25  ;;  %v14637_v25 = vld [vmem:[%s30005_s2 + $0x1a28] sm:$0xff] }
0x142c   : > { %23163 = vmatprep.subr.bf16.mxu1 %v23162_v15  ;;  %v23246_v55 = vpack.c.bf16 %v14637_v25, %v14636_v29 }
0x142f   : > { %23165 = vmatpush3.bf16.msra.mxu1 %v23162_v15  ;;  %v14639_v15 = vld [vmem:[%s30005_s2 + $0x1a38] sm:$0xff] }
0x1430   : > { %23167 = vmatprep.subr.bf16.mxu1 %v23166_v39 }
0x1433   : > { %23169 = vmatpush3.bf16.msra.mxu1 %v23166_v39  ;;  %v14645_v39 = vld [vmem:[%s30005_s2 + $0x1a68] sm:$0xff] }
0x1434   : > { %23171 = vmatprep.subr.bf16.mxu1 %v23170_v62 }
0x1437   : > { %23173 = vmatpush3.bf16.msra.mxu1 %v23170_v62  ;;  %v14656_v62 = vld [vmem:[%s30005_s2 + $0x1a80] sm:$0xff] }
0x1438   : > { %23191 = vmatprep.subr.bf16.mxu1 %v23190_v38  ;;  %v23286_v47 = vpack.c.bf16 %v14657_v1, %v14656_v62 }
0x143a   : > { %20499 = vmatmul.mubr.f32.vlgmr.msra.gmra.mrb[240].mxu1 %v29599_v53  ;;  %v23202_v53 = vpack.c.bf16 %v14615_v49, %v14614_v18  ;;  %v14663_v18 = vld [vmem:[%s30005_s2 + $0x1ab8] sm:$0xff]  ;;  %v14665_v49 = vld [vmem:[%s30005_s2 + $0x1ac8] sm:$0xff] }
0x143b   : > { %23193 = vmatpush3.bf16.msra.mxu1 %v23190_v38  ;;  %20501 = vmatprep.mubr.f32.mxu1 %v29605_v31  ;;  %v14616_v31 = vld [vmem:[%s30005_s2 + $0x19c0] sm:$0xff]  ;;  %v14658_v38 = vld [vmem:[%s30005_s2 + $0x1a90] sm:$0xff] }
0x143c   : > { %23195 = vmatprep.subr.bf16.mxu1 %v23194_v7  ;;  %v23290_v42 = vpack.c.bf16 %v14659_v32, %v14658_v38 }
0x143e   : > { %20502 = vmatmul.mubr.f32.gmra.mrb[242].mxu1 %v29603_v60  ;;  %v23206_v60 = vpack.c.bf16 %v14617_v21, %v14616_v31  ;;  %v14669_v31 = vld [vmem:[%s30005_s2 + $0x1ae8] sm:$0xff] }
0x143f   : > { %23197 = vmatpush3.bf16.msra.mxu1 %v23194_v7  ;;  %20504 = vmatprep.mubr.f32.mxu1 %v29609_v14  ;;  %v14618_v14 = vld [vmem:[%s30005_s2 + $0x19d0] sm:$0xff]  ;;  %v14660_v7 = vld [vmem:[%s30005_s2 + $0x1aa0] sm:$0xff] }
0x1440   : > { %23199 = vmatprep.subr.bf16.mxu1 %v23198_v48  ;;  %v23294_v33 = vpack.c.bf16 %v14661_v5, %v14660_v7 }
0x1442   : > { %20505 = vmatmul.mubr.f32.gmra.mrb[244].mxu1 %v29607_v44  ;;  %v23210_v44 = vpack.c.bf16 %v14619_v54, %v14618_v14  ;;  %v14673_v14 = vld [vmem:[%s30006_s3 + $0x5] ss:$0 sm:$0xff] }
0x1443   : > { %23201 = vmatpush3.bf16.msra.mxu1 %v23198_v48  ;;  %20507 = vmatprep.mubr.f32.mxu1 %v29613_v59  ;;  %v14620_v59 = vld [vmem:[%s30005_s2 + $0x19e0] sm:$0xff]  ;;  %v14662_v48 = vld [vmem:[%s30005_s2 + $0x1ab0] sm:$0xff] }
0x1444   : > { %23203 = vmatprep.subr.bf16.mxu1 %v23202_v53  ;;  %v23214_v13 = vpack.c.bf16 %v14621_v10, %v14620_v59 }
0x1446   : > { %20508 = vmatmul.mubr.f32.gmra.mrb[246].mxu1 %v29611_v37  ;;  %v14622_v37 = vld [vmem:[%s30005_s2 + $0x19f0] sm:$0xff] }
0x1447   : > { %23205 = vmatpush3.bf16.msra.mxu1 %v23202_v53  ;;  %20570 = vmatprep.mubr.f32.mxu1 %v29623_v57  ;;  %v14623_v57 = vld [vmem:[%s30005_s2 + $0x19f8] sm:$0xff] }
0x1448   : > { %23207 = vmatprep.subr.bf16.mxu1 %v23206_v60  ;;  %v23218_v45 = vpack.c.bf16 %v14623_v57, %v14622_v37  ;;  %v14667_v53 = vld [vmem:[%s30005_s2 + $0x1ad8] sm:$0xff] }
0x144b   : > { %23209 = vmatpush3.bf16.msra.mxu1 %v23206_v60 }
0x144c   : > { %23211 = vmatprep.subr.bf16.mxu1 %v23210_v44 }
0x144f   : > { %23213 = vmatpush3.bf16.msra.mxu1 %v23210_v44 }
0x1450   : > { %23215 = vmatprep.subr.bf16.mxu1 %v23214_v13 }
0x1453   : > { %23217 = vmatpush3.bf16.msra.mxu1 %v23214_v13 }
0x1454   : > { %23219 = vmatprep.subr.bf16.mxu1 %v23218_v45 }
0x1457   : > { %23221 = vmatpush3.bf16.msra.mxu1 %v23218_v45 }
0x1458   : > { %23239 = vmatprep.subr.bf16.mxu1 %v23238_v12 }
0x145a   : > { %20571 = vmatmul.mubr.f32.vlgmr.msra.gmra.mrb[240].mxu1 %v29615_v0  ;;  %v23250_v0 = vpack.c.bf16 %v14639_v15, %v14638_v27 }
0x145b   : > { %23241 = vmatpush3.bf16.msra.mxu1 %v23238_v12  ;;  %20573 = vmatprep.mubr.f32.mxu1 %v29657_v16  ;;  %v14640_v16 = vld [vmem:[%s30005_s2 + $0x1a40] sm:$0xff] }
0x145c   : > { %23243 = vmatprep.subr.bf16.mxu1 %v23242_v6 }
0x145e   : > { %20574 = vmatmul.mubr.f32.gmra.mrb[242].mxu1 %v29649_v20  ;;  %v23254_v20 = vpack.c.bf16 %v14641_v8, %v14640_v16 }
0x145f   : > { %23245 = vmatpush3.bf16.msra.mxu1 %v23242_v6  ;;  %20576 = vmatprep.mubr.f32.mxu1 %v29667_v2  ;;  %v14642_v2 = vld [vmem:[%s30005_s2 + $0x1a50] sm:$0xff] }
0x1460   : > { %23247 = vmatprep.subr.bf16.mxu1 %v23246_v55 }
0x1462   : > { %20577 = vmatmul.mubr.f32.gmra.mrb[244].mxu1 %v29659_v19  ;;  %v23258_v19 = vpack.c.bf16 %v14643_v22, %v14642_v2 }
0x1463   : > { %23249 = vmatpush3.bf16.msra.mxu1 %v23246_v55  ;;  %20579 = vmatprep.mubr.f32.mxu1 %v29677_v61  ;;  %v14644_v61 = vld [vmem:[%s30005_s2 + $0x1a60] sm:$0xff] }
0x1464   : > { %23251 = vmatprep.subr.bf16.mxu1 %v23250_v0  ;;  %v23262_v63 = vpack.c.bf16 %v14645_v39, %v14644_v61 }
0x1466   : > { %20580 = vmatmul.mubr.f32.gmra.mrb[246].mxu1 %v29669_v4  ;;  %v14646_v4 = vld [vmem:[%s30005_s2 + $0x1a70] sm:$0xff] }
0x1467   : > { %23253 = vmatpush3.bf16.msra.mxu1 %v23250_v0  ;;  %20642 = vmatprep.mubr.f32.mxu1 %v29687_v28  ;;  %v14647_v28 = vld [vmem:[%s30005_s2 + $0x1a78] sm:$0xff] }
0x1468   : > { %23255 = vmatprep.subr.bf16.mxu1 %v23254_v20  ;;  %v23266_v11 = vpack.c.bf16 %v14647_v28, %v14646_v4 }
0x146b   : > { %23257 = vmatpush3.bf16.msra.mxu1 %v23254_v20 }
0x146c   : > { %23259 = vmatprep.subr.bf16.mxu1 %v23258_v19 }
0x146f   : > { %23261 = vmatpush3.bf16.msra.mxu1 %v23258_v19 }
0x1470   : > { %23263 = vmatprep.subr.bf16.mxu1 %v23262_v63 }
0x1473   : > { %23265 = vmatpush3.bf16.msra.mxu1 %v23262_v63 }
0x1474   : > { %23267 = vmatprep.subr.bf16.mxu1 %v23266_v11 }
0x1477   : > { %23269 = vmatpush3.bf16.msra.mxu1 %v23266_v11 }
0x1478   : > { %23287 = vmatprep.subr.bf16.mxu1 %v23286_v47 }
0x147a   : > { %20643 = vmatmul.mubr.f32.vlgmr.msra.gmra.mrb[240].mxu1 %v29679_v24  ;;  %v23298_v24 = vpack.c.bf16 %v14663_v18, %v14662_v48 }
0x147b   : > { %23289 = vmatpush3.bf16.msra.mxu1 %v23286_v47  ;;  %20645 = vmatprep.mubr.f32.mxu1 %v29723_v35  ;;  %v14664_v35 = vld [vmem:[%s30005_s2 + $0x1ac0] sm:$0xff] }
0x147c   : > { %23291 = vmatprep.subr.bf16.mxu1 %v23290_v42 }
0x147e   : > { %20646 = vmatmul.mubr.f32.gmra.mrb[242].mxu1 %v29721_v3  ;;  %v23302_v3 = vpack.c.bf16 %v14665_v49, %v14664_v35 }
0x147f   : > { %23293 = vmatpush3.bf16.msra.mxu1 %v23290_v42  ;;  %20648 = vmatprep.mubr.f32.mxu1 %v29733_v58  ;;  %v14666_v58 = vld [vmem:[%s30005_s2 + $0x1ad0] sm:$0xff] }
0x1480   : > { %23295 = vmatprep.subr.bf16.mxu1 %v23294_v33 }
0x1482   : > { %20649 = vmatmul.mubr.f32.gmra.mrb[244].mxu1 %v29731_v23  ;;  %v23306_v23 = vpack.c.bf16 %v14667_v53, %v14666_v58 }
0x1483   : > { %23297 = vmatpush3.bf16.msra.mxu1 %v23294_v33  ;;  %20651 = vmatprep.mubr.f32.mxu1 %v29743_v56  ;;  %v14668_v56 = vld [vmem:[%s30005_s2 + $0x1ae0] sm:$0xff] }
0x1484   : > { %23299 = vmatprep.subr.bf16.mxu1 %v23298_v24  ;;  %v23310_v21 = vpack.c.bf16 %v14669_v31, %v14668_v56 }
0x1486   : > { %20652 = vmatmul.mubr.f32.gmra.mrb[246].mxu1 %v29741_v40  ;;  %v14670_v40 = vld [vmem:[%s30005_s2 + $0x1af0] sm:$0xff] }
0x1487   : > { %23301 = vmatpush3.bf16.msra.mxu1 %v23298_v24  ;;  %20714 = vmatprep.mubr.f32.mxu1 %v29759_v30  ;;  %v14671_v30 = vld [vmem:[%s30005_s2 + $0x1af8] sm:$0xff] }
0x1488   : > { %23303 = vmatprep.subr.bf16.mxu1 %v23302_v3  ;;  %v23314_v60 = vpack.c.bf16 %v14671_v30, %v14670_v40 }
0x148b   : > { %23305 = vmatpush3.bf16.msra.mxu1 %v23302_v3 }
0x148c   : > { %23307 = vmatprep.subr.bf16.mxu1 %v23306_v23 }
0x148f   : > { %23309 = vmatpush3.bf16.msra.mxu1 %v23306_v23 }
0x1490   : > { %23311 = vmatprep.subr.bf16.mxu1 %v23310_v21 }
0x1493   : > { %23313 = vmatpush3.bf16.msra.mxu1 %v23310_v21 }
0x1494   : > { %23315 = vmatprep.subr.bf16.mxu1 %v23314_v60 }
0x1497   : > { %23317 = vmatpush3.bf16.msra.mxu1 %v23314_v60 }
0x149a   : > { %20715 = vmatmul.mubr.f32.vlgmr.msra.gmra.mrb[240].mxu1 %v29751_v9 }
0x149b   : > { %20717 = vmatprep.mubr.f32.mxu1 %v29771_v50 }
0x149e   : > { %20718 = vmatmul.mubr.f32.gmra.mrb[242].mxu1 %v29768_v41 }
0x149f   : > { %20720 = vmatprep.mubr.f32.mxu1 %v29783_v36 }
0x14a2   : > { %20721 = vmatmul.mubr.f32.gmra.mrb[244].mxu1 %v29780_v46 }
0x14a3   : > { %20723 = vmatprep.mubr.f32.mxu1 %v29795_v51 }
0x14a6   : > { %20724 = vmatmul.mubr.f32.gmra.mrb[246].mxu1 %v29792_v52 }
0x156d   : > { %v20716_v9 = vpop.f32.mrb[240].mxu1 }
0x156e   : > { %v13240_v50 = vadd.f32 %v20716_v9, %v14673_v14  ;;  %v13184_v41 = vpop.f32.mrb[241].mxu1 }
0x156f   : > { %v13239_v54 = vadd.f32 %v14673_v14, %v13184_v41 }
0x1570   : > { %13248 = vst [vmem:[%s197_s7 + $0x8] sm:$0xff] %v13240_v50 }
0x1571   : > { %13247 = vst [vmem:[%s197_s7] sm:$0xff] %v13239_v54  ;;  %v20719_v46 = vpop.f32.mrb[242].mxu1 }
0x1572   : > { %v13242_v36 = vadd.f32 %v20719_v46, %v14673_v14  ;;  %v13194_v51 = vpop.f32.mrb[243].mxu1 }
0x1573   : > { %v13241_v44 = vadd.f32 %v14673_v14, %v13194_v51 }
0x1574   : > { %13250 = vst [vmem:[%s197_s7 + $0x18] sm:$0xff] %v13242_v36 }
0x1575   : > { %13249 = vst [vmem:[%s197_s7 + $0x10] sm:$0xff] %v13241_v44  ;;  %v20722_v52 = vpop.f32.mrb[244].mxu1 }
0x1576   : > { %v13244_v59 = vadd.f32 %v20722_v52, %v14673_v14  ;;  %v13204_v10 = vpop.f32.mrb[245].mxu1 }
0x1577   : > { %v13243_v13 = vadd.f32 %v14673_v14, %v13204_v10 }
0x1578   : > { %13252 = vst [vmem:[%s197_s7 + $0x28] sm:$0xff] %v13244_v59 }
0x1579   : > { %13251 = vst [vmem:[%s197_s7 + $0x20] sm:$0xff] %v13243_v13  ;;  %v20725_v37 = vpop.f32.mrb[246].mxu1 }
0x157a   : > { %v13246_v57 = vadd.f32 %v20725_v37, %v14673_v14  ;;  %v13214_v45 = vpop.f32.mrb[247].mxu1 }
0x157b   : > { %v13245_v34 = vadd.f32 %v14673_v14, %v13214_v45 }
0x157c   : > { %13254 = vst [vmem:[%s197_s7 + $0x38] sm:$0xff] %v13246_v57 }
0x157d   : > { %13253 = vst [vmem:[%s197_s7 + $0x30] sm:$0xff] %v13245_v34 }
0x157e PF: > { %s14_s15 = sadd.s32 1, %s24067_s15  }
0x157f   : > { %p11_p4 = scmp.ge.s32.totalorder %s14_s15, 4  }
0x1581   :  { %13 = sbr.rel (!%p11_p4) target bundleno = 1 (0x1), region = 132 }

</bundles_post_ra>
